<compile_context>
chip_gen: v6e
topology: v6e:2x2x1
jax: 0.10.0
libtpu: 0.0.40
codegen_flags: <defaults>
</compile_context>

<pallas_src>
import math

import jax
import jax.numpy as jnp
from jax.experimental import pallas as pl
from jax.experimental.pallas import tpu as pltpu


# ============================================================================
# In-kernel helpers (traced inside the fused Pallas kernel)
# ============================================================================
def _pos_in_image(nrows, h_img):
    """Row index within each image for a (N*H, ...) slab.  h_img must be 2^k."""
    r = jax.lax.broadcasted_iota(jnp.int32, (nrows, 1), 0)
    return jnp.bitwise_and(r, h_img - 1)


def _taps3(xb, h_img):
    """[prev | cur | next] row-tap slab for a 3x3 pad-1 conv.  xb: (N*H, W*C) bf16."""
    p = _pos_in_image(xb.shape[0], h_img)
    z = jnp.zeros_like(xb)
    prev = jnp.where(p >= 1, jnp.roll(xb, 1, axis=0), z)
    nxt = jnp.where(p <= h_img - 2, jnp.roll(xb, -1, axis=0), z)
    return jnp.concatenate([prev, xb, nxt], axis=1)


def _taps4(xb, h_img):
    """[r-1 | r | r+1 | r+2] row-tap slab for the 4x4 stride-2 pad-1 down conv."""
    p = _pos_in_image(xb.shape[0], h_img)
    z = jnp.zeros_like(xb)
    prev = jnp.where(p >= 1, jnp.roll(xb, 1, axis=0), z)
    nxt = jnp.where(p <= h_img - 2, jnp.roll(xb, -1, axis=0), z)
    nxt2 = jnp.where(p <= h_img - 3, jnp.roll(xb, -2, axis=0), z)
    return jnp.concatenate([prev, xb, nxt, nxt2], axis=1)


def _pool_mats(c, w):
    """Small BatchNorm pooling matrices: (W*C, C) lane->channel pool and its
    (C, W*C) broadcast-back partner (c must be a power of two)."""
    wc = w * c
    lane = jax.lax.broadcasted_iota(jnp.int32, (wc, c), 0)
    chan = jax.lax.broadcasted_iota(jnp.int32, (wc, c), 1)
    m_pc = (jnp.bitwise_and(lane, c - 1) == chan).astype(jnp.float32)
    chan_r = jax.lax.broadcasted_iota(jnp.int32, (c, wc), 0)
    lane_r = jax.lax.broadcasted_iota(jnp.int32, (c, wc), 1)
    m_cp = (jnp.bitwise_and(lane_r, c - 1) == chan_r).astype(jnp.float32)
    return m_pc, m_cp


def _batchnorm(h, gamma_row, beta_row, m_pc, m_cp, inv_count, eps=1e-5):
    """Training-mode BatchNorm2d (batch statistics) on a (N*H, W*C) f32 slab."""
    colsum = jnp.sum(h, axis=0, keepdims=True)
    mean = jnp.dot(jnp.dot(colsum, m_pc, preferred_element_type=jnp.float32),
                   m_cp, preferred_element_type=jnp.float32) * inv_count
    d = h - mean
    sq = jnp.sum(d * d, axis=0, keepdims=True)
    var = jnp.dot(jnp.dot(sq, m_pc, preferred_element_type=jnp.float32),
                  m_cp, preferred_element_type=jnp.float32) * inv_count
    scale = gamma_row * jax.lax.rsqrt(var + eps)
    return d * scale + beta_row


def _rows_downsample_mat(rows_out, rows_in):
    """(N*H/2, N*H) 0/1 matrix keeping every second row (stride-2 row subsample)."""
    p = jax.lax.broadcasted_iota(jnp.int32, (rows_out, rows_in), 0)
    r = jax.lax.broadcasted_iota(jnp.int32, (rows_out, rows_in), 1)
    return (r == 2 * p).astype(jnp.float32)


def _rows_interleave_mats(rows_out, rows_in):
    """(N*2H, N*H) 0/1 pair scattering even / odd transposed-conv output rows."""
    p = jax.lax.broadcasted_iota(jnp.int32, (rows_out, rows_in), 0)
    r = jax.lax.broadcasted_iota(jnp.int32, (rows_out, rows_in), 1)
    return ((p == 2 * r).astype(jnp.float32), (p == 2 * r + 1).astype(jnp.float32))


# ============================================================================
# Fused UNet kernel factory
# ============================================================================
def make_unet_kernel(meta):
    n_img = meta['n']
    h0, w0 = meta['h0'], meta['w0']
    c_img, c0, tdim = meta['c_img'], meta['c0'], meta['tdim']
    blocks = meta['blocks']
    bf16, f32 = jnp.bfloat16, jnp.float32

    def kernel(*refs):
        it = iter(refs)
        x_ref = next(it)
        emb_ref = next(it)
        rows_ref = next(it)
        tmlpw_ref = next(it)
        conv0_ref = next(it)
        blk_refs = [tuple(next(it) for _ in range(5 if bm['up'] else 4))
                    for bm in blocks]
        outb_ref = next(it)
        o_ref = next(it)

        def row(slot, width):
            return rows_ref[slot:slot + 1, 0:width]          # (1, width) f32

        # ---- shared time MLP: t = relu(emb @ Wt + bt) --------------------------
        t_sh = jnp.dot(emb_ref[...].astype(bf16), tmlpw_ref[...],
                       preferred_element_type=f32) + row(meta['slot_tmlp_b'], tdim)
        t_sh = jnp.maximum(t_sh, 0.0).astype(bf16)           # (N, tdim)

        # ---- conv0 (3x3, no activation) -----------------------------------------
        x0 = x_ref[...]                                      # (N*H0, W0*Cimg) bf16
        x = jnp.dot(_taps3(x0, h0), conv0_ref[...],
                    preferred_element_type=f32) + row(meta['slot_conv0_b'], w0 * c0)

        # ---- UNet Blocks (all intermediates + residuals stay in VMEM) -----------
        def run_block(x_in, r_in, bm, brefs):
            h_img, w_img = bm['h'], bm['w']
            cout, up = bm['cout'], bm['up']
            wc = w_img * cout
            base = bm['slot']
            nrows = x_in.shape[0]
            inv_cnt = 1.0 / float(n_img * h_img * w_img)
            m_pc, m_cp = _pool_mats(cout, w_img)

            # conv1 + bias + ReLU: one batched MXU dot over images and taps.
            taps = _taps3(x_in.astype(bf16), h_img)
            if up:  # conv1(cat(x, r)) == [taps(x) | taps(r)] @ vstack(B_x, B_r)
                taps = jnp.concatenate([taps, _taps3(r_in.astype(bf16), h_img)],
                                       axis=1)
            a = jnp.dot(taps, brefs[0][...],
                        preferred_element_type=f32) + row(base + 0, wc)
            a = jnp.maximum(a, 0.0)
            a = _batchnorm(a, row(base + 1, wc), row(base + 2, wc),
                           m_pc, m_cp, inv_cnt)

            # time embedding: relu(t @ Wb + bb), broadcast over the rows of each image
            te = jnp.maximum(
                jnp.dot(t_sh, brefs[2][...], preferred_element_type=f32)
                + row(base + 3, wc), 0.0)                    # (N, wc)
            te_rows = jnp.concatenate(
                [jnp.broadcast_to(te[i:i + 1, :], (h_img, wc))
                 for i in range(n_img)], axis=0)
            a = a + te_rows

            # conv2 + bias + ReLU + BatchNorm2
            a = jnp.dot(_taps3(a.astype(bf16), h_img), brefs[1][...],
                        preferred_element_type=f32) + row(base + 4, wc)
            a = jnp.maximum(a, 0.0)
            a = _batchnorm(a, row(base + 5, wc), row(base + 6, wc),
                           m_pc, m_cp, inv_cnt)

            ab = a.astype(bf16)
            if up:
                # ConvTranspose2d(4,2,1): even/odd output-row phases + interleave.
                p = _pos_in_image(nrows, h_img)
                z = jnp.zeros_like(ab)
                prev = jnp.where(p >= 1, jnp.roll(ab, 1, axis=0), z)
                nxt = jnp.where(p <= h_img - 2, jnp.roll(ab, -1, axis=0), z)
                y_even = jnp.dot(jnp.concatenate([prev, ab], axis=1),
                                 brefs[3][...], preferred_element_type=f32)
                y_odd = jnp.dot(jnp.concatenate([ab, nxt], axis=1),
                                brefs[4][...], preferred_element_type=f32)
                ev, od = _rows_interleave_mats(2 * nrows, nrows)
                out = (jnp.dot(ev, y_even, preferred_element_type=f32)
                       + jnp.dot(od, y_odd, preferred_element_type=f32))
                out = out + row(base + 7, 2 * w_img * cout)
            else:
                # Conv2d(4,2,1): all rows in one dot, then keep even rows.
                y_full = jnp.dot(_taps4(ab, h_img), brefs[3][...],
                                 preferred_element_type=f32)
                ds = _rows_downsample_mat(nrows // 2, nrows)
                out = (jnp.dot(ds, y_full, preferred_element_type=f32)
                       + row(base + 7, (w_img // 2) * cout))
            return out

        residuals = []
        for bi, bm in enumerate(blocks):
            if bm['up']:
                x = run_block(x, residuals.pop(), bm, blk_refs[bi])
            else:
                x = run_block(x, None, bm, blk_refs[bi])
                residuals.append(x)

        # ---- final 1x1 conv ------------------------------------------------------
        y = jnp.dot(x.astype(bf16), outb_ref[...],
                    preferred_element_type=f32) + row(meta['slot_out_b'], w0 * c_img)
        o_ref[...] = y

    return kernel


# ============================================================================
# Wrapper-side weight transforms (plain JAX, run ONCE in prepare_unet)
# ============================================================================
def banded_conv2d(wt, w_in, w_out, stride, pad):
    """Conv2d weight (Cout,Cin,KH,KW) -> 2-D banded matrix (KH*w_in*Cin, w_out*Cout),
    row order (ky, x, ci) matching the in-kernel [prev|cur|next(|next2)] tap concat."""
    cout, cin, kh, kw = wt.shape
    x = jnp.arange(w_in)[:, None]
    xo = jnp.arange(w_out)[None, :]
    kx = x - stride * xo + pad
    valid = (kx >= 0) & (kx < kw)
    kxc = jnp.clip(kx, 0, kw - 1)
    wk = jnp.transpose(wt, (2, 3, 1, 0))                  # (KH, KW, Cin, Cout)
    g = wk[:, kxc, :, :]                                  # (KH, w_in, w_out, Cin, Cout)
    g = jnp.where(valid[None, :, :, None, None], g, 0.0)
    return jnp.transpose(g, (0, 1, 3, 2, 4)).reshape(kh * w_in * cin, w_out * cout)


def banded_convT_phases(w_ct, w_in):
    """ConvTranspose2d(4,2,1) weight (Cin,Cout,4,4) -> even/odd phase matrices
    (2*w_in*Cin, 2*w_in*Cout): even pairs lanes [prev|cur] (ky=3,1), odd [cur|next]."""
    cin, cout, kh, kw = w_ct.shape
    w_out = 2 * w_in
    j = jnp.arange(w_in)[:, None]
    q = jnp.arange(w_out)[None, :]
    kj = q - 2 * j + 1
    valid = (kj >= 0) & (kj < kw)
    kjc = jnp.clip(kj, 0, kw - 1)
    wk = jnp.transpose(w_ct, (2, 3, 0, 1))                # (KH, KW, Cin, Cout)
    g = jnp.where(valid[None, :, :, None, None], wk[:, kjc, :, :], 0.0)
    b = jnp.transpose(g, (0, 1, 3, 2, 4)).reshape(kh, w_in * cin, w_out * cout)
    b_even = jnp.concatenate([b[3], b[1]], axis=0)
    b_odd = jnp.concatenate([b[2], b[0]], axis=0)
    return b_even, b_odd


def blockdiag_1x1(w, width):
    """1x1 conv weight (Cout, Cin, 1, 1) -> block-diagonal (width*Cin, width*Cout)."""
    w2 = w[:, :, 0, 0].T.astype(jnp.float32)
    eye = jnp.eye(width, dtype=jnp.float32)
    return jnp.einsum('xy,ij->xiyj', eye, w2).reshape(width * w2.shape[0],
                                                      width * w2.shape[1])


def _is_pow2(v):
    return v > 0 and (v & (v - 1)) == 0


def prepare_unet(params, n, h0, w0):
    """One-time weight transform: band conv weights into MXU-ready 2-D matrices and
    pack all per-channel vectors (tiled to the x*C+c lane layout) into one array."""
    f32, bf16 = jnp.float32, jnp.bfloat16
    c_img = params['conv0_w'].shape[1]
    c0 = params['conv0_w'].shape[0]
    tdim = params['time_w'].shape[1]

    rows_list = []

    def add_row(vec):
        rows_list.append(jnp.asarray(vec, f32).reshape(-1))
        return len(rows_list) - 1

    flops = [0]

    def dot_cost(m, mat):
        flops[0] += 2 * m * int(mat.shape[0]) * int(mat.shape[1])

    mats = []
    slot_tmlp_b = add_row(params['time_b'])
    tmlp_w = params['time_w'].T.astype(bf16)
    mats.append(tmlp_w)
    dot_cost(n, tmlp_w)

    conv0_mat = banded_conv2d(params['conv0_w'], w0, w0, 1, 1).astype(bf16)
    mats.append(conv0_mat)
    slot_conv0_b = add_row(jnp.tile(params['conv0_b'], w0))
    dot_cost(n * h0, conv0_mat)

    blocks = []
    h, w = h0, w0
    for bp in params['downs']:
        cout = bp['conv1_w'].shape[0]
        cin = bp['conv1_w'].shape[1]
        assert _is_pow2(h) and _is_pow2(cout)  # TODO(synk): general sizes need %-based masks/pools
        b1 = banded_conv2d(bp['conv1_w'], w, w, 1, 1).astype(bf16)
        b2 = banded_conv2d(bp['conv2_w'], w, w, 1, 1).astype(bf16)
        twt = jnp.tile(bp['time_w'].T.astype(f32), (1, w)).astype(bf16)
        bt = banded_conv2d(bp['tr_w'], w, w // 2, 2, 1).astype(bf16)
        slot = len(rows_list)
        add_row(jnp.tile(bp['conv1_b'], w)); add_row(jnp.tile(bp['bn1_g'], w))
        add_row(jnp.tile(bp['bn1_b'], w)); add_row(jnp.tile(bp['time_b'], w))
        add_row(jnp.tile(bp['conv2_b'], w)); add_row(jnp.tile(bp['bn2_g'], w))
        add_row(jnp.tile(bp['bn2_b'], w)); add_row(jnp.tile(bp['tr_b'], w // 2))
        mats += [b1, b2, twt, bt]
        m = n * h
        dot_cost(m, b1); dot_cost(m, b2); dot_cost(n, twt); dot_cost(m, bt)
        flops[0] += 2 * (m // 2) * m * int(bt.shape[1])
        blocks.append(dict(up=False, h=h, w=w, cin=cin, cout=cout, slot=slot))
        h, w = h // 2, w // 2

    for bp in params['ups']:
        cout = bp['conv1_w'].shape[0]
        in_ch = bp['conv1_w'].shape[1] // 2
        assert _is_pow2(h) and _is_pow2(cout)
        bx = banded_conv2d(bp['conv1_w'][:, :in_ch], w, w, 1, 1)
        br = banded_conv2d(bp['conv1_w'][:, in_ch:], w, w, 1, 1)
        b1 = jnp.concatenate([bx, br], axis=0).astype(bf16)
        b2 = banded_conv2d(bp['conv2_w'], w, w, 1, 1).astype(bf16)
        twt = jnp.tile(bp['time_w'].T.astype(f32), (1, w)).astype(bf16)
        bte, bto = banded_convT_phases(bp['tr_w'], w)
        bte, bto = bte.astype(bf16), bto.astype(bf16)
        slot = len(rows_list)
        add_row(jnp.tile(bp['conv1_b'], w)); add_row(jnp.tile(bp['bn1_g'], w))
        add_row(jnp.tile(bp['bn1_b'], w)); add_row(jnp.tile(bp['time_b'], w))
        add_row(jnp.tile(bp['conv2_b'], w)); add_row(jnp.tile(bp['bn2_g'], w))
        add_row(jnp.tile(bp['bn2_b'], w)); add_row(jnp.tile(bp['tr_b'], 2 * w))
        mats += [b1, b2, twt, bte, bto]
        m = n * h
        dot_cost(m, b1); dot_cost(m, b2); dot_cost(n, twt)
        dot_cost(m, bte); dot_cost(m, bto)
        flops[0] += 2 * 2 * (2 * m) * m * int(bte.shape[1])
        blocks.append(dict(up=True, h=h, w=w, cin=in_ch, cout=cout, slot=slot))
        h, w = 2 * h, 2 * w

    out_mat = blockdiag_1x1(params['out_w'], w0).astype(bf16)
    mats.append(out_mat)
    slot_out_b = add_row(jnp.tile(params['out_b'], w0))
    dot_cost(n * h0, out_mat)

    roww = max(int(r.shape[0]) for r in rows_list)
    roww = ((roww + 127) // 128) * 128
    rows = jnp.stack([jnp.pad(r, (0, roww - int(r.shape[0]))) for r in rows_list], 0)

    bytes_accessed = int(sum(a.size * a.dtype.itemsize for a in mats)
                         + rows.size * 4
                         + n * h0 * w0 * c_img * 2
                         + n * tdim * 4
                         + n * h0 * w0 * c_img * 4)
    transcendentals = int(8 * sum(b['w'] * b['cout'] for b in blocks))

    meta = dict(n=n, h0=h0, w0=w0, c_img=c_img, c0=c0, tdim=tdim, blocks=blocks,
                slot_tmlp_b=slot_tmlp_b, slot_conv0_b=slot_conv0_b,
                slot_out_b=slot_out_b, flops=int(flops[0]),
                transcendentals=transcendentals, bytes_accessed=bytes_accessed)
    return meta, tuple(mats), rows


# ============================================================================
# Forward wrapper
# ============================================================================
def sinusoidal_embedding(t, dim):
    # TODO(synk): SinusoidalNumberEmbedding source not provided; standard DDPM
    # half-sin / half-cos log-spaced embedding is used here.
    half = dim // 2
    freqs = jnp.exp(-math.log(10000.0) * jnp.arange(half, dtype=jnp.float32) / (half - 1))
    args = t.astype(jnp.float32)[:, None] * freqs[None, :]
    return jnp.concatenate([jnp.sin(args), jnp.cos(args)], axis=-1)


def make_forward(meta):
    n, h0, w0 = meta['n'], meta['h0'], meta['w0']
    c_img, tdim = meta['c_img'], meta['tdim']
    kernel = make_unet_kernel(meta)
    vspec = pl.BlockSpec(memory_space=pltpu.MemorySpace.VMEM)
    out_shape = jax.ShapeDtypeStruct((n * h0, w0 * c_img), jnp.float32)
    cost = pl.CostEstimate(flops=meta['flops'],
                           transcendentals=meta['transcendentals'],
                           bytes_accessed=meta['bytes_accessed'])

    @jax.jit
    def forward(mats, rows, x_nchw, timestep):
        x = jnp.transpose(x_nchw, (0, 2, 3, 1)).reshape(n * h0, w0 * c_img)
        x = x.astype(jnp.bfloat16)                       # bf16 activations to HBM/DMA
        emb = sinusoidal_embedding(timestep, tdim)
        inputs = [x, emb, rows] + list(mats)
        out2d = pl.pallas_call(
            kernel,
            out_shape=out_shape,
            in_specs=[vspec] * len(inputs),
            out_specs=vspec,
            compiler_params=pltpu.CompilerParams(vmem_limit_bytes=32 * 1024 * 1024),
            cost_estimate=cost,
        )(*inputs)
        out = out2d.reshape(n, h0, w0, c_img)
        return jnp.transpose(out, (0, 3, 1, 2))

    return forward


# ============================================================================
# Parameter init (PyTorch-style uniform) — forward-only; BN running stats are
# not updated (training-mode batch statistics are used, like the .train() path).
# ============================================================================
def _init_conv(key, cout, cin, k):
    kw, kb = jax.random.split(key)
    scale = 1.0 / math.sqrt(cin * k * k)
    return (jax.random.uniform(kw, (cout, cin, k, k), jnp.float32, -scale, scale),
            jax.random.uniform(kb, (cout,), jnp.float32, -scale, scale))


def _init_convT(key, cin, cout, k):
    kw, kb = jax.random.split(key)
    scale = 1.0 / math.sqrt(cout * k * k)
    return (jax.random.uniform(kw, (cin, cout, k, k), jnp.float32, -scale, scale),
            jax.random.uniform(kb, (cout,), jnp.float32, -scale, scale))


def _init_linear(key, dout, din):
    kw, kb = jax.random.split(key)
    scale = 1.0 / math.sqrt(din)
    return (jax.random.uniform(kw, (dout, din), jnp.float32, -scale, scale),
            jax.random.uniform(kb, (dout,), jnp.float32, -scale, scale))


def _init_block(key, in_ch, out_ch, time_dim, up):
    keys = jax.random.split(key, 4)
    p = {}
    p['time_w'], p['time_b'] = _init_linear(keys[0], out_ch, time_dim)
    conv1_in = 2 * in_ch if up else in_ch
    p['conv1_w'], p['conv1_b'] = _init_conv(keys[1], out_ch, conv1_in, 3)
    p['conv2_w'], p['conv2_b'] = _init_conv(keys[2], out_ch, out_ch, 3)
    p['bn1_g'] = jnp.ones((out_ch,), jnp.float32)
    p['bn1_b'] = jnp.zeros((out_ch,), jnp.float32)
    p['bn2_g'] = jnp.ones((out_ch,), jnp.float32)
    p['bn2_b'] = jnp.zeros((out_ch,), jnp.float32)
    if up:
        p['tr_w'], p['tr_b'] = _init_convT(keys[3], out_ch, out_ch, 4)
    else:
        p['tr_w'], p['tr_b'] = _init_conv(keys[3], out_ch, out_ch, 4)
    return p


def init_params(key, image_channels, down_channels, up_channels, time_emb_dim):
    n_down, n_up = len(down_channels) - 1, len(up_channels) - 1
    keys = jax.random.split(key, 3 + n_down + n_up)
    params = {}
    params['time_w'], params['time_b'] = _init_linear(keys[0], time_emb_dim, time_emb_dim)
    params['conv0_w'], params['conv0_b'] = _init_conv(keys[1], down_channels[0],
                                                      image_channels, 3)
    params['downs'] = [_init_block(keys[2 + i], down_channels[i], down_channels[i + 1],
                                   time_emb_dim, up=False) for i in range(n_down)]
    params['ups'] = [_init_block(keys[2 + n_down + i], up_channels[i], up_channels[i + 1],
                                 time_emb_dim, up=True) for i in range(n_up)]
    params['out_w'], params['out_b'] = _init_conv(keys[2 + n_down + n_up],
                                                  image_channels, up_channels[-1], 1)
    return params


# ============================================================================
if __name__ == "__main__":
    image_channels = 3
    down_channels = (8, 16, 32)
    up_channels = (32, 16, 8)
    time_emb_dim = 32
    N, H, W = 2, 16, 16

    key = jax.random.PRNGKey(0)
    kx, kt, kp = jax.random.split(key, 3)

    x = jax.random.normal(kx, (N, image_channels, H, W), jnp.float32)        # NCHW
    timestep = jax.random.randint(kt, (N,), 0, 1000).astype(jnp.float32)

    params = init_params(kp, image_channels, down_channels, up_channels, time_emb_dim)

    # One-time weight banding / packing (kept out of the jitted forward).
    meta, mats, rows = prepare_unet(params, N, H, W)
    forward = make_forward(meta)

    out = forward(mats, rows, x, timestep)
    out = jax.block_until_ready(out)

    assert out.shape == (N, image_channels, H, W), out.shape
    assert bool(jnp.all(jnp.isfinite(out)))
    print("KERNEL_OK")
</pallas_src>

<mosaic_0001>
module attributes {stable_mosaic.version = 11 : i64} {
  func.func @kernel(%arg0: memref<32x48xbf16, #tpu.memory_space<vmem>>, %arg1: memref<2x32xf32, #tpu.memory_space<vmem>>, %arg2: memref<35x256xf32, #tpu.memory_space<vmem>>, %arg3: memref<32x32xbf16, #tpu.memory_space<vmem>>, %arg4: memref<144x128xbf16, #tpu.memory_space<vmem>>, %arg5: memref<384x256xbf16, #tpu.memory_space<vmem>>, %arg6: memref<768x256xbf16, #tpu.memory_space<vmem>>, %arg7: memref<32x256xbf16, #tpu.memory_space<vmem>>, %arg8: memref<1024x128xbf16, #tpu.memory_space<vmem>>, %arg9: memref<384x256xbf16, #tpu.memory_space<vmem>>, %arg10: memref<768x256xbf16, #tpu.memory_space<vmem>>, %arg11: memref<32x256xbf16, #tpu.memory_space<vmem>>, %arg12: memref<1024x128xbf16, #tpu.memory_space<vmem>>, %arg13: memref<768x64xbf16, #tpu.memory_space<vmem>>, %arg14: memref<192x64xbf16, #tpu.memory_space<vmem>>, %arg15: memref<32x64xbf16, #tpu.memory_space<vmem>>, %arg16: memref<128x128xbf16, #tpu.memory_space<vmem>>, %arg17: memref<128x128xbf16, #tpu.memory_space<vmem>>, %arg18: memref<768x64xbf16, #tpu.memory_space<vmem>>, %arg19: memref<192x64xbf16, #tpu.memory_space<vmem>>, %arg20: memref<32x64xbf16, #tpu.memory_space<vmem>>, %arg21: memref<128x128xbf16, #tpu.memory_space<vmem>>, %arg22: memref<128x128xbf16, #tpu.memory_space<vmem>>, %arg23: memref<128x48xbf16, #tpu.memory_space<vmem>>, %arg24: memref<32x48xf32, #tpu.memory_space<vmem>>) attributes {dimension_semantics = [], scalar_prefetch = 0 : i64, scratch_operands = 0 : i64, tpu.core_type = #tpu.core_type<tc>} {
    %c0 = arith.constant 0 : index
    %c0_0 = arith.constant 0 : index
    %0 = vector.load %arg1[%c0, %c0_0] : memref<2x32xf32, #tpu.memory_space<vmem>>, vector<2x32xf32>
    %1 = arith.truncf %0 : vector<2x32xf32> to vector<2x32xbf16>
    %c0_1 = arith.constant 0 : index
    %c0_2 = arith.constant 0 : index
    %2 = vector.load %arg3[%c0_1, %c0_2] : memref<32x32xbf16, #tpu.memory_space<vmem>>, vector<32x32xbf16>
    %cst = arith.constant dense<0.000000e+00> : vector<2x32xf32>
    %3 = tpu.matmul %1, %2, %cst {dimension_numbers = #tpu.dot_dimension_numbers<[1], [0], [0], [1], [0, 0, 1, 1], [], []>} : vector<2x32xbf16>, vector<32x32xbf16>, vector<2x32xf32> -> vector<2x32xf32>
    %c0_3 = arith.constant 0 : index
    %c0_4 = arith.constant 0 : index
    %4 = vector.load %arg2[%c0_3, %c0_4] : memref<35x256xf32, #tpu.memory_space<vmem>>, vector<1x32xf32>
    %5 = vector.broadcast %4 : vector<1x32xf32> to vector<2x32xf32>
    %6 = arith.addf %3, %5 : vector<2x32xf32>
    %cst_5 = arith.constant 0.000000e+00 : f32
    %7 = vector.broadcast %cst_5 : f32 to vector<2x32xf32>
    %8 = arith.maximumf %6, %7 : vector<2x32xf32>
    %9 = arith.truncf %8 : vector<2x32xf32> to vector<2x32xbf16>
    %c0_6 = arith.constant 0 : index
    %c0_7 = arith.constant 0 : index
    %10 = vector.load %arg0[%c0_6, %c0_7] : memref<32x48xbf16, #tpu.memory_space<vmem>>, vector<32x48xbf16>
    %11 = tpu.iota {dimensions = array<i32: 0>} : vector<32x1xi32>
    %c15_i32 = arith.constant 15 : i32
    %12 = vector.broadcast %c15_i32 : i32 to vector<32x1xi32>
    %13 = arith.andi %11, %12 : vector<32x1xi32>
    %cst_8 = arith.constant 0.000000e+00 : bf16
    %14 = vector.broadcast %cst_8 : bf16 to vector<32x48xbf16>
    %c1_i32 = arith.constant 1 : i32
    %15 = vector.broadcast %c1_i32 : i32 to vector<32x1xi32>
    %16 = arith.cmpi sge, %13, %15 : vector<32x1xi32>
    %17 = vector.extract_strided_slice %10 {offsets = [31, 0], sizes = [1, 48], strides = [1, 1]} : vector<32x48xbf16> to vector<1x48xbf16>
    %18 = vector.extract_strided_slice %10 {offsets = [0, 0], sizes = [31, 48], strides = [1, 1]} : vector<32x48xbf16> to vector<31x48xbf16>
    %19 = tpu.concatenate %17, %18 in 0 : vector<1x48xbf16>, vector<31x48xbf16> -> vector<32x48xbf16>
    %20 = vector.shape_cast %16 : vector<32x1xi1> to vector<32x1xi1>
    %21 = vector.broadcast %20 : vector<32x1xi1> to vector<32x48xi1>
    %22 = arith.select %21, %19, %14 : vector<32x48xi1>, vector<32x48xbf16>
    %c14_i32 = arith.constant 14 : i32
    %23 = vector.broadcast %c14_i32 : i32 to vector<32x1xi32>
    %24 = arith.cmpi sle, %13, %23 : vector<32x1xi32>
    %25 = vector.extract_strided_slice %10 {offsets = [1, 0], sizes = [31, 48], strides = [1, 1]} : vector<32x48xbf16> to vector<31x48xbf16>
    %26 = vector.extract_strided_slice %10 {offsets = [0, 0], sizes = [1, 48], strides = [1, 1]} : vector<32x48xbf16> to vector<1x48xbf16>
    %27 = tpu.concatenate %25, %26 in 0 : vector<31x48xbf16>, vector<1x48xbf16> -> vector<32x48xbf16>
    %28 = vector.shape_cast %24 : vector<32x1xi1> to vector<32x1xi1>
    %29 = vector.broadcast %28 : vector<32x1xi1> to vector<32x48xi1>
    %30 = arith.select %29, %27, %14 : vector<32x48xi1>, vector<32x48xbf16>
    %31 = tpu.concatenate %22, %10, %30 in 1 : vector<32x48xbf16>, vector<32x48xbf16>, vector<32x48xbf16> -> vector<32x144xbf16>
    %c0_9 = arith.constant 0 : index
    %c0_10 = arith.constant 0 : index
    %32 = vector.load %arg4[%c0_9, %c0_10] : memref<144x128xbf16, #tpu.memory_space<vmem>>, vector<144x128xbf16>
    %cst_11 = arith.constant dense<0.000000e+00> : vector<32x128xf32>
    %33 = tpu.matmul %31, %32, %cst_11 {dimension_numbers = #tpu.dot_dimension_numbers<[1], [0], [0], [1], [0, 0, 1, 1], [], []>} : vector<32x144xbf16>, vector<144x128xbf16>, vector<32x128xf32> -> vector<32x128xf32>
    %c1 = arith.constant 1 : index
    %c0_12 = arith.constant 0 : index
    %34 = vector.load %arg2[%c1, %c0_12] : memref<35x256xf32, #tpu.memory_space<vmem>>, vector<1x128xf32>
    %35 = vector.broadcast %34 : vector<1x128xf32> to vector<32x128xf32>
    %36 = arith.addf %33, %35 : vector<32x128xf32>
    %37 = tpu.iota {dimensions = array<i32: 0>} : vector<256x16xi32>
    %38 = tpu.iota {dimensions = array<i32: 1>} : vector<256x16xi32>
    %c15_i32_13 = arith.constant 15 : i32
    %39 = vector.broadcast %c15_i32_13 : i32 to vector<256x16xi32>
    %40 = arith.andi %37, %39 : vector<256x16xi32>
    %41 = arith.cmpi eq, %40, %38 : vector<256x16xi32>
    %42 = arith.extui %41 : vector<256x16xi1> to vector<256x16xi32>
    %43 = arith.sitofp %42 : vector<256x16xi32> to vector<256x16xf32>
    %44 = tpu.iota {dimensions = array<i32: 0>} : vector<16x256xi32>
    %45 = tpu.iota {dimensions = array<i32: 1>} : vector<16x256xi32>
    %c15_i32_14 = arith.constant 15 : i32
    %46 = vector.broadcast %c15_i32_14 : i32 to vector<16x256xi32>
    %47 = arith.andi %45, %46 : vector<16x256xi32>
    %48 = arith.cmpi eq, %47, %44 : vector<16x256xi32>
    %49 = arith.extui %48 : vector<16x256xi1> to vector<16x256xi32>
    %50 = arith.sitofp %49 : vector<16x256xi32> to vector<16x256xf32>
    %51 = arith.truncf %36 : vector<32x128xf32> to vector<32x128xbf16>
    %52 = tpu.iota {dimensions = array<i32: 0>} : vector<32x1xi32>
    %c15_i32_15 = arith.constant 15 : i32
    %53 = vector.broadcast %c15_i32_15 : i32 to vector<32x1xi32>
    %54 = arith.andi %52, %53 : vector<32x1xi32>
    %cst_16 = arith.constant 0.000000e+00 : bf16
    %55 = vector.broadcast %cst_16 : bf16 to vector<32x128xbf16>
    %c1_i32_17 = arith.constant 1 : i32
    %56 = vector.broadcast %c1_i32_17 : i32 to vector<32x1xi32>
    %57 = arith.cmpi sge, %54, %56 : vector<32x1xi32>
    %58 = vector.extract_strided_slice %51 {offsets = [31, 0], sizes = [1, 128], strides = [1, 1]} : vector<32x128xbf16> to vector<1x128xbf16>
    %59 = vector.extract_strided_slice %51 {offsets = [0, 0], sizes = [31, 128], strides = [1, 1]} : vector<32x128xbf16> to vector<31x128xbf16>
    %60 = tpu.concatenate %58, %59 in 0 : vector<1x128xbf16>, vector<31x128xbf16> -> vector<32x128xbf16>
    %61 = vector.shape_cast %57 : vector<32x1xi1> to vector<32x1xi1>
    %62 = vector.broadcast %61 : vector<32x1xi1> to vector<32x128xi1>
    %63 = arith.select %62, %60, %55 : vector<32x128xi1>, vector<32x128xbf16>
    %c14_i32_18 = arith.constant 14 : i32
    %64 = vector.broadcast %c14_i32_18 : i32 to vector<32x1xi32>
    %65 = arith.cmpi sle, %54, %64 : vector<32x1xi32>
    %66 = vector.extract_strided_slice %51 {offsets = [1, 0], sizes = [31, 128], strides = [1, 1]} : vector<32x128xbf16> to vector<31x128xbf16>
    %67 = vector.extract_strided_slice %51 {offsets = [0, 0], sizes = [1, 128], strides = [1, 1]} : vector<32x128xbf16> to vector<1x128xbf16>
    %68 = tpu.concatenate %66, %67 in 0 : vector<31x128xbf16>, vector<1x128xbf16> -> vector<32x128xbf16>
    %69 = vector.shape_cast %65 : vector<32x1xi1> to vector<32x1xi1>
    %70 = vector.broadcast %69 : vector<32x1xi1> to vector<32x128xi1>
    %71 = arith.select %70, %68, %55 : vector<32x128xi1>, vector<32x128xbf16>
    %72 = tpu.concatenate %63, %51, %71 in 1 : vector<32x128xbf16>, vector<32x128xbf16>, vector<32x128xbf16> -> vector<32x384xbf16>
    %c0_19 = arith.constant 0 : index
    %c0_20 = arith.constant 0 : index
    %73 = vector.load %arg5[%c0_19, %c0_20] : memref<384x256xbf16, #tpu.memory_space<vmem>>, vector<384x256xbf16>
    %cst_21 = arith.constant dense<0.000000e+00> : vector<32x256xf32>
    %74 = tpu.matmul %72, %73, %cst_21 {dimension_numbers = #tpu.dot_dimension_numbers<[1], [0], [0], [1], [0, 0, 1, 1], [], []>} : vector<32x384xbf16>, vector<384x256xbf16>, vector<32x256xf32> -> vector<32x256xf32>
    %c2 = arith.constant 2 : index
    %c0_22 = arith.constant 0 : index
    %75 = vector.load %arg2[%c2, %c0_22] : memref<35x256xf32, #tpu.memory_space<vmem>>, vector<1x256xf32>
    %76 = vector.broadcast %75 : vector<1x256xf32> to vector<32x256xf32>
    %77 = arith.addf %74, %76 : vector<32x256xf32>
    %cst_23 = arith.constant 0.000000e+00 : f32
    %78 = vector.broadcast %cst_23 : f32 to vector<32x256xf32>
    %79 = arith.maximumf %77, %78 : vector<32x256xf32>
    %c3 = arith.constant 3 : index
    %c0_24 = arith.constant 0 : index
    %80 = vector.load %arg2[%c3, %c0_24] : memref<35x256xf32, #tpu.memory_space<vmem>>, vector<1x256xf32>
    %c4 = arith.constant 4 : index
    %c0_25 = arith.constant 0 : index
    %81 = vector.load %arg2[%c4, %c0_25] : memref<35x256xf32, #tpu.memory_space<vmem>>, vector<1x256xf32>
    %cst_26 = arith.constant dense<0.000000e+00> : vector<256xf32>
    %82 = vector.multi_reduction <add>, %79, %cst_26 [0] : vector<32x256xf32> to vector<256xf32>
    %83 = vector.shape_cast %82 : vector<256xf32> to vector<1x256xf32>
    %cst_27 = arith.constant dense<0.000000e+00> : vector<1x16xf32>
    %84 = tpu.matmul %83, %43, %cst_27 {dimension_numbers = #tpu.dot_dimension_numbers<[1], [0], [0], [1], [0, 0, 1, 1], [], []>} : vector<1x256xf32>, vector<256x16xf32>, vector<1x16xf32> -> vector<1x16xf32>
    %cst_28 = arith.constant dense<0.000000e+00> : vector<1x256xf32>
    %85 = tpu.matmul %84, %50, %cst_28 {dimension_numbers = #tpu.dot_dimension_numbers<[1], [0], [0], [1], [0, 0, 1, 1], [], []>} : vector<1x16xf32>, vector<16x256xf32>, vector<1x256xf32> -> vector<1x256xf32>
    %cst_29 = arith.constant 0.001953125 : f32
    %86 = vector.broadcast %cst_29 : f32 to vector<1x256xf32>
    %87 = arith.mulf %85, %86 : vector<1x256xf32>
    %88 = vector.broadcast %87 : vector<1x256xf32> to vector<32x256xf32>
    %89 = arith.subf %79, %88 : vector<32x256xf32>
    %90 = arith.mulf %89, %89 : vector<32x256xf32>
    %cst_30 = arith.constant dense<0.000000e+00> : vector<256xf32>
    %91 = vector.multi_reduction <add>, %90, %cst_30 [0] : vector<32x256xf32> to vector<256xf32>
    %92 = vector.shape_cast %91 : vector<256xf32> to vector<1x256xf32>
    %cst_31 = arith.constant dense<0.000000e+00> : vector<1x16xf32>
    %93 = tpu.matmul %92, %43, %cst_31 {dimension_numbers = #tpu.dot_dimension_numbers<[1], [0], [0], [1], [0, 0, 1, 1], [], []>} : vector<1x256xf32>, vector<256x16xf32>, vector<1x16xf32> -> vector<1x16xf32>
    %cst_32 = arith.constant dense<0.000000e+00> : vector<1x256xf32>
    %94 = tpu.matmul %93, %50, %cst_32 {dimension_numbers = #tpu.dot_dimension_numbers<[1], [0], [0], [1], [0, 0, 1, 1], [], []>} : vector<1x16xf32>, vector<16x256xf32>, vector<1x256xf32> -> vector<1x256xf32>
    %cst_33 = arith.constant 0.001953125 : f32
    %95 = vector.broadcast %cst_33 : f32 to vector<1x256xf32>
    %96 = arith.mulf %94, %95 : vector<1x256xf32>
    %cst_34 = arith.constant 9.99999974E-6 : f32
    %97 = vector.broadcast %cst_34 : f32 to vector<1x256xf32>
    %98 = arith.addf %96, %97 : vector<1x256xf32>
    %99 = math.rsqrt %98 : vector<1x256xf32>
    %100 = arith.mulf %80, %99 : vector<1x256xf32>
    %101 = vector.broadcast %100 : vector<1x256xf32> to vector<32x256xf32>
    %102 = arith.mulf %89, %101 : vector<32x256xf32>
    %103 = vector.broadcast %81 : vector<1x256xf32> to vector<32x256xf32>
    %104 = arith.addf %102, %103 : vector<32x256xf32>
    %c0_35 = arith.constant 0 : index
    %c0_36 = arith.constant 0 : index
    %105 = vector.load %arg7[%c0_35, %c0_36] : memref<32x256xbf16, #tpu.memory_space<vmem>>, vector<32x256xbf16>
    %cst_37 = arith.constant dense<0.000000e+00> : vector<2x256xf32>
    %106 = tpu.matmul %9, %105, %cst_37 {dimension_numbers = #tpu.dot_dimension_numbers<[1], [0], [0], [1], [0, 0, 1, 1], [], []>} : vector<2x32xbf16>, vector<32x256xbf16>, vector<2x256xf32> -> vector<2x256xf32>
    %c5 = arith.constant 5 : index
    %c0_38 = arith.constant 0 : index
    %107 = vector.load %arg2[%c5, %c0_38] : memref<35x256xf32, #tpu.memory_space<vmem>>, vector<1x256xf32>
    %108 = vector.broadcast %107 : vector<1x256xf32> to vector<2x256xf32>
    %109 = arith.addf %106, %108 : vector<2x256xf32>
    %cst_39 = arith.constant 0.000000e+00 : f32
    %110 = vector.broadcast %cst_39 : f32 to vector<2x256xf32>
    %111 = arith.maximumf %109, %110 : vector<2x256xf32>
    %112 = vector.extract_strided_slice %111 {offsets = [0, 0], sizes = [1, 256], strides = [1, 1]} : vector<2x256xf32> to vector<1x256xf32>
    %113 = vector.shape_cast %112 : vector<1x256xf32> to vector<1x256xf32>
    %114 = vector.broadcast %113 : vector<1x256xf32> to vector<16x256xf32>
    %115 = vector.extract_strided_slice %111 {offsets = [1, 0], sizes = [1, 256], strides = [1, 1]} : vector<2x256xf32> to vector<1x256xf32>
    %116 = vector.shape_cast %115 : vector<1x256xf32> to vector<1x256xf32>
    %117 = vector.broadcast %116 : vector<1x256xf32> to vector<16x256xf32>
    %118 = tpu.concatenate %114, %117 in 0 : vector<16x256xf32>, vector<16x256xf32> -> vector<32x256xf32>
    %119 = arith.addf %104, %118 : vector<32x256xf32>
    %120 = arith.truncf %119 : vector<32x256xf32> to vector<32x256xbf16>
    %121 = tpu.iota {dimensions = array<i32: 0>} : vector<32x1xi32>
    %c15_i32_40 = arith.constant 15 : i32
    %122 = vector.broadcast %c15_i32_40 : i32 to vector<32x1xi32>
    %123 = arith.andi %121, %122 : vector<32x1xi32>
    %cst_41 = arith.constant 0.000000e+00 : bf16
    %124 = vector.broadcast %cst_41 : bf16 to vector<32x256xbf16>
    %c1_i32_42 = arith.constant 1 : i32
    %125 = vector.broadcast %c1_i32_42 : i32 to vector<32x1xi32>
    %126 = arith.cmpi sge, %123, %125 : vector<32x1xi32>
    %127 = vector.extract_strided_slice %120 {offsets = [31, 0], sizes = [1, 256], strides = [1, 1]} : vector<32x256xbf16> to vector<1x256xbf16>
    %128 = vector.extract_strided_slice %120 {offsets = [0, 0], sizes = [31, 256], strides = [1, 1]} : vector<32x256xbf16> to vector<31x256xbf16>
    %129 = tpu.concatenate %127, %128 in 0 : vector<1x256xbf16>, vector<31x256xbf16> -> vector<32x256xbf16>
    %130 = vector.shape_cast %126 : vector<32x1xi1> to vector<32x1xi1>
    %131 = vector.broadcast %130 : vector<32x1xi1> to vector<32x256xi1>
    %132 = arith.select %131, %129, %124 : vector<32x256xi1>, vector<32x256xbf16>
    %c14_i32_43 = arith.constant 14 : i32
    %133 = vector.broadcast %c14_i32_43 : i32 to vector<32x1xi32>
    %134 = arith.cmpi sle, %123, %133 : vector<32x1xi32>
    %135 = vector.extract_strided_slice %120 {offsets = [1, 0], sizes = [31, 256], strides = [1, 1]} : vector<32x256xbf16> to vector<31x256xbf16>
    %136 = vector.extract_strided_slice %120 {offsets = [0, 0], sizes = [1, 256], strides = [1, 1]} : vector<32x256xbf16> to vector<1x256xbf16>
    %137 = tpu.concatenate %135, %136 in 0 : vector<31x256xbf16>, vector<1x256xbf16> -> vector<32x256xbf16>
    %138 = vector.shape_cast %134 : vector<32x1xi1> to vector<32x1xi1>
    %139 = vector.broadcast %138 : vector<32x1xi1> to vector<32x256xi1>
    %140 = arith.select %139, %137, %124 : vector<32x256xi1>, vector<32x256xbf16>
    %141 = tpu.concatenate %132, %120, %140 in 1 : vector<32x256xbf16>, vector<32x256xbf16>, vector<32x256xbf16> -> vector<32x768xbf16>
    %c0_44 = arith.constant 0 : index
    %c0_45 = arith.constant 0 : index
    %142 = vector.load %arg6[%c0_44, %c0_45] : memref<768x256xbf16, #tpu.memory_space<vmem>>, vector<768x256xbf16>
    %cst_46 = arith.constant dense<0.000000e+00> : vector<32x256xf32>
    %143 = tpu.matmul %141, %142, %cst_46 {dimension_numbers = #tpu.dot_dimension_numbers<[1], [0], [0], [1], [0, 0, 1, 1], [], []>} : vector<32x768xbf16>, vector<768x256xbf16>, vector<32x256xf32> -> vector<32x256xf32>
    %c6 = arith.constant 6 : index
    %c0_47 = arith.constant 0 : index
    %144 = vector.load %arg2[%c6, %c0_47] : memref<35x256xf32, #tpu.memory_space<vmem>>, vector<1x256xf32>
    %145 = vector.broadcast %144 : vector<1x256xf32> to vector<32x256xf32>
    %146 = arith.addf %143, %145 : vector<32x256xf32>
    %cst_48 = arith.constant 0.000000e+00 : f32
    %147 = vector.broadcast %cst_48 : f32 to vector<32x256xf32>
    %148 = arith.maximumf %146, %147 : vector<32x256xf32>
    %c7 = arith.constant 7 : index
    %c0_49 = arith.constant 0 : index
    %149 = vector.load %arg2[%c7, %c0_49] : memref<35x256xf32, #tpu.memory_space<vmem>>, vector<1x256xf32>
    %c8 = arith.constant 8 : index
    %c0_50 = arith.constant 0 : index
    %150 = vector.load %arg2[%c8, %c0_50] : memref<35x256xf32, #tpu.memory_space<vmem>>, vector<1x256xf32>
    %cst_51 = arith.constant dense<0.000000e+00> : vector<256xf32>
    %151 = vector.multi_reduction <add>, %148, %cst_51 [0] : vector<32x256xf32> to vector<256xf32>
    %152 = vector.shape_cast %151 : vector<256xf32> to vector<1x256xf32>
    %cst_52 = arith.constant dense<0.000000e+00> : vector<1x16xf32>
    %153 = tpu.matmul %152, %43, %cst_52 {dimension_numbers = #tpu.dot_dimension_numbers<[1], [0], [0], [1], [0, 0, 1, 1], [], []>} : vector<1x256xf32>, vector<256x16xf32>, vector<1x16xf32> -> vector<1x16xf32>
    %cst_53 = arith.constant dense<0.000000e+00> : vector<1x256xf32>
    %154 = tpu.matmul %153, %50, %cst_53 {dimension_numbers = #tpu.dot_dimension_numbers<[1], [0], [0], [1], [0, 0, 1, 1], [], []>} : vector<1x16xf32>, vector<16x256xf32>, vector<1x256xf32> -> vector<1x256xf32>
    %cst_54 = arith.constant 0.001953125 : f32
    %155 = vector.broadcast %cst_54 : f32 to vector<1x256xf32>
    %156 = arith.mulf %154, %155 : vector<1x256xf32>
    %157 = vector.broadcast %156 : vector<1x256xf32> to vector<32x256xf32>
    %158 = arith.subf %148, %157 : vector<32x256xf32>
    %159 = arith.mulf %158, %158 : vector<32x256xf32>
    %cst_55 = arith.constant dense<0.000000e+00> : vector<256xf32>
    %160 = vector.multi_reduction <add>, %159, %cst_55 [0] : vector<32x256xf32> to vector<256xf32>
    %161 = vector.shape_cast %160 : vector<256xf32> to vector<1x256xf32>
    %cst_56 = arith.constant dense<0.000000e+00> : vector<1x16xf32>
    %162 = tpu.matmul %161, %43, %cst_56 {dimension_numbers = #tpu.dot_dimension_numbers<[1], [0], [0], [1], [0, 0, 1, 1], [], []>} : vector<1x256xf32>, vector<256x16xf32>, vector<1x16xf32> -> vector<1x16xf32>
    %cst_57 = arith.constant dense<0.000000e+00> : vector<1x256xf32>
    %163 = tpu.matmul %162, %50, %cst_57 {dimension_numbers = #tpu.dot_dimension_numbers<[1], [0], [0], [1], [0, 0, 1, 1], [], []>} : vector<1x16xf32>, vector<16x256xf32>, vector<1x256xf32> -> vector<1x256xf32>
    %cst_58 = arith.constant 0.001953125 : f32
    %164 = vector.broadcast %cst_58 : f32 to vector<1x256xf32>
    %165 = arith.mulf %163, %164 : vector<1x256xf32>
    %cst_59 = arith.constant 9.99999974E-6 : f32
    %166 = vector.broadcast %cst_59 : f32 to vector<1x256xf32>
    %167 = arith.addf %165, %166 : vector<1x256xf32>
    %168 = math.rsqrt %167 : vector<1x256xf32>
    %169 = arith.mulf %149, %168 : vector<1x256xf32>
    %170 = vector.broadcast %169 : vector<1x256xf32> to vector<32x256xf32>
    %171 = arith.mulf %158, %170 : vector<32x256xf32>
    %172 = vector.broadcast %150 : vector<1x256xf32> to vector<32x256xf32>
    %173 = arith.addf %171, %172 : vector<32x256xf32>
    %174 = arith.truncf %173 : vector<32x256xf32> to vector<32x256xbf16>
    %175 = tpu.iota {dimensions = array<i32: 0>} : vector<32x1xi32>
    %c15_i32_60 = arith.constant 15 : i32
    %176 = vector.broadcast %c15_i32_60 : i32 to vector<32x1xi32>
    %177 = arith.andi %175, %176 : vector<32x1xi32>
    %cst_61 = arith.constant 0.000000e+00 : bf16
    %178 = vector.broadcast %cst_61 : bf16 to vector<32x256xbf16>
    %c1_i32_62 = arith.constant 1 : i32
    %179 = vector.broadcast %c1_i32_62 : i32 to vector<32x1xi32>
    %180 = arith.cmpi sge, %177, %179 : vector<32x1xi32>
    %181 = vector.extract_strided_slice %174 {offsets = [31, 0], sizes = [1, 256], strides = [1, 1]} : vector<32x256xbf16> to vector<1x256xbf16>
    %182 = vector.extract_strided_slice %174 {offsets = [0, 0], sizes = [31, 256], strides = [1, 1]} : vector<32x256xbf16> to vector<31x256xbf16>
    %183 = tpu.concatenate %181, %182 in 0 : vector<1x256xbf16>, vector<31x256xbf16> -> vector<32x256xbf16>
    %184 = vector.shape_cast %180 : vector<32x1xi1> to vector<32x1xi1>
    %185 = vector.broadcast %184 : vector<32x1xi1> to vector<32x256xi1>
    %186 = arith.select %185, %183, %178 : vector<32x256xi1>, vector<32x256xbf16>
    %c14_i32_63 = arith.constant 14 : i32
    %187 = vector.broadcast %c14_i32_63 : i32 to vector<32x1xi32>
    %188 = arith.cmpi sle, %177, %187 : vector<32x1xi32>
    %189 = vector.extract_strided_slice %174 {offsets = [1, 0], sizes = [31, 256], strides = [1, 1]} : vector<32x256xbf16> to vector<31x256xbf16>
    %190 = vector.extract_strided_slice %174 {offsets = [0, 0], sizes = [1, 256], strides = [1, 1]} : vector<32x256xbf16> to vector<1x256xbf16>
    %191 = tpu.concatenate %189, %190 in 0 : vector<31x256xbf16>, vector<1x256xbf16> -> vector<32x256xbf16>
    %192 = vector.shape_cast %188 : vector<32x1xi1> to vector<32x1xi1>
    %193 = vector.broadcast %192 : vector<32x1xi1> to vector<32x256xi1>
    %194 = arith.select %193, %191, %178 : vector<32x256xi1>, vector<32x256xbf16>
    %c13_i32 = arith.constant 13 : i32
    %195 = vector.broadcast %c13_i32 : i32 to vector<32x1xi32>
    %196 = arith.cmpi sle, %177, %195 : vector<32x1xi32>
    %197 = vector.extract_strided_slice %174 {offsets = [2, 0], sizes = [30, 256], strides = [1, 1]} : vector<32x256xbf16> to vector<30x256xbf16>
    %198 = vector.extract_strided_slice %174 {offsets = [0, 0], sizes = [2, 256], strides = [1, 1]} : vector<32x256xbf16> to vector<2x256xbf16>
    %199 = tpu.concatenate %197, %198 in 0 : vector<30x256xbf16>, vector<2x256xbf16> -> vector<32x256xbf16>
    %200 = vector.shape_cast %196 : vector<32x1xi1> to vector<32x1xi1>
    %201 = vector.broadcast %200 : vector<32x1xi1> to vector<32x256xi1>
    %202 = arith.select %201, %199, %178 : vector<32x256xi1>, vector<32x256xbf16>
    %203 = tpu.concatenate %186, %174, %194, %202 in 1 : vector<32x256xbf16>, vector<32x256xbf16>, vector<32x256xbf16>, vector<32x256xbf16> -> vector<32x1024xbf16>
    %c0_64 = arith.constant 0 : index
    %c0_65 = arith.constant 0 : index
    %204 = vector.load %arg8[%c0_64, %c0_65] : memref<1024x128xbf16, #tpu.memory_space<vmem>>, vector<1024x128xbf16>
    %cst_66 = arith.constant dense<0.000000e+00> : vector<32x128xf32>
    %205 = tpu.matmul %203, %204, %cst_66 {dimension_numbers = #tpu.dot_dimension_numbers<[1], [0], [0], [1], [0, 0, 1, 1], [], []>} : vector<32x1024xbf16>, vector<1024x128xbf16>, vector<32x128xf32> -> vector<32x128xf32>
    %206 = tpu.iota {dimensions = array<i32: 0>} : vector<16x32xi32>
    %207 = tpu.iota {dimensions = array<i32: 1>} : vector<16x32xi32>
    %c2_i32 = arith.constant 2 : i32
    %208 = vector.broadcast %c2_i32 : i32 to vector<16x32xi32>
    %209 = arith.muli %208, %206 : vector<16x32xi32>
    %210 = arith.cmpi eq, %207, %209 : vector<16x32xi32>
    %211 = arith.extui %210 : vector<16x32xi1> to vector<16x32xi32>
    %212 = arith.sitofp %211 : vector<16x32xi32> to vector<16x32xf32>
    %cst_67 = arith.constant dense<0.000000e+00> : vector<16x128xf32>
    %213 = tpu.matmul %212, %205, %cst_67 {dimension_numbers = #tpu.dot_dimension_numbers<[1], [0], [0], [1], [0, 0, 1, 1], [], []>} : vector<16x32xf32>, vector<32x128xf32>, vector<16x128xf32> -> vector<16x128xf32>
    %c9 = arith.constant 9 : index
    %c0_68 = arith.constant 0 : index
    %214 = vector.load %arg2[%c9, %c0_68] : memref<35x256xf32, #tpu.memory_space<vmem>>, vector<1x128xf32>
    %215 = vector.broadcast %214 : vector<1x128xf32> to vector<16x128xf32>
    %216 = arith.addf %213, %215 : vector<16x128xf32>
    %217 = tpu.iota {dimensions = array<i32: 0>} : vector<256x32xi32>
    %218 = tpu.iota {dimensions = array<i32: 1>} : vector<256x32xi32>
    %c31_i32 = arith.constant 31 : i32
    %219 = vector.broadcast %c31_i32 : i32 to vector<256x32xi32>
    %220 = arith.andi %217, %219 : vector<256x32xi32>
    %221 = arith.cmpi eq, %220, %218 : vector<256x32xi32>
    %222 = arith.extui %221 : vector<256x32xi1> to vector<256x32xi32>
    %223 = arith.sitofp %222 : vector<256x32xi32> to vector<256x32xf32>
    %224 = tpu.iota {dimensions = array<i32: 0>} : vector<32x256xi32>
    %225 = tpu.iota {dimensions = array<i32: 1>} : vector<32x256xi32>
    %c31_i32_69 = arith.constant 31 : i32
    %226 = vector.broadcast %c31_i32_69 : i32 to vector<32x256xi32>
    %227 = arith.andi %225, %226 : vector<32x256xi32>
    %228 = arith.cmpi eq, %227, %224 : vector<32x256xi32>
    %229 = arith.extui %228 : vector<32x256xi1> to vector<32x256xi32>
    %230 = arith.sitofp %229 : vector<32x256xi32> to vector<32x256xf32>
    %231 = arith.truncf %216 : vector<16x128xf32> to vector<16x128xbf16>
    %232 = tpu.iota {dimensions = array<i32: 0>} : vector<16x1xi32>
    %c7_i32 = arith.constant 7 : i32
    %233 = vector.broadcast %c7_i32 : i32 to vector<16x1xi32>
    %234 = arith.andi %232, %233 : vector<16x1xi32>
    %cst_70 = arith.constant 0.000000e+00 : bf16
    %235 = vector.broadcast %cst_70 : bf16 to vector<16x128xbf16>
    %c1_i32_71 = arith.constant 1 : i32
    %236 = vector.broadcast %c1_i32_71 : i32 to vector<16x1xi32>
    %237 = arith.cmpi sge, %234, %236 : vector<16x1xi32>
    %238 = vector.extract_strided_slice %231 {offsets = [15, 0], sizes = [1, 128], strides = [1, 1]} : vector<16x128xbf16> to vector<1x128xbf16>
    %239 = vector.extract_strided_slice %231 {offsets = [0, 0], sizes = [15, 128], strides = [1, 1]} : vector<16x128xbf16> to vector<15x128xbf16>
    %240 = tpu.concatenate %238, %239 in 0 : vector<1x128xbf16>, vector<15x128xbf16> -> vector<16x128xbf16>
    %241 = vector.shape_cast %237 : vector<16x1xi1> to vector<16x1xi1>
    %242 = vector.broadcast %241 : vector<16x1xi1> to vector<16x128xi1>
    %243 = arith.select %242, %240, %235 : vector<16x128xi1>, vector<16x128xbf16>
    %c6_i32 = arith.constant 6 : i32
    %244 = vector.broadcast %c6_i32 : i32 to vector<16x1xi32>
    %245 = arith.cmpi sle, %234, %244 : vector<16x1xi32>
    %246 = vector.extract_strided_slice %231 {offsets = [1, 0], sizes = [15, 128], strides = [1, 1]} : vector<16x128xbf16> to vector<15x128xbf16>
    %247 = vector.extract_strided_slice %231 {offsets = [0, 0], sizes = [1, 128], strides = [1, 1]} : vector<16x128xbf16> to vector<1x128xbf16>
    %248 = tpu.concatenate %246, %247 in 0 : vector<15x128xbf16>, vector<1x128xbf16> -> vector<16x128xbf16>
    %249 = vector.shape_cast %245 : vector<16x1xi1> to vector<16x1xi1>
    %250 = vector.broadcast %249 : vector<16x1xi1> to vector<16x128xi1>
    %251 = arith.select %250, %248, %235 : vector<16x128xi1>, vector<16x128xbf16>
    %252 = tpu.concatenate %243, %231, %251 in 1 : vector<16x128xbf16>, vector<16x128xbf16>, vector<16x128xbf16> -> vector<16x384xbf16>
    %c0_72 = arith.constant 0 : index
    %c0_73 = arith.constant 0 : index
    %253 = vector.load %arg9[%c0_72, %c0_73] : memref<384x256xbf16, #tpu.memory_space<vmem>>, vector<384x256xbf16>
    %cst_74 = arith.constant dense<0.000000e+00> : vector<16x256xf32>
    %254 = tpu.matmul %252, %253, %cst_74 {dimension_numbers = #tpu.dot_dimension_numbers<[1], [0], [0], [1], [0, 0, 1, 1], [], []>} : vector<16x384xbf16>, vector<384x256xbf16>, vector<16x256xf32> -> vector<16x256xf32>
    %c10 = arith.constant 10 : index
    %c0_75 = arith.constant 0 : index
    %255 = vector.load %arg2[%c10, %c0_75] : memref<35x256xf32, #tpu.memory_space<vmem>>, vector<1x256xf32>
    %256 = vector.broadcast %255 : vector<1x256xf32> to vector<16x256xf32>
    %257 = arith.addf %254, %256 : vector<16x256xf32>
    %cst_76 = arith.constant 0.000000e+00 : f32
    %258 = vector.broadcast %cst_76 : f32 to vector<16x256xf32>
    %259 = arith.maximumf %257, %258 : vector<16x256xf32>
    %c11 = arith.constant 11 : index
    %c0_77 = arith.constant 0 : index
    %260 = vector.load %arg2[%c11, %c0_77] : memref<35x256xf32, #tpu.memory_space<vmem>>, vector<1x256xf32>
    %c12 = arith.constant 12 : index
    %c0_78 = arith.constant 0 : index
    %261 = vector.load %arg2[%c12, %c0_78] : memref<35x256xf32, #tpu.memory_space<vmem>>, vector<1x256xf32>
    %cst_79 = arith.constant dense<0.000000e+00> : vector<256xf32>
    %262 = vector.multi_reduction <add>, %259, %cst_79 [0] : vector<16x256xf32> to vector<256xf32>
    %263 = vector.shape_cast %262 : vector<256xf32> to vector<1x256xf32>
    %cst_80 = arith.constant dense<0.000000e+00> : vector<1x32xf32>
    %264 = tpu.matmul %263, %223, %cst_80 {dimension_numbers = #tpu.dot_dimension_numbers<[1], [0], [0], [1], [0, 0, 1, 1], [], []>} : vector<1x256xf32>, vector<256x32xf32>, vector<1x32xf32> -> vector<1x32xf32>
    %cst_81 = arith.constant dense<0.000000e+00> : vector<1x256xf32>
    %265 = tpu.matmul %264, %230, %cst_81 {dimension_numbers = #tpu.dot_dimension_numbers<[1], [0], [0], [1], [0, 0, 1, 1], [], []>} : vector<1x32xf32>, vector<32x256xf32>, vector<1x256xf32> -> vector<1x256xf32>
    %cst_82 = arith.constant 7.812500e-03 : f32
    %266 = vector.broadcast %cst_82 : f32 to vector<1x256xf32>
    %267 = arith.mulf %265, %266 : vector<1x256xf32>
    %268 = vector.broadcast %267 : vector<1x256xf32> to vector<16x256xf32>
    %269 = arith.subf %259, %268 : vector<16x256xf32>
    %270 = arith.mulf %269, %269 : vector<16x256xf32>
    %cst_83 = arith.constant dense<0.000000e+00> : vector<256xf32>
    %271 = vector.multi_reduction <add>, %270, %cst_83 [0] : vector<16x256xf32> to vector<256xf32>
    %272 = vector.shape_cast %271 : vector<256xf32> to vector<1x256xf32>
    %cst_84 = arith.constant dense<0.000000e+00> : vector<1x32xf32>
    %273 = tpu.matmul %272, %223, %cst_84 {dimension_numbers = #tpu.dot_dimension_numbers<[1], [0], [0], [1], [0, 0, 1, 1], [], []>} : vector<1x256xf32>, vector<256x32xf32>, vector<1x32xf32> -> vector<1x32xf32>
    %cst_85 = arith.constant dense<0.000000e+00> : vector<1x256xf32>
    %274 = tpu.matmul %273, %230, %cst_85 {dimension_numbers = #tpu.dot_dimension_numbers<[1], [0], [0], [1], [0, 0, 1, 1], [], []>} : vector<1x32xf32>, vector<32x256xf32>, vector<1x256xf32> -> vector<1x256xf32>
    %cst_86 = arith.constant 7.812500e-03 : f32
    %275 = vector.broadcast %cst_86 : f32 to vector<1x256xf32>
    %276 = arith.mulf %274, %275 : vector<1x256xf32>
    %cst_87 = arith.constant 9.99999974E-6 : f32
    %277 = vector.broadcast %cst_87 : f32 to vector<1x256xf32>
    %278 = arith.addf %276, %277 : vector<1x256xf32>
    %279 = math.rsqrt %278 : vector<1x256xf32>
    %280 = arith.mulf %260, %279 : vector<1x256xf32>
    %281 = vector.broadcast %280 : vector<1x256xf32> to vector<16x256xf32>
    %282 = arith.mulf %269, %281 : vector<16x256xf32>
    %283 = vector.broadcast %261 : vector<1x256xf32> to vector<16x256xf32>
    %284 = arith.addf %282, %283 : vector<16x256xf32>
    %c0_88 = arith.constant 0 : index
    %c0_89 = arith.constant 0 : index
    %285 = vector.load %arg11[%c0_88, %c0_89] : memref<32x256xbf16, #tpu.memory_space<vmem>>, vector<32x256xbf16>
    %cst_90 = arith.constant dense<0.000000e+00> : vector<2x256xf32>
    %286 = tpu.matmul %9, %285, %cst_90 {dimension_numbers = #tpu.dot_dimension_numbers<[1], [0], [0], [1], [0, 0, 1, 1], [], []>} : vector<2x32xbf16>, vector<32x256xbf16>, vector<2x256xf32> -> vector<2x256xf32>
    %c13 = arith.constant 13 : index
    %c0_91 = arith.constant 0 : index
    %287 = vector.load %arg2[%c13, %c0_91] : memref<35x256xf32, #tpu.memory_space<vmem>>, vector<1x256xf32>
    %288 = vector.broadcast %287 : vector<1x256xf32> to vector<2x256xf32>
    %289 = arith.addf %286, %288 : vector<2x256xf32>
    %cst_92 = arith.constant 0.000000e+00 : f32
    %290 = vector.broadcast %cst_92 : f32 to vector<2x256xf32>
    %291 = arith.maximumf %289, %290 : vector<2x256xf32>
    %292 = vector.extract_strided_slice %291 {offsets = [0, 0], sizes = [1, 256], strides = [1, 1]} : vector<2x256xf32> to vector<1x256xf32>
    %293 = vector.shape_cast %292 : vector<1x256xf32> to vector<1x256xf32>
    %294 = vector.broadcast %293 : vector<1x256xf32> to vector<8x256xf32>
    %295 = vector.extract_strided_slice %291 {offsets = [1, 0], sizes = [1, 256], strides = [1, 1]} : vector<2x256xf32> to vector<1x256xf32>
    %296 = vector.shape_cast %295 : vector<1x256xf32> to vector<1x256xf32>
    %297 = vector.broadcast %296 : vector<1x256xf32> to vector<8x256xf32>
    %298 = tpu.concatenate %294, %297 in 0 : vector<8x256xf32>, vector<8x256xf32> -> vector<16x256xf32>
    %299 = arith.addf %284, %298 : vector<16x256xf32>
    %300 = arith.truncf %299 : vector<16x256xf32> to vector<16x256xbf16>
    %301 = tpu.iota {dimensions = array<i32: 0>} : vector<16x1xi32>
    %c7_i32_93 = arith.constant 7 : i32
    %302 = vector.broadcast %c7_i32_93 : i32 to vector<16x1xi32>
    %303 = arith.andi %301, %302 : vector<16x1xi32>
    %cst_94 = arith.constant 0.000000e+00 : bf16
    %304 = vector.broadcast %cst_94 : bf16 to vector<16x256xbf16>
    %c1_i32_95 = arith.constant 1 : i32
    %305 = vector.broadcast %c1_i32_95 : i32 to vector<16x1xi32>
    %306 = arith.cmpi sge, %303, %305 : vector<16x1xi32>
    %307 = vector.extract_strided_slice %300 {offsets = [15, 0], sizes = [1, 256], strides = [1, 1]} : vector<16x256xbf16> to vector<1x256xbf16>
    %308 = vector.extract_strided_slice %300 {offsets = [0, 0], sizes = [15, 256], strides = [1, 1]} : vector<16x256xbf16> to vector<15x256xbf16>
    %309 = tpu.concatenate %307, %308 in 0 : vector<1x256xbf16>, vector<15x256xbf16> -> vector<16x256xbf16>
    %310 = vector.shape_cast %306 : vector<16x1xi1> to vector<16x1xi1>
    %311 = vector.broadcast %310 : vector<16x1xi1> to vector<16x256xi1>
    %312 = arith.select %311, %309, %304 : vector<16x256xi1>, vector<16x256xbf16>
    %c6_i32_96 = arith.constant 6 : i32
    %313 = vector.broadcast %c6_i32_96 : i32 to vector<16x1xi32>
    %314 = arith.cmpi sle, %303, %313 : vector<16x1xi32>
    %315 = vector.extract_strided_slice %300 {offsets = [1, 0], sizes = [15, 256], strides = [1, 1]} : vector<16x256xbf16> to vector<15x256xbf16>
    %316 = vector.extract_strided_slice %300 {offsets = [0, 0], sizes = [1, 256], strides = [1, 1]} : vector<16x256xbf16> to vector<1x256xbf16>
    %317 = tpu.concatenate %315, %316 in 0 : vector<15x256xbf16>, vector<1x256xbf16> -> vector<16x256xbf16>
    %318 = vector.shape_cast %314 : vector<16x1xi1> to vector<16x1xi1>
    %319 = vector.broadcast %318 : vector<16x1xi1> to vector<16x256xi1>
    %320 = arith.select %319, %317, %304 : vector<16x256xi1>, vector<16x256xbf16>
    %321 = tpu.concatenate %312, %300, %320 in 1 : vector<16x256xbf16>, vector<16x256xbf16>, vector<16x256xbf16> -> vector<16x768xbf16>
    %c0_97 = arith.constant 0 : index
    %c0_98 = arith.constant 0 : index
    %322 = vector.load %arg10[%c0_97, %c0_98] : memref<768x256xbf16, #tpu.memory_space<vmem>>, vector<768x256xbf16>
    %cst_99 = arith.constant dense<0.000000e+00> : vector<16x256xf32>
    %323 = tpu.matmul %321, %322, %cst_99 {dimension_numbers = #tpu.dot_dimension_numbers<[1], [0], [0], [1], [0, 0, 1, 1], [], []>} : vector<16x768xbf16>, vector<768x256xbf16>, vector<16x256xf32> -> vector<16x256xf32>
    %c14 = arith.constant 14 : index
    %c0_100 = arith.constant 0 : index
    %324 = vector.load %arg2[%c14, %c0_100] : memref<35x256xf32, #tpu.memory_space<vmem>>, vector<1x256xf32>
    %325 = vector.broadcast %324 : vector<1x256xf32> to vector<16x256xf32>
    %326 = arith.addf %323, %325 : vector<16x256xf32>
    %cst_101 = arith.constant 0.000000e+00 : f32
    %327 = vector.broadcast %cst_101 : f32 to vector<16x256xf32>
    %328 = arith.maximumf %326, %327 : vector<16x256xf32>
    %c15 = arith.constant 15 : index
    %c0_102 = arith.constant 0 : index
    %329 = vector.load %arg2[%c15, %c0_102] : memref<35x256xf32, #tpu.memory_space<vmem>>, vector<1x256xf32>
    %c16 = arith.constant 16 : index
    %c0_103 = arith.constant 0 : index
    %330 = vector.load %arg2[%c16, %c0_103] : memref<35x256xf32, #tpu.memory_space<vmem>>, vector<1x256xf32>
    %cst_104 = arith.constant dense<0.000000e+00> : vector<256xf32>
    %331 = vector.multi_reduction <add>, %328, %cst_104 [0] : vector<16x256xf32> to vector<256xf32>
    %332 = vector.shape_cast %331 : vector<256xf32> to vector<1x256xf32>
    %cst_105 = arith.constant dense<0.000000e+00> : vector<1x32xf32>
    %333 = tpu.matmul %332, %223, %cst_105 {dimension_numbers = #tpu.dot_dimension_numbers<[1], [0], [0], [1], [0, 0, 1, 1], [], []>} : vector<1x256xf32>, vector<256x32xf32>, vector<1x32xf32> -> vector<1x32xf32>
    %cst_106 = arith.constant dense<0.000000e+00> : vector<1x256xf32>
    %334 = tpu.matmul %333, %230, %cst_106 {dimension_numbers = #tpu.dot_dimension_numbers<[1], [0], [0], [1], [0, 0, 1, 1], [], []>} : vector<1x32xf32>, vector<32x256xf32>, vector<1x256xf32> -> vector<1x256xf32>
    %cst_107 = arith.constant 7.812500e-03 : f32
    %335 = vector.broadcast %cst_107 : f32 to vector<1x256xf32>
    %336 = arith.mulf %334, %335 : vector<1x256xf32>
    %337 = vector.broadcast %336 : vector<1x256xf32> to vector<16x256xf32>
    %338 = arith.subf %328, %337 : vector<16x256xf32>
    %339 = arith.mulf %338, %338 : vector<16x256xf32>
    %cst_108 = arith.constant dense<0.000000e+00> : vector<256xf32>
    %340 = vector.multi_reduction <add>, %339, %cst_108 [0] : vector<16x256xf32> to vector<256xf32>
    %341 = vector.shape_cast %340 : vector<256xf32> to vector<1x256xf32>
    %cst_109 = arith.constant dense<0.000000e+00> : vector<1x32xf32>
    %342 = tpu.matmul %341, %223, %cst_109 {dimension_numbers = #tpu.dot_dimension_numbers<[1], [0], [0], [1], [0, 0, 1, 1], [], []>} : vector<1x256xf32>, vector<256x32xf32>, vector<1x32xf32> -> vector<1x32xf32>
    %cst_110 = arith.constant dense<0.000000e+00> : vector<1x256xf32>
    %343 = tpu.matmul %342, %230, %cst_110 {dimension_numbers = #tpu.dot_dimension_numbers<[1], [0], [0], [1], [0, 0, 1, 1], [], []>} : vector<1x32xf32>, vector<32x256xf32>, vector<1x256xf32> -> vector<1x256xf32>
    %cst_111 = arith.constant 7.812500e-03 : f32
    %344 = vector.broadcast %cst_111 : f32 to vector<1x256xf32>
    %345 = arith.mulf %343, %344 : vector<1x256xf32>
    %cst_112 = arith.constant 9.99999974E-6 : f32
    %346 = vector.broadcast %cst_112 : f32 to vector<1x256xf32>
    %347 = arith.addf %345, %346 : vector<1x256xf32>
    %348 = math.rsqrt %347 : vector<1x256xf32>
    %349 = arith.mulf %329, %348 : vector<1x256xf32>
    %350 = vector.broadcast %349 : vector<1x256xf32> to vector<16x256xf32>
    %351 = arith.mulf %338, %350 : vector<16x256xf32>
    %352 = vector.broadcast %330 : vector<1x256xf32> to vector<16x256xf32>
    %353 = arith.addf %351, %352 : vector<16x256xf32>
    %354 = arith.truncf %353 : vector<16x256xf32> to vector<16x256xbf16>
    %355 = tpu.iota {dimensions = array<i32: 0>} : vector<16x1xi32>
    %c7_i32_113 = arith.constant 7 : i32
    %356 = vector.broadcast %c7_i32_113 : i32 to vector<16x1xi32>
    %357 = arith.andi %355, %356 : vector<16x1xi32>
    %cst_114 = arith.constant 0.000000e+00 : bf16
    %358 = vector.broadcast %cst_114 : bf16 to vector<16x256xbf16>
    %c1_i32_115 = arith.constant 1 : i32
    %359 = vector.broadcast %c1_i32_115 : i32 to vector<16x1xi32>
    %360 = arith.cmpi sge, %357, %359 : vector<16x1xi32>
    %361 = vector.extract_strided_slice %354 {offsets = [15, 0], sizes = [1, 256], strides = [1, 1]} : vector<16x256xbf16> to vector<1x256xbf16>
    %362 = vector.extract_strided_slice %354 {offsets = [0, 0], sizes = [15, 256], strides = [1, 1]} : vector<16x256xbf16> to vector<15x256xbf16>
    %363 = tpu.concatenate %361, %362 in 0 : vector<1x256xbf16>, vector<15x256xbf16> -> vector<16x256xbf16>
    %364 = vector.shape_cast %360 : vector<16x1xi1> to vector<16x1xi1>
    %365 = vector.broadcast %364 : vector<16x1xi1> to vector<16x256xi1>
    %366 = arith.select %365, %363, %358 : vector<16x256xi1>, vector<16x256xbf16>
    %c6_i32_116 = arith.constant 6 : i32
    %367 = vector.broadcast %c6_i32_116 : i32 to vector<16x1xi32>
    %368 = arith.cmpi sle, %357, %367 : vector<16x1xi32>
    %369 = vector.extract_strided_slice %354 {offsets = [1, 0], sizes = [15, 256], strides = [1, 1]} : vector<16x256xbf16> to vector<15x256xbf16>
    %370 = vector.extract_strided_slice %354 {offsets = [0, 0], sizes = [1, 256], strides = [1, 1]} : vector<16x256xbf16> to vector<1x256xbf16>
    %371 = tpu.concatenate %369, %370 in 0 : vector<15x256xbf16>, vector<1x256xbf16> -> vector<16x256xbf16>
    %372 = vector.shape_cast %368 : vector<16x1xi1> to vector<16x1xi1>
    %373 = vector.broadcast %372 : vector<16x1xi1> to vector<16x256xi1>
    %374 = arith.select %373, %371, %358 : vector<16x256xi1>, vector<16x256xbf16>
    %c5_i32 = arith.constant 5 : i32
    %375 = vector.broadcast %c5_i32 : i32 to vector<16x1xi32>
    %376 = arith.cmpi sle, %357, %375 : vector<16x1xi32>
    %377 = vector.extract_strided_slice %354 {offsets = [2, 0], sizes = [14, 256], strides = [1, 1]} : vector<16x256xbf16> to vector<14x256xbf16>
    %378 = vector.extract_strided_slice %354 {offsets = [0, 0], sizes = [2, 256], strides = [1, 1]} : vector<16x256xbf16> to vector<2x256xbf16>
    %379 = tpu.concatenate %377, %378 in 0 : vector<14x256xbf16>, vector<2x256xbf16> -> vector<16x256xbf16>
    %380 = vector.shape_cast %376 : vector<16x1xi1> to vector<16x1xi1>
    %381 = vector.broadcast %380 : vector<16x1xi1> to vector<16x256xi1>
    %382 = arith.select %381, %379, %358 : vector<16x256xi1>, vector<16x256xbf16>
    %383 = tpu.concatenate %366, %354, %374, %382 in 1 : vector<16x256xbf16>, vector<16x256xbf16>, vector<16x256xbf16>, vector<16x256xbf16> -> vector<16x1024xbf16>
    %c0_117 = arith.constant 0 : index
    %c0_118 = arith.constant 0 : index
    %384 = vector.load %arg12[%c0_117, %c0_118] : memref<1024x128xbf16, #tpu.memory_space<vmem>>, vector<1024x128xbf16>
    %cst_119 = arith.constant dense<0.000000e+00> : vector<16x128xf32>
    %385 = tpu.matmul %383, %384, %cst_119 {dimension_numbers = #tpu.dot_dimension_numbers<[1], [0], [0], [1], [0, 0, 1, 1], [], []>} : vector<16x1024xbf16>, vector<1024x128xbf16>, vector<16x128xf32> -> vector<16x128xf32>
    %386 = tpu.iota {dimensions = array<i32: 0>} : vector<8x16xi32>
    %387 = tpu.iota {dimensions = array<i32: 1>} : vector<8x16xi32>
    %c2_i32_120 = arith.constant 2 : i32
    %388 = vector.broadcast %c2_i32_120 : i32 to vector<8x16xi32>
    %389 = arith.muli %388, %386 : vector<8x16xi32>
    %390 = arith.cmpi eq, %387, %389 : vector<8x16xi32>
    %391 = arith.extui %390 : vector<8x16xi1> to vector<8x16xi32>
    %392 = arith.sitofp %391 : vector<8x16xi32> to vector<8x16xf32>
    %cst_121 = arith.constant dense<0.000000e+00> : vector<8x128xf32>
    %393 = tpu.matmul %392, %385, %cst_121 {dimension_numbers = #tpu.dot_dimension_numbers<[1], [0], [0], [1], [0, 0, 1, 1], [], []>} : vector<8x16xf32>, vector<16x128xf32>, vector<8x128xf32> -> vector<8x128xf32>
    %c17 = arith.constant 17 : index
    %c0_122 = arith.constant 0 : index
    %394 = vector.load %arg2[%c17, %c0_122] : memref<35x256xf32, #tpu.memory_space<vmem>>, vector<1x128xf32>
    %395 = vector.broadcast %394 : vector<1x128xf32> to vector<8x128xf32>
    %396 = arith.addf %393, %395 : vector<8x128xf32>
    %397 = tpu.iota {dimensions = array<i32: 0>} : vector<64x16xi32>
    %398 = tpu.iota {dimensions = array<i32: 1>} : vector<64x16xi32>
    %c15_i32_123 = arith.constant 15 : i32
    %399 = vector.broadcast %c15_i32_123 : i32 to vector<64x16xi32>
    %400 = arith.andi %397, %399 : vector<64x16xi32>
    %401 = arith.cmpi eq, %400, %398 : vector<64x16xi32>
    %402 = arith.extui %401 : vector<64x16xi1> to vector<64x16xi32>
    %403 = arith.sitofp %402 : vector<64x16xi32> to vector<64x16xf32>
    %404 = tpu.iota {dimensions = array<i32: 0>} : vector<16x64xi32>
    %405 = tpu.iota {dimensions = array<i32: 1>} : vector<16x64xi32>
    %c15_i32_124 = arith.constant 15 : i32
    %406 = vector.broadcast %c15_i32_124 : i32 to vector<16x64xi32>
    %407 = arith.andi %405, %406 : vector<16x64xi32>
    %408 = arith.cmpi eq, %407, %404 : vector<16x64xi32>
    %409 = arith.extui %408 : vector<16x64xi1> to vector<16x64xi32>
    %410 = arith.sitofp %409 : vector<16x64xi32> to vector<16x64xf32>
    %411 = arith.truncf %396 : vector<8x128xf32> to vector<8x128xbf16>
    %412 = tpu.iota {dimensions = array<i32: 0>} : vector<8x1xi32>
    %c3_i32 = arith.constant 3 : i32
    %413 = vector.broadcast %c3_i32 : i32 to vector<8x1xi32>
    %414 = arith.andi %412, %413 : vector<8x1xi32>
    %cst_125 = arith.constant 0.000000e+00 : bf16
    %415 = vector.broadcast %cst_125 : bf16 to vector<8x128xbf16>
    %c1_i32_126 = arith.constant 1 : i32
    %416 = vector.broadcast %c1_i32_126 : i32 to vector<8x1xi32>
    %417 = arith.cmpi sge, %414, %416 : vector<8x1xi32>
    %418 = vector.extract_strided_slice %411 {offsets = [7, 0], sizes = [1, 128], strides = [1, 1]} : vector<8x128xbf16> to vector<1x128xbf16>
    %419 = vector.extract_strided_slice %411 {offsets = [0, 0], sizes = [7, 128], strides = [1, 1]} : vector<8x128xbf16> to vector<7x128xbf16>
    %420 = tpu.concatenate %418, %419 in 0 : vector<1x128xbf16>, vector<7x128xbf16> -> vector<8x128xbf16>
    %421 = vector.shape_cast %417 : vector<8x1xi1> to vector<8x1xi1>
    %422 = vector.broadcast %421 : vector<8x1xi1> to vector<8x128xi1>
    %423 = arith.select %422, %420, %415 : vector<8x128xi1>, vector<8x128xbf16>
    %c2_i32_127 = arith.constant 2 : i32
    %424 = vector.broadcast %c2_i32_127 : i32 to vector<8x1xi32>
    %425 = arith.cmpi sle, %414, %424 : vector<8x1xi32>
    %426 = vector.extract_strided_slice %411 {offsets = [1, 0], sizes = [7, 128], strides = [1, 1]} : vector<8x128xbf16> to vector<7x128xbf16>
    %427 = vector.extract_strided_slice %411 {offsets = [0, 0], sizes = [1, 128], strides = [1, 1]} : vector<8x128xbf16> to vector<1x128xbf16>
    %428 = tpu.concatenate %426, %427 in 0 : vector<7x128xbf16>, vector<1x128xbf16> -> vector<8x128xbf16>
    %429 = vector.shape_cast %425 : vector<8x1xi1> to vector<8x1xi1>
    %430 = vector.broadcast %429 : vector<8x1xi1> to vector<8x128xi1>
    %431 = arith.select %430, %428, %415 : vector<8x128xi1>, vector<8x128xbf16>
    %432 = tpu.concatenate %423, %411, %431 in 1 : vector<8x128xbf16>, vector<8x128xbf16>, vector<8x128xbf16> -> vector<8x384xbf16>
    %433 = arith.truncf %396 : vector<8x128xf32> to vector<8x128xbf16>
    %434 = tpu.iota {dimensions = array<i32: 0>} : vector<8x1xi32>
    %c3_i32_128 = arith.constant 3 : i32
    %435 = vector.broadcast %c3_i32_128 : i32 to vector<8x1xi32>
    %436 = arith.andi %434, %435 : vector<8x1xi32>
    %cst_129 = arith.constant 0.000000e+00 : bf16
    %437 = vector.broadcast %cst_129 : bf16 to vector<8x128xbf16>
    %c1_i32_130 = arith.constant 1 : i32
    %438 = vector.broadcast %c1_i32_130 : i32 to vector<8x1xi32>
    %439 = arith.cmpi sge, %436, %438 : vector<8x1xi32>
    %440 = vector.extract_strided_slice %433 {offsets = [7, 0], sizes = [1, 128], strides = [1, 1]} : vector<8x128xbf16> to vector<1x128xbf16>
    %441 = vector.extract_strided_slice %433 {offsets = [0, 0], sizes = [7, 128], strides = [1, 1]} : vector<8x128xbf16> to vector<7x128xbf16>
    %442 = tpu.concatenate %440, %441 in 0 : vector<1x128xbf16>, vector<7x128xbf16> -> vector<8x128xbf16>
    %443 = vector.shape_cast %439 : vector<8x1xi1> to vector<8x1xi1>
    %444 = vector.broadcast %443 : vector<8x1xi1> to vector<8x128xi1>
    %445 = arith.select %444, %442, %437 : vector<8x128xi1>, vector<8x128xbf16>
    %c2_i32_131 = arith.constant 2 : i32
    %446 = vector.broadcast %c2_i32_131 : i32 to vector<8x1xi32>
    %447 = arith.cmpi sle, %436, %446 : vector<8x1xi32>
    %448 = vector.extract_strided_slice %433 {offsets = [1, 0], sizes = [7, 128], strides = [1, 1]} : vector<8x128xbf16> to vector<7x128xbf16>
    %449 = vector.extract_strided_slice %433 {offsets = [0, 0], sizes = [1, 128], strides = [1, 1]} : vector<8x128xbf16> to vector<1x128xbf16>
    %450 = tpu.concatenate %448, %449 in 0 : vector<7x128xbf16>, vector<1x128xbf16> -> vector<8x128xbf16>
    %451 = vector.shape_cast %447 : vector<8x1xi1> to vector<8x1xi1>
    %452 = vector.broadcast %451 : vector<8x1xi1> to vector<8x128xi1>
    %453 = arith.select %452, %450, %437 : vector<8x128xi1>, vector<8x128xbf16>
    %454 = tpu.concatenate %445, %433, %453 in 1 : vector<8x128xbf16>, vector<8x128xbf16>, vector<8x128xbf16> -> vector<8x384xbf16>
    %455 = tpu.concatenate %432, %454 in 1 : vector<8x384xbf16>, vector<8x384xbf16> -> vector<8x768xbf16>
    %c0_132 = arith.constant 0 : index
    %c0_133 = arith.constant 0 : index
    %456 = vector.load %arg13[%c0_132, %c0_133] : memref<768x64xbf16, #tpu.memory_space<vmem>>, vector<768x64xbf16>
    %cst_134 = arith.constant dense<0.000000e+00> : vector<8x64xf32>
    %457 = tpu.matmul %455, %456, %cst_134 {dimension_numbers = #tpu.dot_dimension_numbers<[1], [0], [0], [1], [0, 0, 1, 1], [], []>} : vector<8x768xbf16>, vector<768x64xbf16>, vector<8x64xf32> -> vector<8x64xf32>
    %c18 = arith.constant 18 : index
    %c0_135 = arith.constant 0 : index
    %458 = vector.load %arg2[%c18, %c0_135] : memref<35x256xf32, #tpu.memory_space<vmem>>, vector<1x64xf32>
    %459 = vector.broadcast %458 : vector<1x64xf32> to vector<8x64xf32>
    %460 = arith.addf %457, %459 : vector<8x64xf32>
    %cst_136 = arith.constant 0.000000e+00 : f32
    %461 = vector.broadcast %cst_136 : f32 to vector<8x64xf32>
    %462 = arith.maximumf %460, %461 : vector<8x64xf32>
    %c19 = arith.constant 19 : index
    %c0_137 = arith.constant 0 : index
    %463 = vector.load %arg2[%c19, %c0_137] : memref<35x256xf32, #tpu.memory_space<vmem>>, vector<1x64xf32>
    %c20 = arith.constant 20 : index
    %c0_138 = arith.constant 0 : index
    %464 = vector.load %arg2[%c20, %c0_138] : memref<35x256xf32, #tpu.memory_space<vmem>>, vector<1x64xf32>
    %cst_139 = arith.constant dense<0.000000e+00> : vector<64xf32>
    %465 = vector.multi_reduction <add>, %462, %cst_139 [0] : vector<8x64xf32> to vector<64xf32>
    %466 = vector.shape_cast %465 : vector<64xf32> to vector<1x64xf32>
    %cst_140 = arith.constant dense<0.000000e+00> : vector<1x16xf32>
    %467 = tpu.matmul %466, %403, %cst_140 {dimension_numbers = #tpu.dot_dimension_numbers<[1], [0], [0], [1], [0, 0, 1, 1], [], []>} : vector<1x64xf32>, vector<64x16xf32>, vector<1x16xf32> -> vector<1x16xf32>
    %cst_141 = arith.constant dense<0.000000e+00> : vector<1x64xf32>
    %468 = tpu.matmul %467, %410, %cst_141 {dimension_numbers = #tpu.dot_dimension_numbers<[1], [0], [0], [1], [0, 0, 1, 1], [], []>} : vector<1x16xf32>, vector<16x64xf32>, vector<1x64xf32> -> vector<1x64xf32>
    %cst_142 = arith.constant 3.125000e-02 : f32
    %469 = vector.broadcast %cst_142 : f32 to vector<1x64xf32>
    %470 = arith.mulf %468, %469 : vector<1x64xf32>
    %471 = vector.broadcast %470 : vector<1x64xf32> to vector<8x64xf32>
    %472 = arith.subf %462, %471 : vector<8x64xf32>
    %473 = arith.mulf %472, %472 : vector<8x64xf32>
    %cst_143 = arith.constant dense<0.000000e+00> : vector<64xf32>
    %474 = vector.multi_reduction <add>, %473, %cst_143 [0] : vector<8x64xf32> to vector<64xf32>
    %475 = vector.shape_cast %474 : vector<64xf32> to vector<1x64xf32>
    %cst_144 = arith.constant dense<0.000000e+00> : vector<1x16xf32>
    %476 = tpu.matmul %475, %403, %cst_144 {dimension_numbers = #tpu.dot_dimension_numbers<[1], [0], [0], [1], [0, 0, 1, 1], [], []>} : vector<1x64xf32>, vector<64x16xf32>, vector<1x16xf32> -> vector<1x16xf32>
    %cst_145 = arith.constant dense<0.000000e+00> : vector<1x64xf32>
    %477 = tpu.matmul %476, %410, %cst_145 {dimension_numbers = #tpu.dot_dimension_numbers<[1], [0], [0], [1], [0, 0, 1, 1], [], []>} : vector<1x16xf32>, vector<16x64xf32>, vector<1x64xf32> -> vector<1x64xf32>
    %cst_146 = arith.constant 3.125000e-02 : f32
    %478 = vector.broadcast %cst_146 : f32 to vector<1x64xf32>
    %479 = arith.mulf %477, %478 : vector<1x64xf32>
    %cst_147 = arith.constant 9.99999974E-6 : f32
    %480 = vector.broadcast %cst_147 : f32 to vector<1x64xf32>
    %481 = arith.addf %479, %480 : vector<1x64xf32>
    %482 = math.rsqrt %481 : vector<1x64xf32>
    %483 = arith.mulf %463, %482 : vector<1x64xf32>
    %484 = vector.broadcast %483 : vector<1x64xf32> to vector<8x64xf32>
    %485 = arith.mulf %472, %484 : vector<8x64xf32>
    %486 = vector.broadcast %464 : vector<1x64xf32> to vector<8x64xf32>
    %487 = arith.addf %485, %486 : vector<8x64xf32>
    %c0_148 = arith.constant 0 : index
    %c0_149 = arith.constant 0 : index
    %488 = vector.load %arg15[%c0_148, %c0_149] : memref<32x64xbf16, #tpu.memory_space<vmem>>, vector<32x64xbf16>
    %cst_150 = arith.constant dense<0.000000e+00> : vector<2x64xf32>
    %489 = tpu.matmul %9, %488, %cst_150 {dimension_numbers = #tpu.dot_dimension_numbers<[1], [0], [0], [1], [0, 0, 1, 1], [], []>} : vector<2x32xbf16>, vector<32x64xbf16>, vector<2x64xf32> -> vector<2x64xf32>
    %c21 = arith.constant 21 : index
    %c0_151 = arith.constant 0 : index
    %490 = vector.load %arg2[%c21, %c0_151] : memref<35x256xf32, #tpu.memory_space<vmem>>, vector<1x64xf32>
    %491 = vector.broadcast %490 : vector<1x64xf32> to vector<2x64xf32>
    %492 = arith.addf %489, %491 : vector<2x64xf32>
    %cst_152 = arith.constant 0.000000e+00 : f32
    %493 = vector.broadcast %cst_152 : f32 to vector<2x64xf32>
    %494 = arith.maximumf %492, %493 : vector<2x64xf32>
    %495 = vector.extract_strided_slice %494 {offsets = [0, 0], sizes = [1, 64], strides = [1, 1]} : vector<2x64xf32> to vector<1x64xf32>
    %496 = vector.shape_cast %495 : vector<1x64xf32> to vector<1x64xf32>
    %497 = vector.broadcast %496 : vector<1x64xf32> to vector<4x64xf32>
    %498 = vector.extract_strided_slice %494 {offsets = [1, 0], sizes = [1, 64], strides = [1, 1]} : vector<2x64xf32> to vector<1x64xf32>
    %499 = vector.shape_cast %498 : vector<1x64xf32> to vector<1x64xf32>
    %500 = vector.broadcast %499 : vector<1x64xf32> to vector<4x64xf32>
    %501 = tpu.concatenate %497, %500 in 0 : vector<4x64xf32>, vector<4x64xf32> -> vector<8x64xf32>
    %502 = arith.addf %487, %501 : vector<8x64xf32>
    %503 = arith.truncf %502 : vector<8x64xf32> to vector<8x64xbf16>
    %504 = tpu.iota {dimensions = array<i32: 0>} : vector<8x1xi32>
    %c3_i32_153 = arith.constant 3 : i32
    %505 = vector.broadcast %c3_i32_153 : i32 to vector<8x1xi32>
    %506 = arith.andi %504, %505 : vector<8x1xi32>
    %cst_154 = arith.constant 0.000000e+00 : bf16
    %507 = vector.broadcast %cst_154 : bf16 to vector<8x64xbf16>
    %c1_i32_155 = arith.constant 1 : i32
    %508 = vector.broadcast %c1_i32_155 : i32 to vector<8x1xi32>
    %509 = arith.cmpi sge, %506, %508 : vector<8x1xi32>
    %510 = vector.extract_strided_slice %503 {offsets = [7, 0], sizes = [1, 64], strides = [1, 1]} : vector<8x64xbf16> to vector<1x64xbf16>
    %511 = vector.extract_strided_slice %503 {offsets = [0, 0], sizes = [7, 64], strides = [1, 1]} : vector<8x64xbf16> to vector<7x64xbf16>
    %512 = tpu.concatenate %510, %511 in 0 : vector<1x64xbf16>, vector<7x64xbf16> -> vector<8x64xbf16>
    %513 = vector.shape_cast %509 : vector<8x1xi1> to vector<8x1xi1>
    %514 = vector.broadcast %513 : vector<8x1xi1> to vector<8x64xi1>
    %515 = arith.select %514, %512, %507 : vector<8x64xi1>, vector<8x64xbf16>
    %c2_i32_156 = arith.constant 2 : i32
    %516 = vector.broadcast %c2_i32_156 : i32 to vector<8x1xi32>
    %517 = arith.cmpi sle, %506, %516 : vector<8x1xi32>
    %518 = vector.extract_strided_slice %503 {offsets = [1, 0], sizes = [7, 64], strides = [1, 1]} : vector<8x64xbf16> to vector<7x64xbf16>
    %519 = vector.extract_strided_slice %503 {offsets = [0, 0], sizes = [1, 64], strides = [1, 1]} : vector<8x64xbf16> to vector<1x64xbf16>
    %520 = tpu.concatenate %518, %519 in 0 : vector<7x64xbf16>, vector<1x64xbf16> -> vector<8x64xbf16>
    %521 = vector.shape_cast %517 : vector<8x1xi1> to vector<8x1xi1>
    %522 = vector.broadcast %521 : vector<8x1xi1> to vector<8x64xi1>
    %523 = arith.select %522, %520, %507 : vector<8x64xi1>, vector<8x64xbf16>
    %524 = tpu.concatenate %515, %503, %523 in 1 : vector<8x64xbf16>, vector<8x64xbf16>, vector<8x64xbf16> -> vector<8x192xbf16>
    %c0_157 = arith.constant 0 : index
    %c0_158 = arith.constant 0 : index
    %525 = vector.load %arg14[%c0_157, %c0_158] : memref<192x64xbf16, #tpu.memory_space<vmem>>, vector<192x64xbf16>
    %cst_159 = arith.constant dense<0.000000e+00> : vector<8x64xf32>
    %526 = tpu.matmul %524, %525, %cst_159 {dimension_numbers = #tpu.dot_dimension_numbers<[1], [0], [0], [1], [0, 0, 1, 1], [], []>} : vector<8x192xbf16>, vector<192x64xbf16>, vector<8x64xf32> -> vector<8x64xf32>
    %c22 = arith.constant 22 : index
    %c0_160 = arith.constant 0 : index
    %527 = vector.load %arg2[%c22, %c0_160] : memref<35x256xf32, #tpu.memory_space<vmem>>, vector<1x64xf32>
    %528 = vector.broadcast %527 : vector<1x64xf32> to vector<8x64xf32>
    %529 = arith.addf %526, %528 : vector<8x64xf32>
    %cst_161 = arith.constant 0.000000e+00 : f32
    %530 = vector.broadcast %cst_161 : f32 to vector<8x64xf32>
    %531 = arith.maximumf %529, %530 : vector<8x64xf32>
    %c23 = arith.constant 23 : index
    %c0_162 = arith.constant 0 : index
    %532 = vector.load %arg2[%c23, %c0_162] : memref<35x256xf32, #tpu.memory_space<vmem>>, vector<1x64xf32>
    %c24 = arith.constant 24 : index
    %c0_163 = arith.constant 0 : index
    %533 = vector.load %arg2[%c24, %c0_163] : memref<35x256xf32, #tpu.memory_space<vmem>>, vector<1x64xf32>
    %cst_164 = arith.constant dense<0.000000e+00> : vector<64xf32>
    %534 = vector.multi_reduction <add>, %531, %cst_164 [0] : vector<8x64xf32> to vector<64xf32>
    %535 = vector.shape_cast %534 : vector<64xf32> to vector<1x64xf32>
    %cst_165 = arith.constant dense<0.000000e+00> : vector<1x16xf32>
    %536 = tpu.matmul %535, %403, %cst_165 {dimension_numbers = #tpu.dot_dimension_numbers<[1], [0], [0], [1], [0, 0, 1, 1], [], []>} : vector<1x64xf32>, vector<64x16xf32>, vector<1x16xf32> -> vector<1x16xf32>
    %cst_166 = arith.constant dense<0.000000e+00> : vector<1x64xf32>
    %537 = tpu.matmul %536, %410, %cst_166 {dimension_numbers = #tpu.dot_dimension_numbers<[1], [0], [0], [1], [0, 0, 1, 1], [], []>} : vector<1x16xf32>, vector<16x64xf32>, vector<1x64xf32> -> vector<1x64xf32>
    %cst_167 = arith.constant 3.125000e-02 : f32
    %538 = vector.broadcast %cst_167 : f32 to vector<1x64xf32>
    %539 = arith.mulf %537, %538 : vector<1x64xf32>
    %540 = vector.broadcast %539 : vector<1x64xf32> to vector<8x64xf32>
    %541 = arith.subf %531, %540 : vector<8x64xf32>
    %542 = arith.mulf %541, %541 : vector<8x64xf32>
    %cst_168 = arith.constant dense<0.000000e+00> : vector<64xf32>
    %543 = vector.multi_reduction <add>, %542, %cst_168 [0] : vector<8x64xf32> to vector<64xf32>
    %544 = vector.shape_cast %543 : vector<64xf32> to vector<1x64xf32>
    %cst_169 = arith.constant dense<0.000000e+00> : vector<1x16xf32>
    %545 = tpu.matmul %544, %403, %cst_169 {dimension_numbers = #tpu.dot_dimension_numbers<[1], [0], [0], [1], [0, 0, 1, 1], [], []>} : vector<1x64xf32>, vector<64x16xf32>, vector<1x16xf32> -> vector<1x16xf32>
    %cst_170 = arith.constant dense<0.000000e+00> : vector<1x64xf32>
    %546 = tpu.matmul %545, %410, %cst_170 {dimension_numbers = #tpu.dot_dimension_numbers<[1], [0], [0], [1], [0, 0, 1, 1], [], []>} : vector<1x16xf32>, vector<16x64xf32>, vector<1x64xf32> -> vector<1x64xf32>
    %cst_171 = arith.constant 3.125000e-02 : f32
    %547 = vector.broadcast %cst_171 : f32 to vector<1x64xf32>
    %548 = arith.mulf %546, %547 : vector<1x64xf32>
    %cst_172 = arith.constant 9.99999974E-6 : f32
    %549 = vector.broadcast %cst_172 : f32 to vector<1x64xf32>
    %550 = arith.addf %548, %549 : vector<1x64xf32>
    %551 = math.rsqrt %550 : vector<1x64xf32>
    %552 = arith.mulf %532, %551 : vector<1x64xf32>
    %553 = vector.broadcast %552 : vector<1x64xf32> to vector<8x64xf32>
    %554 = arith.mulf %541, %553 : vector<8x64xf32>
    %555 = vector.broadcast %533 : vector<1x64xf32> to vector<8x64xf32>
    %556 = arith.addf %554, %555 : vector<8x64xf32>
    %557 = arith.truncf %556 : vector<8x64xf32> to vector<8x64xbf16>
    %558 = tpu.iota {dimensions = array<i32: 0>} : vector<8x1xi32>
    %c3_i32_173 = arith.constant 3 : i32
    %559 = vector.broadcast %c3_i32_173 : i32 to vector<8x1xi32>
    %560 = arith.andi %558, %559 : vector<8x1xi32>
    %cst_174 = arith.constant 0.000000e+00 : bf16
    %561 = vector.broadcast %cst_174 : bf16 to vector<8x64xbf16>
    %c1_i32_175 = arith.constant 1 : i32
    %562 = vector.broadcast %c1_i32_175 : i32 to vector<8x1xi32>
    %563 = arith.cmpi sge, %560, %562 : vector<8x1xi32>
    %564 = vector.extract_strided_slice %557 {offsets = [7, 0], sizes = [1, 64], strides = [1, 1]} : vector<8x64xbf16> to vector<1x64xbf16>
    %565 = vector.extract_strided_slice %557 {offsets = [0, 0], sizes = [7, 64], strides = [1, 1]} : vector<8x64xbf16> to vector<7x64xbf16>
    %566 = tpu.concatenate %564, %565 in 0 : vector<1x64xbf16>, vector<7x64xbf16> -> vector<8x64xbf16>
    %567 = vector.shape_cast %563 : vector<8x1xi1> to vector<8x1xi1>
    %568 = vector.broadcast %567 : vector<8x1xi1> to vector<8x64xi1>
    %569 = arith.select %568, %566, %561 : vector<8x64xi1>, vector<8x64xbf16>
    %c2_i32_176 = arith.constant 2 : i32
    %570 = vector.broadcast %c2_i32_176 : i32 to vector<8x1xi32>
    %571 = arith.cmpi sle, %560, %570 : vector<8x1xi32>
    %572 = vector.extract_strided_slice %557 {offsets = [1, 0], sizes = [7, 64], strides = [1, 1]} : vector<8x64xbf16> to vector<7x64xbf16>
    %573 = vector.extract_strided_slice %557 {offsets = [0, 0], sizes = [1, 64], strides = [1, 1]} : vector<8x64xbf16> to vector<1x64xbf16>
    %574 = tpu.concatenate %572, %573 in 0 : vector<7x64xbf16>, vector<1x64xbf16> -> vector<8x64xbf16>
    %575 = vector.shape_cast %571 : vector<8x1xi1> to vector<8x1xi1>
    %576 = vector.broadcast %575 : vector<8x1xi1> to vector<8x64xi1>
    %577 = arith.select %576, %574, %561 : vector<8x64xi1>, vector<8x64xbf16>
    %578 = tpu.concatenate %569, %557 in 1 : vector<8x64xbf16>, vector<8x64xbf16> -> vector<8x128xbf16>
    %c0_177 = arith.constant 0 : index
    %c0_178 = arith.constant 0 : index
    %579 = vector.load %arg16[%c0_177, %c0_178] : memref<128x128xbf16, #tpu.memory_space<vmem>>, vector<128x128xbf16>
    %cst_179 = arith.constant dense<0.000000e+00> : vector<8x128xf32>
    %580 = tpu.matmul %578, %579, %cst_179 {dimension_numbers = #tpu.dot_dimension_numbers<[1], [0], [0], [1], [0, 0, 1, 1], [], []>} : vector<8x128xbf16>, vector<128x128xbf16>, vector<8x128xf32> -> vector<8x128xf32>
    %581 = tpu.concatenate %557, %577 in 1 : vector<8x64xbf16>, vector<8x64xbf16> -> vector<8x128xbf16>
    %c0_180 = arith.constant 0 : index
    %c0_181 = arith.constant 0 : index
    %582 = vector.load %arg17[%c0_180, %c0_181] : memref<128x128xbf16, #tpu.memory_space<vmem>>, vector<128x128xbf16>
    %cst_182 = arith.constant dense<0.000000e+00> : vector<8x128xf32>
    %583 = tpu.matmul %581, %582, %cst_182 {dimension_numbers = #tpu.dot_dimension_numbers<[1], [0], [0], [1], [0, 0, 1, 1], [], []>} : vector<8x128xbf16>, vector<128x128xbf16>, vector<8x128xf32> -> vector<8x128xf32>
    %584 = tpu.iota {dimensions = array<i32: 0>} : vector<16x8xi32>
    %585 = tpu.iota {dimensions = array<i32: 1>} : vector<16x8xi32>
    %c2_i32_183 = arith.constant 2 : i32
    %586 = vector.broadcast %c2_i32_183 : i32 to vector<16x8xi32>
    %587 = arith.muli %586, %585 : vector<16x8xi32>
    %588 = arith.cmpi eq, %584, %587 : vector<16x8xi32>
    %589 = arith.extui %588 : vector<16x8xi1> to vector<16x8xi32>
    %590 = arith.sitofp %589 : vector<16x8xi32> to vector<16x8xf32>
    %c2_i32_184 = arith.constant 2 : i32
    %591 = vector.broadcast %c2_i32_184 : i32 to vector<16x8xi32>
    %592 = arith.muli %591, %585 : vector<16x8xi32>
    %c1_i32_185 = arith.constant 1 : i32
    %593 = vector.broadcast %c1_i32_185 : i32 to vector<16x8xi32>
    %594 = arith.addi %592, %593 : vector<16x8xi32>
    %595 = arith.cmpi eq, %584, %594 : vector<16x8xi32>
    %596 = arith.extui %595 : vector<16x8xi1> to vector<16x8xi32>
    %597 = arith.sitofp %596 : vector<16x8xi32> to vector<16x8xf32>
    %cst_186 = arith.constant dense<0.000000e+00> : vector<16x128xf32>
    %598 = tpu.matmul %590, %580, %cst_186 {dimension_numbers = #tpu.dot_dimension_numbers<[1], [0], [0], [1], [0, 0, 1, 1], [], []>} : vector<16x8xf32>, vector<8x128xf32>, vector<16x128xf32> -> vector<16x128xf32>
    %cst_187 = arith.constant dense<0.000000e+00> : vector<16x128xf32>
    %599 = tpu.matmul %597, %583, %cst_187 {dimension_numbers = #tpu.dot_dimension_numbers<[1], [0], [0], [1], [0, 0, 1, 1], [], []>} : vector<16x8xf32>, vector<8x128xf32>, vector<16x128xf32> -> vector<16x128xf32>
    %600 = arith.addf %598, %599 : vector<16x128xf32>
    %c25 = arith.constant 25 : index
    %c0_188 = arith.constant 0 : index
    %601 = vector.load %arg2[%c25, %c0_188] : memref<35x256xf32, #tpu.memory_space<vmem>>, vector<1x128xf32>
    %602 = vector.broadcast %601 : vector<1x128xf32> to vector<16x128xf32>
    %603 = arith.addf %600, %602 : vector<16x128xf32>
    %604 = tpu.iota {dimensions = array<i32: 0>} : vector<64x8xi32>
    %605 = tpu.iota {dimensions = array<i32: 1>} : vector<64x8xi32>
    %c7_i32_189 = arith.constant 7 : i32
    %606 = vector.broadcast %c7_i32_189 : i32 to vector<64x8xi32>
    %607 = arith.andi %604, %606 : vector<64x8xi32>
    %608 = arith.cmpi eq, %607, %605 : vector<64x8xi32>
    %609 = arith.extui %608 : vector<64x8xi1> to vector<64x8xi32>
    %610 = arith.sitofp %609 : vector<64x8xi32> to vector<64x8xf32>
    %611 = tpu.iota {dimensions = array<i32: 0>} : vector<8x64xi32>
    %612 = tpu.iota {dimensions = array<i32: 1>} : vector<8x64xi32>
    %c7_i32_190 = arith.constant 7 : i32
    %613 = vector.broadcast %c7_i32_190 : i32 to vector<8x64xi32>
    %614 = arith.andi %612, %613 : vector<8x64xi32>
    %615 = arith.cmpi eq, %614, %611 : vector<8x64xi32>
    %616 = arith.extui %615 : vector<8x64xi1> to vector<8x64xi32>
    %617 = arith.sitofp %616 : vector<8x64xi32> to vector<8x64xf32>
    %618 = arith.truncf %603 : vector<16x128xf32> to vector<16x128xbf16>
    %619 = tpu.iota {dimensions = array<i32: 0>} : vector<16x1xi32>
    %c7_i32_191 = arith.constant 7 : i32
    %620 = vector.broadcast %c7_i32_191 : i32 to vector<16x1xi32>
    %621 = arith.andi %619, %620 : vector<16x1xi32>
    %cst_192 = arith.constant 0.000000e+00 : bf16
    %622 = vector.broadcast %cst_192 : bf16 to vector<16x128xbf16>
    %c1_i32_193 = arith.constant 1 : i32
    %623 = vector.broadcast %c1_i32_193 : i32 to vector<16x1xi32>
    %624 = arith.cmpi sge, %621, %623 : vector<16x1xi32>
    %625 = vector.extract_strided_slice %618 {offsets = [15, 0], sizes = [1, 128], strides = [1, 1]} : vector<16x128xbf16> to vector<1x128xbf16>
    %626 = vector.extract_strided_slice %618 {offsets = [0, 0], sizes = [15, 128], strides = [1, 1]} : vector<16x128xbf16> to vector<15x128xbf16>
    %627 = tpu.concatenate %625, %626 in 0 : vector<1x128xbf16>, vector<15x128xbf16> -> vector<16x128xbf16>
    %628 = vector.shape_cast %624 : vector<16x1xi1> to vector<16x1xi1>
    %629 = vector.broadcast %628 : vector<16x1xi1> to vector<16x128xi1>
    %630 = arith.select %629, %627, %622 : vector<16x128xi1>, vector<16x128xbf16>
    %c6_i32_194 = arith.constant 6 : i32
    %631 = vector.broadcast %c6_i32_194 : i32 to vector<16x1xi32>
    %632 = arith.cmpi sle, %621, %631 : vector<16x1xi32>
    %633 = vector.extract_strided_slice %618 {offsets = [1, 0], sizes = [15, 128], strides = [1, 1]} : vector<16x128xbf16> to vector<15x128xbf16>
    %634 = vector.extract_strided_slice %618 {offsets = [0, 0], sizes = [1, 128], strides = [1, 1]} : vector<16x128xbf16> to vector<1x128xbf16>
    %635 = tpu.concatenate %633, %634 in 0 : vector<15x128xbf16>, vector<1x128xbf16> -> vector<16x128xbf16>
    %636 = vector.shape_cast %632 : vector<16x1xi1> to vector<16x1xi1>
    %637 = vector.broadcast %636 : vector<16x1xi1> to vector<16x128xi1>
    %638 = arith.select %637, %635, %622 : vector<16x128xi1>, vector<16x128xbf16>
    %639 = tpu.concatenate %630, %618, %638 in 1 : vector<16x128xbf16>, vector<16x128xbf16>, vector<16x128xbf16> -> vector<16x384xbf16>
    %640 = arith.truncf %216 : vector<16x128xf32> to vector<16x128xbf16>
    %641 = tpu.iota {dimensions = array<i32: 0>} : vector<16x1xi32>
    %c7_i32_195 = arith.constant 7 : i32
    %642 = vector.broadcast %c7_i32_195 : i32 to vector<16x1xi32>
    %643 = arith.andi %641, %642 : vector<16x1xi32>
    %cst_196 = arith.constant 0.000000e+00 : bf16
    %644 = vector.broadcast %cst_196 : bf16 to vector<16x128xbf16>
    %c1_i32_197 = arith.constant 1 : i32
    %645 = vector.broadcast %c1_i32_197 : i32 to vector<16x1xi32>
    %646 = arith.cmpi sge, %643, %645 : vector<16x1xi32>
    %647 = vector.extract_strided_slice %640 {offsets = [15, 0], sizes = [1, 128], strides = [1, 1]} : vector<16x128xbf16> to vector<1x128xbf16>
    %648 = vector.extract_strided_slice %640 {offsets = [0, 0], sizes = [15, 128], strides = [1, 1]} : vector<16x128xbf16> to vector<15x128xbf16>
    %649 = tpu.concatenate %647, %648 in 0 : vector<1x128xbf16>, vector<15x128xbf16> -> vector<16x128xbf16>
    %650 = vector.shape_cast %646 : vector<16x1xi1> to vector<16x1xi1>
    %651 = vector.broadcast %650 : vector<16x1xi1> to vector<16x128xi1>
    %652 = arith.select %651, %649, %644 : vector<16x128xi1>, vector<16x128xbf16>
    %c6_i32_198 = arith.constant 6 : i32
    %653 = vector.broadcast %c6_i32_198 : i32 to vector<16x1xi32>
    %654 = arith.cmpi sle, %643, %653 : vector<16x1xi32>
    %655 = vector.extract_strided_slice %640 {offsets = [1, 0], sizes = [15, 128], strides = [1, 1]} : vector<16x128xbf16> to vector<15x128xbf16>
    %656 = vector.extract_strided_slice %640 {offsets = [0, 0], sizes = [1, 128], strides = [1, 1]} : vector<16x128xbf16> to vector<1x128xbf16>
    %657 = tpu.concatenate %655, %656 in 0 : vector<15x128xbf16>, vector<1x128xbf16> -> vector<16x128xbf16>
    %658 = vector.shape_cast %654 : vector<16x1xi1> to vector<16x1xi1>
    %659 = vector.broadcast %658 : vector<16x1xi1> to vector<16x128xi1>
    %660 = arith.select %659, %657, %644 : vector<16x128xi1>, vector<16x128xbf16>
    %661 = tpu.concatenate %652, %640, %660 in 1 : vector<16x128xbf16>, vector<16x128xbf16>, vector<16x128xbf16> -> vector<16x384xbf16>
    %662 = tpu.concatenate %639, %661 in 1 : vector<16x384xbf16>, vector<16x384xbf16> -> vector<16x768xbf16>
    %c0_199 = arith.constant 0 : index
    %c0_200 = arith.constant 0 : index
    %663 = vector.load %arg18[%c0_199, %c0_200] : memref<768x64xbf16, #tpu.memory_space<vmem>>, vector<768x64xbf16>
    %cst_201 = arith.constant dense<0.000000e+00> : vector<16x64xf32>
    %664 = tpu.matmul %662, %663, %cst_201 {dimension_numbers = #tpu.dot_dimension_numbers<[1], [0], [0], [1], [0, 0, 1, 1], [], []>} : vector<16x768xbf16>, vector<768x64xbf16>, vector<16x64xf32> -> vector<16x64xf32>
    %c26 = arith.constant 26 : index
    %c0_202 = arith.constant 0 : index
    %665 = vector.load %arg2[%c26, %c0_202] : memref<35x256xf32, #tpu.memory_space<vmem>>, vector<1x64xf32>
    %666 = vector.broadcast %665 : vector<1x64xf32> to vector<16x64xf32>
    %667 = arith.addf %664, %666 : vector<16x64xf32>
    %cst_203 = arith.constant 0.000000e+00 : f32
    %668 = vector.broadcast %cst_203 : f32 to vector<16x64xf32>
    %669 = arith.maximumf %667, %668 : vector<16x64xf32>
    %c27 = arith.constant 27 : index
    %c0_204 = arith.constant 0 : index
    %670 = vector.load %arg2[%c27, %c0_204] : memref<35x256xf32, #tpu.memory_space<vmem>>, vector<1x64xf32>
    %c28 = arith.constant 28 : index
    %c0_205 = arith.constant 0 : index
    %671 = vector.load %arg2[%c28, %c0_205] : memref<35x256xf32, #tpu.memory_space<vmem>>, vector<1x64xf32>
    %cst_206 = arith.constant dense<0.000000e+00> : vector<64xf32>
    %672 = vector.multi_reduction <add>, %669, %cst_206 [0] : vector<16x64xf32> to vector<64xf32>
    %673 = vector.shape_cast %672 : vector<64xf32> to vector<1x64xf32>
    %cst_207 = arith.constant dense<0.000000e+00> : vector<1x8xf32>
    %674 = tpu.matmul %673, %610, %cst_207 {dimension_numbers = #tpu.dot_dimension_numbers<[1], [0], [0], [1], [0, 0, 1, 1], [], []>} : vector<1x64xf32>, vector<64x8xf32>, vector<1x8xf32> -> vector<1x8xf32>
    %cst_208 = arith.constant dense<0.000000e+00> : vector<1x64xf32>
    %675 = tpu.matmul %674, %617, %cst_208 {dimension_numbers = #tpu.dot_dimension_numbers<[1], [0], [0], [1], [0, 0, 1, 1], [], []>} : vector<1x8xf32>, vector<8x64xf32>, vector<1x64xf32> -> vector<1x64xf32>
    %cst_209 = arith.constant 7.812500e-03 : f32
    %676 = vector.broadcast %cst_209 : f32 to vector<1x64xf32>
    %677 = arith.mulf %675, %676 : vector<1x64xf32>
    %678 = vector.broadcast %677 : vector<1x64xf32> to vector<16x64xf32>
    %679 = arith.subf %669, %678 : vector<16x64xf32>
    %680 = arith.mulf %679, %679 : vector<16x64xf32>
    %cst_210 = arith.constant dense<0.000000e+00> : vector<64xf32>
    %681 = vector.multi_reduction <add>, %680, %cst_210 [0] : vector<16x64xf32> to vector<64xf32>
    %682 = vector.shape_cast %681 : vector<64xf32> to vector<1x64xf32>
    %cst_211 = arith.constant dense<0.000000e+00> : vector<1x8xf32>
    %683 = tpu.matmul %682, %610, %cst_211 {dimension_numbers = #tpu.dot_dimension_numbers<[1], [0], [0], [1], [0, 0, 1, 1], [], []>} : vector<1x64xf32>, vector<64x8xf32>, vector<1x8xf32> -> vector<1x8xf32>
    %cst_212 = arith.constant dense<0.000000e+00> : vector<1x64xf32>
    %684 = tpu.matmul %683, %617, %cst_212 {dimension_numbers = #tpu.dot_dimension_numbers<[1], [0], [0], [1], [0, 0, 1, 1], [], []>} : vector<1x8xf32>, vector<8x64xf32>, vector<1x64xf32> -> vector<1x64xf32>
    %cst_213 = arith.constant 7.812500e-03 : f32
    %685 = vector.broadcast %cst_213 : f32 to vector<1x64xf32>
    %686 = arith.mulf %684, %685 : vector<1x64xf32>
    %cst_214 = arith.constant 9.99999974E-6 : f32
    %687 = vector.broadcast %cst_214 : f32 to vector<1x64xf32>
    %688 = arith.addf %686, %687 : vector<1x64xf32>
    %689 = math.rsqrt %688 : vector<1x64xf32>
    %690 = arith.mulf %670, %689 : vector<1x64xf32>
    %691 = vector.broadcast %690 : vector<1x64xf32> to vector<16x64xf32>
    %692 = arith.mulf %679, %691 : vector<16x64xf32>
    %693 = vector.broadcast %671 : vector<1x64xf32> to vector<16x64xf32>
    %694 = arith.addf %692, %693 : vector<16x64xf32>
    %c0_215 = arith.constant 0 : index
    %c0_216 = arith.constant 0 : index
    %695 = vector.load %arg20[%c0_215, %c0_216] : memref<32x64xbf16, #tpu.memory_space<vmem>>, vector<32x64xbf16>
    %cst_217 = arith.constant dense<0.000000e+00> : vector<2x64xf32>
    %696 = tpu.matmul %9, %695, %cst_217 {dimension_numbers = #tpu.dot_dimension_numbers<[1], [0], [0], [1], [0, 0, 1, 1], [], []>} : vector<2x32xbf16>, vector<32x64xbf16>, vector<2x64xf32> -> vector<2x64xf32>
    %c29 = arith.constant 29 : index
    %c0_218 = arith.constant 0 : index
    %697 = vector.load %arg2[%c29, %c0_218] : memref<35x256xf32, #tpu.memory_space<vmem>>, vector<1x64xf32>
    %698 = vector.broadcast %697 : vector<1x64xf32> to vector<2x64xf32>
    %699 = arith.addf %696, %698 : vector<2x64xf32>
    %cst_219 = arith.constant 0.000000e+00 : f32
    %700 = vector.broadcast %cst_219 : f32 to vector<2x64xf32>
    %701 = arith.maximumf %699, %700 : vector<2x64xf32>
    %702 = vector.extract_strided_slice %701 {offsets = [0, 0], sizes = [1, 64], strides = [1, 1]} : vector<2x64xf32> to vector<1x64xf32>
    %703 = vector.shape_cast %702 : vector<1x64xf32> to vector<1x64xf32>
    %704 = vector.broadcast %703 : vector<1x64xf32> to vector<8x64xf32>
    %705 = vector.extract_strided_slice %701 {offsets = [1, 0], sizes = [1, 64], strides = [1, 1]} : vector<2x64xf32> to vector<1x64xf32>
    %706 = vector.shape_cast %705 : vector<1x64xf32> to vector<1x64xf32>
    %707 = vector.broadcast %706 : vector<1x64xf32> to vector<8x64xf32>
    %708 = tpu.concatenate %704, %707 in 0 : vector<8x64xf32>, vector<8x64xf32> -> vector<16x64xf32>
    %709 = arith.addf %694, %708 : vector<16x64xf32>
    %710 = arith.truncf %709 : vector<16x64xf32> to vector<16x64xbf16>
    %711 = tpu.iota {dimensions = array<i32: 0>} : vector<16x1xi32>
    %c7_i32_220 = arith.constant 7 : i32
    %712 = vector.broadcast %c7_i32_220 : i32 to vector<16x1xi32>
    %713 = arith.andi %711, %712 : vector<16x1xi32>
    %cst_221 = arith.constant 0.000000e+00 : bf16
    %714 = vector.broadcast %cst_221 : bf16 to vector<16x64xbf16>
    %c1_i32_222 = arith.constant 1 : i32
    %715 = vector.broadcast %c1_i32_222 : i32 to vector<16x1xi32>
    %716 = arith.cmpi sge, %713, %715 : vector<16x1xi32>
    %717 = vector.extract_strided_slice %710 {offsets = [15, 0], sizes = [1, 64], strides = [1, 1]} : vector<16x64xbf16> to vector<1x64xbf16>
    %718 = vector.extract_strided_slice %710 {offsets = [0, 0], sizes = [15, 64], strides = [1, 1]} : vector<16x64xbf16> to vector<15x64xbf16>
    %719 = tpu.concatenate %717, %718 in 0 : vector<1x64xbf16>, vector<15x64xbf16> -> vector<16x64xbf16>
    %720 = vector.shape_cast %716 : vector<16x1xi1> to vector<16x1xi1>
    %721 = vector.broadcast %720 : vector<16x1xi1> to vector<16x64xi1>
    %722 = arith.select %721, %719, %714 : vector<16x64xi1>, vector<16x64xbf16>
    %c6_i32_223 = arith.constant 6 : i32
    %723 = vector.broadcast %c6_i32_223 : i32 to vector<16x1xi32>
    %724 = arith.cmpi sle, %713, %723 : vector<16x1xi32>
    %725 = vector.extract_strided_slice %710 {offsets = [1, 0], sizes = [15, 64], strides = [1, 1]} : vector<16x64xbf16> to vector<15x64xbf16>
    %726 = vector.extract_strided_slice %710 {offsets = [0, 0], sizes = [1, 64], strides = [1, 1]} : vector<16x64xbf16> to vector<1x64xbf16>
    %727 = tpu.concatenate %725, %726 in 0 : vector<15x64xbf16>, vector<1x64xbf16> -> vector<16x64xbf16>
    %728 = vector.shape_cast %724 : vector<16x1xi1> to vector<16x1xi1>
    %729 = vector.broadcast %728 : vector<16x1xi1> to vector<16x64xi1>
    %730 = arith.select %729, %727, %714 : vector<16x64xi1>, vector<16x64xbf16>
    %731 = tpu.concatenate %722, %710, %730 in 1 : vector<16x64xbf16>, vector<16x64xbf16>, vector<16x64xbf16> -> vector<16x192xbf16>
    %c0_224 = arith.constant 0 : index
    %c0_225 = arith.constant 0 : index
    %732 = vector.load %arg19[%c0_224, %c0_225] : memref<192x64xbf16, #tpu.memory_space<vmem>>, vector<192x64xbf16>
    %cst_226 = arith.constant dense<0.000000e+00> : vector<16x64xf32>
    %733 = tpu.matmul %731, %732, %cst_226 {dimension_numbers = #tpu.dot_dimension_numbers<[1], [0], [0], [1], [0, 0, 1, 1], [], []>} : vector<16x192xbf16>, vector<192x64xbf16>, vector<16x64xf32> -> vector<16x64xf32>
    %c30 = arith.constant 30 : index
    %c0_227 = arith.constant 0 : index
    %734 = vector.load %arg2[%c30, %c0_227] : memref<35x256xf32, #tpu.memory_space<vmem>>, vector<1x64xf32>
    %735 = vector.broadcast %734 : vector<1x64xf32> to vector<16x64xf32>
    %736 = arith.addf %733, %735 : vector<16x64xf32>
    %cst_228 = arith.constant 0.000000e+00 : f32
    %737 = vector.broadcast %cst_228 : f32 to vector<16x64xf32>
    %738 = arith.maximumf %736, %737 : vector<16x64xf32>
    %c31 = arith.constant 31 : index
    %c0_229 = arith.constant 0 : index
    %739 = vector.load %arg2[%c31, %c0_229] : memref<35x256xf32, #tpu.memory_space<vmem>>, vector<1x64xf32>
    %c32 = arith.constant 32 : index
    %c0_230 = arith.constant 0 : index
    %740 = vector.load %arg2[%c32, %c0_230] : memref<35x256xf32, #tpu.memory_space<vmem>>, vector<1x64xf32>
    %cst_231 = arith.constant dense<0.000000e+00> : vector<64xf32>
    %741 = vector.multi_reduction <add>, %738, %cst_231 [0] : vector<16x64xf32> to vector<64xf32>
    %742 = vector.shape_cast %741 : vector<64xf32> to vector<1x64xf32>
    %cst_232 = arith.constant dense<0.000000e+00> : vector<1x8xf32>
    %743 = tpu.matmul %742, %610, %cst_232 {dimension_numbers = #tpu.dot_dimension_numbers<[1], [0], [0], [1], [0, 0, 1, 1], [], []>} : vector<1x64xf32>, vector<64x8xf32>, vector<1x8xf32> -> vector<1x8xf32>
    %cst_233 = arith.constant dense<0.000000e+00> : vector<1x64xf32>
    %744 = tpu.matmul %743, %617, %cst_233 {dimension_numbers = #tpu.dot_dimension_numbers<[1], [0], [0], [1], [0, 0, 1, 1], [], []>} : vector<1x8xf32>, vector<8x64xf32>, vector<1x64xf32> -> vector<1x64xf32>
    %cst_234 = arith.constant 7.812500e-03 : f32
    %745 = vector.broadcast %cst_234 : f32 to vector<1x64xf32>
    %746 = arith.mulf %744, %745 : vector<1x64xf32>
    %747 = vector.broadcast %746 : vector<1x64xf32> to vector<16x64xf32>
    %748 = arith.subf %738, %747 : vector<16x64xf32>
    %749 = arith.mulf %748, %748 : vector<16x64xf32>
    %cst_235 = arith.constant dense<0.000000e+00> : vector<64xf32>
    %750 = vector.multi_reduction <add>, %749, %cst_235 [0] : vector<16x64xf32> to vector<64xf32>
    %751 = vector.shape_cast %750 : vector<64xf32> to vector<1x64xf32>
    %cst_236 = arith.constant dense<0.000000e+00> : vector<1x8xf32>
    %752 = tpu.matmul %751, %610, %cst_236 {dimension_numbers = #tpu.dot_dimension_numbers<[1], [0], [0], [1], [0, 0, 1, 1], [], []>} : vector<1x64xf32>, vector<64x8xf32>, vector<1x8xf32> -> vector<1x8xf32>
    %cst_237 = arith.constant dense<0.000000e+00> : vector<1x64xf32>
    %753 = tpu.matmul %752, %617, %cst_237 {dimension_numbers = #tpu.dot_dimension_numbers<[1], [0], [0], [1], [0, 0, 1, 1], [], []>} : vector<1x8xf32>, vector<8x64xf32>, vector<1x64xf32> -> vector<1x64xf32>
    %cst_238 = arith.constant 7.812500e-03 : f32
    %754 = vector.broadcast %cst_238 : f32 to vector<1x64xf32>
    %755 = arith.mulf %753, %754 : vector<1x64xf32>
    %cst_239 = arith.constant 9.99999974E-6 : f32
    %756 = vector.broadcast %cst_239 : f32 to vector<1x64xf32>
    %757 = arith.addf %755, %756 : vector<1x64xf32>
    %758 = math.rsqrt %757 : vector<1x64xf32>
    %759 = arith.mulf %739, %758 : vector<1x64xf32>
    %760 = vector.broadcast %759 : vector<1x64xf32> to vector<16x64xf32>
    %761 = arith.mulf %748, %760 : vector<16x64xf32>
    %762 = vector.broadcast %740 : vector<1x64xf32> to vector<16x64xf32>
    %763 = arith.addf %761, %762 : vector<16x64xf32>
    %764 = arith.truncf %763 : vector<16x64xf32> to vector<16x64xbf16>
    %765 = tpu.iota {dimensions = array<i32: 0>} : vector<16x1xi32>
    %c7_i32_240 = arith.constant 7 : i32
    %766 = vector.broadcast %c7_i32_240 : i32 to vector<16x1xi32>
    %767 = arith.andi %765, %766 : vector<16x1xi32>
    %cst_241 = arith.constant 0.000000e+00 : bf16
    %768 = vector.broadcast %cst_241 : bf16 to vector<16x64xbf16>
    %c1_i32_242 = arith.constant 1 : i32
    %769 = vector.broadcast %c1_i32_242 : i32 to vector<16x1xi32>
    %770 = arith.cmpi sge, %767, %769 : vector<16x1xi32>
    %771 = vector.extract_strided_slice %764 {offsets = [15, 0], sizes = [1, 64], strides = [1, 1]} : vector<16x64xbf16> to vector<1x64xbf16>
    %772 = vector.extract_strided_slice %764 {offsets = [0, 0], sizes = [15, 64], strides = [1, 1]} : vector<16x64xbf16> to vector<15x64xbf16>
    %773 = tpu.concatenate %771, %772 in 0 : vector<1x64xbf16>, vector<15x64xbf16> -> vector<16x64xbf16>
    %774 = vector.shape_cast %770 : vector<16x1xi1> to vector<16x1xi1>
    %775 = vector.broadcast %774 : vector<16x1xi1> to vector<16x64xi1>
    %776 = arith.select %775, %773, %768 : vector<16x64xi1>, vector<16x64xbf16>
    %c6_i32_243 = arith.constant 6 : i32
    %777 = vector.broadcast %c6_i32_243 : i32 to vector<16x1xi32>
    %778 = arith.cmpi sle, %767, %777 : vector<16x1xi32>
    %779 = vector.extract_strided_slice %764 {offsets = [1, 0], sizes = [15, 64], strides = [1, 1]} : vector<16x64xbf16> to vector<15x64xbf16>
    %780 = vector.extract_strided_slice %764 {offsets = [0, 0], sizes = [1, 64], strides = [1, 1]} : vector<16x64xbf16> to vector<1x64xbf16>
    %781 = tpu.concatenate %779, %780 in 0 : vector<15x64xbf16>, vector<1x64xbf16> -> vector<16x64xbf16>
    %782 = vector.shape_cast %778 : vector<16x1xi1> to vector<16x1xi1>
    %783 = vector.broadcast %782 : vector<16x1xi1> to vector<16x64xi1>
    %784 = arith.select %783, %781, %768 : vector<16x64xi1>, vector<16x64xbf16>
    %785 = tpu.concatenate %776, %764 in 1 : vector<16x64xbf16>, vector<16x64xbf16> -> vector<16x128xbf16>
    %c0_244 = arith.constant 0 : index
    %c0_245 = arith.constant 0 : index
    %786 = vector.load %arg21[%c0_244, %c0_245] : memref<128x128xbf16, #tpu.memory_space<vmem>>, vector<128x128xbf16>
    %cst_246 = arith.constant dense<0.000000e+00> : vector<16x128xf32>
    %787 = tpu.matmul %785, %786, %cst_246 {dimension_numbers = #tpu.dot_dimension_numbers<[1], [0], [0], [1], [0, 0, 1, 1], [], []>} : vector<16x128xbf16>, vector<128x128xbf16>, vector<16x128xf32> -> vector<16x128xf32>
    %788 = tpu.concatenate %764, %784 in 1 : vector<16x64xbf16>, vector<16x64xbf16> -> vector<16x128xbf16>
    %c0_247 = arith.constant 0 : index
    %c0_248 = arith.constant 0 : index
    %789 = vector.load %arg22[%c0_247, %c0_248] : memref<128x128xbf16, #tpu.memory_space<vmem>>, vector<128x128xbf16>
    %cst_249 = arith.constant dense<0.000000e+00> : vector<16x128xf32>
    %790 = tpu.matmul %788, %789, %cst_249 {dimension_numbers = #tpu.dot_dimension_numbers<[1], [0], [0], [1], [0, 0, 1, 1], [], []>} : vector<16x128xbf16>, vector<128x128xbf16>, vector<16x128xf32> -> vector<16x128xf32>
    %791 = tpu.iota {dimensions = array<i32: 0>} : vector<32x16xi32>
    %792 = tpu.iota {dimensions = array<i32: 1>} : vector<32x16xi32>
    %c2_i32_250 = arith.constant 2 : i32
    %793 = vector.broadcast %c2_i32_250 : i32 to vector<32x16xi32>
    %794 = arith.muli %793, %792 : vector<32x16xi32>
    %795 = arith.cmpi eq, %791, %794 : vector<32x16xi32>
    %796 = arith.extui %795 : vector<32x16xi1> to vector<32x16xi32>
    %797 = arith.sitofp %796 : vector<32x16xi32> to vector<32x16xf32>
    %c2_i32_251 = arith.constant 2 : i32
    %798 = vector.broadcast %c2_i32_251 : i32 to vector<32x16xi32>
    %799 = arith.muli %798, %792 : vector<32x16xi32>
    %c1_i32_252 = arith.constant 1 : i32
    %800 = vector.broadcast %c1_i32_252 : i32 to vector<32x16xi32>
    %801 = arith.addi %799, %800 : vector<32x16xi32>
    %802 = arith.cmpi eq, %791, %801 : vector<32x16xi32>
    %803 = arith.extui %802 : vector<32x16xi1> to vector<32x16xi32>
    %804 = arith.sitofp %803 : vector<32x16xi32> to vector<32x16xf32>
    %cst_253 = arith.constant dense<0.000000e+00> : vector<32x128xf32>
    %805 = tpu.matmul %797, %787, %cst_253 {dimension_numbers = #tpu.dot_dimension_numbers<[1], [0], [0], [1], [0, 0, 1, 1], [], []>} : vector<32x16xf32>, vector<16x128xf32>, vector<32x128xf32> -> vector<32x128xf32>
    %cst_254 = arith.constant dense<0.000000e+00> : vector<32x128xf32>
    %806 = tpu.matmul %804, %790, %cst_254 {dimension_numbers = #tpu.dot_dimension_numbers<[1], [0], [0], [1], [0, 0, 1, 1], [], []>} : vector<32x16xf32>, vector<16x128xf32>, vector<32x128xf32> -> vector<32x128xf32>
    %807 = arith.addf %805, %806 : vector<32x128xf32>
    %c33 = arith.constant 33 : index
    %c0_255 = arith.constant 0 : index
    %808 = vector.load %arg2[%c33, %c0_255] : memref<35x256xf32, #tpu.memory_space<vmem>>, vector<1x128xf32>
    %809 = vector.broadcast %808 : vector<1x128xf32> to vector<32x128xf32>
    %810 = arith.addf %807, %809 : vector<32x128xf32>
    %811 = arith.truncf %810 : vector<32x128xf32> to vector<32x128xbf16>
    %c0_256 = arith.constant 0 : index
    %c0_257 = arith.constant 0 : index
    %812 = vector.load %arg23[%c0_256, %c0_257] : memref<128x48xbf16, #tpu.memory_space<vmem>>, vector<128x48xbf16>
    %cst_258 = arith.constant dense<0.000000e+00> : vector<32x48xf32>
    %813 = tpu.matmul %811, %812, %cst_258 {dimension_numbers = #tpu.dot_dimension_numbers<[1], [0], [0], [1], [0, 0, 1, 1], [], []>} : vector<32x128xbf16>, vector<128x48xbf16>, vector<32x48xf32> -> vector<32x48xf32>
    %c34 = arith.constant 34 : index
    %c0_259 = arith.constant 0 : index
    %814 = vector.load %arg2[%c34, %c0_259] : memref<35x256xf32, #tpu.memory_space<vmem>>, vector<1x48xf32>
    %815 = vector.broadcast %814 : vector<1x48xf32> to vector<32x48xf32>
    %816 = arith.addf %813, %815 : vector<32x48xf32>
    %c0_260 = arith.constant 0 : index
    %c0_261 = arith.constant 0 : index
    %817 = vector.load %arg24[%c0_260, %c0_261] : memref<32x48xf32, #tpu.memory_space<vmem>>, vector<32x48xf32>
    tpu.vector_store %arg24[%c0_260, %c0_261], %816 {strides = array<i32>} : memref<32x48xf32, #tpu.memory_space<vmem>>, vector<32x48xf32>,
    return
  }
}

</mosaic_0001>

<bundles_post_ra>
// kernel: forward.1
= control target key start
LH: loop header
LB: loop body
LE: loop exit
PB: predicated region body
PF: predicated region fallthrough
CT: control target
= control target key end

     0   :  { %s18585_s0 = inlined_call_operand.vmem [shape: bf16[32,48], index: 0, kind: input, shape index: {}]   ;;  %s18586_s1 = inlined_call_operand.vmem [shape: f32[2,32], index: 1, kind: input, shape index: {}]   ;;  %s18587_s2 = inlined_call_operand.hbm [shape: f32[35,256], index: 2, kind: input, shape index: {}]   ;;  %s18588_s3 = inlined_call_operand.hbm [shape: bf16[32,32], index: 3, kind: input, shape index: {}]   ;;  %s18589_s4 = inlined_call_operand.hbm [shape: bf16[144,128], index: 4, kind: input, shape index: {}]   ;;  %s18590_s5 = inlined_call_operand.vmem [shape: bf16[384,256], index: 5, kind: input, shape index: {}]   ;;  %s18591_s6 = inlined_call_operand.vmem [shape: bf16[768,256], index: 6, kind: input, shape index: {}]   ;;  %s18592_s7 = inlined_call_operand.hbm [shape: bf16[32,256], index: 7, kind: input, shape index: {}]   ;;  %s18593_s8 = inlined_call_operand.hbm [shape: bf16[1024,128], index: 8, kind: input, shape index: {}]   ;;  %s18594_s9 = inlined_call_operand.hbm [shape: bf16[384,256], index: 9, kind: input, shape index: {}]   ;;  %s18595_s10 = inlined_call_operand.vmem [shape: bf16[768,256], index: 10, kind: input, shape index: {}]   ;;  %s18596_s11 = inlined_call_operand.hbm [shape: bf16[32,256], index: 11, kind: input, shape index: {}]   ;;  %s18597_s12 = inlined_call_operand.hbm [shape: bf16[1024,128], index: 12, kind: input, shape index: {}]   ;;  %s18598_s13 = inlined_call_operand.vmem [shape: bf16[768,64], index: 13, kind: input, shape index: {}]   ;;  %s18599_s14 = inlined_call_operand.vmem [shape: bf16[192,64], index: 14, kind: input, shape index: {}]   ;;  %s18600_s15 = inlined_call_operand.hbm [shape: bf16[32,64], index: 15, kind: input, shape index: {}]   ;;  %s18601_s16 = inlined_call_operand.hbm [shape: bf16[128,128], index: 16, kind: input, shape index: {}]   ;;  %s18602_s17 = inlined_call_operand.hbm [shape: bf16[128,128], index: 17, kind: input, shape index: {}]   ;;  %s18603_s18 = inlined_call_operand.vmem [shape: bf16[768,64], index: 18, kind: input, shape index: {}]   ;;  %s18604_s19 = inlined_call_operand.vmem [shape: bf16[192,64], index: 19, kind: input, shape index: {}]   ;;  %s18605_s20 = inlined_call_operand.hbm [shape: bf16[32,64], index: 20, kind: input, shape index: {}]   ;;  %s18606_s21 = inlined_call_operand.hbm [shape: bf16[128,128], index: 21, kind: input, shape index: {}]   ;;  %s18607_s22 = inlined_call_operand.hbm [shape: bf16[128,128], index: 22, kind: input, shape index: {}]   ;;  %s18608_s23 = inlined_call_operand.vmem [shape: bf16[128,48], index: 23, kind: input, shape index: {}]   ;;  %s18609_s24 = inlined_call_operand.vmem [shape: f32[32,48], index: 24, kind: output, shape index: {}]  }
   0x1   :  { %18916 = sst [smem:[#allocation96_spill]] %s18585_s0 }
   0x2   :  { %18917 = sst [smem:[#allocation97_spill]] %s18586_s1 }
   0x3   :  { %18918 = sst [smem:[#allocation98_spill]] %s18587_s2 }
   0x4   :  { %18919 = sst [smem:[#allocation99_spill]] %s18588_s3 }
   0x5   :  { %18920 = sst [smem:[#allocation100_spill]] %s18589_s4 }
   0x6   :  { %18921 = sst [smem:[#allocation101_spill]] %s18590_s5 }
   0x7   :  { %18922 = sst [smem:[#allocation102_spill]] %s18591_s6 }
   0x8   :  { %18923 = sst [smem:[#allocation103_spill]] %s18592_s7 }
   0x9   :  { %18924 = sst [smem:[#allocation104_spill]] %s18593_s8 }
   0xa   :  { %29 = vsyncpa [#allocation3], 0 }
   0xb   :  { %30 = vsyncpa [#allocation5], 0 }
   0xc   :  { %31 = vsyncpa [#allocation8], 0 }
   0xd   :  { %32 = vsyncpa [#allocation11], 0 }
   0xe   :  { %33 = vsyncpa [#allocation14], 0 }
   0xf   :  { %34 = vsyncpa [#allocation17], 0 }
  0x10   :  { %35 = vsyncpa [#allocation20], 0 }
  0x11   :  { %36 = vsyncpa [#allocation23], 0  ;;  %s14287_s5 = smov [#allocation4]  }
  0x12   :  { %s58_s26 = sshll.u32 %s14287_s5, 4  ;;  %s59_s26 = int_to_ptr.vmem [resolvable:$true] %s58_s26 }
  0x13   :  { %s13999_s27 = scalar_lea.vmem %s59_s26, 256  ;;  %p14004_p1 = scmp.lt.s32.totalorder %s59_s26, %s59_s26 }
  0x14   :  { %p14000_p0 = scmp.ne.s32.totalorder %s59_s26, %s13999_s27  ;;  %p14005_p2 = scmp.lt.s32.totalorder %s13999_s27, %s13999_s27 }
  0x16   :  { %p14006_p3 = por %p14005_p2, %p14004_p1 }
  0x18   :  { %p14007_p4 = pnand %p14006_p3, %p14000_p0 }
  0x1a   :  { %14010 = shalt.err (!%p14007_p4)
}
  0x1b   :  { %s14288_s28 = smov 64   ;;  %s14289_s6 = smov 4  }
  0x1c   :  { %s18925_s0 = sld [smem:[#allocation99_spill]]  ;;  %s14290_s7 = smov [#allocation7]  }
  0x1d   :  { %s86_s30 = sshll.u32 %s14290_s7, 4  ;;  %s87_s30 = int_to_ptr.vmem [resolvable:$true] %s86_s30 }
  0x1e   :  { %s14019_s3 = scalar_lea.vmem %s87_s30, 512  ;;  %p14024_p6 = scmp.lt.s32.totalorder %s87_s30, %s87_s30 }
  0x1f   :  { %p14020_p5 = scmp.ne.s32.totalorder %s87_s30, %s14019_s3  ;;  %p14025_p7 = scmp.lt.s32.totalorder %s14019_s3, %s14019_s3 }
  0x21   :  { %p14026_p8 = por %p14025_p7, %p14024_p6 }
  0x22   :  { %64 = dma.hbm_to_vmem [thread:$0]  %s18925_s0, 256, %s59_s26, [#allocation5], %s14288_s28, %s14288_s28, %s14289_s6  }
  0x23   :  { %p14027_p9 = pnand %p14026_p8, %p14020_p5 }
  0x25   :  { %14030 = shalt.err (!%p14027_p9)
}
  0x26   :  { %s14291_s25 = smov 128   ;;  %s14292_s8 = smov 8  }
  0x27   :  { %s18926_s5 = sld [smem:[#allocation103_spill]]  ;;  %s14293_s26 = smov [#allocation10]  }
  0x28   :  { %s110_s27 = sshll.u32 %s14293_s26, 4  ;;  %s14294_s2 = smov [#allocation13]   ;;  %s111_s27 = int_to_ptr.vmem [resolvable:$true] %s110_s27 }
  0x29   :  { %s136_s29 = sshll.u32 %s14294_s2, 4  ;;  %s14039_s0 = scalar_lea.vmem %s111_s27, 6144  ;;  %s137_s29 = int_to_ptr.vmem [resolvable:$true] %s136_s29 }
  0x2a   :  { %p14040_p10 = scmp.ne.s32.totalorder %s111_s27, %s14039_s0  ;;  %p14044_p11 = scmp.lt.s32.totalorder %s111_s27, %s111_s27 }
  0x2b   :  { %p14045_p12 = scmp.lt.s32.totalorder %s14039_s0, %s14039_s0 }
  0x2d   :  { %92 = dma.hbm_to_vmem [thread:$0]  %s18926_s5, 512, %s87_s30, [#allocation8], %s14291_s25, %s14291_s25, %s14292_s8  }
  0x2e   :  { %p14046_p13 = por %p14045_p12, %p14044_p11 }
  0x30   :  { %p14047_p0 = pnand %p14046_p13, %p14040_p10 }
  0x32   :  { %14050 = shalt.err (!%p14047_p0)
}
  0x33   :  { %116 = dma.hbm_to_vmem [thread:$0]  %s18594_s9, 6144, %s111_s27, [#allocation11], %s14291_s25, %s14291_s25, %s14292_s8  }
  0x34   :  { %s14059_s30 = scalar_lea.vmem %s137_s29, 8192  ;;  %p14064_p2 = scmp.lt.s32.totalorder %s137_s29, %s137_s29 }
  0x35   :  { %p14060_p1 = scmp.ne.s32.totalorder %s137_s29, %s14059_s30  ;;  %p14065_p3 = scmp.lt.s32.totalorder %s14059_s30, %s14059_s30 }
  0x37   :  { %p14066_p4 = por %p14065_p3, %p14064_p2 }
  0x39   :  { %p14067_p5 = pnand %p14066_p4, %p14060_p1 }
  0x3b   :  { %14070 = shalt.err (!%p14067_p5)
}
  0x3c   :  { %142 = dma.hbm_to_vmem [thread:$0]  %s18597_s12, 8192, %s137_s29, [#allocation14], %s14288_s28, %s14288_s28, %s14289_s6  }
  0x3d   :  { %s14295_s5 = smov [#allocation16]   ;;  %s14296_s2 = smov [#allocation19]  }
  0x3e   :  { %s164_s26 = sshll.u32 %s14295_s5, 4  ;;  %s192_s0 = sshll.u32 %s14296_s2, 4  ;;  %s165_s26 = int_to_ptr.vmem [resolvable:$true] %s164_s26  ;;  %s193_s0 = int_to_ptr.vmem [resolvable:$true] %s192_s0 }
  0x3f   :  { %s14079_s9 = scalar_lea.vmem %s165_s26, 1024  ;;  %p14084_p7 = scmp.lt.s32.totalorder %s165_s26, %s165_s26 }
  0x40   :  { %p14080_p6 = scmp.ne.s32.totalorder %s165_s26, %s14079_s9  ;;  %p14085_p8 = scmp.lt.s32.totalorder %s14079_s9, %s14079_s9 }
  0x42   :  { %p14086_p9 = por %p14085_p8, %p14084_p7 }
  0x44   :  { %p14087_p10 = pnand %p14086_p9, %p14080_p6 }
  0x46   :  { %14090 = shalt.err (!%p14087_p10)
}
  0x47   :  { %170 = dma.hbm_to_vmem [thread:$0]  %s18601_s16, 1024, %s165_s26, [#allocation17], %s14288_s28, %s14288_s28, %s14289_s6  }
  0x48   :  { %s14099_s12 = scalar_lea.vmem %s193_s0, 256  ;;  %p14104_p12 = scmp.lt.s32.totalorder %s193_s0, %s193_s0 }
  0x49   :  { %p14100_p11 = scmp.ne.s32.totalorder %s193_s0, %s14099_s12  ;;  %p14105_p13 = scmp.lt.s32.totalorder %s14099_s12, %s14099_s12 }
  0x4b   :  { %p14106_p0 = por %p14105_p13, %p14104_p12 }
  0x4d   :  { %p14107_p1 = pnand %p14106_p0, %p14100_p11 }
  0x4f   :  { %14110 = shalt.err (!%p14107_p1)
}
  0x50   :  { %198 = dma.hbm_to_vmem [thread:$0]  %s18605_s20, 256, %s193_s0, [#allocation20], %s14288_s28, %s14288_s28, %s14289_s6  }
  0x51   :  { %s14297_s30 = smov [#allocation2]  }
  0x52   :  { %s46_s4 = sshll.u32 %s14297_s30, 4  ;;  %s47_s4 = int_to_ptr.vmem [resolvable:$true] %s46_s4 }
  0x53   :  { %s14119_s1 = scalar_lea.vmem %s47_s4, 1280  ;;  %p14124_p3 = scmp.lt.s32.totalorder %s47_s4, %s47_s4 }
  0x54   :  { %p14120_p2 = scmp.ne.s32.totalorder %s47_s4, %s14119_s1  ;;  %p14125_p4 = scmp.lt.s32.totalorder %s14119_s1, %s14119_s1 }
  0x56   :  { %p14126_p5 = por %p14125_p4, %p14124_p3 }
  0x58   :  { %p14127_p6 = pnand %p14126_p5, %p14120_p2 }
  0x5a   :  { %14130 = shalt.err (!%p14127_p6)
}
  0x5b   :  { %s14298_s16 = smov 256   ;;  %s14299_s5 = smov 16  }
  0x5c   :  { %s18927_s9 = sld [smem:[#allocation98_spill]]  ;;  %s14300_s27 = smov [#allocation6]  }
  0x5d   :  { %s70_s7 = sshll.u32 %s14300_s27, 4  ;;  %s14301_s20 = smov [#allocation9]   ;;  %s71_s7 = int_to_ptr.vmem [resolvable:$true] %s70_s7 }
  0x5e   :  { %s98_s0 = sshll.u32 %s14301_s20, 4  ;;  %s14139_s12 = scalar_lea.vmem %s71_s7, 1152  ;;  %s99_s0 = int_to_ptr.vmem [resolvable:$true] %s98_s0 }
  0x5f   :  { %p14140_p7 = scmp.ne.s32.totalorder %s71_s7, %s14139_s12  ;;  %p14144_p8 = scmp.lt.s32.totalorder %s71_s7, %s71_s7 }
  0x60   :  { %p14145_p9 = scmp.lt.s32.totalorder %s14139_s12, %s14139_s12 }
  0x62   :  { %52 = dma.hbm_to_vmem [thread:$0]  %s18927_s9, 1280, %s47_s4, [#allocation3], %s14298_s16, %s14298_s16, %s14299_s5  }
  0x63   :  { %p14146_p10 = por %p14145_p9, %p14144_p8 }
  0x65   :  { %p14147_p11 = pnand %p14146_p10, %p14140_p7 }
  0x67   :  { %14150 = shalt.err (!%p14147_p11)
}
  0x68   :  { %s18928_s30 = sld [smem:[#allocation100_spill]]  ;;  %s14159_s4 = scalar_lea.vmem %s99_s0, 8192 }
  0x69   :  { %p14160_p12 = scmp.ne.s32.totalorder %s99_s0, %s14159_s4  ;;  %p14164_p13 = scmp.lt.s32.totalorder %s99_s0, %s99_s0 }
  0x6a   :  { %p14165_p0 = scmp.lt.s32.totalorder %s14159_s4, %s14159_s4 }
  0x6c   :  { %p14166_p1 = por %p14165_p0, %p14164_p13 }
  0x6e   :  { %76 = dma.hbm_to_vmem [thread:$0]  %s18928_s30, 1152, %s71_s7, [#allocation5], %s14288_s28, %s14288_s28, %s14289_s6  }
  0x6f   :  { %p14167_p2 = pnand %p14166_p1, %p14160_p12 }
  0x71   :  { %14170 = shalt.err (!%p14167_p2)
}
  0x72   :  { %s18929_s5 = sld [smem:[#allocation104_spill]]  ;;  %s14302_s26 = smov [#allocation12]  }
  0x73   :  { %s124_s2 = sshll.u32 %s14302_s26, 4  ;;  %s14303_s9 = smov [#allocation15]   ;;  %s125_s2 = int_to_ptr.vmem [resolvable:$true] %s124_s2 }
  0x74   :  { %s152_s27 = sshll.u32 %s14303_s9, 4  ;;  %s14179_s7 = scalar_lea.vmem %s125_s2, 512  ;;  %s153_s27 = int_to_ptr.vmem [resolvable:$true] %s152_s27 }
  0x75   :  { %p14180_p3 = scmp.ne.s32.totalorder %s125_s2, %s14179_s7  ;;  %p14184_p4 = scmp.lt.s32.totalorder %s125_s2, %s125_s2 }
  0x76   :  { %p14185_p5 = scmp.lt.s32.totalorder %s14179_s7, %s14179_s7 }
  0x78   :  { %104 = dma.hbm_to_vmem [thread:$0]  %s18929_s5, 8192, %s99_s0, [#allocation8], %s14288_s28, %s14288_s28, %s14289_s6  }
  0x79   :  { %p14186_p6 = por %p14185_p5, %p14184_p4 }
  0x7b   :  { %p14187_p7 = pnand %p14186_p6, %p14180_p3 }
  0x7d   :  { %14190 = shalt.err (!%p14187_p7)
}
  0x7e   :  { %130 = dma.hbm_to_vmem [thread:$0]  %s18596_s11, 512, %s125_s2, [#allocation11], %s14291_s25, %s14291_s25, %s14292_s8  }
  0x7f   :  { %s14199_s0 = scalar_lea.vmem %s153_s27, 256  ;;  %p14204_p9 = scmp.lt.s32.totalorder %s153_s27, %s153_s27 }
  0x80   :  { %p14200_p8 = scmp.ne.s32.totalorder %s153_s27, %s14199_s0  ;;  %p14205_p10 = scmp.lt.s32.totalorder %s14199_s0, %s14199_s0 }
  0x82   :  { %p14206_p11 = por %p14205_p10, %p14204_p9 }
  0x84   :  { %p14207_p12 = pnand %p14206_p11, %p14200_p8 }
  0x86   :  { %14210 = shalt.err (!%p14207_p12)
}
  0x87   :  { %158 = dma.hbm_to_vmem [thread:$0]  %s18600_s15, 256, %s153_s27, [#allocation14], %s14288_s28, %s14288_s28, %s14289_s6  }
  0x88   :  { %s14304_s30 = smov [#allocation18]   ;;  %s14305_s1 = smov [#allocation21]  }
  0x89   :  { %s176_s4 = sshll.u32 %s14304_s30, 4  ;;  %s204_s11 = sshll.u32 %s14305_s1, 4  ;;  %s177_s4 = int_to_ptr.vmem [resolvable:$true] %s176_s4  ;;  %s205_s11 = int_to_ptr.vmem [resolvable:$true] %s204_s11 }
  0x8a   :  { %s14219_s25 = scalar_lea.vmem %s177_s4, 1024  ;;  %p14224_p0 = scmp.lt.s32.totalorder %s177_s4, %s177_s4 }
  0x8b   :  { %p14220_p13 = scmp.ne.s32.totalorder %s177_s4, %s14219_s25  ;;  %p14225_p1 = scmp.lt.s32.totalorder %s14219_s25, %s14219_s25 }
  0x8d   :  { %p14226_p2 = por %p14225_p1, %p14224_p0 }
  0x8f   :  { %p14227_p3 = pnand %p14226_p2, %p14220_p13 }
  0x91   :  { %14230 = shalt.err (!%p14227_p3)
}
  0x92   :  { %182 = dma.hbm_to_vmem [thread:$0]  %s18602_s17, 1024, %s177_s4, [#allocation17], %s14288_s28, %s14288_s28, %s14289_s6  }
  0x93   :  { %s14239_s15 = scalar_lea.vmem %s205_s11, 1024  ;;  %p14244_p5 = scmp.lt.s32.totalorder %s205_s11, %s205_s11 }
  0x94   :  { %p14240_p4 = scmp.ne.s32.totalorder %s205_s11, %s14239_s15  ;;  %p14245_p6 = scmp.lt.s32.totalorder %s14239_s15, %s14239_s15 }
  0x96   :  { %p14246_p7 = por %p14245_p6, %p14244_p5 }
  0x98   :  { %p14247_p8 = pnand %p14246_p7, %p14240_p4 }
  0x9a   :  { %14250 = shalt.err (!%p14247_p8)
}
  0x9b   :  { %210 = dma.hbm_to_vmem [thread:$0]  %s18606_s21, 1024, %s205_s11, [#allocation20], %s14288_s28, %s14288_s28, %s14289_s6  }
  0x9c   :  { %s14306_s2 = smov [#allocation22]  }
  0x9d   :  { %s216_s9 = sshll.u32 %s14306_s2, 4  ;;  %s217_s9 = int_to_ptr.vmem [resolvable:$true] %s216_s9 }
  0x9e   :  { %s14259_s27 = scalar_lea.vmem %s217_s9, 1024  ;;  %p14264_p10 = scmp.lt.s32.totalorder %s217_s9, %s217_s9 }
  0x9f   :  { %p14260_p9 = scmp.ne.s32.totalorder %s217_s9, %s14259_s27  ;;  %p14265_p11 = scmp.lt.s32.totalorder %s14259_s27, %s14259_s27 }
  0xa1   :  { %p14266_p12 = por %p14265_p11, %p14264_p10 }
  0xa3   :  { %p14267_p13 = pnand %p14266_p12, %p14260_p9 }
  0xa5   :  { %14270 = shalt.err (!%p14267_p13)
}
  0xa6   :  { %222 = dma.hbm_to_vmem [thread:$0]  %s18607_s22, 1024, %s217_s9, [#allocation23], %s14288_s28, %s14288_s28, %s14289_s6  }
  0xa7   :  { %14271 = dma.done.wait [#allocation3], 1280  }
  0xa8   :  { %14272 = vsyncadd [#allocation3], 4294966016 }
  0xa9   :  { %14273 = dma.done.wait [#allocation5], 1408  }
  0xaa   :  { %14274 = vsyncadd [#allocation5], 4294965888 }
  0xab   :  { %14275 = dma.done.wait [#allocation8], 8704  }
  0xac   :  { %14276 = vsyncadd [#allocation8], 4294958592 }
  0xad   :  { %14277 = dma.done.wait [#allocation11], 6656  }
  0xae   :  { %14278 = vsyncadd [#allocation11], 4294960640 }
  0xaf   :  { %14279 = dma.done.wait [#allocation14], 8448  }
  0xb0   :  { %14280 = vsyncadd [#allocation14], 4294958848 }
  0xb1   :  { %14281 = dma.done.wait [#allocation17], 2048  }
  0xb2   :  { %14282 = vsyncadd [#allocation17], 4294965248 }
  0xb3   :  { %14283 = dma.done.wait [#allocation20], 1280  }
  0xb4   :  { %14284 = vsyncadd [#allocation20], 4294966016 }
  0xb5   :  { %14285 = dma.done.wait [#allocation23], 1024  }
  0xb6   :  { %14286 = vsyncadd [#allocation23], 4294966272  ;;  %v339_v0 = vlaneseq  ;;  %v18638_v1 = vmov 0   ;;  %vm14308_vm0 = vmmov 1   ;;  %vm433_vm2 = vcmask 1047552   ;;  %s18936_s6 = sld [smem:[#allocation96_spill]] }
  0xb7   :  { %564 = vmatprep.subr.bf16.mxu1 %v18638_v1  ;;  %vm398_vm1 = vmpackc.low %vm14308_vm0, %vm14308_vm0  ;;  %vm18616_vm3 = vsmask.f32 7424  ;;  %v13219_v15 = vld [vmem:[#allocation6 + $0x38] sm:$0xff]   ;;  %vm18617_vm7 = vsmask.f32 256  ;;  %vm386_vm8 = vcmask 1040384  }
  0xb8   :  { %v14523_v2 = vshrl.u32 %v339_v0, 7  ;;  %v14535_v6 = vsel %vm398_vm1, 65537, %v18638_v1  ;;  %s14309_s4 = smov 48   ;;  %565 = vmatpush1.bf16.msra.mxu1 %v13219_v15  ;;  %v13220_v24 = vld [vmem:[#allocation6 + $0x30] sm:$0xff]   ;;  %v13221_v32 = vld [vmem:[#allocation6 + $0x28] sm:$0xff]   ;;  %vm14561_vm10 = vmand %vm433_vm2, %vm18616_vm3  ;;  %v18937_v34 = vmov 0 }
  0xb9   :  { %18934 = vst [vmem:[#allocation36_spill] sm:$0xff] %v14535_v6  ;;  %566 = vmatprep.subr.bf16.mxu1 %v18638_v1  ;;  %v18938_v34 = vsel %vm14561_vm10, 4294967295, %v18937_v34  ;;  %v18940_v35 = vmov 0  ;;  %v18943_v36 = vmov 0  ;;  %vm14581_vm13 = vmand %vm386_vm8, %vm18617_vm7  ;;  %v18946_v44 = vmov 0  ;;  %s14310_s1 = smov 96  }
  0xba   :  { %18930 = vst [vmem:[#allocation32_spill] sm:$0xff] %v14523_v2  ;;  %v14526_v3 = vadd.s32 8, %v14523_v2  ;;  %v14529_v4 = vadd.s32 24, %v14523_v2  ;;  %18939 = vst [vmem:[#allocation38_spill] sm:$0xff] %v18938_v34  ;;  %v18947_v44 = vsel %vm14581_vm13, 4294967295, %v18946_v44  ;;  %v13222_v48 = vld [vmem:[#allocation6 + $0x20] sm:$0xff]  }
  0xbb   :  { %18948 = vst [vmem:[#allocation41_spill] sm:$0xff] %v18947_v44  ;;  %v13229_v50 = vld [vmem:[#allocation4 + $0x8] sm:$0xff]   ;;  %v18642_v51 = vmov 0.0   ;;  %v13230_v52 = vld [vmem:[#allocation4] sm:$0xff]   ;;  %s18949_s8 = sld [smem:[#allocation97_spill]]  ;;  %vm18614_vm14 = vmmov 0  }
  0xbc   :  { %18931 = vst [vmem:[#allocation33_spill] sm:$0xff] %v14526_v3  ;;  %18932 = vst [vmem:[#allocation34_spill] sm:$0xff] %v14529_v4  ;;  %v14532_v5 = vand.u32 15, %v14526_v3  ;;  %v14538_v7 = vand.u32 15, %v14529_v4  ;;  %v335_v8 = vld [vmem:[%s18936_s6] sm:$0xf]  ;;  %567 = vmatpush1.bf16.msra.mxu1 %v13220_v24  ;;  %12816 = vmatprep.subr.bf16.mxu0 %v18642_v51 }
  0xbd   :  { %v336_v9 = vld [vmem:[%s18936_s6 + $0x4] sm:$0xf]  ;;  %v337_v10 = vld [vmem:[%s18936_s6 + $0x8] sm:$0xf]  ;;  %v10863_v12 = vcombine.low %v335_v8, %v335_v8  ;;  %v338_v13 = vld [vmem:[%s18936_s6 + $0xc] sm:$0xf]  ;;  %568 = vmatprep.subr.bf16.mxu1 %v18638_v1  ;;  %12817 = vmatpush3.bf16.msra.mxu0 %v13229_v50 }
  0xbe   :  { %18933 = vst [vmem:[#allocation35_spill] sm:$0xff] %v14532_v5  ;;  %18935 = vst [vmem:[#allocation37_spill] sm:$0xff] %v14538_v7  ;;  %v10859_v11 = vcombine.low %v335_v8, %v336_v9  ;;  %vm416_vm4 = vcmp.le.s32.totalorder %v14532_v5, 14  ;;  %vm418_vm5 = vcmp.le.s32.totalorder %v14538_v7, 14  ;;  %v10860_v14 = vcombine.low %v337_v10, %v338_v13  ;;  %v13223_v54 = vld [vmem:[#allocation6 + $0x18] sm:$0xff]   ;;  %12818 = vmatprep.subr.bf16.mxu0 %v18642_v51  ;;  %s18950_s5 = sld [smem:[#allocation101_spill]] }
  0xbf   :  { %vm445_vm6 = vmpackc.low %vm416_vm4, %vm416_vm4  ;;  %v429_v16 = vshll.u32 %v10863_v12, 16  ;;  %v10858_v28 = vcombine.low %v338_v13, %v338_v13  ;;  %12820 = vmatprep.mubr.msk.bf16.mxu0 %vm18614_vm14, %v18642_v51  ;;  %vm18618_vm15 = vcmask 261120   ;;  %v13224_v58 = vld [vmem:[#allocation6 + $0x10] sm:$0xff]   ;;  %v13225_v61 = vld [vmem:[#allocation6 + $0x8] sm:$0xff]   ;;  %vm18619_vm8 = vcmask 130048   ;;  %s19085_s22 = sld [smem:[#allocation102_spill]] }
  0xc0   :  { %462 = vrot.lane.b32.xlu0 %v10859_v11, %s14309_s4  ;;  %v370_v17 = vshrl.u32 %v10859_v11, 16  ;;  %v373_v18 = vshll.u32 %v10859_v11, 16  ;;  %v449_v19 = vsel %vm445_vm6, 65537, %v18638_v1  ;;  %vm447_vm9 = vmpackc.low %vm418_vm5, %vm418_vm5  ;;  %v380_v20 = vshll.u32 %v10860_v14, 16  ;;  %464 = vrot.lane.b32.xlu1 %v10860_v14, %s14309_s4  ;;  %v13226_v8 = vld [vmem:[#allocation6] sm:$0xff]  }
  0xc1   :  { %v10864_v21 = vcombine.low %v14535_v6, %v449_v19  ;;  %v377_v22 = vshrl.u32 %v10860_v14, 16  ;;  %v451_v23 = vsel %vm447_vm9, 65537, %v18638_v1  ;;  %v431_v29 = vrot.slane %v429_v16, 1  ;;  %569 = vmatpush1.bf16.msra.mxu1 %v13221_v32  ;;  %v270_v53 = vld [vmem:[%s18949_s8] sm:$0x3]  ;;  %12819 = vmatpush3.bf16.msra.mxu0 %v13230_v52 }
  0xc2   :  { %v372_v25 = vrot.slane %v370_v17, 7  ;;  %v420_v26 = vrot.slane %v373_v18, 1  ;;  %v10865_v27 = vcombine.low %v14535_v6, %v451_v23  ;;  %v422_v30 = vrot.slane %v380_v20, 1  ;;  %570 = vmatprep.subr.bf16.mxu1 %v18638_v1  ;;  %v13228_v11 = vld [vmem:[#allocation6 + $0x40] sm:$0xff]  }
  0xc3   :  { %v379_v31 = vrot.slane %v377_v22, 7  ;;  %vm14565_vm11 = vcmp.ne.s16.totalorder %v10864_v21, 0  ;;  %v356_v41 = vshrl.u32 %v10858_v28, 16  ;;  %v271_v56 = vpack.c.bf16 %v270_v53, %v270_v53 }
  0xc4   :  { %v421_v33 = vor.u32 %v420_v26, %v370_v17  ;;  %v18941_v35 = vsel %vm14565_vm11, 4294967295, %v18940_v35  ;;  %vm14569_vm12 = vcmp.ne.s16.totalorder %v10865_v27, 0  ;;  %v375_v37 = vor.u32 %v373_v18, %v372_v25  ;;  %v13233_v55 = vld [vmem:[%s18950_s5 + $0x74] ss:$8 sps:$4 sm:$0xff]   ;;  %v13231_v57 = vld [vmem:[%s18950_s5 + $0x70] ss:$8 sps:$4 sm:$0xff]  }
  0xc5   :  { %18942 = vst [vmem:[#allocation39_spill] sm:$0xff] %v18941_v35  ;;  %v18944_v36 = vsel %vm14569_vm12, 4294967295, %v18943_v36  ;;  %v424_v38 = vor.u32 %v422_v30, %v377_v22  ;;  %v382_v39 = vor.u32 %v380_v20, %v379_v31  ;;  %v358_v47 = vrot.slane %v356_v41, 3  ;;  %571 = vmatpush1.bf16.msra.mxu1 %v13222_v48  ;;  %1117 = vmatprep.subr.bf16.mxu0 %v13233_v55  ;;  %v13236_v59 = vld [vmem:[%s18950_s5 + $0x64] ss:$8 sps:$4 sm:$0xff]  }
  0xc6   :  { %18945 = vst [vmem:[#allocation40_spill] sm:$0xff] %v18944_v36  ;;  %v423_v40 = vsel %vm18616_vm3, %v421_v33, %v422_v30  ;;  %572 = vmatprep.subr.bf16.mxu1 %v18638_v1  ;;  %12821 = vmatmul.mubr.msk.bf16.vlgmr.msra.gmra.mxu0 %vm18618_vm15, %v271_v56  ;;  %v13234_v60 = vld [vmem:[%s18950_s5 + $0x60] ss:$8 sps:$4 sm:$0xff]   ;;  %v13239_v62 = vld [vmem:[%s18950_s5 + $0x54] ss:$8 sps:$4 sm:$0xff]   ;;  %v18644_v26 = vand.u32 15, %v14523_v2 }
  0xc7   :  { %v460_v42 = vsel %vm14565_vm11, %v423_v40, 0  ;;  %v435_v43 = vsel %vm14561_vm10, %v424_v38, %v431_v29  ;;  %v14586_v45 = vsel %vm18617_vm7, %v372_v25, %v382_v39  ;;  %v14593_v49 = vsel %vm14581_vm13, %v358_v47, %v375_v37  ;;  %1118 = vmatpush1.bf16.msra.mxu0 %v13231_v57  ;;  %v13237_v63 = vld [vmem:[%s18950_s5 + $0x50] ss:$8 sps:$4 sm:$0xff]   ;;  %v13242_v9 = vld [vmem:[%s18950_s5 + $0x44] ss:$8 sps:$4 sm:$0xff]  }
  0xc8   :  { %468 = vrot.lane.b32.xlu0 %v460_v42, %s14310_s1  ;;  %v461_v46 = vsel %vm14569_vm12, %v435_v43, 0  ;;  %1119 = vmatprep.subr.bf16.mxu0 %v13236_v59  ;;  %v13240_v10 = vld [vmem:[%s18950_s5 + $0x40] ss:$8 sps:$4 sm:$0xff]   ;;  %v13245_v12 = vld [vmem:[%s18950_s5 + $0x34] ss:$8 sps:$4 sm:$0xff]   ;;  %vm348_vm0 = vcmp.ge.s32.totalorder %v18644_v26, 1 }
  0xc9   :  { %470 = vrot.lane.b32.xlu1 %v461_v46, %s14310_s1  ;;  %573 = vmatpush1.bf16.msra.mxu1 %v13223_v54  ;;  %v13260_v13 = vld [vmem:[%s18950_s5 + $0x174] ss:$8 sps:$4 sm:$0xff]   ;;  %v13243_v14 = vld [vmem:[%s18950_s5 + $0x30] ss:$8 sps:$4 sm:$0xff]   ;;  %v13248_v15 = vld [vmem:[%s18950_s5 + $0x24] ss:$8 sps:$4 sm:$0xff]  }
  0xca   :  { %574 = vmatprep.subr.bf16.mxu1 %v18638_v1  ;;  %v13246_v16 = vld [vmem:[%s18950_s5 + $0x20] ss:$8 sps:$4 sm:$0xff]   ;;  %v13251_v17 = vld [vmem:[%s18950_s5 + $0x14] ss:$8 sps:$4 sm:$0xff]   ;;  %v13249_v18 = vld [vmem:[%s18950_s5 + $0x10] ss:$8 sps:$4 sm:$0xff]  }
  0xcb   :  { %1120 = vmatpush1.bf16.msra.mxu0 %v13234_v60  ;;  %v13254_v19 = vld [vmem:[%s18950_s5 + $0x4] ss:$8 sps:$4 sm:$0xff]   ;;  %v13252_v20 = vld [vmem:[%s18950_s5] ss:$8 sps:$4 sm:$0xff]   ;;  %v13257_v21 = vld [vmem:[%s18950_s5 + $0xf4] ss:$8 sps:$4 sm:$0xff]  }
  0xcc   :  { %1121 = vmatprep.subr.bf16.mxu0 %v13239_v62  ;;  %v13255_v22 = vld [vmem:[%s18950_s5 + $0xf0] ss:$8 sps:$4 sm:$0xff]   ;;  %v13263_v23 = vld [vmem:[%s18950_s5 + $0xe4] ss:$8 sps:$4 sm:$0xff]   ;;  %v13261_v24 = vld [vmem:[%s18950_s5 + $0xe0] ss:$8 sps:$4 sm:$0xff]  }
  0xcd   :  { %575 = vmatpush1.bf16.msra.mxu1 %v13224_v58  ;;  %v13269_v25 = vld [vmem:[%s18950_s5 + $0xd4] ss:$8 sps:$4 sm:$0xff]   ;;  %v13267_v27 = vld [vmem:[%s18950_s5 + $0xd0] ss:$8 sps:$4 sm:$0xff]   ;;  %vm397_vm1 = vmpackc.low %vm348_vm0, %vm348_vm0  ;;  %v14681_v28 = vadd.s32 16, %v14523_v2  ;;  %v18952_v33 = vmov 0 }
  0xce   :  { %576 = vmatprep.subr.bf16.mxu1 %v18638_v1  ;;  %v401_v29 = vsel %vm397_vm1, 65537, %v18638_v1  ;;  %vm18613_vm6 = vcmask 392192   ;;  %v13258_v41 = vld [vmem:[%s18950_s5 + $0x170] ss:$8 sps:$4 sm:$0xff]   ;;  %vm479_vm9 = vcmask 785408   ;;  %v18955_v47 = vmov 0 }
  0xcf   :  { %1122 = vmatpush1.bf16.msra.mxu0 %v13237_v63  ;;  %18951 = vst [vmem:[#allocation42_spill] sm:$0xff] %v14681_v28  ;;  %v18647_v30 = vand.u32 15, %v14681_v28  ;;  %v10861_v31 = vcombine.low %v401_v29, %v14535_v6  ;;  %v13266_v42 = vld [vmem:[%s18950_s5 + $0x164] ss:$8 sps:$4 sm:$0xff]   ;;  %v13272_v52 = vld [vmem:[%s18950_s5 + $0x154] ss:$8 sps:$4 sm:$0xff]  }
  0xd0   :  { %1123 = vmatprep.subr.bf16.mxu0 %v13242_v9  ;;  %v13270_v54 = vld [vmem:[%s18950_s5 + $0x150] ss:$8 sps:$4 sm:$0xff]   ;;  %v13278_v57 = vld [vmem:[%s18950_s5 + $0x144] ss:$8 sps:$4 sm:$0xff]   ;;  %v13273_v58 = vld [vmem:[%s18950_s5 + $0xc0] ss:$8 sps:$4 sm:$0xff]  }
  0xd1   :  { %577 = vmatpush1.bf16.msra.mxu1 %v13225_v61  ;;  %vm350_vm2 = vcmp.ge.s32.totalorder %v18647_v30, 1  ;;  %vm14689_vm5 = vcmp.ne.s16.totalorder %v10861_v31, 0  ;;  %v13276_v59 = vld [vmem:[%s18950_s5 + $0x140] ss:$8 sps:$4 sm:$0xff]   ;;  %v13281_v60 = vld [vmem:[%s18950_s5 + $0xb4] ss:$8 sps:$4 sm:$0xff]  }
  0xd2   :  { %578 = vmatprep.subr.bf16.mxu1 %v18638_v1  ;;  %vm399_vm4 = vmpackc.low %vm350_vm2, %vm350_vm2  ;;  %v18953_v33 = vsel %vm14689_vm5, 4294967295, %v18952_v33  ;;  %v413_v40 = vsel %vm14689_vm5, %v14593_v49, 0  ;;  %v13264_v49 = vld [vmem:[%s18950_s5 + $0x160] ss:$8 sps:$4 sm:$0xff]   ;;  %v13284_v61 = vld [vmem:[%s18950_s5 + $0x134] ss:$8 sps:$4 sm:$0xff]  }
  0xd3   :  { %1124 = vmatpush1.bf16.msra.mxu0 %v13240_v10  ;;  %v403_v32 = vsel %vm399_vm4, 65537, %v18638_v1  ;;  %18954 = vst [vmem:[#allocation43_spill] sm:$0xff] %v18953_v33  ;;  %v13279_v62 = vld [vmem:[%s18950_s5 + $0xb0] ss:$8 sps:$4 sm:$0xff]   ;;  %v13290_v9 = vld [vmem:[%s18950_s5 + $0x124] ss:$8 sps:$4 sm:$0xff]  }
  0xd4   :  { %1125 = vmatprep.subr.bf16.mxu0 %v13245_v12  ;;  %v10862_v38 = vcombine.low %v403_v32, %v14535_v6  ;;  %v13282_v63 = vld [vmem:[%s18950_s5 + $0x130] ss:$8 sps:$4 sm:$0xff]   ;;  %v13285_v10 = vld [vmem:[%s18950_s5 + $0xa0] ss:$8 sps:$4 sm:$0xff]   ;;  %v13293_v12 = vld [vmem:[%s18950_s5 + $0x94] ss:$8 sps:$4 sm:$0xff]  }
  0xd5   :  { %579 = vmatpush1.bf16.msra.mxu1 %v13226_v8  ;;  %v13287_v8 = vld [vmem:[%s18950_s5 + $0xa4] ss:$8 sps:$4 sm:$0xff]   ;;  %v19022_v51 = vmov 0  ;;  %v15109_v26 = vadd.s32 32, %v14523_v2  ;;  %v19026_v30 = vmov 0  ;;  %v15124_v4 = vadd.s32 152, %v14523_v2 }
  0xd6   :  { %594 = vmatprep.subr.bf16.mxu1 %v18638_v1  ;;  %vm14704_vm0 = vcmp.ne.s16.totalorder %v10862_v38, 0 }
  0xd7   :  { %1126 = vmatpush1.bf16.msra.mxu0 %v13243_v14  ;;  %v18956_v47 = vsel %vm14704_vm0, 4294967295, %v18955_v47  ;;  %v414_v53 = vsel %vm14704_vm0, %v14586_v45, 0  ;;  %v13275_v45 = vld [vmem:[%s18950_s5 + $0xc4] ss:$8 sps:$4 sm:$0xff]   ;;  %v13291_v14 = vld [vmem:[%s18950_s5 + $0x90] ss:$8 sps:$4 sm:$0xff]  }
  0xd8   :  { %1127 = vmatprep.subr.bf16.mxu0 %v13248_v15  ;;  %18957 = vst [vmem:[#allocation44_spill] sm:$0xff] %v18956_v47  ;;  %v13294_v15 = vld [vmem:[%s18950_s5 + $0x110] ss:$8 sps:$4 sm:$0xff]   ;;  %19025 = vst [vmem:[#allocation72_spill] sm:$0xff] %v15109_v26 }
  0xd9   :  { %595 = vmatpush2.bf16.msra.mxu1 %v13228_v11  ;;  %v13288_v11 = vld [vmem:[%s18950_s5 + $0x120] ss:$8 sps:$4 sm:$0xff]   ;;  %19028 = vst [vmem:[#allocation73_spill] sm:$0xff] %v15124_v4 }
  0xda   :  { %1170 = vmatprep.subr.bf16.mxu1 %v13260_v13  ;;  %v13296_v13 = vld [vmem:[%s18950_s5 + $0x114] ss:$8 sps:$4 sm:$0xff]  }
  0xdb   :  { %1128 = vmatpush1.bf16.msra.mxu0 %v13246_v16  ;;  %v13299_v16 = vld [vmem:[%s18950_s5 + $0x84] ss:$8 sps:$4 sm:$0xff]  }
  0xdc   :  { %1129 = vmatprep.subr.bf16.mxu0 %v13251_v17  ;;  %v13302_v17 = vld [vmem:[%s18950_s5 + $0x104] ss:$8 sps:$4 sm:$0xff]  }
  0xdf   :  { %1130 = vmatpush1.bf16.msra.mxu0 %v13249_v18  ;;  %v13297_v18 = vld [vmem:[%s18950_s5 + $0x80] ss:$8 sps:$4 sm:$0xff]  }
  0xe0   :  { %1131 = vmatprep.subr.bf16.mxu0 %v13254_v19  ;;  %v13300_v19 = vld [vmem:[%s18950_s5 + $0x100] ss:$8 sps:$4 sm:$0xff]  }
  0xe3   :  { %1132 = vmatpush1.bf16.msra.mxu0 %v13252_v20 }
  0xe4   :  { %1133 = vmatprep.subr.bf16.mxu0 %v13257_v21 }
  0xe7   :  { %1134 = vmatpush2.bf16.msra.mxu0 %v13255_v22 }
  0xe8   :  { %1135 = vmatprep.subr.bf16.mxu0 %v13263_v23 }
  0xeb   :  { %1136 = vmatpush2.bf16.msra.mxu0 %v13261_v24  ;;  %v504_v24 = vld [vmem:[#allocation2 + $0x1] ss:$0 sm:$0xff] }
  0xec   :  { %1137 = vmatprep.subr.bf16.mxu0 %v13269_v25 }
  0xef   :  { %1138 = vmatpush2.bf16.msra.mxu0 %v13267_v27 }
  0xf0   :  { %1139 = vmatprep.subr.bf16.mxu0 %v13275_v45 }
  0xf3   :  { %1140 = vmatpush2.bf16.msra.mxu0 %v13273_v58 }
  0xf4   :  { %1141 = vmatprep.subr.bf16.mxu0 %v13281_v60 }
  0xf7   :  { %1142 = vmatpush2.bf16.msra.mxu0 %v13279_v62 }
  0xf8   :  { %1143 = vmatprep.subr.bf16.mxu0 %v13287_v8 }
  0xfb   :  { %1144 = vmatpush2.bf16.msra.mxu0 %v13285_v10  ;;  %v14807_v10 = vadd.s32 248, %v14523_v2 }
  0xfc   :  { %1145 = vmatprep.subr.bf16.mxu0 %v13293_v12 }
  0xfd   :  { %18959 = vst [vmem:[#allocation46_spill] sm:$0xff] %v14807_v10  ;;  %v670_v12 = vand.u32 15, %v14807_v10 }
  0xff   :  { %1146 = vmatpush2.bf16.msra.mxu0 %v13291_v14 }
 0x100   :  { %1147 = vmatprep.subr.bf16.mxu0 %v13299_v16 }
 0x103   :  { %1148 = vmatpush2.bf16.msra.mxu0 %v13297_v18  ;;  %v18701_v18 = vmov 1.0  }
 0x132   :  { %v463_v37 = vpop.permute.xlu0 %462  ;;  %v465_v39 = vpop.permute.xlu1 %464 }
 0x133   :  { %v475_v43 = vsel %vm18613_vm6, %v413_v40, %v463_v37  ;;  %v478_v55 = vsel %vm18613_vm6, %v414_v53, %v465_v39 }
 0x13a   :  { %v469_v46 = vpop.permute.xlu0 %468 }
 0x13b   :  { %10875 = vmatprep.mubr.msk.bf16.mxu1 %vm18619_vm8, %v469_v46  ;;  %v481_v48 = vsel %vm479_vm9, %v475_v43, %v469_v46  ;;  %v471_v50 = vpop.permute.xlu1 %470 }
 0x13c   :  { %597 = vmatmul.mubr.bf16.vlgmr.msra.gmra.mxu1 %v481_v48  ;;  %v484_v56 = vsel %vm479_vm9, %v478_v55, %v471_v50 }
 0x13d   :  { %10876 = vmatprep.mubr.msk.bf16.mxu1 %vm18619_vm8, %v471_v50  ;;  %1171 = vmatpush1.bf16.msra.mxu1 %v13258_v41 }
 0x13e   :  { %1172 = vmatprep.subr.bf16.mxu1 %v13266_v42 }
 0x141   :  { %1173 = vmatpush1.bf16.msra.mxu1 %v13264_v49 }
 0x142   :  { %1174 = vmatprep.subr.bf16.mxu1 %v13272_v52 }
 0x144   :  { %605 = vmatmul.mubr.bf16.gmra.mxu1 %v484_v56 }
 0x145   :  { %1175 = vmatpush1.bf16.msra.mxu1 %v13270_v54  ;;  %1202 = vmatprep.mubr.bf16.mxu1 %v18638_v1 }
 0x146   :  { %1176 = vmatprep.subr.bf16.mxu1 %v13278_v57 }
 0x149   :  { %1177 = vmatpush1.bf16.msra.mxu1 %v13276_v59 }
 0x14a   :  { %1178 = vmatprep.subr.bf16.mxu1 %v13284_v61 }
 0x14d   :  { %1179 = vmatpush1.bf16.msra.mxu1 %v13282_v63 }
 0x14e   :  { %1180 = vmatprep.subr.bf16.mxu1 %v13290_v9  ;;  %v14804_v9 = vand.u32 127, %v339_v0  ;;  %v18963_v0 = vmov 0 }
 0x150   :  { %18958 = vst [vmem:[#allocation45_spill] sm:$0xff] %v14804_v9  ;;  %vm14821_vm1 = vcmp.eq.s32.totalorder %v670_v12, %v14804_v9  ;;  %v15004_v12 = vadd.s32 184, %v14523_v2 }
 0x151   :  { %1181 = vmatpush1.bf16.msra.mxu1 %v13288_v11  ;;  %v14810_v11 = vadd.s32 120, %v14523_v2  ;;  %v18964_v0 = vsel %vm14821_vm1, 4294967295, %v18963_v0  ;;  %12068 = vmatprep.subr.msk.mxu0 %vm14821_vm1, %v18701_v18 }
 0x152   :  { %1182 = vmatprep.subr.bf16.mxu1 %v13296_v13  ;;  %v14814_v13 = vadd.s32 240, %v14523_v2  ;;  %18965 = vst [vmem:[#allocation50_spill] sm:$0xff] %v18964_v0  ;;  %19002 = vst [vmem:[#allocation63_spill] sm:$0xff] %v15004_v12 }
 0x153   :  { %18960 = vst [vmem:[#allocation47_spill] sm:$0xff] %v14810_v11  ;;  %v654_v14 = vand.u32 15, %v14810_v11 }
 0x154   :  { %18961 = vst [vmem:[#allocation48_spill] sm:$0xff] %v14814_v13  ;;  %v669_v16 = vand.u32 15, %v14814_v13 }
 0x155   :  { %1183 = vmatpush1.bf16.msra.mxu1 %v13294_v15  ;;  %v14818_v15 = vadd.s32 112, %v14523_v2  ;;  %vm14833_vm2 = vcmp.eq.s32.totalorder %v654_v14, %v14804_v9  ;;  %v19003_v14 = vmov 0 }
 0x156   :  { %1184 = vmatprep.subr.bf16.mxu1 %v13302_v17  ;;  %v14827_v17 = vadd.s32 232, %v14523_v2  ;;  %vm14848_vm4 = vcmp.eq.s32.totalorder %v669_v16, %v14804_v9 }
 0x157   :  { %18962 = vst [vmem:[#allocation49_spill] sm:$0xff] %v14818_v15 }
 0x158   :  { %18966 = vst [vmem:[#allocation51_spill] sm:$0xff] %v14827_v17 }
 0x159   :  { %1185 = vmatpush1.bf16.msra.mxu1 %v13300_v19 }
 0x15a   :  { %12033 = vmatprep.subr.msk.mxu1 %vm14821_vm1, %v18701_v18 }
 0x186   :  { %v14786_v20 = vpop.f32.mrf.mxu0 }
 0x188   :  { %v12822_v21 = vpop.f32.mrf.mxu0 }
 0x189   :  { %v653_v21 = vand.u32 15, %v14818_v15 }
 0x18a   :  { %v330_v22 = vpop.f32.mrf.mxu0 }
 0x18b   :  { %v14839_v22 = vadd.s32 104, %v14523_v2  ;;  %vm14863_vm9 = vcmp.eq.s32.totalorder %v653_v21, %v14804_v9  ;;  %v15019_v21 = vadd.s32 56, %v14523_v2 }
 0x18c   :  { %v12823_v23 = vpop.f32.mrf.mxu0 }
 0x18d   :  { %18969 = vst [vmem:[#allocation52_spill] sm:$0xff] %v14839_v22  ;;  %19005 = vst [vmem:[#allocation64_spill] sm:$0xff] %v15019_v21 }
 0x1fc   :  { %v598_v25 = vpop.f32.mrf.mxu1 }
 0x1fd   :  { %v599_v31 = vadd.f32 %v598_v25, %v504_v24  ;;  %v14854_v25 = vadd.s32 224, %v14523_v2 }
 0x1fe   :  { %v600_v27 = vpop.f32.mrf.mxu1 }
 0x1ff   :  { %18972 = vst [vmem:[#allocation53_spill] sm:$0xff] %v14854_v25 }
 0x200   :  { %v601_v29 = vpop.f32.mrf.mxu1 }
 0x201   :  { %v602_v32 = vadd.f32 %v601_v29, %v504_v24  ;;  %v652_v29 = vand.u32 15, %v14839_v22 }
 0x202   :  { %v603_v37 = vpop.f32.mrf.mxu1 }
 0x203   :  { %v782_v38 = vpack.c.bf16 %v602_v32, %v599_v31  ;;  %v14869_v31 = vadd.s32 96, %v14523_v2  ;;  %v667_v37 = vand.u32 15, %v14854_v25  ;;  %vm14893_vm14 = vcmp.eq.s32.totalorder %v652_v29, %v14804_v9 }
 0x204   :  { %v606_v39 = vpop.f32.mrf.mxu1  ;;  %v662_v29 = vand.u32 15, %v15004_v12  ;;  %v19060_v12 = vmov 0 }
 0x205   :  { %1149 = vmatprep.mubr.bf16.mxu0 %v782_v38  ;;  %v790_v41 = vshrl.u32 %v782_v38, 16  ;;  %v793_v42 = vshll.u32 %v782_v38, 16  ;;  %v607_v46 = vadd.f32 %v606_v39, %v504_v24  ;;  %18975 = vst [vmem:[#allocation54_spill] sm:$0xff] %v14869_v31  ;;  %v14884_v38 = vadd.s32 216, %v14523_v2 }
 0x206   :  { %v608_v40 = vpop.f32.mrf.mxu1  ;;  %v18979_v39 = vmov 0 }
 0x207   :  { %v792_v50 = vrot.slane %v790_v41, 7  ;;  %v805_v52 = vrot.slane %v793_v42, 1  ;;  %18978 = vst [vmem:[#allocation55_spill] sm:$0xff] %v14884_v38  ;;  %v18980_v39 = vsel %vm14893_vm14, 4294967295, %v18979_v39  ;;  %v651_v40 = vand.u32 15, %v14869_v31 }
 0x208   :  { %v609_v43 = vpop.f32.mrf.mxu1 }
 0x209   :  { %v610_v48 = vadd.f32 %v609_v43, %v504_v24  ;;  %v795_v56 = vor.u32 %v793_v42, %v792_v50  ;;  %v806_v45 = vor.u32 %v805_v52, %v790_v41  ;;  %v668_v24 = vand.u32 15, %v14827_v17 }
 0x20a   :  { %v611_v49 = vpop.f32.mrf.mxu1  ;;  %v14899_v41 = vadd.s32 88, %v14523_v2  ;;  %v18982_v42 = vmov 0  ;;  %v666_v43 = vand.u32 15, %v14884_v38 }
 0x20b   :  { %v783_v53 = vpack.c.bf16 %v610_v48, %v607_v46  ;;  %vm14878_vm6 = vcmp.eq.s32.totalorder %v668_v24, %v14804_v9  ;;  %v14914_v46 = vadd.s32 208, %v14523_v2  ;;  %v18985_v48 = vmov 0 }
 0x20c   :  { %18981 = vst [vmem:[#allocation56_spill] sm:$0xff] %v14899_v41  ;;  %v650_v49 = vand.u32 15, %v14899_v41  ;;  %vm14938_vm15 = vcmp.eq.s32.totalorder %v666_v43, %v14804_v9  ;;  %v19006_v24 = vmov 0  ;;  %v646_v43 = vand.u32 15, %v15019_v21 }
 0x20d   :  { %v785_v54 = vshrl.u32 %v783_v53, 16  ;;  %v796_v55 = vshll.u32 %v783_v53, 16  ;;  %18984 = vst [vmem:[#allocation57_spill] sm:$0xff] %v14914_v46  ;;  %v19049_v21 = vand.u32 15, %v14681_v28 }
 0x20e   :  { %vm14953_vm8 = vcmp.eq.s32.totalorder %v650_v49, %v14804_v9  ;;  %v15049_v49 = vadd.s32 48, %v14523_v2 }
 0x20f   :  { %v787_v57 = vrot.slane %v785_v54, 7  ;;  %v807_v58 = vrot.slane %v796_v55, 1 }
 0x210   :  { %19011 = vst [vmem:[#allocation66_spill] sm:$0xff] %v15049_v49 }
 0x211   :  { %v802_v59 = vsel %vm14581_vm13, %v787_v57, %v795_v56  ;;  %v808_v60 = vsel %vm18616_vm3, %v806_v45, %v807_v58  ;;  %v798_v61 = vor.u32 %v796_v55, %v787_v57  ;;  %v809_v62 = vor.u32 %v807_v58, %v785_v54 }
 0x212   :  { %10961 = vmatmul.mubr.msk.bf16.vlgmr.msra.gmra.mxu0 %vm14689_vm5, %v802_v59  ;;  %10963 = vmatmul.mubr.msk.bf16.vlgmr.msra.gmra.mxu1 %vm14565_vm11, %v808_v60  ;;  %vm14908_vm3 = vcmp.eq.s32.totalorder %v667_v37, %v14804_v9  ;;  %v14944_v54 = vadd.s32 200, %v14523_v2  ;;  %v18991_v55 = vmov 0  ;;  %v14959_v45 = vadd.s32 72, %v14523_v2 }
 0x213   :  { %1159 = vmatprep.mubr.bf16.mxu0 %v783_v53  ;;  %1212 = vmatprep.mubr.bf16.mxu1 %v18638_v1  ;;  %v799_v63 = vsel %vm18617_vm7, %v792_v50, %v798_v61  ;;  %v813_v8 = vsel %vm14561_vm10, %v809_v62, %v805_v52  ;;  %v18983_v42 = vsel %vm14908_vm3, 4294967295, %v18982_v42  ;;  %vm14923_vm7 = vcmp.eq.s32.totalorder %v651_v40, %v14804_v9 }
 0x214   :  { %12034 = vmatpush3.msk.msra.mxu1 %vm14833_vm2, %v18701_v18  ;;  %12069 = vmatpush3.msk.msra.mxu0 %vm14833_vm2, %v18701_v18  ;;  %v18986_v48 = vsel %vm14923_vm7, 4294967295, %v18985_v48  ;;  %v14929_v50 = vadd.s32 80, %v14523_v2  ;;  %v18988_v52 = vmov 0  ;;  %v665_v53 = vand.u32 15, %v14914_v46  ;;  %18990 = vst [vmem:[#allocation59_spill] sm:$0xff] %v14944_v54  ;;  %18993 = vst [vmem:[#allocation60_spill] sm:$0xff] %v14959_v45 }
 0x215   :  { %12035 = vmatprep.subr.msk.mxu1 %vm14848_vm4, %v18701_v18  ;;  %12070 = vmatprep.subr.msk.mxu0 %vm14848_vm4, %v18701_v18  ;;  %v18989_v52 = vsel %vm14938_vm15, 4294967295, %v18988_v52  ;;  %v18992_v55 = vsel %vm14953_vm8, 4294967295, %v18991_v55  ;;  %v18994_v57 = vmov 0  ;;  %v664_v58 = vand.u32 15, %v14944_v54 }
 0x216   :  { %12036 = vmatpush3.msk.msra.mxu1 %vm14863_vm9, %v18701_v18  ;;  %12071 = vmatpush3.msk.msra.mxu0 %vm14863_vm9, %v18701_v18  ;;  %18987 = vst [vmem:[#allocation58_spill] sm:$0xff] %v14929_v50  ;;  %v649_v56 = vand.u32 15, %v14929_v50  ;;  %v14974_v59 = vadd.s32 192, %v14523_v2  ;;  %v18997_v60 = vmov 0  ;;  %v648_v61 = vand.u32 15, %v14959_v45 }
 0x217   :  { %12037 = vmatprep.subr.msk.mxu1 %vm14878_vm6, %v18701_v18  ;;  %12072 = vmatprep.subr.msk.mxu0 %vm14878_vm6, %v18701_v18  ;;  %v14989_v62 = vadd.s32 64, %v14523_v2  ;;  %vm14998_vm11 = vcmp.eq.s32.totalorder %v664_v58, %v14804_v9  ;;  %v15034_v37 = vadd.s32 176, %v14523_v2  ;;  %v19009_v40 = vmov 0 }
 0x218   :  { %12038 = vmatpush3.msk.msra.mxu1 %vm14893_vm14, %v18701_v18  ;;  %12073 = vmatpush3.msk.msra.mxu0 %vm14893_vm14, %v18701_v18  ;;  %18996 = vst [vmem:[#allocation61_spill] sm:$0xff] %v14974_v59  ;;  %vm14983_vm10 = vcmp.eq.s32.totalorder %v649_v56, %v14804_v9  ;;  %v15064_v58 = vadd.s32 168, %v14523_v2  ;;  %v15094_v1 = vadd.s32 160, %v14523_v2 }
 0x219   :  { %12039 = vmatprep.subr.msk.mxu1 %vm14908_vm3, %v18701_v18  ;;  %12074 = vmatprep.subr.msk.mxu0 %vm14908_vm3, %v18701_v18  ;;  %v18998_v60 = vsel %vm14983_vm10, 4294967295, %v18997_v60  ;;  %18999 = vst [vmem:[#allocation62_spill] sm:$0xff] %v14989_v62  ;;  %v647_v16 = vand.u32 15, %v14989_v62  ;;  %19008 = vst [vmem:[#allocation65_spill] sm:$0xff] %v15034_v37  ;;  %v661_v56 = vand.u32 15, %v15034_v37  ;;  %v15204_v37 = vadd.s32 128, %v14523_v2 }
 0x21a   :  { %10962 = vmatmul.mubr.msk.bf16.gmra.mxu0 %vm14704_vm0, %v799_v63  ;;  %10964 = vmatmul.mubr.msk.bf16.gmra.mxu1 %vm14569_vm12, %v813_v8  ;;  %vm14968_vm12 = vcmp.eq.s32.totalorder %v665_v53, %v14804_v9  ;;  %v19000_v63 = vmov 0  ;;  %v663_v8 = vand.u32 15, %v14974_v59  ;;  %v19012_v53 = vmov 0  ;;  %19014 = vst [vmem:[#allocation67_spill] sm:$0xff] %v15064_v58  ;;  %19021 = vst [vmem:[#allocation70_spill] sm:$0xff] %v15094_v1 }
 0x21b   :  { %12040 = vmatpush3.msk.msra.mxu1 %vm14923_vm7, %v18701_v18  ;;  %12075 = vmatpush3.msk.msra.mxu0 %vm14923_vm7, %v18701_v18  ;;  %v18995_v57 = vsel %vm14968_vm12, 4294967295, %v18994_v57  ;;  %v19001_v63 = vsel %vm14998_vm11, 4294967295, %v19000_v63  ;;  %19048 = vst [vmem:[#allocation81_spill] sm:$0xff] %v15204_v37  ;;  %v655_v28 = vand.u32 15, %v15204_v37  ;;  %v19063_v37 = vmov 0 }
 0x21c   :  { %12041 = vmatprep.subr.msk.mxu1 %vm14938_vm15, %v18701_v18  ;;  %12076 = vmatprep.subr.msk.mxu0 %vm14938_vm15, %v18701_v18  ;;  %v15280_v62 = vsub.s32 1, %v14523_v2  ;;  %vm19083_vm15 = vcmask 130048  }
 0x21d   :  { %12042 = vmatpush3.msk.msra.mxu1 %vm14953_vm8, %v18701_v18  ;;  %12077 = vmatpush3.msk.msra.mxu0 %vm14953_vm8, %v18701_v18 }
 0x21e   :  { %12043 = vmatprep.subr.msk.mxu1 %vm14968_vm12, %v18701_v18  ;;  %12078 = vmatprep.subr.msk.mxu0 %vm14968_vm12, %v18701_v18  ;;  %vm15013_vm12 = vcmp.eq.s32.totalorder %v648_v61, %v14804_v9  ;;  %v19015_v61 = vmov 0  ;;  %19067 = vst [vmem:[#allocation88_spill] sm:$0xff] %v15280_v62 }
 0x21f   :  { %12044 = vmatpush3.msk.msra.mxu1 %vm14983_vm10, %v18701_v18  ;;  %12079 = vmatpush3.msk.msra.mxu0 %vm14983_vm10, %v18701_v18  ;;  %v19004_v14 = vsel %vm15013_vm12, 4294967295, %v19003_v14  ;;  %vm15028_vm10 = vcmp.eq.s32.totalorder %v663_v8, %v14804_v9  ;;  %v645_v8 = vand.u32 15, %v15049_v49 }
 0x220   :  { %12045 = vmatprep.subr.msk.mxu1 %vm14998_vm11, %v18701_v18  ;;  %12080 = vmatprep.subr.msk.mxu0 %vm14998_vm11, %v18701_v18  ;;  %v19007_v24 = vsel %vm15028_vm10, 4294967295, %v19006_v24  ;;  %vm15043_vm11 = vcmp.eq.s32.totalorder %v647_v16, %v14804_v9  ;;  %v15079_v16 = vadd.s32 40, %v14523_v2 }
 0x221   :  { %12046 = vmatpush3.msk.msra.mxu1 %vm15013_vm12, %v18701_v18  ;;  %12081 = vmatpush3.msk.msra.mxu0 %vm15013_vm12, %v18701_v18  ;;  %v19010_v40 = vsel %vm15043_vm11, 4294967295, %v19009_v40  ;;  %vm15058_vm12 = vcmp.eq.s32.totalorder %v662_v29, %v14804_v9  ;;  %v19019_v29 = vmov 0 }
 0x222   :  { %12047 = vmatprep.subr.msk.mxu1 %vm15028_vm10, %v18701_v18  ;;  %12082 = vmatprep.subr.msk.mxu0 %vm15028_vm10, %v18701_v18  ;;  %v19013_v53 = vsel %vm15058_vm12, 4294967295, %v19012_v53  ;;  %vm15073_vm10 = vcmp.eq.s32.totalorder %v646_v43, %v14804_v9  ;;  %19018 = vst [vmem:[#allocation69_spill] sm:$0xff] %v15079_v16  ;;  %v660_v43 = vand.u32 15, %v15064_v58  ;;  %v15151_v58 = vadd.s32 144, %v14523_v2 }
 0x223   :  { %12048 = vmatpush3.msk.msra.mxu1 %vm15043_vm11, %v18701_v18  ;;  %12083 = vmatpush3.msk.msra.mxu0 %vm15043_vm11, %v18701_v18  ;;  %v19016_v61 = vsel %vm15073_vm10, 4294967295, %v19015_v61  ;;  %vm15088_vm11 = vcmp.eq.s32.totalorder %v661_v56, %v14804_v9  ;;  %v644_v56 = vand.u32 15, %v15079_v16  ;;  %v19029_v16 = vmov 0 }
 0x224   :  { %12049 = vmatprep.subr.msk.mxu1 %vm15058_vm12, %v18701_v18  ;;  %19017 = vst [vmem:[#allocation68_spill] sm:$0xff] %v19016_v61  ;;  %12084 = vmatprep.subr.msk.mxu0 %vm15058_vm12, %v18701_v18  ;;  %v19020_v29 = vsel %vm15088_vm11, 4294967295, %v19019_v29  ;;  %vm15103_vm12 = vcmp.eq.s32.totalorder %v645_v8, %v14804_v9  ;;  %v659_v8 = vand.u32 15, %v15094_v1  ;;  %v19032_v1 = vmov 0  ;;  %19034 = vst [vmem:[#allocation75_spill] sm:$0xff] %v15151_v58 }
 0x225   :  { %12050 = vmatpush3.msk.msra.mxu1 %vm15073_vm10, %v18701_v18  ;;  %12085 = vmatpush3.msk.msra.mxu0 %vm15073_vm10, %v18701_v18  ;;  %v19023_v51 = vsel %vm15103_vm12, 4294967295, %v19022_v51  ;;  %vm15118_vm10 = vcmp.eq.s32.totalorder %v660_v43, %v14804_v9  ;;  %v643_v43 = vand.u32 15, %v15109_v26  ;;  %v19035_v26 = vmov 0 }
 0x226   :  { %12051 = vmatprep.subr.msk.mxu1 %vm15088_vm11, %v18701_v18  ;;  %19024 = vst [vmem:[#allocation71_spill] sm:$0xff] %v19023_v51  ;;  %12086 = vmatprep.subr.msk.mxu0 %vm15088_vm11, %v18701_v18  ;;  %v19027_v30 = vsel %vm15118_vm10, 4294967295, %v19026_v30  ;;  %vm15133_vm11 = vcmp.eq.s32.totalorder %v644_v56, %v14804_v9  ;;  %v658_v56 = vand.u32 15, %v15124_v4  ;;  %v657_v4 = vand.u32 15, %v15151_v58 }
 0x227   :  { %12052 = vmatpush3.msk.msra.mxu1 %vm15103_vm12, %v18701_v18  ;;  %12087 = vmatpush3.msk.msra.mxu0 %vm15103_vm12, %v18701_v18  ;;  %v19030_v16 = vsel %vm15133_vm11, 4294967295, %v19029_v16  ;;  %vm15145_vm12 = vcmp.eq.s32.totalorder %v659_v8, %v14804_v9  ;;  %v19038_v8 = vmov 0  ;;  %v19045_v58 = vmov 0 }
 0x228   :  { %12053 = vmatprep.subr.msk.mxu1 %vm15118_vm10, %v18701_v18  ;;  %19031 = vst [vmem:[#allocation74_spill] sm:$0xff] %v19030_v16  ;;  %12088 = vmatprep.subr.msk.mxu0 %vm15118_vm10, %v18701_v18  ;;  %v19033_v1 = vsel %vm15145_vm12, 4294967295, %v19032_v1  ;;  %vm15160_vm10 = vcmp.eq.s32.totalorder %v643_v43, %v14804_v9  ;;  %vm15171_vm8 = vcmp.eq.s32.totalorder %v658_v56, %v14804_v9  ;;  %v15177_v43 = vadd.s32 136, %v14523_v2 }
 0x229   :  { %12054 = vmatpush3.msk.msra.mxu1 %vm15133_vm11, %v18701_v18  ;;  %12089 = vmatpush3.msk.msra.mxu0 %vm15133_vm11, %v18701_v18  ;;  %v19036_v26 = vsel %vm15160_vm10, 4294967295, %v19035_v26  ;;  %v19039_v8 = vsel %vm15171_vm8, 4294967295, %v19038_v8  ;;  %v19042_v56 = vmov 0  ;;  %vm15232_vm11 = vcmp.eq.s32.totalorder %v14532_v5, %v14804_v9 }
 0x22a   :  { %12055 = vmatprep.subr.msk.mxu1 %vm15145_vm12, %v18701_v18  ;;  %19037 = vst [vmem:[#allocation76_spill] sm:$0xff] %v19036_v26  ;;  %12090 = vmatprep.subr.msk.mxu0 %vm15145_vm12, %v18701_v18  ;;  %19040 = vst [vmem:[#allocation77_spill] sm:$0xff] %v19039_v8  ;;  %vm15187_vm12 = vcmp.eq.s32.totalorder %v14538_v7, %v14804_v9  ;;  %v656_v49 = vand.u32 15, %v15177_v43 }
 0x22b   :  { %12056 = vmatpush3.msk.msra.mxu1 %vm15160_vm10, %v18701_v18  ;;  %19041 = vst [vmem:[#allocation78_spill] sm:$0xff] %v15177_v43  ;;  %12091 = vmatpush3.msk.msra.mxu0 %vm15160_vm10, %v18701_v18  ;;  %v19043_v56 = vsel %vm15187_vm12, 4294967295, %v19042_v56  ;;  %vm15198_vm10 = vcmp.eq.s32.totalorder %v657_v4, %v14804_v9  ;;  %v19050_v4 = vmov 0  ;;  %v19053_v43 = vmov 0 }
 0x22c   :  { %12057 = vmatprep.subr.msk.mxu1 %vm15171_vm8, %v18701_v18  ;;  %19044 = vst [vmem:[#allocation79_spill] sm:$0xff] %v19043_v56  ;;  %12092 = vmatprep.subr.msk.mxu0 %vm15171_vm8, %v18701_v18  ;;  %v19046_v58 = vsel %vm15198_vm10, 4294967295, %v19045_v58  ;;  %vm15215_vm8 = vcmp.eq.s32.totalorder %v19049_v21, %v14804_v9  ;;  %v19056_v21 = vmov 0 }
 0x22d   :  { %12058 = vmatpush3.msk.msra.mxu1 %vm15187_vm12, %v18701_v18  ;;  %19047 = vst [vmem:[#allocation80_spill] sm:$0xff] %v19046_v58  ;;  %12093 = vmatpush3.msk.msra.mxu0 %vm15187_vm12, %v18701_v18  ;;  %v19051_v4 = vsel %vm15215_vm8, 4294967295, %v19050_v4  ;;  %vm15226_vm12 = vcmp.eq.s32.totalorder %v656_v49, %v14804_v9  ;;  %v19057_v21 = vsel %vm15232_vm11, 4294967295, %v19056_v21  ;;  %v19059_v49 = vand.u32 15, %v14523_v2 }
 0x22e   :  { %12059 = vmatprep.subr.msk.mxu1 %vm15198_vm10, %v18701_v18  ;;  %19052 = vst [vmem:[#allocation82_spill] sm:$0xff] %v19051_v4  ;;  %12094 = vmatprep.subr.msk.mxu0 %vm15198_vm10, %v18701_v18  ;;  %v19054_v43 = vsel %vm15226_vm12, 4294967295, %v19053_v43  ;;  %19058 = vst [vmem:[#allocation84_spill] sm:$0xff] %v19057_v21 }
 0x22f   :  { %12060 = vmatpush3.msk.msra.mxu1 %vm15215_vm8, %v18701_v18  ;;  %19055 = vst [vmem:[#allocation83_spill] sm:$0xff] %v19054_v43  ;;  %12095 = vmatpush3.msk.msra.mxu0 %vm15215_vm8, %v18701_v18  ;;  %vm15246_vm10 = vcmp.eq.s32.totalorder %v19059_v49, %v14804_v9  ;;  %vm15257_vm8 = vcmp.eq.s32.totalorder %v655_v28, %v14804_v9  ;;  %v15277_v28 = vsub.s32 0, %v14523_v2  ;;  %v865_v49 = vld [vmem:[#allocation2 + $0x2] ss:$8 sm:$0x3] }
 0x230   :  { %12061 = vmatprep.subr.msk.mxu1 %vm15226_vm12, %v18701_v18  ;;  %v19061_v12 = vsel %vm15246_vm10, 4294967295, %v19060_v12  ;;  %12096 = vmatprep.subr.msk.mxu0 %vm15226_vm12, %v18701_v18  ;;  %v19064_v37 = vsel %vm15257_vm8, 4294967295, %v19063_v37  ;;  %v874_v50 = vrot.slane %v865_v49, %v15280_v62 }
 0x231   :  { %19062 = vst [vmem:[#allocation85_spill] sm:$0xff] %v19061_v12  ;;  %12062 = vmatpush3.msk.msra.mxu1 %vm15232_vm11, %v18701_v18  ;;  %19065 = vst [vmem:[#allocation86_spill] sm:$0xff] %v19064_v37  ;;  %12097 = vmatpush3.msk.msra.mxu0 %vm15232_vm11, %v18701_v18  ;;  %v870_v59 = vrot.slane %v865_v49, %v15277_v28 }
 0x232   :  { %12063 = vmatprep.subr.msk.mxu1 %vm15257_vm8, %v18701_v18  ;;  %12098 = vmatprep.subr.msk.mxu0 %vm15257_vm8, %v18701_v18  ;;  %19066 = vst [vmem:[#allocation87_spill] sm:$0xff] %v15277_v28 }
 0x233   :  { %12064 = vmatpush3.msk.msra.mxu1 %vm15246_vm10, %v18701_v18  ;;  %12099 = vmatpush3.msk.msra.mxu0 %vm15246_vm10, %v18701_v18 }
 0x238   :  { %v19162_v19 = vld [vmem:[#allocation85_spill] sm:$0xff] }
 0x2d2   :  { %v1151_v45 = vpop.f32.mrf.mxu0  ;;  %v1204_v54 = vpop.f32.mrf.mxu1 }
 0x2d3   :  { %v1152_v38 = vadd.f32 %v1151_v45, %v870_v59 }
 0x2d4   :  { %v1153_v46 = vpop.f32.mrf.mxu0  ;;  %v1206_v41 = vpop.f32.mrf.mxu1 }
 0x2d5   :  { %v1154_v18 = vadd.f32 %v1153_v46, %v874_v50  ;;  %v15286_v10 = vadd.f32 %v1204_v54, %v1152_v38 }
 0x2d6   :  { %v1155_v31 = vpop.f32.mrf.mxu0  ;;  %v1208_v25 = vpop.f32.mrf.mxu1 }
 0x2d7   :  { %v1156_v22 = vadd.f32 %v1155_v31, %v870_v59  ;;  %v15290_v49 = vadd.f32 %v1206_v41, %v1154_v18 }
 0x2d8   :  { %v1157_v17 = vpop.f32.mrf.mxu0  ;;  %v1210_v15 = vpop.f32.mrf.mxu1 }
 0x2d9   :  { %v15284_v13 = vadd.f32 %v1208_v25, %v1156_v22  ;;  %v1158_v11 = vadd.f32 %v1157_v17, %v874_v50  ;;  %v1223_v22 = vmax.f32 %v15286_v10, 0.0 }
 0x2da   :  { %v1161_v7 = vpop.f32.mrf.mxu0  ;;  %v1214_v6 = vpop.f32.mrf.mxu1 }
 0x2db   :  { %v15288_v5 = vadd.f32 %v1210_v15, %v1158_v11  ;;  %v1162_v36 = vadd.f32 %v1161_v7, %v870_v59  ;;  %v18731_v12 = vmax.f32 %v15284_v13, 0.0  ;;  %v1224_v15 = vmax.f32 %v15290_v49, 0.0 }
 0x2dc   :  { %v1163_v34 = vpop.f32.mrf.mxu0  ;;  %v1216_v45 = vpop.f32.mrf.mxu1 }
 0x2dd   :  { %v15293_v31 = vadd.f32 %v1214_v6, %v1162_v36  ;;  %v1164_v46 = vadd.f32 %v1163_v34, %v874_v50  ;;  %v1226_v38 = vmax.f32 %v15288_v5, 0.0  ;;  %v1235_v41 = vadd.f32 %v18731_v12, %v1223_v22 }
 0x2de   :  { %v1165_v25 = vpop.f32.mrf.mxu0  ;;  %v1218_v17 = vpop.f32.mrf.mxu1 }
 0x2df   :  { %v1227_v54 = vmax.f32 %v15293_v31, 0.0  ;;  %v15298_v11 = vadd.f32 %v1216_v45, %v1164_v46  ;;  %v1166_v7 = vadd.f32 %v1165_v25, %v870_v59  ;;  %v1244_v37 = vadd.f32 %v1226_v38, %v1224_v15 }
 0x2e0   :  { %v1167_v18 = vpop.f32.mrf.mxu0  ;;  %v1220_v10 = vpop.f32.mrf.mxu1 }
 0x2e1   :  { %v1228_v6 = vmax.f32 %v15298_v11, 0.0  ;;  %v1219_v34 = vadd.f32 %v1218_v17, %v1166_v7  ;;  %v1168_v36 = vadd.f32 %v1167_v18, %v874_v50  ;;  %v1236_v21 = vadd.f32 %v1235_v41, %v1227_v54 }
 0x2e2   :  { %v19068_v41 = vmov 0.0  }
 0x2e3   :  { %v1229_v43 = vmax.f32 %v1219_v34, 0.0  ;;  %v1221_v31 = vadd.f32 %v1220_v10, %v1168_v36  ;;  %v1245_v45 = vadd.f32 %v1244_v37, %v1228_v6  ;;  %v15308_v37 = vadd.s32 128, %v14804_v9 }
 0x2e4   :  { %v768_v34 = vand.u32 15, %v14804_v9 }
 0x2e5   :  { %v1237_v46 = vadd.f32 %v1236_v21, %v1229_v43  ;;  %v1230_v59 = vmax.f32 %v1221_v31, 0.0  ;;  %19069 = vst [vmem:[#allocation89_spill] sm:$0xff] %v15308_v37  ;;  %v769_v21 = vand.u32 15, %v15308_v37 }
 0x2e6   :  { %vm15321_vm8 = vcmp.eq.s32.totalorder %v768_v34, %v14526_v3  ;;  %vm15337_vm12 = vcmp.eq.s32.totalorder %v768_v34, %v14523_v2 }
 0x2e7   :  { %v1238_v25 = vrot.slane %v1237_v46, 4  ;;  %v1246_v49 = vadd.f32 %v1245_v45, %v1230_v59  ;;  %vm15313_vm10 = vcmp.eq.s32.totalorder %v769_v21, %v14526_v3  ;;  %vm15329_vm11 = vcmp.eq.s32.totalorder %v769_v21, %v14523_v2 }
 0x2e9   :  { %v1239_v4 = vadd.f32 %v1238_v25, %v1237_v46  ;;  %v1247_v58 = vrot.slane %v1246_v49, 4 }
 0x2eb   :  { %v1240_v56 = vrot.slane %v1239_v4, 2  ;;  %v1248_v12 = vadd.f32 %v1247_v58, %v1246_v49  ;;  %v19070_v58 = vmov 0 }
 0x2ec   :  { %v19071_v58 = vsel %vm15313_vm10, 4294967295, %v19070_v58 }
 0x2ed   :  { %v1241_v8 = vadd.f32 %v1240_v56, %v1239_v4  ;;  %v1249_v11 = vrot.slane %v1248_v12, 2  ;;  %19072 = vst [vmem:[#allocation90_spill] sm:$0xff] %v19071_v58  ;;  %v19080_v56 = vmov 0 }
 0x2ee   :  { %v19081_v56 = vsel %vm15337_vm12, 4294967295, %v19080_v56 }
 0x2ef   :  { %v1250_v17 = vadd.f32 %v1249_v11, %v1248_v12  ;;  %v1242_v50 = vrot.slane %v1241_v8, 1  ;;  %v19073_v12 = vmov 1.0   ;;  %19082 = vst [vmem:[#allocation93_spill] sm:$0xff] %v19081_v56 }
 0x2f0   :  { %10997 = vmatprep.subr.msk.mxu1 %vm15313_vm10, %v19073_v12 }
 0x2f1   :  { %v1251_v7 = vrot.slane %v1250_v17, 1  ;;  %v1243_v26 = vadd.f32 %v1242_v50, %v1241_v8  ;;  %v19077_v8 = vmov 0 }
 0x2f2   :  { %v19078_v8 = vsel %vm15329_vm11, 4294967295, %v19077_v8 }
 0x2f3   :  { %v1252_v18 = vadd.f32 %v1251_v7, %v1250_v17  ;;  %19079 = vst [vmem:[#allocation92_spill] sm:$0xff] %v19078_v8  ;;  %v19084_v17 = vmax.f32 %v15284_v13, 0.0 }
 0x2f4   :  { %v19164_v23 = vld [vmem:[#allocation90_spill] sm:$0xff] }
 0x2f5   :  { %1317 = vmatprep.mubr.f32.mxu1 %v1252_v18 }
 0x2f6   :  { %1318 = vmatmul.mubr.f32.vlgmr.msra.gmra.mxu1 %v1243_v26  ;;  %v19074_v26 = vmov 0 }
 0x2f7   :  { %1390 = vmatprep.mubr.f32.mxu1 %v19068_v41  ;;  %v19075_v26 = vsel %vm15321_vm8, 4294967295, %v19074_v26  ;;  %10998 = vmatpush1.msk.msra.mxu1 %vm15321_vm8, %v19073_v12 }
 0x2f8   :  { %19076 = vst [vmem:[#allocation91_spill] sm:$0xff] %v19075_v26  ;;  %10999 = vmatprep.subr.msk.mxu1 %vm15329_vm11, %v19073_v12 }
 0x2f9   :  { %11000 = vmatpush1.msk.msra.mxu1 %vm15337_vm12, %v19073_v12 }
 0x2fa   :  { %11034 = vmatprep.subr.msk.mxu1 %vm15313_vm10, %v19073_v12 }
 0x3b6   :  { %v12065_v4 = vpop.f32.mrf.mxu1 }
 0x3b8   :  { %v12066_v36 = vpop.f32.mrf.mxu1 }
 0x3b9   :  { %v12067_v10 = vadd.f32 %v12066_v36, %v12065_v4 }
 0x3bb   :  { %11001 = vmatmul.mubr.msk.f32.vlgmr.msra.gmra.mxu1 %vm19083_vm15, %v12067_v10 }
 0x3bc   :  { %11035 = vmatpush1.msk.msra.mxu1 %vm15321_vm8, %v19073_v12  ;;  %1578 = vmatprep.mubr.f32.mxu1 %v19068_v41 }
 0x3bd   :  { %11036 = vmatprep.subr.msk.mxu1 %vm15329_vm11, %v19073_v12 }
 0x3be   :  { %11037 = vmatpush1.msk.msra.mxu1 %vm15337_vm12, %v19073_v12 }
 0x47b   :  { %v1392_v31 = vpop.f32.mrf.mxu1 }
 0x47c   :  { %v1397_v45 = vmul.f32 0.001953125, %v1392_v31 }
 0x47d   :  { %v1394_v46 = vpop.f32.mrf.mxu1 }
 0x47e   :  { %v1402_v25 = vrot.slane %v1397_v45, %v15277_v28  ;;  %v1398_v49 = vmul.f32 0.001953125, %v1394_v46 }
 0x480   :  { %v15359_v11 = vsub.f32 %v1223_v22, %v1402_v25  ;;  %v15363_v50 = vsub.f32 %v19084_v17, %v1402_v25  ;;  %v15365_v7 = vsub.f32 %v1227_v54, %v1402_v25  ;;  %v1406_v18 = vrot.slane %v1398_v49, %v15277_v28 }
 0x481   :  { %v15368_v21 = vsub.f32 %v1229_v43, %v1402_v25 }
 0x482   :  { %v1415_v34 = vmul.f32 %v15359_v11, %v15359_v11  ;;  %v1417_v4 = vmul.f32 %v15363_v50, %v15363_v50  ;;  %v15374_v36 = vsub.f32 %v1224_v15, %v1406_v18  ;;  %v15378_v22 = vsub.f32 %v1226_v38, %v1406_v18 }
 0x483   :  { %v15380_v13 = vsub.f32 %v1228_v6, %v1406_v18  ;;  %v1419_v54 = vmul.f32 %v15365_v7, %v15365_v7  ;;  %v15384_v43 = vsub.f32 %v1230_v59, %v1406_v18  ;;  %v1421_v15 = vmul.f32 %v15368_v21, %v15368_v21 }
 0x484   :  { %v1423_v10 = vadd.f32 %v1417_v4, %v1415_v34  ;;  %v1416_v31 = vmul.f32 %v15374_v36, %v15374_v36  ;;  %v1418_v45 = vmul.f32 %v15378_v22, %v15378_v22 }
 0x485   :  { %v1420_v38 = vmul.f32 %v15380_v13, %v15380_v13  ;;  %v1422_v25 = vmul.f32 %v15384_v43, %v15384_v43 }
 0x486   :  { %v1424_v5 = vadd.f32 %v1423_v10, %v1419_v54  ;;  %v1432_v6 = vadd.f32 %v1418_v45, %v1416_v31  ;;  %v13305_v31 = vld [vmem:[#allocation7 + $0x14] ss:$8 sps:$4 sm:$0xff]   ;;  %v13309_v45 = vld [vmem:[%s19085_s22 + $0x170] ss:$8 sps:$4 sm:$0xff]  }
 0x487   :  { %1700 = vmatprep.subr.bf16.mxu1 %v13305_v31 }
 0x488   :  { %v1425_v46 = vadd.f32 %v1424_v5, %v1421_v15  ;;  %v1433_v59 = vadd.f32 %v1432_v6, %v1420_v38  ;;  %v13311_v15 = vld [vmem:[%s19085_s22 + $0x174] ss:$8 sps:$4 sm:$0xff]   ;;  %v13330_v38 = vld [vmem:[%s19085_s22 + $0x130] ss:$8 sps:$4 sm:$0xff]   ;;  %v13338_v6 = vld [vmem:[%s19085_s22 + $0x124] ss:$8 sps:$4 sm:$0xff]  }
 0x489   :  { %2465 = vmatprep.subr.bf16.mxu0 %v13311_v15  ;;  %v13332_v5 = vld [vmem:[%s19085_s22 + $0x134] ss:$8 sps:$4 sm:$0xff]   ;;  %v13315_v15 = vld [vmem:[%s19085_s22 + $0x70] ss:$8 sps:$4 sm:$0xff]  }
 0x48a   :  { %v1426_v49 = vrot.slane %v1425_v46, 4  ;;  %v1434_v17 = vadd.f32 %v1433_v59, %v1422_v25  ;;  %v276_v25 = vld [vmem:[#allocation2] ss:$0 sm:$0xff] }
 0x48c   :  { %v1427_v18 = vadd.f32 %v1426_v49, %v1425_v46  ;;  %v1435_v34 = vrot.slane %v1434_v17, 4  ;;  %v13336_v46 = vld [vmem:[%s19085_s22 + $0x120] ss:$8 sps:$4 sm:$0xff]  }
 0x48e   :  { %v1428_v4 = vrot.slane %v1427_v18, 2  ;;  %v1436_v37 = vadd.f32 %v1435_v34, %v1434_v17  ;;  %v13303_v17 = vld [vmem:[#allocation7 + $0x10] ss:$8 sps:$4 sm:$0xff]  }
 0x490   :  { %v1429_v3 = vadd.f32 %v1428_v4, %v1427_v18  ;;  %v1437_v9 = vrot.slane %v1436_v37, 2  ;;  %v328_v18 = vadd.f32 %v14786_v20, %v276_v25  ;;  %v13308_v4 = vld [vmem:[#allocation7 + $0x4] ss:$8 sps:$4 sm:$0xff]  }
 0x491   :  { %v13347_v25 = vld [vmem:[%s19085_s22 + $0x24] ss:$8 sps:$4 sm:$0xff]  }
 0x492   :  { %v1438_v56 = vadd.f32 %v1437_v9, %v1436_v37  ;;  %v1430_v8 = vrot.slane %v1429_v3, 1  ;;  %v13314_v9 = vld [vmem:[%s19085_s22 + $0x164] ss:$8 sps:$4 sm:$0xff]   ;;  %v13318_v37 = vld [vmem:[%s19085_s22 + $0x150] ss:$8 sps:$4 sm:$0xff]   ;;  %v333_v31 = vmax.f32 %v328_v18, 0.0 }
 0x493   :  { %v13353_v18 = vld [vmem:[%s19085_s22 + $0x14] ss:$8 sps:$4 sm:$0xff]  }
 0x494   :  { %v1439_v54 = vrot.slane %v1438_v56, 1  ;;  %v1431_v41 = vadd.f32 %v1430_v8, %v1429_v3  ;;  %v13312_v3 = vld [vmem:[%s19085_s22 + $0x160] ss:$8 sps:$4 sm:$0xff]   ;;  %v13326_v8 = vld [vmem:[%s19085_s22 + $0x144] ss:$8 sps:$4 sm:$0xff]   ;;  %v15441_v20 = vpack.c.bf16 %v333_v31, %v333_v31 }
 0x495   :  { %v13359_v31 = vld [vmem:[%s19085_s22 + $0x4] ss:$8 sps:$4 sm:$0xff]  }
 0x496   :  { %v1440_v10 = vadd.f32 %v1439_v54, %v1438_v56  ;;  %v13324_v56 = vld [vmem:[%s19085_s22 + $0x140] ss:$8 sps:$4 sm:$0xff]   ;;  %19087 = vst [vmem:[#allocation94_spill] sm:$0xff] %v15441_v20 }
 0x497   :  { %v13306_v54 = vld [vmem:[#allocation7] ss:$8 sps:$4 sm:$0xff]  }
 0x498   :  { %1505 = vmatprep.mubr.f32.mxu0 %v1440_v10  ;;  %v19086_v10 = vmov 0  }
 0x499   :  { %1506 = vmatmul.mubr.f32.vlgmr.msra.gmra.mxu0 %v1431_v41  ;;  %v13320_v41 = vld [vmem:[%s19085_s22 + $0x154] ss:$8 sps:$4 sm:$0xff]  }
 0x49a   :  { %2466 = vmatpush1.bf16.msra.mxu0 %v13309_v45  ;;  %v13317_v45 = vld [vmem:[%s19085_s22 + $0x74] ss:$8 sps:$4 sm:$0xff]  }
 0x49b   :  { %2467 = vmatprep.subr.bf16.mxu0 %v13314_v9  ;;  %v13323_v9 = vld [vmem:[%s19085_s22 + $0x64] ss:$8 sps:$4 sm:$0xff]  }
 0x49e   :  { %2468 = vmatpush1.bf16.msra.mxu0 %v13312_v3  ;;  %v13321_v3 = vld [vmem:[%s19085_s22 + $0x60] ss:$8 sps:$4 sm:$0xff]  }
 0x49f   :  { %2469 = vmatprep.subr.bf16.mxu0 %v13320_v41  ;;  %v13329_v41 = vld [vmem:[%s19085_s22 + $0x54] ss:$8 sps:$4 sm:$0xff]  }
 0x4a2   :  { %2470 = vmatpush1.bf16.msra.mxu0 %v13318_v37  ;;  %v13327_v37 = vld [vmem:[%s19085_s22 + $0x50] ss:$8 sps:$4 sm:$0xff]  }
 0x4a3   :  { %2471 = vmatprep.subr.bf16.mxu0 %v13326_v8  ;;  %v13335_v8 = vld [vmem:[%s19085_s22 + $0x44] ss:$8 sps:$4 sm:$0xff]  }
 0x4a6   :  { %2472 = vmatpush1.bf16.msra.mxu0 %v13324_v56  ;;  %v13333_v56 = vld [vmem:[%s19085_s22 + $0x40] ss:$8 sps:$4 sm:$0xff]  }
 0x4a7   :  { %2473 = vmatprep.subr.bf16.mxu0 %v13332_v5  ;;  %v13341_v5 = vld [vmem:[%s19085_s22 + $0x34] ss:$8 sps:$4 sm:$0xff]  }
 0x4aa   :  { %2474 = vmatpush1.bf16.msra.mxu0 %v13330_v38  ;;  %v13339_v38 = vld [vmem:[%s19085_s22 + $0x30] ss:$8 sps:$4 sm:$0xff]  }
 0x4ab   :  { %2475 = vmatprep.subr.bf16.mxu0 %v13338_v6  ;;  %v13344_v6 = vld [vmem:[%s19085_s22 + $0x114] ss:$8 sps:$4 sm:$0xff]  }
 0x4ae   :  { %2476 = vmatpush1.bf16.msra.mxu0 %v13336_v46  ;;  %v13342_v46 = vld [vmem:[%s19085_s22 + $0x110] ss:$8 sps:$4 sm:$0xff]  }
 0x4af   :  { %2477 = vmatprep.subr.bf16.mxu0 %v13344_v6  ;;  %v13372_v6 = vld [vmem:[%s19085_s22 + $0x1c0] ss:$8 sps:$4 sm:$0xff]  }
 0x4b2   :  { %2478 = vmatpush1.bf16.msra.mxu0 %v13342_v46  ;;  %v13377_v46 = vld [vmem:[%s19085_s22 + $0xd4] ss:$8 sps:$4 sm:$0xff]  }
 0x559   :  { %v12100_v59 = vpop.f32.mrf.mxu0 }
 0x55b   :  { %v12101_v49 = vpop.f32.mrf.mxu0 }
 0x55c   :  { %v12102_v34 = vadd.f32 %v12101_v49, %v12100_v59  ;;  %v13345_v59 = vld [vmem:[%s19085_s22 + $0x20] ss:$8 sps:$4 sm:$0xff]   ;;  %v13350_v49 = vld [vmem:[%s19085_s22 + $0x104] ss:$8 sps:$4 sm:$0xff]  }
 0x55d   :  { %2479 = vmatprep.subr.bf16.mxu0 %v13350_v49  ;;  %v13378_v49 = vld [vmem:[%s19085_s22 + $0x1b0] ss:$8 sps:$4 sm:$0xff]  }
 0x55e   :  { %11038 = vmatmul.mubr.msk.f32.vlgmr.msra.gmra.mxu1 %vm19083_vm15, %v12102_v34  ;;  %vm19088_vm15 = vcmask 261120   ;;  %v13351_v34 = vld [vmem:[%s19085_s22 + $0x10] ss:$8 sps:$4 sm:$0xff]  }
 0x55f   :  { %1701 = vmatpush1.bf16.msra.mxu1 %v13303_v17  ;;  %1720 = vmatprep.mubr.bf16.mxu1 %v19086_v10  ;;  %v13348_v17 = vld [vmem:[%s19085_s22 + $0x100] ss:$8 sps:$4 sm:$0xff]  }
 0x560   :  { %1702 = vmatprep.subr.bf16.mxu1 %v13308_v4  ;;  %2480 = vmatpush1.bf16.msra.mxu0 %v13348_v17  ;;  %v13356_v4 = vld [vmem:[%s19085_s22 + $0x1f4] ss:$8 sps:$4 sm:$0xff]   ;;  %v13381_v17 = vld [vmem:[%s19085_s22 + $0xc0] ss:$8 sps:$4 sm:$0xff]  }
 0x561   :  { %2481 = vmatprep.subr.bf16.mxu0 %v13356_v4  ;;  %v13384_v4 = vld [vmem:[%s19085_s22 + $0x1a0] ss:$8 sps:$4 sm:$0xff]  }
 0x563   :  { %1703 = vmatpush1.bf16.msra.mxu1 %v13306_v54  ;;  %v13354_v54 = vld [vmem:[%s19085_s22 + $0x1f0] ss:$8 sps:$4 sm:$0xff]  }
 0x564   :  { %2412 = vmatprep.subr.bf16.mxu1 %v13317_v45  ;;  %2482 = vmatpush2.bf16.msra.mxu0 %v13354_v54  ;;  %v13357_v45 = vld [vmem:[%s19085_s22] ss:$8 sps:$4 sm:$0xff]   ;;  %v13389_v54 = vld [vmem:[%s19085_s22 + $0xb4] ss:$8 sps:$4 sm:$0xff]  }
 0x566   :  { %11043 = vmatmul.mubr.msk.bf16.vlgmr.msra.gmra.mxu1 %vm19088_vm15, %v15441_v20  ;;  %vm19090_vm15 = vsmask.f32 256 }
 0x567   :  { %2413 = vmatpush1.bf16.msra.mxu1 %v13315_v15  ;;  %v13362_v15 = vld [vmem:[%s19085_s22 + $0x1e4] ss:$8 sps:$4 sm:$0xff]  }
 0x568   :  { %2414 = vmatprep.subr.bf16.mxu1 %v13323_v9  ;;  %v13360_v9 = vld [vmem:[%s19085_s22 + $0x1e0] ss:$8 sps:$4 sm:$0xff]   ;;  %2483 = vmatprep.subr.bf16.mxu0 %v13362_v15  ;;  %v13390_v15 = vld [vmem:[%s19085_s22 + $0x190] ss:$8 sps:$4 sm:$0xff]  }
 0x569   :  { %2484 = vmatpush2.bf16.msra.mxu0 %v13360_v9  ;;  %v13395_v9 = vld [vmem:[%s19085_s22 + $0xa4] ss:$8 sps:$4 sm:$0xff]  }
 0x56b   :  { %2415 = vmatpush1.bf16.msra.mxu1 %v13321_v3  ;;  %v13365_v3 = vld [vmem:[%s19085_s22 + $0xf4] ss:$8 sps:$4 sm:$0xff]  }
 0x56c   :  { %2416 = vmatprep.subr.bf16.mxu1 %v13329_v41  ;;  %v13363_v41 = vld [vmem:[%s19085_s22 + $0xf0] ss:$8 sps:$4 sm:$0xff]  }
 0x56f   :  { %2417 = vmatpush1.bf16.msra.mxu1 %v13327_v37  ;;  %v13368_v37 = vld [vmem:[%s19085_s22 + $0x1d4] ss:$8 sps:$4 sm:$0xff]  }
 0x570   :  { %2418 = vmatprep.subr.bf16.mxu1 %v13335_v8  ;;  %v13366_v8 = vld [vmem:[%s19085_s22 + $0x1d0] ss:$8 sps:$4 sm:$0xff]   ;;  %2485 = vmatprep.subr.bf16.mxu0 %v13368_v37  ;;  %v13396_v37 = vld [vmem:[%s19085_s22 + $0x180] ss:$8 sps:$4 sm:$0xff]  }
 0x571   :  { %2486 = vmatpush2.bf16.msra.mxu0 %v13366_v8  ;;  %v13401_v8 = vld [vmem:[%s19085_s22 + $0x94] ss:$8 sps:$4 sm:$0xff]  }
 0x573   :  { %2419 = vmatpush1.bf16.msra.mxu1 %v13333_v56  ;;  %v13371_v56 = vld [vmem:[%s19085_s22 + $0xe4] ss:$8 sps:$4 sm:$0xff]  }
 0x574   :  { %2420 = vmatprep.subr.bf16.mxu1 %v13341_v5  ;;  %v13369_v5 = vld [vmem:[%s19085_s22 + $0xe0] ss:$8 sps:$4 sm:$0xff]  }
 0x577   :  { %2421 = vmatpush1.bf16.msra.mxu1 %v13339_v38  ;;  %v13374_v38 = vld [vmem:[%s19085_s22 + $0x1c4] ss:$8 sps:$4 sm:$0xff]  }
 0x578   :  { %2422 = vmatprep.subr.bf16.mxu1 %v13347_v25  ;;  %2487 = vmatprep.subr.bf16.mxu0 %v13374_v38  ;;  %v13375_v25 = vld [vmem:[%s19085_s22 + $0xd0] ss:$8 sps:$4 sm:$0xff]   ;;  %v13402_v38 = vld [vmem:[%s19085_s22 + $0x80] ss:$8 sps:$4 sm:$0xff]  }
 0x579   :  { %2488 = vmatpush2.bf16.msra.mxu0 %v13372_v6  ;;  %v13407_v6 = vld [vmem:[%s19085_s22 + $0x274] ss:$8 sps:$4 sm:$0xff]  }
 0x57b   :  { %2423 = vmatpush1.bf16.msra.mxu1 %v13345_v59  ;;  %v13380_v59 = vld [vmem:[%s19085_s22 + $0x1b4] ss:$8 sps:$4 sm:$0xff]  }
 0x57c   :  { %2424 = vmatprep.subr.bf16.mxu1 %v13353_v18  ;;  %2489 = vmatprep.subr.bf16.mxu0 %v13380_v59  ;;  %v13383_v18 = vld [vmem:[%s19085_s22 + $0xc4] ss:$8 sps:$4 sm:$0xff]  }
 0x57d   :  { %2490 = vmatpush2.bf16.msra.mxu0 %v13378_v49 }
 0x57f   :  { %2425 = vmatpush1.bf16.msra.mxu1 %v13351_v34  ;;  %v13386_v34 = vld [vmem:[%s19085_s22 + $0x1a4] ss:$8 sps:$4 sm:$0xff]  }
 0x580   :  { %2426 = vmatprep.subr.bf16.mxu1 %v13359_v31  ;;  %2491 = vmatprep.subr.bf16.mxu0 %v13386_v34  ;;  %v13387_v31 = vld [vmem:[%s19085_s22 + $0xb0] ss:$8 sps:$4 sm:$0xff]  }
 0x581   :  { %2492 = vmatpush2.bf16.msra.mxu0 %v13384_v4 }
 0x583   :  { %2427 = vmatpush1.bf16.msra.mxu1 %v13357_v45  ;;  %v13392_v45 = vld [vmem:[%s19085_s22 + $0x194] ss:$8 sps:$4 sm:$0xff]  }
 0x584   :  { %2428 = vmatprep.subr.bf16.mxu1 %v13365_v3  ;;  %2493 = vmatprep.subr.bf16.mxu0 %v13392_v45  ;;  %v13393_v3 = vld [vmem:[%s19085_s22 + $0xa0] ss:$8 sps:$4 sm:$0xff]  }
 0x585   :  { %2494 = vmatpush2.bf16.msra.mxu0 %v13390_v15 }
 0x587   :  { %2429 = vmatpush2.bf16.msra.mxu1 %v13363_v41  ;;  %v13398_v41 = vld [vmem:[%s19085_s22 + $0x184] ss:$8 sps:$4 sm:$0xff]  }
 0x588   :  { %2430 = vmatprep.subr.bf16.mxu1 %v13371_v56  ;;  %2495 = vmatprep.subr.bf16.mxu0 %v13398_v41  ;;  %v13399_v56 = vld [vmem:[%s19085_s22 + $0x90] ss:$8 sps:$4 sm:$0xff]  }
 0x589   :  { %2496 = vmatpush2.bf16.msra.mxu0 %v13396_v37 }
 0x58a   :  { %12103 = vmatprep.subr.msk.mxu0 %vm14821_vm1, %v19073_v12 }
 0x58b   :  { %2431 = vmatpush2.bf16.msra.mxu1 %v13369_v5  ;;  %v13404_v5 = vld [vmem:[%s19085_s22 + $0x84] ss:$8 sps:$4 sm:$0xff]  }
 0x58c   :  { %2432 = vmatprep.subr.bf16.mxu1 %v13377_v46 }
 0x58f   :  { %2433 = vmatpush2.bf16.msra.mxu1 %v13375_v25 }
 0x590   :  { %2434 = vmatprep.subr.bf16.mxu1 %v13383_v18 }
 0x593   :  { %2435 = vmatpush2.bf16.msra.mxu1 %v13381_v17 }
 0x594   :  { %2436 = vmatprep.subr.bf16.mxu1 %v13389_v54  ;;  %v14314_v54 = vmov 1966171168  }
 0x597   :  { %2437 = vmatpush2.bf16.msra.mxu1 %v13387_v31  ;;  %v1595_v31 = vunpack.c.l.s4 %v14314_v54 }
 0x598   :  { %2438 = vmatprep.subr.bf16.mxu1 %v13395_v9 }
 0x599   :  { %v1596_v9 = vunpack.c.0.s8 %v1595_v31 }
 0x59b   :  { %2439 = vmatpush2.bf16.msra.mxu1 %v13393_v3  ;;  %v1653_v3 = vld [vmem:[#allocation2 + $0x5] ss:$8 sm:$0x3] }
 0x59c   :  { %2440 = vmatprep.subr.bf16.mxu1 %v13401_v8  ;;  %v1658_v41 = vrot.slane %v1653_v3, %v15277_v28  ;;  %v1662_v37 = vrot.slane %v1653_v3, %v15280_v62 }
 0x59f   :  { %2441 = vmatpush2.bf16.msra.mxu1 %v13399_v56  ;;  %v15604_v56 = vsub.s32 %v1596_v9, %v14523_v2 }
 0x5a0   :  { %2442 = vmatprep.subr.bf16.mxu1 %v13404_v5 }
 0x5a1   :  { %19089 = vst [vmem:[#allocation95_spill] sm:$0xff] %v15604_v56 }
 0x5a3   :  { %2443 = vmatpush2.bf16.msra.mxu1 %v13402_v38 }
 0x5a4   :  { %2518 = vmatprep.subr.bf16.mxu1 %v13407_v6 }
 0x61e   :  { %v1580_v46 = vpop.f32.mrf.mxu1 }
 0x61f   :  { %v1585_v25 = vmul.f32 0.001953125, %v1580_v46 }
 0x620   :  { %v1582_v59 = vpop.f32.mrf.mxu1 }
 0x621   :  { %v1587_v49 = vadd.f32 1e-05, %v1585_v25  ;;  %v1586_v17 = vmul.f32 0.001953125, %v1582_v59  ;;  %v1232_v59 = vld [vmem:[#allocation2 + $0x3] ss:$8 sm:$0x3] }
 0x623   :  { %v1588_v18 = vadd.f32 1e-05, %v1586_v17  ;;  %13967 = vrsqrt.f32 %v1587_v49  ;;  %v1234_v17 = vld [vmem:[#allocation2 + $0x4] ss:$8 sm:$0x3] }
 0x624   :  { %v1637_v3 = vrot.slane %v1234_v17, %v15280_v62 }
 0x625   :  { %13969 = vrsqrt.f32 %v1588_v18 }
 0x626   :  { %v1722_v34 = vpop.f32.mrf.mxu1 }
 0x627   :  { %v1723_v6 = vadd.f32 %v1722_v34, %v1658_v41 }
 0x628   :  { %v1724_v4 = vpop.f32.mrf.mxu1 }
 0x629   :  { %v1725_v46 = vadd.f32 %v1724_v4, %v1662_v37  ;;  %v1729_v18 = vmax.f32 %v1723_v6, 0.0 }
 0x62a   :  { %v1726_v45 = vpop.f32.mrf.mxu1 }
 0x62b   :  { %v1730_v54 = vmax.f32 %v1725_v46, 0.0  ;;  %v1734_v34 = vrot.slane %v1729_v18, %v15277_v28  ;;  %v1742_v4 = vrot.slane %v1729_v18, %v15280_v62 }
 0x62c   :  { %v1727_v15 = vpop.f32.mrf.mxu1 }
 0x62d   :  { %v1633_v15 = vrot.slane %v1234_v17, %v15277_v28  ;;  %v1738_v41 = vrot.slane %v1730_v54, %v15277_v28  ;;  %v1746_v37 = vrot.slane %v1730_v54, %v15280_v62 }
 0x630   :  { %v13968_v8 = vpop.eup %13967 }
 0x632   :  { %v13970_v5 = vpop.eup %13969 }
 0x633   :  { %v1593_v38 = vcombine.low %v13968_v8, %v13970_v5 }
 0x635   :  { %v1600_v25 = vrot.slane %v1593_v38, %v15604_v56 }
 0x637   :  { %v1607_v49 = vrot.slane %v1600_v25, %v15604_v56 }
 0x639   :  { %v1609_v31 = vmul.f32 %v1607_v49, %v1232_v59 }
 0x63b   :  { %v1614_v45 = vrot.slane %v1609_v31, %v15277_v28  ;;  %v1618_v9 = vrot.slane %v1609_v31, %v15280_v62 }
 0x63d   :  { %v1621_v8 = vmul.f32 %v1614_v45, %v15359_v11  ;;  %v1623_v5 = vmul.f32 %v1614_v45, %v15363_v50  ;;  %v1625_v38 = vmul.f32 %v1614_v45, %v15365_v7  ;;  %v1627_v6 = vmul.f32 %v1614_v45, %v15368_v21 }
 0x63e   :  { %v1622_v46 = vmul.f32 %v1618_v9, %v15374_v36  ;;  %v1624_v25 = vmul.f32 %v1618_v9, %v15378_v22  ;;  %v1626_v59 = vmul.f32 %v1618_v9, %v15380_v13  ;;  %v1628_v49 = vmul.f32 %v1618_v9, %v15384_v43 }
 0x63f   :  { %v1640_v17 = vadd.f32 %v1633_v15, %v1621_v8  ;;  %v1642_v18 = vadd.f32 %v1633_v15, %v1623_v5  ;;  %v1644_v31 = vadd.f32 %v1633_v15, %v1625_v38  ;;  %v1646_v54 = vadd.f32 %v1633_v15, %v1627_v6  ;;  %v13405_v6 = vld [vmem:[%s19085_s22 + $0x270] ss:$8 sps:$4 sm:$0xff]  }
 0x640   :  { %v1641_v20 = vadd.f32 %v1637_v3, %v1622_v46  ;;  %v1643_v11 = vadd.f32 %v1637_v3, %v1624_v25  ;;  %v1645_v2 = vadd.f32 %v1637_v3, %v1626_v59  ;;  %v1647_v50 = vadd.f32 %v1637_v3, %v1628_v49  ;;  %v13410_v59 = vld [vmem:[%s19085_s22 + $0x264] ss:$8 sps:$4 sm:$0xff]  }
 0x641   :  { %v1747_v10 = vadd.f32 %v1734_v34, %v1640_v17  ;;  %v1749_v7 = vadd.f32 %v1734_v34, %v1642_v18  ;;  %v1751_v56 = vadd.f32 %v1742_v4, %v1644_v31  ;;  %v1753_v21 = vadd.f32 %v1742_v4, %v1646_v54  ;;  %v13408_v18 = vld [vmem:[%s19085_s22 + $0x260] ss:$8 sps:$4 sm:$0xff]   ;;  %v13413_v54 = vld [vmem:[%s19085_s22 + $0x254] ss:$8 sps:$4 sm:$0xff]  }
 0x642   :  { %v1748_v45 = vadd.f32 %v1738_v41, %v1641_v20  ;;  %v1750_v36 = vadd.f32 %v1738_v41, %v1643_v11  ;;  %v1752_v0 = vadd.f32 %v1746_v37, %v1645_v2  ;;  %v1754_v22 = vadd.f32 %v1746_v37, %v1647_v50 }
 0x643   :  { %v15624_v26 = vpack.c.bf16 %v1749_v7, %v1747_v10  ;;  %v15626_v13 = vpack.c.bf16 %v1753_v21, %v1751_v56  ;;  %v13411_v7 = vld [vmem:[%s19085_s22 + $0x250] ss:$8 sps:$4 sm:$0xff]  }
 0x644   :  { %v1756_v43 = vpack.c.bf16 %v1750_v36, %v1748_v45  ;;  %v15628_v9 = vpack.c.bf16 %v1754_v22, %v1752_v0  ;;  %v13416_v45 = vld [vmem:[%s19085_s22 + $0x244] ss:$8 sps:$4 sm:$0xff]  }
 0x645   :  { %v1760_v15 = vshrl.u32 %v15626_v13, 16  ;;  %v1770_v8 = vshrl.u32 %v15624_v26, 16  ;;  %v1773_v20 = vshll.u32 %v15624_v26, 16  ;;  %v1783_v31 = vshll.u32 %v15626_v13, 16 }
 0x646   :  { %v1777_v3 = vshrl.u32 %v1756_v43, 16  ;;  %2497 = vmatprep.mubr.bf16.mxu0 %v1756_v43  ;;  %v1764_v34 = vshrl.u32 %v15628_v9, 16  ;;  %v1780_v10 = vshll.u32 %v1756_v43, 16  ;;  %v1787_v56 = vshll.u32 %v15628_v9, 16  ;;  %v13414_v43 = vld [vmem:[%s19085_s22 + $0x240] ss:$8 sps:$4 sm:$0xff]  }
 0x647   :  { %2498 = vmatmul.mubr.bf16.vlgmr.msra.gmra.mxu0 %v15624_v26  ;;  %v1772_v2 = vrot.slane %v1770_v8, 7  ;;  %v1762_v41 = vrot.slane %v1760_v15, 7 }
 0x648   :  { %2507 = vmatprep.mubr.bf16.mxu0 %v15628_v9  ;;  %v1766_v0 = vrot.slane %v1764_v34, 7  ;;  %v1779_v4 = vrot.slane %v1777_v3, 7  ;;  %12104 = vmatpush3.msk.msra.mxu0 %vm14833_vm2, %v19073_v12  ;;  %v15678_v17 = vrot.slane %v1780_v10, 1  ;;  %v15708_v21 = vrot.slane %v1787_v56, 1 }
 0x649   :  { %v1775_v37 = vor.u32 %v1773_v20, %v1772_v2  ;;  %12105 = vmatprep.subr.msk.mxu0 %vm14848_vm4, %v19073_v12  ;;  %v1785_v11 = vor.u32 %v1783_v31, %v1762_v41 }
 0x64a   :  { %v1782_v5 = vor.u32 %v1780_v10, %v1779_v4  ;;  %v1789_v38 = vor.u32 %v1787_v56, %v1766_v0  ;;  %12106 = vmatpush3.msk.msra.mxu0 %vm14863_vm9, %v19073_v12  ;;  %v1806_v50 = vor.u32 %v15678_v17, %v1777_v3  ;;  %v13419_v3 = vld [vmem:[%s19085_s22 + $0x234] ss:$8 sps:$4 sm:$0xff]   ;;  %v13422_v10 = vld [vmem:[%s19085_s22 + $0x224] ss:$8 sps:$4 sm:$0xff]   ;;  %v13420_v56 = vld [vmem:[%s19085_s22 + $0x220] ss:$8 sps:$4 sm:$0xff]  }
 0x64b   :  { %v1795_v46 = vsel %vm14581_vm13, %v1762_v41, %v1775_v37  ;;  %12107 = vmatprep.subr.msk.mxu0 %vm14878_vm6, %v19073_v12  ;;  %v19111_v41 = vld [vmem:[#allocation77_spill] sm:$0xff] }
 0x64c   :  { %v1796_v25 = vsel %vm14581_vm13, %v1766_v0, %v1782_v5  ;;  %12108 = vmatpush3.msk.msra.mxu0 %vm14893_vm14, %v19073_v12  ;;  %v1790_v49 = vsel %vm19090_vm15, %v1779_v4, %v1789_v38  ;;  %vm19091_vm15 = vnez %v18989_v52  ;;  %vm19093_vm13 = vnez %v18995_v57  ;;  %v13425_v0 = vld [vmem:[%s19085_s22 + $0x214] ss:$8 sps:$4 sm:$0xff]   ;;  %v19109_v4 = vld [vmem:[#allocation76_spill] sm:$0xff]  ;;  %v13423_v37 = vld [vmem:[%s19085_s22 + $0x210] ss:$8 sps:$4 sm:$0xff]  }
 0x64d   :  { %11140 = vmatprep.mubr.msk.bf16.mxu1 %vm14689_vm5, %v1796_v25  ;;  %12109 = vmatprep.subr.msk.mxu0 %vm14908_vm3, %v19073_v12  ;;  %vm19098_vm3 = vnez %v19004_v14  ;;  %vm19099_vm14 = vnez %v18941_v35  ;;  %v19113_v5 = vld [vmem:[#allocation79_spill] sm:$0xff] }
 0x64e   :  { %11141 = vmatmul.mubr.msk.bf16.vlgmr.msra.gmra.mxu1 %vm14689_vm5, %v1795_v46  ;;  %12110 = vmatpush3.msk.msra.mxu0 %vm14923_vm7, %v19073_v12  ;;  %vm19092_vm5 = vnez %v18992_v55  ;;  %vm19096_vm7 = vnez %v19001_v63  ;;  %v13428_v38 = vld [vmem:[%s19085_s22 + $0x204] ss:$8 sps:$4 sm:$0xff]   ;;  %v19117_v46 = vld [vmem:[#allocation82_spill] sm:$0xff] }
 0x64f   :  { %2519 = vmatpush1.bf16.msra.mxu1 %v13405_v6  ;;  %11142 = vmatprep.mubr.msk.bf16.mxu1 %vm14704_vm0, %v1790_v49  ;;  %v19115_v6 = vld [vmem:[#allocation80_spill] sm:$0xff]  ;;  %v19119_v25 = vld [vmem:[#allocation83_spill] sm:$0xff] }
 0x650   :  { %2508 = vmatmul.mubr.bf16.gmra.mxu0 %v15626_v13  ;;  %2520 = vmatprep.subr.bf16.mxu1 %v13410_v59  ;;  %v13426_v59 = vld [vmem:[%s19085_s22 + $0x200] ss:$8 sps:$4 sm:$0xff]  }
 0x651   :  { %12111 = vmatprep.subr.msk.mxu0 %vm19091_vm15, %v19073_v12  ;;  %vm19094_vm15 = vnez %v18998_v60  ;;  %v19121_v49 = vld [vmem:[#allocation84_spill] sm:$0xff] }
 0x652   :  { %12112 = vmatpush3.msk.msra.mxu0 %vm19092_vm5, %v19073_v12  ;;  %vm19095_vm5 = vsmask.f32 256 }
 0x653   :  { %2521 = vmatpush1.bf16.msra.mxu1 %v13408_v18  ;;  %12113 = vmatprep.subr.msk.mxu0 %vm19093_vm13, %v19073_v12  ;;  %v1786_v36 = vsel %vm19095_vm5, %v1772_v2, %v1785_v11  ;;  %vm19097_vm13 = vsmask.f32 7424  ;;  %vm19101_vm5 = vnez %v19010_v40  ;;  %v13417_v2 = vld [vmem:[%s19085_s22 + $0x230] ss:$8 sps:$4 sm:$0xff]   ;;  %v13431_v18 = vld [vmem:[%s19085_s22 + $0x2f4] ss:$8 sps:$4 sm:$0xff]  }
 0x654   :  { %2522 = vmatprep.subr.bf16.mxu1 %v13413_v54  ;;  %12114 = vmatpush3.msk.msra.mxu0 %vm19094_vm15, %v19073_v12  ;;  %v1808_v22 = vsel %vm19097_vm13, %v1806_v50, %v15708_v21  ;;  %vm19100_vm13 = vnez %v19007_v24  ;;  %v19123_v54 = vld [vmem:[#allocation86_spill] sm:$0xff]  ;;  %v19125_v11 = vld [vmem:[#allocation85_spill] sm:$0xff] }
 0x655   :  { %12115 = vmatprep.subr.msk.mxu0 %vm19096_vm7, %v19073_v12  ;;  %v13429_v50 = vld [vmem:[%s19085_s22 + $0x2f0] ss:$8 sps:$4 sm:$0xff]  }
 0x656   :  { %11143 = vmatmul.mubr.msk.bf16.gmra.mxu1 %vm14704_vm0, %v1786_v36  ;;  %12116 = vmatpush3.msk.msra.mxu0 %vm19098_vm3, %v19073_v12  ;;  %vm19102_vm0 = vnez %v19013_v53  ;;  %vm19103_vm3 = vnez %v19016_v61  ;;  %v13437_v36 = vld [vmem:[%s19085_s22 + $0x2d4] ss:$8 sps:$4 sm:$0xff]  }
 0x657   :  { %2523 = vmatpush1.bf16.msra.mxu1 %v13411_v7  ;;  %11144 = vmatprep.mubr.msk.bf16.mxu1 %vm19099_vm14, %v1808_v22  ;;  %v13434_v7 = vld [vmem:[%s19085_s22 + $0x2e4] ss:$8 sps:$4 sm:$0xff]   ;;  %v13435_v22 = vld [vmem:[%s19085_s22 + $0x2d0] ss:$8 sps:$4 sm:$0xff]  }
 0x658   :  { %2524 = vmatprep.subr.bf16.mxu1 %v13416_v45  ;;  %12117 = vmatprep.subr.msk.mxu0 %vm19100_vm13, %v19073_v12  ;;  %vm19106_vm13 = vnez %v19027_v30  ;;  %v13432_v45 = vld [vmem:[%s19085_s22 + $0x2e0] ss:$8 sps:$4 sm:$0xff]  }
 0x659   :  { %12118 = vmatpush3.msk.msra.mxu0 %vm19101_vm5, %v19073_v12  ;;  %vm19104_vm5 = vnez %v19020_v29 }
 0x65a   :  { %12119 = vmatprep.subr.msk.mxu0 %vm19102_vm0, %v19073_v12  ;;  %vm19105_vm0 = vnez %v19023_v51 }
 0x65b   :  { %2525 = vmatpush1.bf16.msra.mxu1 %v13414_v43  ;;  %12120 = vmatpush3.msk.msra.mxu0 %vm19103_vm3, %v19073_v12  ;;  %vm19107_vm3 = vnez %v19030_v16  ;;  %v13440_v43 = vld [vmem:[%s19085_s22 + $0x2c4] ss:$8 sps:$4 sm:$0xff]  }
 0x65c   :  { %2526 = vmatprep.subr.bf16.mxu1 %v13419_v3  ;;  %12121 = vmatprep.subr.msk.mxu0 %vm19104_vm5, %v19073_v12  ;;  %vm19112_vm5 = vnez %v19111_v41  ;;  %v13438_v3 = vld [vmem:[%s19085_s22 + $0x2c0] ss:$8 sps:$4 sm:$0xff]  }
 0x65d   :  { %12122 = vmatpush3.msk.msra.mxu0 %vm19105_vm0, %v19073_v12  ;;  %vm19108_vm0 = vnez %v19033_v1 }
 0x65e   :  { %12123 = vmatprep.subr.msk.mxu0 %vm19106_vm13, %v19073_v12  ;;  %vm19110_vm13 = vnez %v19109_v4 }
 0x65f   :  { %2527 = vmatpush1.bf16.msra.mxu1 %v13417_v2  ;;  %12124 = vmatpush3.msk.msra.mxu0 %vm19107_vm3, %v19073_v12  ;;  %vm19114_vm3 = vnez %v19113_v5  ;;  %v13443_v2 = vld [vmem:[%s19085_s22 + $0x2b4] ss:$8 sps:$4 sm:$0xff]  }
 0x660   :  { %2528 = vmatprep.subr.bf16.mxu1 %v13422_v10  ;;  %12125 = vmatprep.subr.msk.mxu0 %vm19108_vm0, %v19073_v12  ;;  %vm19120_vm0 = vnez %v19119_v25  ;;  %v13441_v10 = vld [vmem:[%s19085_s22 + $0x2b0] ss:$8 sps:$4 sm:$0xff]  }
 0x661   :  { %12126 = vmatpush3.msk.msra.mxu0 %vm19110_vm13, %v19073_v12  ;;  %vm19116_vm13 = vnez %v19115_v6 }
 0x662   :  { %12127 = vmatprep.subr.msk.mxu0 %vm19112_vm5, %v19073_v12  ;;  %vm19118_vm5 = vnez %v19117_v46 }
 0x663   :  { %2529 = vmatpush1.bf16.msra.mxu1 %v13420_v56  ;;  %12128 = vmatpush3.msk.msra.mxu0 %vm19114_vm3, %v19073_v12  ;;  %vm19122_vm3 = vnez %v19121_v49  ;;  %v13446_v56 = vld [vmem:[%s19085_s22 + $0x2a4] ss:$8 sps:$4 sm:$0xff]  }
 0x664   :  { %2530 = vmatprep.subr.bf16.mxu1 %v13425_v0  ;;  %12129 = vmatprep.subr.msk.mxu0 %vm19116_vm13, %v19073_v12  ;;  %v13444_v0 = vld [vmem:[%s19085_s22 + $0x2a0] ss:$8 sps:$4 sm:$0xff]  }
 0x665   :  { %12130 = vmatpush3.msk.msra.mxu0 %vm19118_vm5, %v19073_v12  ;;  %vm19124_vm5 = vnez %v19123_v54 }
 0x666   :  { %12131 = vmatprep.subr.msk.mxu0 %vm19120_vm0, %v19073_v12  ;;  %vm19126_vm0 = vnez %v19125_v11 }
 0x667   :  { %2531 = vmatpush1.bf16.msra.mxu1 %v13423_v37  ;;  %12132 = vmatpush3.msk.msra.mxu0 %vm19122_vm3, %v19073_v12  ;;  %v13449_v37 = vld [vmem:[%s19085_s22 + $0x294] ss:$8 sps:$4 sm:$0xff]  }
 0x668   :  { %2532 = vmatprep.subr.bf16.mxu1 %v13428_v38  ;;  %12133 = vmatprep.subr.msk.mxu0 %vm19124_vm5, %v19073_v12  ;;  %v13447_v38 = vld [vmem:[%s19085_s22 + $0x290] ss:$8 sps:$4 sm:$0xff]  }
 0x669   :  { %12134 = vmatpush3.msk.msra.mxu0 %vm19126_vm0, %v19073_v12 }
 0x66a   :  { %11180 = vmatprep.subr.msk.mxu0 %vm15313_vm10, %v19073_v12  ;;  %vm19127_vm10 = vsmask.f32 7424 }
 0x66b   :  { %2533 = vmatpush1.bf16.msra.mxu1 %v13426_v59  ;;  %v13452_v59 = vld [vmem:[%s19085_s22 + $0x284] ss:$8 sps:$4 sm:$0xff]  }
 0x66c   :  { %2534 = vmatprep.subr.bf16.mxu1 %v13431_v18  ;;  %v1801_v18 = vrot.slane %v1773_v20, 1  ;;  %v19128_v20 = vld [vmem:[#allocation38_spill] sm:$0xff] }
 0x66d   :  { %vm19129_vm0 = vnez %v19128_v20 }
 0x66f   :  { %2535 = vmatpush2.bf16.msra.mxu1 %v13429_v50  ;;  %v13450_v50 = vld [vmem:[%s19085_s22 + $0x280] ss:$8 sps:$4 sm:$0xff]  }
 0x670   :  { %2536 = vmatprep.subr.bf16.mxu1 %v13434_v7  ;;  %v1802_v7 = vor.u32 %v1801_v18, %v1770_v8 }
 0x673   :  { %2537 = vmatpush2.bf16.msra.mxu1 %v13432_v45  ;;  %v1810_v45 = vor.u32 %v15708_v21, %v1764_v34 }
 0x674   :  { %2538 = vmatprep.subr.bf16.mxu1 %v13437_v36  ;;  %v1803_v36 = vrot.slane %v1783_v31, 1 }
 0x676   :  { %v1809_v26 = vor.u32 %v1803_v36, %v1760_v15 }
 0x677   :  { %2539 = vmatpush2.bf16.msra.mxu1 %v13435_v22  ;;  %v1804_v22 = vsel %vm19127_vm10, %v1802_v7, %v1803_v36  ;;  %vm19137_vm10 = vcmask 130048  }
 0x678   :  { %2540 = vmatprep.subr.bf16.mxu1 %v13440_v43  ;;  %v1818_v43 = vsel %vm19129_vm0, %v1810_v45, %v15678_v17  ;;  %v1817_v9 = vsel %vm19129_vm0, %v1809_v26, %v1801_v18 }
 0x67b   :  { %2541 = vmatpush2.bf16.msra.mxu1 %v13438_v3  ;;  %v19130_v3 = vld [vmem:[#allocation40_spill] sm:$0xff] }
 0x67c   :  { %2542 = vmatprep.subr.bf16.mxu1 %v13443_v2  ;;  %vm19131_vm5 = vnez %v19130_v3 }
 0x67f   :  { %2543 = vmatpush2.bf16.msra.mxu1 %v13441_v10 }
 0x680   :  { %2544 = vmatprep.subr.bf16.mxu1 %v13446_v56 }
 0x683   :  { %2545 = vmatpush2.bf16.msra.mxu1 %v13444_v0 }
 0x684   :  { %2546 = vmatprep.subr.bf16.mxu1 %v13449_v37  ;;  %v1920_v37 = vld [vmem:[#allocation2 + $0x6] ss:$8 sm:$0x3] }
 0x685   :  { %v1925_v13 = vrot.slane %v1920_v37, %v15277_v28  ;;  %v1929_v18 = vrot.slane %v1920_v37, %v15280_v62 }
 0x687   :  { %2547 = vmatpush2.bf16.msra.mxu1 %v13447_v38 }
 0x688   :  { %2548 = vmatprep.subr.bf16.mxu1 %v13452_v59 }
 0x68b   :  { %2549 = vmatpush2.bf16.msra.mxu1 %v13450_v50 }
 0x68e   :  { %11145 = vmatmul.mubr.msk.bf16.vlgmr.msra.gmra.mxu1 %vm19099_vm14, %v1804_v22 }
 0x68f   :  { %11146 = vmatprep.mubr.msk.bf16.mxu1 %vm19131_vm5, %v1818_v43 }
 0x696   :  { %11147 = vmatmul.mubr.msk.bf16.gmra.mxu1 %vm19131_vm5, %v1817_v9 }
 0x707   :  { %v2499_v2 = vpop.f32.mrf.mxu0 }
 0x709   :  { %v2501_v56 = vpop.f32.mrf.mxu0 }
 0x70b   :  { %v2503_v0 = vpop.f32.mrf.mxu0 }
 0x70d   :  { %v2505_v59 = vpop.f32.mrf.mxu0 }
 0x70e   :  { %v2446_v8 = vpop.f32.mrf.mxu1 }
 0x70f   :  { %v2447_v36 = vadd.f32 %v2446_v8, %v1925_v13 }
 0x710   :  { %v2448_v34 = vpop.f32.mrf.mxu1  ;;  %v2509_v50 = vpop.f32.mrf.mxu0 }
 0x711   :  { %v2449_v26 = vadd.f32 %v2448_v34, %v1929_v18  ;;  %v2500_v33 = vadd.f32 %v2499_v2, %v2447_v36 }
 0x712   :  { %v2450_v31 = vpop.f32.mrf.mxu1  ;;  %v2511_v9 = vpop.f32.mrf.mxu0 }
 0x713   :  { %v2451_v7 = vadd.f32 %v2450_v31, %v1925_v13  ;;  %v2502_v31 = vadd.f32 %v2501_v56, %v2449_v26 }
 0x714   :  { %v2452_v21 = vpop.f32.mrf.mxu1  ;;  %v2513_v54 = vpop.f32.mrf.mxu0 }
 0x715   :  { %v2453_v22 = vadd.f32 %v2452_v21, %v1929_v18  ;;  %v2504_v20 = vadd.f32 %v2503_v0, %v2451_v7 }
 0x716   :  { %v2456_v10 = vpop.f32.mrf.mxu1  ;;  %v2515_v0 = vpop.f32.mrf.mxu0 }
 0x717   :  { %v2457_v3 = vadd.f32 %v2456_v10, %v1925_v13  ;;  %v2506_v58 = vadd.f32 %v2505_v59, %v2453_v22 }
 0x718   :  { %v2458_v17 = vpop.f32.mrf.mxu1 }
 0x719   :  { %v2459_v47 = vadd.f32 %v2458_v17, %v1929_v18  ;;  %v2510_v8 = vadd.f32 %v2509_v50, %v2457_v3 }
 0x71a   :  { %v2460_v38 = vpop.f32.mrf.mxu1 }
 0x71b   :  { %v2461_v28 = vadd.f32 %v2460_v38, %v1925_v13 }
 0x71c   :  { %v2462_v15 = vpop.f32.mrf.mxu1 }
 0x71d   :  { %v2463_v21 = vadd.f32 %v2462_v15, %v1929_v18  ;;  %v2514_v2 = vadd.f32 %v2513_v54, %v2461_v28 }
 0x71f   :  { %v2516_v56 = vadd.f32 %v2515_v0, %v2463_v21 }
 0x74e   :  { %v2552_v45 = vpop.f32.mrf.mxu1 }
 0x74f   :  { %v15888_v49 = vadd.f32 %v2552_v45, %v2500_v33 }
 0x750   :  { %v2554_v43 = vpop.f32.mrf.mxu1 }
 0x751   :  { %v15892_v62 = vadd.f32 %v2554_v43, %v2502_v31  ;;  %v2571_v38 = vmax.f32 %v15888_v49, 0.0 }
 0x752   :  { %v2556_v35 = vpop.f32.mrf.mxu1 }
 0x753   :  { %v15886_v44 = vadd.f32 %v2556_v35, %v2504_v20  ;;  %v2512_v35 = vadd.f32 %v2511_v9, %v2459_v47  ;;  %v2572_v59 = vmax.f32 %v15892_v62, 0.0 }
 0x754   :  { %v2558_v11 = vpop.f32.mrf.mxu1 }
 0x755   :  { %v15890_v37 = vadd.f32 %v2558_v11, %v2506_v58  ;;  %v2573_v10 = vmax.f32 %v15886_v44, 0.0 }
 0x756   :  { %v2562_v34 = vpop.f32.mrf.mxu1 }
 0x757   :  { %v15895_v17 = vadd.f32 %v2562_v34, %v2510_v8  ;;  %v2574_v33 = vmax.f32 %v15890_v37, 0.0  ;;  %v2583_v47 = vadd.f32 %v2573_v10, %v2571_v38 }
 0x758   :  { %v2564_v20 = vpop.f32.mrf.mxu1 }
 0x759   :  { %v2575_v58 = vmax.f32 %v15895_v17, 0.0  ;;  %v15900_v11 = vadd.f32 %v2564_v20, %v2512_v35  ;;  %v2592_v15 = vadd.f32 %v2574_v33, %v2572_v59 }
 0x75a   :  { %v2566_v3 = vpop.f32.mrf.mxu1 }
 0x75b   :  { %v2576_v28 = vmax.f32 %v15900_v11, 0.0  ;;  %v15908_v54 = vadd.f32 %v2566_v3, %v2514_v2  ;;  %v2584_v50 = vadd.f32 %v2583_v47, %v2575_v58 }
 0x75c   :  { %v2568_v13 = vpop.f32.mrf.mxu1 }
 0x75d   :  { %v2577_v18 = vmax.f32 %v15908_v54, 0.0  ;;  %v15917_v7 = vadd.f32 %v2568_v13, %v2516_v56  ;;  %v2593_v45 = vadd.f32 %v2592_v15, %v2576_v28  ;;  %v19133_v13 = vmov 0.0   ;;  %v13458_v15 = vld [vmem:[#allocation9 + $0x38] sm:$0xff]  }
 0x75f   :  { %v2585_v36 = vadd.f32 %v2584_v50, %v2577_v18  ;;  %v2578_v22 = vmax.f32 %v15917_v7, 0.0 }
 0x761   :  { %v2586_v43 = vrot.slane %v2585_v36, 4  ;;  %v2594_v26 = vadd.f32 %v2593_v45, %v2578_v22  ;;  %v13454_v45 = vld [vmem:[#allocation9 + $0xb8] sm:$0xff]  }
 0x763   :  { %v2587_v9 = vadd.f32 %v2586_v43, %v2585_v36  ;;  %v2595_v31 = vrot.slane %v2594_v26, 4 }
 0x765   :  { %v2588_v8 = vrot.slane %v2587_v9, 2  ;;  %v2596_v21 = vadd.f32 %v2595_v31, %v2594_v26 }
 0x767   :  { %v2589_v34 = vadd.f32 %v2588_v8, %v2587_v9  ;;  %v2597_v35 = vrot.slane %v2596_v21, 2 }
 0x769   :  { %v2598_v20 = vadd.f32 %v2597_v35, %v2596_v21  ;;  %v2590_v2 = vrot.slane %v2589_v34, 1 }
 0x76b   :  { %v2599_v0 = vrot.slane %v2598_v20, 1  ;;  %v2591_v56 = vadd.f32 %v2590_v2, %v2589_v34 }
 0x76d   :  { %v2600_v3 = vadd.f32 %v2599_v0, %v2598_v20 }
 0x76f   :  { %2665 = vmatprep.mubr.f32.mxu0 %v2600_v3 }
 0x770   :  { %2666 = vmatmul.mubr.f32.vlgmr.msra.gmra.mxu0 %v2591_v56  ;;  %v13453_v56 = vld [vmem:[#allocation9 + $0xf8] sm:$0xff]  }
 0x771   :  { %11181 = vmatpush1.msk.msra.mxu0 %vm15321_vm8, %v19073_v12  ;;  %2738 = vmatprep.mubr.f32.mxu0 %v19133_v13 }
 0x772   :  { %11182 = vmatprep.subr.msk.mxu0 %vm15329_vm11, %v19073_v12 }
 0x773   :  { %11183 = vmatpush1.msk.msra.mxu0 %vm15337_vm12, %v19073_v12 }
 0x774   :  { %12138 = vmatprep.subr.msk.mxu0 %vm14821_vm1, %v19073_v12  ;;  %vm19138_vm1 = vnez %v18980_v39 }
 0x830   :  { %v12135_v36 = vpop.f32.mrf.mxu0 }
 0x832   :  { %v12136_v43 = vpop.f32.mrf.mxu0 }
 0x833   :  { %v12137_v26 = vadd.f32 %v12136_v43, %v12135_v36  ;;  %v13455_v36 = vld [vmem:[#allocation9 + $0xf0] sm:$0xff]  }
 0x834   :  { %v13456_v43 = vld [vmem:[#allocation9 + $0xb0] sm:$0xff]  }
 0x835   :  { %11184 = vmatmul.mubr.msk.f32.vlgmr.msra.gmra.mxu0 %vm19137_vm10, %v12137_v26  ;;  %vm19139_vm10 = vnez %v18983_v42  ;;  %v19166_v42 = vld [vmem:[#allocation87_spill] sm:$0xff] }
 0x836   :  { %12139 = vmatpush3.msk.msra.mxu0 %vm14833_vm2, %v19073_v12  ;;  %vm19140_vm2 = vnez %v18986_v48  ;;  %v13457_v26 = vld [vmem:[#allocation9 + $0x78] sm:$0xff]  }
 0x837   :  { %12140 = vmatprep.subr.msk.mxu0 %vm14848_vm4, %v19073_v12  ;;  %vm19141_vm4 = vnez %v18989_v52  ;;  %12173 = vmatprep.subr.bf16.mxu1 %v13457_v26  ;;  %v2582_v26 = vld [vmem:[#allocation2 + $0x10] ss:$8 sm:$0x3] }
 0x838   :  { %12141 = vmatpush3.msk.msra.mxu0 %vm14863_vm9, %v19073_v12  ;;  %vm19142_vm9 = vnez %v18992_v55  ;;  %12174 = vmatpush3.bf16.msra.mxu1 %v13458_v15 }
 0x839   :  { %12142 = vmatprep.subr.msk.mxu0 %vm14878_vm6, %v19073_v12  ;;  %vm19143_vm6 = vnez %v18995_v57 }
 0x83a   :  { %12143 = vmatpush3.msk.msra.mxu0 %vm19138_vm1, %v19073_v12  ;;  %vm19144_vm1 = vnez %v19004_v14 }
 0x83b   :  { %12144 = vmatprep.subr.msk.mxu0 %vm19139_vm10, %v19073_v12  ;;  %vm19145_vm10 = vnez %v19007_v24 }
 0x83c   :  { %12145 = vmatpush3.msk.msra.mxu0 %vm19140_vm2, %v19073_v12  ;;  %vm19146_vm2 = vnez %v19010_v40 }
 0x83d   :  { %12146 = vmatprep.subr.msk.mxu0 %vm19141_vm4, %v19073_v12  ;;  %vm19147_vm4 = vnez %v19013_v53 }
 0x83e   :  { %12147 = vmatpush3.msk.msra.mxu0 %vm19142_vm9, %v19073_v12  ;;  %vm19150_vm9 = vnez %v19023_v51 }
 0x83f   :  { %12148 = vmatprep.subr.msk.mxu0 %vm19143_vm6, %v19073_v12  ;;  %vm19151_vm6 = vnez %v19027_v30  ;;  %v19160_v30 = vld [vmem:[#allocation86_spill] sm:$0xff] }
 0x840   :  { %12149 = vmatpush3.msk.msra.mxu0 %vm19094_vm15, %v19073_v12  ;;  %vm19148_vm15 = vnez %v19016_v61 }
 0x841   :  { %12150 = vmatprep.subr.msk.mxu0 %vm19096_vm7, %v19073_v12  ;;  %vm19149_vm7 = vnez %v19020_v29 }
 0x842   :  { %12151 = vmatpush3.msk.msra.mxu0 %vm19144_vm1, %v19073_v12  ;;  %vm19152_vm1 = vnez %v19030_v16 }
 0x843   :  { %12152 = vmatprep.subr.msk.mxu0 %vm19145_vm10, %v19073_v12  ;;  %vm19153_vm10 = vnez %v19033_v1 }
 0x844   :  { %12153 = vmatpush3.msk.msra.mxu0 %vm19146_vm2, %v19073_v12  ;;  %vm19154_vm2 = vnez %v19109_v4 }
 0x845   :  { %12154 = vmatprep.subr.msk.mxu0 %vm19147_vm4, %v19073_v12  ;;  %vm19155_vm4 = vnez %v19111_v41 }
 0x846   :  { %12155 = vmatpush3.msk.msra.mxu0 %vm19148_vm15, %v19073_v12 }
 0x847   :  { %12156 = vmatprep.subr.msk.mxu0 %vm19149_vm7, %v19073_v12  ;;  %vm19156_vm7 = vnez %v19113_v5 }
 0x848   :  { %12157 = vmatpush3.msk.msra.mxu0 %vm19150_vm9, %v19073_v12 }
 0x849   :  { %12158 = vmatprep.subr.msk.mxu0 %vm19151_vm6, %v19073_v12  ;;  %vm19157_vm6 = vnez %v19117_v46 }
 0x84a   :  { %12159 = vmatpush3.msk.msra.mxu0 %vm19152_vm1, %v19073_v12 }
 0x84b   :  { %12160 = vmatprep.subr.msk.mxu0 %vm19153_vm10, %v19073_v12  ;;  %vm19158_vm10 = vnez %v19119_v25 }
 0x84c   :  { %12161 = vmatpush3.msk.msra.mxu0 %vm19154_vm2, %v19073_v12 }
 0x84d   :  { %12162 = vmatprep.subr.msk.mxu0 %vm19155_vm4, %v19073_v12  ;;  %vm19161_vm4 = vnez %v19160_v30  ;;  %v13459_v30 = vld [vmem:[#allocation9 + $0xe8] sm:$0xff]  }
 0x84e   :  { %12163 = vmatpush3.msk.msra.mxu0 %vm19156_vm7, %v19073_v12  ;;  %vm19163_vm7 = vnez %v19162_v19 }
 0x84f   :  { %12164 = vmatprep.subr.msk.mxu0 %vm19116_vm13, %v19073_v12  ;;  %vm19165_vm13 = vnez %v19164_v23  ;;  %v13460_v23 = vld [vmem:[#allocation9 + $0xa8] sm:$0xff]  }
 0x850   :  { %12165 = vmatpush3.msk.msra.mxu0 %vm19157_vm6, %v19073_v12 }
 0x851   :  { %12166 = vmatprep.subr.msk.mxu0 %vm19158_vm10, %v19073_v12  ;;  %vm19167_vm10 = vcmask 130048  }
 0x852   :  { %12167 = vmatpush3.msk.msra.mxu0 %vm19122_vm3, %v19073_v12 }
 0x853   :  { %12168 = vmatprep.subr.msk.mxu0 %vm19161_vm4, %v19073_v12 }
 0x854   :  { %12169 = vmatpush3.msk.msra.mxu0 %vm19163_vm7, %v19073_v12 }
 0x855   :  { %11217 = vmatprep.subr.msk.mxu0 %vm19165_vm13, %v19073_v12 }
 0x8f5   :  { %v2740_v27 = vpop.f32.mrf.mxu0 }
 0x8f6   :  { %v2745_v32 = vmul.f32 0.001953125, %v2740_v27  ;;  %v13461_v27 = vld [vmem:[#allocation9 + $0x70] sm:$0xff]  }
 0x8f7   :  { %v2742_v39 = vpop.f32.mrf.mxu0  ;;  %12175 = vmatprep.subr.bf16.mxu1 %v13461_v27 }
 0x8f8   :  { %v2750_v48 = vrot.slane %v2745_v32, %v19166_v42  ;;  %v2746_v52 = vmul.f32 0.001953125, %v2742_v39  ;;  %v13462_v32 = vld [vmem:[#allocation9 + $0x30] sm:$0xff]   ;;  %v13463_v39 = vld [vmem:[#allocation9 + $0xe0] sm:$0xff]  }
 0x8f9   :  { %12176 = vmatpush3.bf16.msra.mxu1 %v13462_v32 }
 0x8fa   :  { %v16039_v55 = vsub.f32 %v2571_v38, %v2750_v48  ;;  %v16043_v57 = vsub.f32 %v2573_v10, %v2750_v48  ;;  %v16047_v60 = vsub.f32 %v2575_v58, %v2750_v48  ;;  %v2754_v63 = vrot.slane %v2746_v52, %v19166_v42  ;;  %v13465_v52 = vld [vmem:[#allocation9 + $0x68] sm:$0xff]  }
 0x8fb   :  { %v16052_v14 = vsub.f32 %v2577_v18, %v2750_v48  ;;  %v13464_v48 = vld [vmem:[#allocation9 + $0xa0] sm:$0xff]   ;;  %12177 = vmatprep.subr.bf16.mxu1 %v13465_v52 }
 0x8fc   :  { %v2763_v24 = vmul.f32 %v16039_v55, %v16039_v55  ;;  %v2765_v40 = vmul.f32 %v16043_v57, %v16043_v57  ;;  %v16060_v44 = vsub.f32 %v2572_v59, %v2754_v63  ;;  %v16064_v53 = vsub.f32 %v2574_v33, %v2754_v63 }
 0x8fd   :  { %v16068_v29 = vsub.f32 %v2576_v28, %v2754_v63  ;;  %v2767_v41 = vmul.f32 %v16047_v60, %v16047_v60  ;;  %v16074_v25 = vsub.f32 %v2578_v22, %v2754_v63  ;;  %v2769_v37 = vmul.f32 %v16052_v14, %v16052_v14  ;;  %v13466_v63 = vld [vmem:[#allocation9 + $0x28] sm:$0xff]  }
 0x8fe   :  { %v2771_v6 = vadd.f32 %v2765_v40, %v2763_v24  ;;  %v2764_v62 = vmul.f32 %v16060_v44, %v16060_v44  ;;  %v2766_v49 = vmul.f32 %v16064_v53, %v16064_v53  ;;  %v13467_v24 = vld [vmem:[#allocation9 + $0xd8] sm:$0xff]   ;;  %12178 = vmatpush3.bf16.msra.mxu1 %v13466_v63 }
 0x8ff   :  { %v2768_v17 = vmul.f32 %v16068_v29, %v16068_v29  ;;  %v2770_v58 = vmul.f32 %v16074_v25, %v16074_v25  ;;  %v13468_v40 = vld [vmem:[#allocation9 + $0x98] sm:$0xff]  }
 0x900   :  { %v2772_v10 = vadd.f32 %v2771_v6, %v2767_v41  ;;  %v2780_v38 = vadd.f32 %v2766_v49, %v2764_v62  ;;  %v13469_v41 = vld [vmem:[#allocation9 + $0x60] sm:$0xff]   ;;  %v13471_v62 = vld [vmem:[#allocation9 + $0xd0] sm:$0xff]  }
 0x901   :  { %v13470_v6 = vld [vmem:[#allocation9 + $0x20] sm:$0xff]   ;;  %12179 = vmatprep.subr.bf16.mxu1 %v13469_v41  ;;  %v13472_v49 = vld [vmem:[#allocation9 + $0x90] sm:$0xff]  }
 0x902   :  { %v2773_v33 = vadd.f32 %v2772_v10, %v2769_v37  ;;  %v2781_v11 = vadd.f32 %v2780_v38, %v2768_v17  ;;  %12180 = vmatpush3.bf16.msra.mxu1 %v13470_v6  ;;  %v13473_v37 = vld [vmem:[#allocation9 + $0x58] sm:$0xff]   ;;  %v13475_v17 = vld [vmem:[#allocation9 + $0xc8] sm:$0xff]  }
 0x903   :  { %v13474_v10 = vld [vmem:[#allocation9 + $0x18] sm:$0xff]   ;;  %v13476_v38 = vld [vmem:[#allocation9 + $0x88] sm:$0xff]   ;;  %12181 = vmatprep.subr.bf16.mxu1 %v13473_v37 }
 0x904   :  { %v2774_v59 = vrot.slane %v2773_v33, 4  ;;  %v2782_v28 = vadd.f32 %v2781_v11, %v2770_v58  ;;  %v13479_v58 = vld [vmem:[#allocation9 + $0xc0] sm:$0xff]   ;;  %v13478_v11 = vld [vmem:[#allocation9 + $0x10] sm:$0xff]  }
 0x906   :  { %v2775_v54 = vadd.f32 %v2774_v59, %v2773_v33  ;;  %v2783_v18 = vrot.slane %v2782_v28, 4  ;;  %v13477_v33 = vld [vmem:[#allocation9 + $0x50] sm:$0xff]   ;;  %12182 = vmatpush3.bf16.msra.mxu1 %v13474_v10  ;;  %v13480_v59 = vld [vmem:[#allocation9 + $0x80] sm:$0xff]  }
 0x907   :  { %12183 = vmatprep.subr.bf16.mxu1 %v13477_v33 }
 0x908   :  { %v2776_v7 = vrot.slane %v2775_v54, 2  ;;  %v2784_v22 = vadd.f32 %v2783_v18, %v2782_v28  ;;  %v13481_v28 = vld [vmem:[#allocation9 + $0x48] sm:$0xff]   ;;  %v13483_v18 = vld [vmem:[#allocation9 + $0x1f8] sm:$0xff]  }
 0x90a   :  { %v2777_v9 = vadd.f32 %v2776_v7, %v2775_v54  ;;  %v2785_v31 = vrot.slane %v2784_v22, 2  ;;  %12184 = vmatpush3.bf16.msra.mxu1 %v13478_v11  ;;  %v13482_v54 = vld [vmem:[#allocation9 + $0x8] sm:$0xff]   ;;  %v13485_v7 = vld [vmem:[#allocation9 + $0x40] sm:$0xff]  }
 0x90b   :  { %12185 = vmatprep.subr.bf16.mxu1 %v13481_v28 }
 0x90c   :  { %v2786_v8 = vadd.f32 %v2785_v31, %v2784_v22  ;;  %v2778_v21 = vrot.slane %v2777_v9, 1  ;;  %v13486_v22 = vld [vmem:[#allocation9] sm:$0xff]  }
 0x90e   :  { %v2787_v34 = vrot.slane %v2786_v8, 1  ;;  %v2779_v20 = vadd.f32 %v2778_v21, %v2777_v9  ;;  %12186 = vmatpush3.bf16.msra.mxu1 %v13482_v54  ;;  %v13489_v9 = vld [vmem:[#allocation9 + $0x178] sm:$0xff]  }
 0x90f   :  { %12187 = vmatprep.subr.bf16.mxu1 %v13485_v7 }
 0x910   :  { %v2788_v35 = vadd.f32 %v2787_v34, %v2786_v8 }
 0x912   :  { %2853 = vmatprep.mubr.f32.mxu0 %v2788_v35  ;;  %12188 = vmatpush3.bf16.msra.mxu1 %v13486_v22  ;;  %v13488_v22 = vld [vmem:[#allocation9 + $0x1b0] sm:$0xff]  }
 0x913   :  { %2854 = vmatmul.mubr.f32.vlgmr.msra.gmra.mxu0 %v2779_v20  ;;  %12229 = vmatprep.subr.bf16.mxu1 %v13489_v9 }
 0x914   :  { %11218 = vmatpush1.msk.msra.mxu0 %vm15321_vm8, %v19073_v12  ;;  %2926 = vmatprep.mubr.f32.mxu0 %v19133_v13 }
 0x915   :  { %11219 = vmatprep.subr.msk.mxu0 %vm15329_vm11, %v19073_v12 }
 0x916   :  { %11220 = vmatpush1.msk.msra.mxu0 %vm15337_vm12, %v19073_v12 }
 0x917   :  { %12201 = vmatprep.subr.bf16.mxu0 %v13453_v56  ;;  %v19168_v56 = vld [vmem:[#allocation95_spill] sm:$0xff] }
 0x9d3   :  { %v12170_v2 = vpop.f32.mrf.mxu0 }
 0x9d5   :  { %v12171_v0 = vpop.f32.mrf.mxu0 }
 0x9d6   :  { %v12172_v3 = vadd.f32 %v12171_v0, %v12170_v2 }
 0x9d8   :  { %11221 = vmatmul.mubr.msk.f32.vlgmr.msra.gmra.mxu0 %vm19167_vm10, %v12172_v3 }
 0x9d9   :  { %12202 = vmatpush3.bf16.msra.mxu0 %v13454_v45 }
 0x9da   :  { %12203 = vmatprep.subr.bf16.mxu0 %v13455_v36  ;;  %v2580_v36 = vld [vmem:[#allocation2 + $0x7] ss:$8 sm:$0x3] }
 0x9dd   :  { %12204 = vmatpush3.bf16.msra.mxu0 %v13456_v43 }
 0x9de   :  { %12205 = vmatprep.subr.bf16.mxu0 %v13459_v30  ;;  %v19169_v30 = vld [vmem:[#allocation88_spill] sm:$0xff] }
 0x9df   :  { %v2985_v27 = vrot.slane %v2582_v26, %v19169_v30 }
 0x9e1   :  { %12206 = vmatpush3.bf16.msra.mxu0 %v13460_v23 }
 0x9e2   :  { %12207 = vmatprep.subr.bf16.mxu0 %v13463_v39  ;;  %v2981_v39 = vrot.slane %v2582_v26, %v19166_v42 }
 0x9e5   :  { %12208 = vmatpush3.bf16.msra.mxu0 %v13464_v48  ;;  %v19170_v48 = vld [vmem:[#allocation35_spill] sm:$0xff] }
 0x9e6   :  { %12209 = vmatprep.subr.bf16.mxu0 %v13467_v24  ;;  %vm3065_vm11 = vcmp.le.s32.totalorder %v19170_v48, 13  ;;  %v13493_v48 = vld [vmem:[#allocation9 + $0x170] sm:$0xff]  }
 0x9e7   :  { %vm3099_vm4 = vmpackc.low %vm3065_vm11, %vm3065_vm11  ;;  %vm18794_vm11 = vcmask 1046528  }
 0x9e9   :  { %12210 = vmatpush3.bf16.msra.mxu0 %v13468_v40 }
 0x9ea   :  { %12211 = vmatprep.subr.bf16.mxu0 %v13471_v62 }
 0x9ed   :  { %12212 = vmatpush3.bf16.msra.mxu0 %v13472_v49 }
 0x9ee   :  { %12213 = vmatprep.subr.bf16.mxu0 %v13475_v17 }
 0x9f1   :  { %12214 = vmatpush3.bf16.msra.mxu0 %v13476_v38 }
 0x9f2   :  { %12215 = vmatprep.subr.bf16.mxu0 %v13479_v58 }
 0x9f5   :  { %12216 = vmatpush3.bf16.msra.mxu0 %v13480_v59 }
 0x9f6   :  { %12257 = vmatprep.subr.bf16.mxu0 %v13483_v18  ;;  %v19171_v18 = vmov 0  }
 0x9f7   :  { %v3103_v7 = vsel %vm3099_vm4, 65537, %v19171_v18  ;;  %vm19177_vm4 = vsmask.f32 256 }
 0xa98   :  { %v2928_v31 = vpop.f32.mrf.mxu0 }
 0xa99   :  { %v2933_v8 = vmul.f32 0.001953125, %v2928_v31 }
 0xa9a   :  { %v2930_v21 = vpop.f32.mrf.mxu0 }
 0xa9b   :  { %v2935_v34 = vadd.f32 1e-05, %v2933_v8  ;;  %v2934_v35 = vmul.f32 0.001953125, %v2930_v21 }
 0xa9d   :  { %v2936_v20 = vadd.f32 1e-05, %v2934_v35  ;;  %13971 = vrsqrt.f32 %v2935_v34  ;;  %v13491_v35 = vld [vmem:[#allocation9 + $0x1e8] sm:$0xff]  }
 0xa9f   :  { %13973 = vrsqrt.f32 %v2936_v20 }
 0xaaa   :  { %v13972_v2 = vpop.eup %13971 }
 0xaac   :  { %v13974_v0 = vpop.eup %13973 }
 0xaad   :  { %v2941_v3 = vcombine.low %v13972_v2, %v13974_v0 }
 0xaaf   :  { %v2948_v45 = vrot.slane %v2941_v3, %v19168_v56 }
 0xab1   :  { %v2955_v43 = vrot.slane %v2948_v45, %v19168_v56  ;;  %v19172_v45 = vld [vmem:[#allocation36_spill] sm:$0xff] }
 0xab3   :  { %v2957_v15 = vmul.f32 %v2955_v43, %v2580_v36  ;;  %v11222_v36 = vcombine.low %v19172_v45, %v3103_v7  ;;  %v13490_v43 = vld [vmem:[#allocation9 + $0x138] sm:$0xff]  }
 0xab5   :  { %v2966_v23 = vrot.slane %v2957_v15, %v19169_v30  ;;  %v2962_v32 = vrot.slane %v2957_v15, %v19166_v42  ;;  %v19173_v15 = vld [vmem:[#allocation41_spill] sm:$0xff]  ;;  %vm16154_vm12 = vcmp.ne.s16.totalorder %v11222_v36, 0 }
 0xab6   :  { %vm19174_vm13 = vnez %v19173_v15  ;;  %v13508_v36 = vld [vmem:[#allocation9 + $0x188] sm:$0xff]  }
 0xab7   :  { %v2970_v52 = vmul.f32 %v2966_v23, %v16060_v44  ;;  %v2972_v63 = vmul.f32 %v2966_v23, %v16064_v53  ;;  %v2969_v24 = vmul.f32 %v2962_v32, %v16039_v55  ;;  %v2971_v40 = vmul.f32 %v2962_v32, %v16043_v57  ;;  %v13484_v57 = vld [vmem:[#allocation9 + $0x1b8] sm:$0xff]  }
 0xab8   :  { %v2974_v41 = vmul.f32 %v2966_v23, %v16068_v29  ;;  %v2976_v6 = vmul.f32 %v2966_v23, %v16074_v25  ;;  %v2973_v62 = vmul.f32 %v2962_v32, %v16047_v60  ;;  %v2975_v49 = vmul.f32 %v2962_v32, %v16052_v14  ;;  %v13487_v14 = vld [vmem:[#allocation9 + $0x1f0] sm:$0xff]  }
 0xab9   :  { %v2989_v37 = vadd.f32 %v2985_v27, %v2970_v52  ;;  %v2991_v10 = vadd.f32 %v2985_v27, %v2972_v63  ;;  %v2988_v17 = vadd.f32 %v2981_v39, %v2969_v24  ;;  %v2990_v38 = vadd.f32 %v2981_v39, %v2971_v40  ;;  %v19175_v52 = vld [vmem:[#allocation43_spill] sm:$0xff]  ;;  %v13492_v63 = vld [vmem:[#allocation9 + $0x1a8] sm:$0xff]  }
 0xaba   :  { %v2993_v33 = vadd.f32 %v2985_v27, %v2974_v41  ;;  %v2995_v44 = vadd.f32 %v2985_v27, %v2976_v6  ;;  %v2992_v58 = vadd.f32 %v2981_v39, %v2973_v62  ;;  %v2994_v53 = vadd.f32 %v2981_v39, %v2975_v49  ;;  %v13495_v41 = vld [vmem:[#allocation9 + $0x1e0] sm:$0xff]   ;;  %v13494_v49 = vld [vmem:[#allocation9 + $0x130] sm:$0xff]  }
 0xabb   :  { %v16112_v11 = vpack.c.bf16 %v2991_v10, %v2989_v37  ;;  %v16114_v55 = vpack.c.bf16 %v2990_v38, %v2988_v17  ;;  %vm19176_vm10 = vnez %v19175_v52  ;;  %v19180_v62 = vld [vmem:[#allocation44_spill] sm:$0xff]  ;;  %v13497_v17 = vld [vmem:[#allocation9 + $0x168] sm:$0xff]  }
 0xabc   :  { %v16119_v60 = vpack.c.bf16 %v2995_v44, %v2993_v33  ;;  %v16121_v29 = vpack.c.bf16 %v2994_v53, %v2992_v58  ;;  %vm19181_vm8 = vnez %v19180_v62  ;;  %v13496_v38 = vld [vmem:[#allocation9 + $0x1a0] sm:$0xff]   ;;  %v13499_v44 = vld [vmem:[#allocation9 + $0x1d8] sm:$0xff]   ;;  %v13498_v53 = vld [vmem:[#allocation9 + $0x128] sm:$0xff]  }
 0xabd   :  { %3711 = vmatprep.mubr.bf16.mxu0 %v16112_v11  ;;  %v3011_v25 = vshrl.u32 %v16114_v55, 16  ;;  %v3018_v59 = vshrl.u32 %v16112_v11, 16  ;;  %v3021_v31 = vshll.u32 %v16112_v11, 16  ;;  %v3014_v21 = vshll.u32 %v16114_v55, 16  ;;  %v13515_v62 = vld [vmem:[#allocation9 + $0x140] sm:$0xff]  }
 0xabe   :  { %3712 = vmatmul.mubr.bf16.vlgmr.msra.gmra.mxu0 %v16114_v55  ;;  %v3005_v28 = vshrl.u32 %v16119_v60, 16  ;;  %v3001_v54 = vshrl.u32 %v16121_v29, 16  ;;  %v3028_v20 = vshll.u32 %v16119_v60, 16  ;;  %v3076_v32 = vrot.slane %v16112_v11, 1 }
 0xabf   :  { %12258 = vmatpush3.bf16.msra.mxu0 %v13484_v57  ;;  %3719 = vmatprep.mubr.bf16.mxu0 %v16119_v60  ;;  %v3020_v9 = vrot.slane %v3018_v59, 7  ;;  %v3013_v8 = vrot.slane %v3011_v25, 7  ;;  %v3077_v39 = vrot.slane %v16119_v60, 1  ;;  %v16158_v6 = vrot.slane %v3021_v31, 1 }
 0xac0   :  { %12259 = vmatprep.subr.bf16.mxu0 %v13487_v14  ;;  %v3007_v34 = vrot.slane %v3005_v28, 7  ;;  %v3003_v0 = vrot.slane %v3001_v54, 7  ;;  %v3024_v37 = vshll.u32 %v16121_v29, 16  ;;  %v3048_v57 = vrot.slane %v3028_v20, 1  ;;  %v13501_v14 = vld [vmem:[#allocation9 + $0x160] sm:$0xff]  }
 0xac1   :  { %v3023_v2 = vor.u32 %v3021_v31, %v3020_v9  ;;  %v3016_v3 = vor.u32 %v3014_v21, %v3013_v8  ;;  %v3078_v10 = vsel %vm18794_vm11, %v3076_v32, %v3077_v39  ;;  %v3047_v58 = vor.u32 %v16158_v6, %v3018_v59  ;;  %v13503_v31 = vld [vmem:[#allocation9 + $0x1d0] sm:$0xff]   ;;  %v13502_v59 = vld [vmem:[#allocation9 + $0x120] sm:$0xff]  }
 0xac2   :  { %v3030_v26 = vor.u32 %v3028_v20, %v3007_v34  ;;  %v3026_v33 = vor.u32 %v3024_v37, %v3003_v0  ;;  %v13504_v20 = vld [vmem:[#allocation9 + $0x190] sm:$0xff]   ;;  %v3044_v40 = vrot.slane %v3024_v37, 1 }
 0xac3   :  { %12260 = vmatpush3.bf16.msra.mxu0 %v13488_v22  ;;  %v3037_v23 = vsel %vm19174_vm13, %v3007_v34, %v3023_v2  ;;  %v3036_v27 = vsel %vm19174_vm13, %v3003_v0, %v3016_v3  ;;  %v13500_v22 = vld [vmem:[#allocation9 + $0x198] sm:$0xff]   ;;  %v19185_v2 = vld [vmem:[#allocation37_spill] sm:$0xff]  ;;  %v13509_v3 = vld [vmem:[#allocation9 + $0x150] sm:$0xff]  }
 0xac4   :  { %11288 = vmatprep.mubr.msk.bf16.mxu1 %vm19176_vm10, %v3037_v23  ;;  %12261 = vmatprep.subr.bf16.mxu0 %v13491_v35  ;;  %v3031_v24 = vsel %vm19177_vm4, %v3020_v9, %v3030_v26  ;;  %v13505_v35 = vld [vmem:[#allocation9 + $0x158] sm:$0xff]   ;;  %vm3067_vm11 = vcmp.le.s32.totalorder %v19185_v2, 13  ;;  %v13510_v26 = vld [vmem:[#allocation9 + $0x110] sm:$0xff]   ;;  %v3050_v60 = vor.u32 %v3044_v40, %v3001_v54 }
 0xac5   :  { %11289 = vmatmul.mubr.msk.bf16.vlgmr.msra.gmra.mxu1 %vm19176_vm10, %v3036_v27  ;;  %vm19182_vm10 = vmmov %vm19177_vm4  ;;  %vm19183_vm4 = vsmask.f32 7424  ;;  %v13506_v0 = vld [vmem:[#allocation9 + $0x118] sm:$0xff]   ;;  %v13513_v27 = vld [vmem:[#allocation9 + $0x148] sm:$0xff]  }
 0xac6   :  { %12230 = vmatpush3.bf16.msra.mxu1 %v13490_v43  ;;  %11290 = vmatprep.mubr.msk.bf16.mxu1 %vm19181_vm8, %v3031_v24  ;;  %v3027_v7 = vsel %vm19182_vm10, %v3013_v8, %v3026_v33  ;;  %v3049_v9 = vsel %vm19183_vm4, %v3047_v58, %v3048_v57  ;;  %v13507_v8 = vld [vmem:[#allocation9 + $0x1c8] sm:$0xff]   ;;  %v13511_v43 = vld [vmem:[#allocation9 + $0x1c0] sm:$0xff]   ;;  %v3073_v24 = vrot.slane %v16114_v55, 1  ;;  %vm19188_vm10 = vcmask 1046528   ;;  %v13519_v58 = vld [vmem:[#allocation10 + $0x74] ss:$8 sps:$4 sm:$0xff]  }
 0xac7   :  { %3720 = vmatmul.mubr.bf16.gmra.mxu0 %v16121_v29  ;;  %12231 = vmatprep.subr.bf16.mxu1 %v13493_v48  ;;  %v13512_v48 = vld [vmem:[#allocation9 + $0x180] sm:$0xff]   ;;  %vm19189_vm4 = vmmov %vm19188_vm10  ;;  %v3051_v33 = vor.u32 %v3048_v57, %v3005_v28  ;;  %v13525_v54 = vld [vmem:[#allocation10 + $0x54] ss:$8 sps:$4 sm:$0xff]  }
 0xac8   :  { %12262 = vmatpush3.bf16.msra.mxu0 %v13492_v63  ;;  %11296 = vmatprep.mubr.msk.bf16.mxu0 %vm16154_vm12, %v3078_v10  ;;  %v13514_v63 = vld [vmem:[#allocation9 + $0x108] sm:$0xff]   ;;  %v19194_v28 = vld [vmem:[#allocation32_spill] sm:$0xff]  ;;  %v13529_v34 = vld [vmem:[#allocation10 + $0x30] ss:$8 sps:$4 sm:$0xff]  }
 0xac9   :  { %12263 = vmatprep.subr.bf16.mxu0 %v13495_v41  ;;  %v3074_v41 = vrot.slane %v16121_v29, 1  ;;  %v3826_v37 = vmul.u32 2, %v19194_v28  ;;  %v13522_v57 = vld [vmem:[#allocation10 + $0x64] ss:$8 sps:$4 sm:$0xff]   ;;  %v13520_v29 = vld [vmem:[#allocation10 + $0x60] ss:$8 sps:$4 sm:$0xff]  }
 0xaca   :  { %12232 = vmatpush3.bf16.msra.mxu1 %v13494_v49  ;;  %v3042_v49 = vrot.slane %v3014_v21, 1  ;;  %v13535_v2 = vld [vmem:[#allocation10 + $0x10] ss:$8 sps:$4 sm:$0xff]  }
 0xacb   :  { %12233 = vmatprep.subr.bf16.mxu1 %v13497_v17  ;;  %v3075_v17 = vsel %vm19188_vm10, %v3073_v24, %v3074_v41 }
 0xacc   :  { %12264 = vmatpush3.bf16.msra.mxu0 %v13496_v38  ;;  %v3088_v38 = vsel %vm19189_vm4, %v3077_v39, %v3076_v32  ;;  %v3043_v21 = vor.u32 %v3042_v49, %v3011_v25  ;;  %v3059_v39 = vsel %vm19129_vm0, %v3051_v33, %v16158_v6  ;;  %v3058_v25 = vsel %vm19129_vm0, %v3050_v60, %v3042_v49  ;;  %v13517_v6 = vld [vmem:[#allocation10 + $0x70] ss:$8 sps:$4 sm:$0xff]  }
 0xacd   :  { %11291 = vmatmul.mubr.msk.bf16.gmra.mxu1 %vm19181_vm8, %v3027_v7  ;;  %12265 = vmatprep.subr.bf16.mxu0 %v13499_v44  ;;  %vm3101_vm8 = vmpackc.low %vm3067_vm11, %vm3067_vm11  ;;  %v13523_v7 = vld [vmem:[#allocation10 + $0x50] ss:$8 sps:$4 sm:$0xff]  }
 0xace   :  { %12234 = vmatpush3.bf16.msra.mxu1 %v13498_v53  ;;  %11292 = vmatprep.mubr.msk.bf16.mxu1 %vm19099_vm14, %v3049_v9  ;;  %v3105_v23 = vsel %vm3101_vm8, 65537, %v19171_v18  ;;  %vm19193_vm8 = vmmov %vm19189_vm4  ;;  %v19195_v53 = vld [vmem:[#allocation45_spill] sm:$0xff] }
 0xacf   :  { %12235 = vmatprep.subr.bf16.mxu1 %v13501_v14  ;;  %v11223_v52 = vcombine.low %v19172_v45, %v3105_v23  ;;  %v13516_v45 = vld [vmem:[#allocation9 + $0x100] sm:$0xff]   ;;  %v3084_v55 = vsel %vm19193_vm8, %v3074_v41, %v3073_v24  ;;  %v13555_v23 = vld [vmem:[#allocation10 + $0xd4] ss:$8 sps:$4 sm:$0xff]   ;;  %v13565_v24 = vld [vmem:[#allocation10 + $0xb0] ss:$8 sps:$4 sm:$0xff]  }
 0xad0   :  { %12266 = vmatpush3.bf16.msra.mxu0 %v13500_v22  ;;  %v13528_v22 = vld [vmem:[#allocation10 + $0x44] ss:$8 sps:$4 sm:$0xff]   ;;  %v13526_v9 = vld [vmem:[#allocation10 + $0x40] ss:$8 sps:$4 sm:$0xff]  }
 0xad1   :  { %12267 = vmatprep.subr.bf16.mxu0 %v13503_v31  ;;  %vm16187_vm11 = vcmp.ne.s16.totalorder %v11223_v52, 0  ;;  %v13531_v31 = vld [vmem:[#allocation10 + $0x34] ss:$8 sps:$4 sm:$0xff]   ;;  %v13559_v52 = vld [vmem:[#allocation10 + $0xc0] ss:$8 sps:$4 sm:$0xff]  }
 0xad2   :  { %12236 = vmatpush3.bf16.msra.mxu1 %v13502_v59  ;;  %v13534_v59 = vld [vmem:[#allocation10 + $0x24] ss:$8 sps:$4 sm:$0xff]  }
 0xad3   :  { %12237 = vmatprep.subr.bf16.mxu1 %v13505_v35  ;;  %v13532_v35 = vld [vmem:[#allocation10 + $0x20] ss:$8 sps:$4 sm:$0xff]  }
 0xad4   :  { %12268 = vmatpush3.bf16.msra.mxu0 %v13504_v20  ;;  %v13537_v20 = vld [vmem:[#allocation10 + $0x14] ss:$8 sps:$4 sm:$0xff]  }
 0xad5   :  { %12269 = vmatprep.subr.bf16.mxu0 %v13507_v8  ;;  %v13540_v8 = vld [vmem:[#allocation10 + $0x4] ss:$8 sps:$4 sm:$0xff]  }
 0xad6   :  { %12238 = vmatpush3.bf16.msra.mxu1 %v13506_v0  ;;  %v13538_v0 = vld [vmem:[#allocation10] ss:$8 sps:$4 sm:$0xff]  }
 0xad7   :  { %12239 = vmatprep.subr.bf16.mxu1 %v13509_v3  ;;  %v13543_v3 = vld [vmem:[#allocation10 + $0xf4] ss:$8 sps:$4 sm:$0xff]  }
 0xad8   :  { %12270 = vmatpush3.bf16.msra.mxu0 %v13508_v36  ;;  %v13541_v36 = vld [vmem:[#allocation10 + $0xf0] ss:$8 sps:$4 sm:$0xff]  }
 0xad9   :  { %12271 = vmatprep.subr.bf16.mxu0 %v13511_v43  ;;  %v13549_v43 = vld [vmem:[#allocation10 + $0xe4] ss:$8 sps:$4 sm:$0xff]  }
 0xada   :  { %12240 = vmatpush3.bf16.msra.mxu1 %v13510_v26  ;;  %v13547_v26 = vld [vmem:[#allocation10 + $0xe0] ss:$8 sps:$4 sm:$0xff]  }
 0xadb   :  { %12241 = vmatprep.subr.bf16.mxu1 %v13513_v27  ;;  %v13553_v27 = vld [vmem:[#allocation10 + $0xd0] ss:$8 sps:$4 sm:$0xff]  }
 0xadc   :  { %12272 = vmatpush3.bf16.msra.mxu0 %v13512_v48  ;;  %v13561_v48 = vld [vmem:[#allocation10 + $0xc4] ss:$8 sps:$4 sm:$0xff]  }
 0xadd   :  { %4419 = vmatprep.subr.bf16.mxu0 %v13519_v58 }
 0xade   :  { %12242 = vmatpush3.bf16.msra.mxu1 %v13514_v63  ;;  %v13567_v63 = vld [vmem:[#allocation10 + $0xb4] ss:$8 sps:$4 sm:$0xff]  }
 0xadf   :  { %11297 = vmatmul.mubr.msk.bf16.vlgmr.msra.gmra.mxu0 %vm16154_vm12, %v3075_v17  ;;  %12243 = vmatprep.subr.bf16.mxu1 %v13515_v62  ;;  %vm19190_vm12 = vsmask.f32 7424 }
 0xae0   :  { %11298 = vmatprep.mubr.msk.bf16.mxu0 %vm16187_vm11, %v3088_v38  ;;  %v3045_v11 = vsel %vm19190_vm12, %v3043_v21, %v3044_v40  ;;  %4420 = vmatpush1.bf16.msra.mxu0 %v13517_v6 }
 0xae1   :  { %4421 = vmatprep.subr.bf16.mxu0 %v13522_v57 }
 0xae2   :  { %12244 = vmatpush3.bf16.msra.mxu1 %v13516_v45 }
 0xae4   :  { %4422 = vmatpush1.bf16.msra.mxu0 %v13520_v29 }
 0xae5   :  { %11293 = vmatmul.mubr.msk.bf16.vlgmr.msra.gmra.mxu1 %vm19099_vm14, %v3045_v11  ;;  %vm3828_vm14 = vcmp.eq.s32.totalorder %v19195_v53, %v3826_v37  ;;  %4423 = vmatprep.subr.bf16.mxu0 %v13525_v54 }
 0xae6   :  { %11294 = vmatprep.mubr.msk.bf16.mxu1 %vm19131_vm5, %v3059_v39  ;;  %v16227_v14 = vsel %vm3828_vm14, 1.0, %v19133_v13 }
 0xae7   :  { %11299 = vmatmul.mubr.msk.bf16.gmra.mxu0 %vm16187_vm11, %v3084_v55  ;;  %19196 = vst [vmem:[#allocation77_spill] sm:$0xff] %v16227_v14  ;;  %vm19197_vm11 = vcmask 261120  }
 0xae8   :  { %4424 = vmatpush1.bf16.msra.mxu0 %v13523_v7  ;;  %vm19199_vm10 = vmmov %vm19197_vm11 }
 0xae9   :  { %4425 = vmatprep.subr.bf16.mxu0 %v13528_v22 }
 0xaec   :  { %4426 = vmatpush1.bf16.msra.mxu0 %v13526_v9 }
 0xaed   :  { %11295 = vmatmul.mubr.msk.bf16.gmra.mxu1 %vm19131_vm5, %v3058_v25  ;;  %4427 = vmatprep.subr.bf16.mxu0 %v13531_v31 }
 0xaee   :  { %12832 = vmatprep.mubr.msk.f32.mxu1 %vm19197_vm11, %v16227_v14 }
 0xaf0   :  { %4428 = vmatpush1.bf16.msra.mxu0 %v13529_v34 }
 0xaf1   :  { %4429 = vmatprep.subr.bf16.mxu0 %v13534_v59 }
 0xaf4   :  { %4430 = vmatpush1.bf16.msra.mxu0 %v13532_v35 }
 0xaf5   :  { %4431 = vmatprep.subr.bf16.mxu0 %v13537_v20 }
 0xaf8   :  { %4432 = vmatpush1.bf16.msra.mxu0 %v13535_v2 }
 0xaf9   :  { %4433 = vmatprep.subr.bf16.mxu0 %v13540_v8 }
 0xafc   :  { %4434 = vmatpush1.bf16.msra.mxu0 %v13538_v0 }
 0xafd   :  { %4435 = vmatprep.subr.bf16.mxu0 %v13543_v3 }
 0xb00   :  { %4436 = vmatpush2.bf16.msra.mxu0 %v13541_v36 }
 0xb01   :  { %4437 = vmatprep.subr.bf16.mxu0 %v13549_v43 }
 0xb04   :  { %4438 = vmatpush2.bf16.msra.mxu0 %v13547_v26 }
 0xb05   :  { %4439 = vmatprep.subr.bf16.mxu0 %v13555_v23 }
 0xb08   :  { %4440 = vmatpush2.bf16.msra.mxu0 %v13553_v27 }
 0xb09   :  { %4441 = vmatprep.subr.bf16.mxu0 %v13561_v48 }
 0xb0c   :  { %4442 = vmatpush2.bf16.msra.mxu0 %v13559_v52 }
 0xb0d   :  { %4443 = vmatprep.subr.bf16.mxu0 %v13567_v63 }
 0xb10   :  { %4444 = vmatpush2.bf16.msra.mxu0 %v13565_v24 }
 0xb7e   :  { %v12217_v41 = vpop.f32.mrf.mxu0 }
 0xb80   :  { %v12218_v62 = vpop.f32.mrf.mxu0 }
 0xb81   :  { %v12219_v47 = vadd.f32 %v12218_v62, %v12217_v41  ;;  %v13544_v62 = vld [vmem:[#allocation10 + $0x170] ss:$8 sps:$4 sm:$0xff]  }
 0xb82   :  { %v12220_v10 = vpop.f32.mrf.mxu0 }
 0xb84   :  { %v12221_v45 = vpop.f32.mrf.mxu0 }
 0xb85   :  { %v12189_v49 = vpop.f32.mrf.mxu1  ;;  %v12222_v26 = vadd.f32 %v12221_v45, %v12220_v10 }
 0xb87   :  { %v12190_v17 = vpop.f32.mrf.mxu1  ;;  %v12223_v21 = vpop.f32.mrf.mxu0 }
 0xb88   :  { %v12191_v23 = vadd.f32 %v12190_v17, %v12189_v49 }
 0xb89   :  { %v12192_v38 = vpop.f32.mrf.mxu1  ;;  %v12224_v40 = vpop.f32.mrf.mxu0 }
 0xb8a   :  { %v12225_v3 = vadd.f32 %v12224_v40, %v12223_v21 }
 0xb8b   :  { %v12193_v33 = vpop.f32.mrf.mxu1  ;;  %v12226_v39 = vpop.f32.mrf.mxu0 }
 0xb8c   :  { %v12194_v8 = vadd.f32 %v12193_v33, %v12192_v38  ;;  %v3714_v33 = vadd.f32 %v12219_v47, %v12191_v23 }
 0xb8d   :  { %v12195_v11 = vpop.f32.mrf.mxu1  ;;  %v12227_v55 = vpop.f32.mrf.mxu0 }
 0xb8e   :  { %v12228_v36 = vadd.f32 %v12227_v55, %v12226_v39  ;;  %v3717_v19 = vadd.f32 %v12222_v26, %v12194_v8  ;;  %v3834_v26 = vld [vmem:[#allocation2 + $0x11] ss:$0 sm:$0xff] }
 0xb8f   :  { %v12196_v44 = vpop.f32.mrf.mxu1 }
 0xb90   :  { %v12197_v20 = vadd.f32 %v12196_v44, %v12195_v11  ;;  %v19198_v44 = vld [vmem:[#allocation33_spill] sm:$0xff] }
 0xb91   :  { %v12198_v60 = vpop.f32.mrf.mxu1  ;;  %v3827_v38 = vmul.u32 2, %v19198_v44 }
 0xb92   :  { %v3722_v52 = vadd.f32 %v12225_v3, %v12197_v20  ;;  %v13588_v20 = vld [vmem:[#allocation10 + $0x104] ss:$8 sps:$4 sm:$0xff]   ;;  %v16246_v3 = vand.u32 7, %v19194_v28 }
 0xb93   :  { %v12199_v6 = vpop.f32.mrf.mxu1  ;;  %vm3829_vm5 = vcmp.eq.s32.totalorder %v19195_v53, %v3827_v38 }
 0xb94   :  { %v12200_v2 = vadd.f32 %v12199_v6, %v12198_v60  ;;  %v11301_v47 = vsel %vm3829_vm5, 1.0, %v19133_v13  ;;  %v13564_v60 = vld [vmem:[#allocation10 + $0x144] ss:$8 sps:$4 sm:$0xff]   ;;  %v13568_v6 = vld [vmem:[#allocation10 + $0x130] ss:$8 sps:$4 sm:$0xff]   ;;  %19204 = vst [vmem:[#allocation83_spill] sm:$0xff] %v16246_v3 }
 0xb95   :  { %vm4073_vm12 = vcmp.ge.s32.totalorder %v16246_v3, 1  ;;  %vm4098_vm14 = vcmp.le.s32.totalorder %v16246_v3, 6 }
 0xb96   :  { %v3725_v63 = vadd.f32 %v12228_v36, %v12200_v2  ;;  %v19200_v2 = vld [vmem:[#allocation46_spill] sm:$0xff]  ;;  %v16249_v36 = vand.u32 7, %v19198_v44  ;;  %vm4089_vm11 = vmpackc.low %vm4073_vm12, %vm4073_vm12 }
 0xb97   :  { %v3947_v8 = vand.u32 31, %v19200_v2  ;;  %vm4109_vm7 = vmpackc.low %vm4098_vm14, %vm4098_vm14 }
 0xb98   :  { %19205 = vst [vmem:[#allocation92_spill] sm:$0xff] %v16249_v36  ;;  %vm4074_vm8 = vcmp.ge.s32.totalorder %v16249_v36, 1  ;;  %vm4099_vm5 = vcmp.le.s32.totalorder %v16249_v36, 6 }
 0xb99   :  { %vm16238_vm4 = vcmp.eq.s32.totalorder %v3947_v8, %v19195_v53  ;;  %vm4110_vm3 = vmpackc.low %vm4099_vm5, %vm4099_vm5  ;;  %v19235_v8 = vmov 0 }
 0xb9f   :  { %v12273_v25 = vpop.f32.mrf.mxu0 }
 0xba1   :  { %v12274_v37 = vpop.f32.mrf.mxu0 }
 0xba2   :  { %v12275_v45 = vadd.f32 %v12274_v37, %v12273_v25  ;;  %v13562_v25 = vld [vmem:[#allocation10 + $0x140] ss:$8 sps:$4 sm:$0xff]   ;;  %v13570_v37 = vld [vmem:[#allocation10 + $0x134] ss:$8 sps:$4 sm:$0xff]  }
 0xba3   :  { %v12276_v58 = vpop.f32.mrf.mxu0 }
 0xba5   :  { %v12277_v57 = vpop.f32.mrf.mxu0  ;;  %v12245_v29 = vpop.f32.mrf.mxu1 }
 0xba6   :  { %v12278_v10 = vadd.f32 %v12277_v57, %v12276_v58  ;;  %v13573_v58 = vld [vmem:[#allocation10 + $0xa4] ss:$8 sps:$4 sm:$0xff]  }
 0xba7   :  { %v12279_v54 = vpop.f32.mrf.mxu0  ;;  %v12246_v7 = vpop.f32.mrf.mxu1  ;;  %v13576_v57 = vld [vmem:[#allocation10 + $0x124] ss:$8 sps:$4 sm:$0xff]   ;;  %4445 = vmatprep.subr.bf16.mxu0 %v13573_v58  ;;  %v19224_v58 = vld [vmem:[#allocation51_spill] sm:$0xff] }
 0xba8   :  { %v12247_v1 = vadd.f32 %v12246_v7, %v12245_v29  ;;  %v13571_v29 = vld [vmem:[#allocation10 + $0xa0] ss:$8 sps:$4 sm:$0xff]   ;;  %v13579_v7 = vld [vmem:[#allocation10 + $0x94] ss:$8 sps:$4 sm:$0xff]  }
 0xba9   :  { %v12248_v22 = vpop.f32.mrf.mxu1  ;;  %v12280_v9 = vpop.f32.mrf.mxu0  ;;  %4446 = vmatpush2.bf16.msra.mxu0 %v13571_v29  ;;  %v19225_v29 = vld [vmem:[#allocation52_spill] sm:$0xff] }
 0xbaa   :  { %v12281_v21 = vadd.f32 %v12280_v9, %v12279_v54  ;;  %v3763_v49 = vadd.f32 %v12247_v1, %v3714_v33  ;;  %v13558_v1 = vld [vmem:[#allocation10 + $0x154] ss:$8 sps:$4 sm:$0xff]   ;;  %v13574_v54 = vld [vmem:[#allocation10 + $0x120] ss:$8 sps:$4 sm:$0xff]   ;;  %v13577_v9 = vld [vmem:[#allocation10 + $0x90] ss:$8 sps:$4 sm:$0xff]   ;;  %4447 = vmatprep.subr.bf16.mxu0 %v13579_v7 }
 0xbab   :  { %v12249_v31 = vpop.f32.mrf.mxu1  ;;  %v12282_v59 = vpop.f32.mrf.mxu0  ;;  %v19407_v7 = vld [vmem:[#allocation87_spill] sm:$0xff] }
 0xbac   :  { %v12250_v24 = vadd.f32 %v12249_v31, %v12248_v22  ;;  %v3812_v41 = vadd.f32 %v12275_v45, %v3763_v49  ;;  %v13582_v22 = vld [vmem:[#allocation10 + $0x114] ss:$8 sps:$4 sm:$0xff]   ;;  %v13580_v31 = vld [vmem:[#allocation10 + $0x110] ss:$8 sps:$4 sm:$0xff]  }
 0xbad   :  { %v12251_v34 = vpop.f32.mrf.mxu1  ;;  %v12283_v27 = vpop.f32.mrf.mxu0  ;;  %4448 = vmatpush2.bf16.msra.mxu0 %v13577_v9 }
 0xbae   :  { %v12284_v46 = vadd.f32 %v12283_v27, %v12282_v59  ;;  %v3766_v40 = vadd.f32 %v12250_v24, %v3717_v19  ;;  %v13556_v19 = vld [vmem:[#allocation10 + $0x150] ss:$8 sps:$4 sm:$0xff]   ;;  %v13583_v59 = vld [vmem:[#allocation10 + $0x80] ss:$8 sps:$4 sm:$0xff]   ;;  %v4111_v24 = vsel %vm4109_vm7, 65537, %v19171_v18 }
 0xbaf   :  { %v12252_v35 = vpop.f32.mrf.mxu1 }
 0xbb0   :  { %v12253_v43 = vadd.f32 %v12252_v35, %v12251_v34  ;;  %v3815_v55 = vadd.f32 %v12278_v10, %v3766_v40  ;;  %v13585_v34 = vld [vmem:[#allocation10 + $0x84] ss:$8 sps:$4 sm:$0xff]   ;;  %v13586_v35 = vld [vmem:[#allocation10 + $0x100] ss:$8 sps:$4 sm:$0xff]   ;;  %v19207_v10 = vld [vmem:[#allocation47_spill] sm:$0xff] }
 0xbb1   :  { %v12254_v0 = vpop.f32.mrf.mxu1  ;;  %4449 = vmatprep.subr.bf16.mxu0 %v13585_v34  ;;  %v3931_v49 = vand.u32 31, %v19207_v10  ;;  %v19231_v34 = vld [vmem:[#allocation54_spill] sm:$0xff] }
 0xbb2   :  { %v3771_v5 = vadd.f32 %v12253_v43, %v3722_v52  ;;  %4450 = vmatpush2.bf16.msra.mxu0 %v13583_v59  ;;  %v4091_v52 = vsel %vm4089_vm11, 65537, %v19171_v18  ;;  %v3928_v59 = vand.u32 31, %v19231_v34  ;;  %v19265_v34 = vmov 0 }
 0xbb3   :  { %v12255_v48 = vpop.f32.mrf.mxu1  ;;  %vm16276_vm12 = vcmp.eq.s32.totalorder %v3931_v49, %v19195_v53  ;;  %v19250_v49 = vmov 0 }
 0xbb4   :  { %v12256_v50 = vadd.f32 %v12255_v48, %v12254_v0  ;;  %v3820_v17 = vadd.f32 %v12281_v21, %v3771_v5  ;;  %v13550_v5 = vld [vmem:[#allocation10 + $0x160] ss:$8 sps:$4 sm:$0xff]   ;;  %v19201_v0 = vmov 0  ;;  %vm16344_vm6 = vcmp.eq.s32.totalorder %v3928_v59, %v19195_v53  ;;  %v19267_v59 = vld [vmem:[#allocation66_spill] sm:$0xff] }
 0xbb5   :  { %v19202_v0 = vsel %vm16238_vm4, 4294967295, %v19201_v0  ;;  %v19236_v8 = vsel %vm16344_vm6, 4294967295, %v19235_v8 }
 0xbb6   :  { %v3774_v11 = vadd.f32 %v12256_v50, %v3725_v63  ;;  %v13546_v50 = vld [vmem:[#allocation10 + $0x174] ss:$8 sps:$4 sm:$0xff]   ;;  %19203 = vst [vmem:[#allocation80_spill] sm:$0xff] %v19202_v0 }
 0xbb8   :  { %v3823_v39 = vadd.f32 %v12284_v46, %v3774_v11  ;;  %v13552_v46 = vld [vmem:[#allocation10 + $0x164] ss:$8 sps:$4 sm:$0xff]   ;;  %v4112_v11 = vsel %vm4110_vm3, 65537, %v19171_v18 }
 0xbba   :  { %12824 = vmatprep.subr.mxu1 %v3823_v39 }
 0xbbb   :  { %12825 = vmatpush3.msra.mxu1 %v3823_v39  ;;  %v11345_v39 = vcombine.low %v4111_v24, %v4112_v11  ;;  %v19244_v11 = vmov 0 }
 0xbbc   :  { %12826 = vmatprep.subr.mxu1 %v3820_v17 }
 0xbbd   :  { %12827 = vmatpush3.msra.mxu1 %v3820_v17  ;;  %vm16271_vm7 = vcmp.ne.s16.totalorder %v11345_v39, 0  ;;  %v19249_v39 = vld [vmem:[#allocation60_spill] sm:$0xff] }
 0xbbe   :  { %12828 = vmatprep.subr.mxu1 %v3815_v55  ;;  %v3925_v10 = vand.u32 31, %v19249_v39  ;;  %v19277_v39 = vmov 0 }
 0xbbf   :  { %12829 = vmatpush3.msra.mxu1 %v3815_v55  ;;  %v19208_v55 = vld [vmem:[#allocation48_spill] sm:$0xff] }
 0xbc0   :  { %12830 = vmatprep.subr.mxu1 %v3812_v41 }
 0xbc1   :  { %12831 = vmatpush3.msra.mxu1 %v3812_v41  ;;  %v3946_v41 = vand.u32 31, %v19208_v55  ;;  %v19253_v55 = vmov 0 }
 0xbc2   :  { %12833 = vmatmul.mubr.msk.f32.vlgmr.msra.gmra.mxu1 %vm19199_vm10, %v11301_v47  ;;  %4462 = vmatprep.subr.bf16.mxu1 %v13546_v50  ;;  %vm4090_vm10 = vmpackc.low %vm4074_vm8, %vm4074_vm8  ;;  %v19209_v50 = vld [vmem:[#allocation49_spill] sm:$0xff] }
 0xbc3   :  { %4463 = vmatpush1.bf16.msra.mxu1 %v13544_v62  ;;  %4494 = vmatprep.mubr.bf16.mxu1 %v19171_v18  ;;  %v4092_v63 = vsel %vm4090_vm10, 65537, %v19171_v18  ;;  %v3930_v47 = vand.u32 31, %v19209_v50  ;;  %vm16289_vm8 = vcmp.eq.s32.totalorder %v3946_v41, %v19195_v53  ;;  %v19255_v41 = vld [vmem:[#allocation62_spill] sm:$0xff] }
 0xbc4   :  { %4464 = vmatprep.subr.bf16.mxu1 %v13552_v46  ;;  %v11344_v40 = vcombine.low %v4091_v52, %v4092_v63  ;;  %v19210_v46 = vmov 0  ;;  %v19241_v52 = vmov 0  ;;  %v19243_v63 = vld [vmem:[#allocation58_spill] sm:$0xff]  ;;  %v3924_v50 = vand.u32 31, %v19255_v41 }
 0xbc5   :  { %vm16300_vm14 = vcmp.eq.s32.totalorder %v3930_v47, %v19195_v53  ;;  %v3926_v24 = vand.u32 31, %v19243_v63  ;;  %v19256_v47 = vmov 0 }
 0xbc6   :  { %vm16267_vm3 = vcmp.ne.s16.totalorder %v11344_v40, 0  ;;  %v19247_v40 = vmov 0 }
 0xbc7   :  { %4465 = vmatpush1.bf16.msra.mxu1 %v13550_v5  ;;  %v19211_v46 = vsel %vm16267_vm3, 4294967295, %v19210_v46  ;;  %vm16380_vm15 = vcmp.eq.s32.totalorder %v3926_v24, %v19195_v53  ;;  %v19274_v24 = vmov 0 }
 0xbc8   :  { %4466 = vmatprep.subr.bf16.mxu1 %v13558_v1  ;;  %19212 = vst [vmem:[#allocation86_spill] sm:$0xff] %v19211_v46  ;;  %v19213_v1 = vmov 0  ;;  %v19248_v40 = vsel %vm16380_vm15, 4294967295, %v19247_v40 }
 0xbc9   :  { %v19214_v1 = vsel %vm16271_vm7, 4294967295, %v19213_v1 }
 0xbca   :  { %19215 = vst [vmem:[#allocation90_spill] sm:$0xff] %v19214_v1 }
 0xbcb   :  { %4467 = vmatpush1.bf16.msra.mxu1 %v13556_v19 }
 0xbcc   :  { %4468 = vmatprep.subr.bf16.mxu1 %v13564_v60 }
 0xbcf   :  { %4469 = vmatpush1.bf16.msra.mxu1 %v13562_v25 }
 0xbd0   :  { %4470 = vmatprep.subr.bf16.mxu1 %v13570_v37 }
 0xbd3   :  { %4471 = vmatpush1.bf16.msra.mxu1 %v13568_v6 }
 0xbd4   :  { %4472 = vmatprep.subr.bf16.mxu1 %v13576_v57  ;;  %v3945_v57 = vand.u32 31, %v19224_v58  ;;  %v19259_v58 = vmov 0 }
 0xbd6   :  { %vm16317_vm11 = vcmp.eq.s32.totalorder %v3945_v57, %v19195_v53  ;;  %v19261_v57 = vld [vmem:[#allocation64_spill] sm:$0xff] }
 0xbd7   :  { %4473 = vmatpush1.bf16.msra.mxu1 %v13574_v54  ;;  %v3929_v54 = vand.u32 31, %v19225_v29  ;;  %v3923_v29 = vand.u32 31, %v19261_v57 }
 0xbd8   :  { %4474 = vmatprep.subr.bf16.mxu1 %v13582_v22  ;;  %v19228_v22 = vld [vmem:[#allocation53_spill] sm:$0xff] }
 0xbd9   :  { %v3944_v9 = vand.u32 31, %v19228_v22  ;;  %vm16326_vm5 = vcmp.eq.s32.totalorder %v3929_v54, %v19195_v53  ;;  %v19262_v54 = vmov 0  ;;  %v19264_v22 = vld [vmem:[#allocation65_spill] sm:$0xff] }
 0xbdb   :  { %4475 = vmatpush1.bf16.msra.mxu1 %v13580_v31  ;;  %vm16335_vm10 = vcmp.eq.s32.totalorder %v3944_v9, %v19195_v53  ;;  %v3938_v9 = vand.u32 31, %v19264_v22 }
 0xbdc   :  { %4476 = vmatprep.subr.bf16.mxu1 %v13588_v20  ;;  %v19234_v20 = vld [vmem:[#allocation55_spill] sm:$0xff] }
 0xbdd   :  { %v3943_v2 = vand.u32 31, %v19234_v20  ;;  %v3922_v20 = vand.u32 31, %v19267_v59 }
 0xbdf   :  { %4477 = vmatpush1.bf16.msra.mxu1 %v13586_v35  ;;  %v19232_v35 = vmov 0  ;;  %vm16353_vm2 = vcmp.eq.s32.totalorder %v3943_v2, %v19195_v53  ;;  %v19268_v2 = vmov 0 }
 0xbe0   :  { %12291 = vmatprep.subr.msk.mxu1 %vm16238_vm4, %v19073_v12  ;;  %v19233_v35 = vsel %vm16335_vm10, 4294967295, %v19232_v35 }
 0xc82   :  { %v12834_v43 = vpop.f32.mrf.mxu1 }
 0xc83   :  { %v3913_v27 = vadd.f32 %v12834_v43, %v3834_v26  ;;  %v19237_v43 = vld [vmem:[#allocation56_spill] sm:$0xff] }
 0xc84   :  { %v3907_v23 = vpop.f32.mrf.mxu1 }
 0xc85   :  { %v3908_v48 = vadd.f32 %v3907_v23, %v3834_v26  ;;  %v3927_v26 = vand.u32 31, %v19237_v43  ;;  %v19238_v23 = vmov 0  ;;  %v19270_v43 = vld [vmem:[#allocation67_spill] sm:$0xff] }
 0xc86   :  { %v19239_v23 = vsel %vm16353_vm2, 4294967295, %v19238_v23 }
 0xc87   :  { %v16259_v38 = vpack.c.bf16 %v3913_v27, %v3908_v48  ;;  %v19240_v27 = vld [vmem:[#allocation57_spill] sm:$0xff]  ;;  %vm16362_vm1 = vcmp.eq.s32.totalorder %v3927_v26, %v19195_v53  ;;  %v3937_v26 = vand.u32 31, %v19270_v43  ;;  %v19286_v43 = vld [vmem:[#allocation78_spill] sm:$0xff] }
 0xc88   :  { %v3942_v48 = vand.u32 31, %v19240_v27  ;;  %v19242_v52 = vsel %vm16362_vm1, 4294967295, %v19241_v52  ;;  %v19271_v27 = vmov 0 }
 0xc89   :  { %19206 = vst [vmem:[#allocation50_spill] sm:$0xff] %v16259_v38  ;;  %v4076_v33 = vshrl.u32 %v16259_v38, 16  ;;  %v4080_v21 = vshll.u32 %v16259_v38, 16  ;;  %4451 = vmatprep.mubr.bf16.mxu0 %v16259_v38 }
 0xc8a   :  { %vm16371_vm9 = vcmp.eq.s32.totalorder %v3942_v48, %v19195_v53  ;;  %v19273_v48 = vld [vmem:[#allocation69_spill] sm:$0xff] }
 0xc8b   :  { %v4078_v17 = vrot.slane %v4076_v33, 7  ;;  %v4100_v45 = vrot.slane %v4080_v21, 1  ;;  %v19245_v11 = vsel %vm16371_vm9, 4294967295, %v19244_v11  ;;  %v3921_v63 = vand.u32 31, %v19273_v48 }
 0xc8d   :  { %v4082_v62 = vor.u32 %v4080_v21, %v4078_v17  ;;  %v4101_v5 = vor.u32 %v4100_v45, %v4076_v33  ;;  %v19246_v33 = vld [vmem:[#allocation59_spill] sm:$0xff] }
 0xc8e   :  { %v3941_v21 = vand.u32 31, %v19246_v33  ;;  %v19276_v33 = vld [vmem:[#allocation70_spill] sm:$0xff] }
 0xc8f   :  { %v16282_v60 = vsel %vm19174_vm13, %v4078_v17, %v4082_v62  ;;  %v16286_v25 = vsel %vm19129_vm0, %v4101_v5, %v4100_v45  ;;  %v19252_v17 = vld [vmem:[#allocation61_spill] sm:$0xff]  ;;  %vm16398_vm0 = vcmp.eq.s32.totalorder %v3925_v10, %v19195_v53  ;;  %v19258_v62 = vld [vmem:[#allocation63_spill] sm:$0xff]  ;;  %vm16416_vm13 = vcmp.eq.s32.totalorder %v3924_v50, %v19195_v53  ;;  %v19279_v10 = vld [vmem:[#allocation72_spill] sm:$0xff] }
 0xc90   :  { %19218 = vst [vmem:[#allocation35_spill] sm:$0xff] %v16282_v60  ;;  %19219 = vst [vmem:[#allocation36_spill] sm:$0xff] %v16286_v25  ;;  %11394 = vmatmul.mubr.msk.bf16.vlgmr.msra.gmra.mxu0 %vm16267_vm3, %v16282_v60  ;;  %11395 = vmatmul.mubr.msk.bf16.vlgmr.msra.gmra.mxu1 %vm16271_vm7, %v16286_v25  ;;  %vm16389_vm7 = vcmp.eq.s32.totalorder %v3941_v21, %v19195_v53  ;;  %v3940_v45 = vand.u32 31, %v19252_v17  ;;  %v19254_v55 = vsel %vm16398_vm0, 4294967295, %v19253_v55  ;;  %v3939_v5 = vand.u32 31, %v19258_v62  ;;  %v19281_v50 = vld [vmem:[#allocation34_spill] sm:$0xff] }
 0xc91   :  { %12292 = vmatpush3.msk.msra.mxu1 %vm16276_vm12, %v19073_v12  ;;  %4664 = vmatprep.mubr.f32.mxu0 %v19133_v13  ;;  %v19251_v49 = vsel %vm16389_vm7, 4294967295, %v19250_v49  ;;  %v19260_v58 = vsel %vm16416_vm13, 4294967295, %v19259_v58  ;;  %v3936_v21 = vand.u32 31, %v19276_v33  ;;  %v3920_v17 = vand.u32 31, %v19279_v10 }
 0xc92   :  { %12293 = vmatprep.subr.msk.mxu1 %vm16289_vm8, %v19073_v12  ;;  %vm16407_vm3 = vcmp.eq.s32.totalorder %v3940_v45, %v19195_v53  ;;  %v19280_v45 = vld [vmem:[#allocation73_spill] sm:$0xff]  ;;  %v3919_v62 = vand.u32 31, %v19281_v50  ;;  %v19289_v33 = vmov 0 }
 0xc93   :  { %12294 = vmatpush3.msk.msra.mxu1 %vm16300_vm14, %v19073_v12  ;;  %v19257_v47 = vsel %vm16407_vm3, 4294967295, %v19256_v47  ;;  %v3935_v41 = vand.u32 31, %v19280_v45  ;;  %v3917_v45 = vand.u32 31, %v19198_v44 }
 0xc94   :  { %12295 = vmatprep.subr.msk.mxu1 %vm16317_vm11, %v19073_v12 }
 0xc95   :  { %12296 = vmatpush3.msk.msra.mxu1 %vm16326_vm5, %v19073_v12 }
 0xc96   :  { %12297 = vmatprep.subr.msk.mxu1 %vm16335_vm10, %v19073_v12 }
 0xc97   :  { %12298 = vmatpush3.msk.msra.mxu1 %vm16344_vm6, %v19073_v12 }
 0xc98   :  { %12299 = vmatprep.subr.msk.mxu1 %vm16353_vm2, %v19073_v12 }
 0xc99   :  { %12300 = vmatpush3.msk.msra.mxu1 %vm16362_vm1, %v19073_v12 }
 0xc9a   :  { %12301 = vmatprep.subr.msk.mxu1 %vm16371_vm9, %v19073_v12 }
 0xc9b   :  { %12302 = vmatpush3.msk.msra.mxu1 %vm16380_vm15, %v19073_v12 }
 0xc9c   :  { %12303 = vmatprep.subr.msk.mxu1 %vm16389_vm7, %v19073_v12  ;;  %vm16502_vm7 = vcmp.eq.s32.totalorder %v3919_v62, %v19195_v53  ;;  %v19297_v62 = vmov 0 }
 0xc9d   :  { %12304 = vmatpush3.msk.msra.mxu1 %vm16398_vm0, %v19073_v12  ;;  %vm16425_vm0 = vcmp.eq.s32.totalorder %v3939_v5, %v19195_v53  ;;  %v19282_v5 = vmov 0 }
 0xc9e   :  { %12305 = vmatprep.subr.msk.mxu1 %vm16407_vm3, %v19073_v12  ;;  %v19263_v54 = vsel %vm16425_vm0, 4294967295, %v19262_v54  ;;  %vm16434_vm3 = vcmp.eq.s32.totalorder %v3923_v29, %v19195_v53  ;;  %v19284_v29 = vld [vmem:[#allocation75_spill] sm:$0xff] }
 0xc9f   :  { %12306 = vmatpush3.msk.msra.mxu1 %vm16416_vm13, %v19073_v12  ;;  %v19266_v34 = vsel %vm16434_vm3, 4294967295, %v19265_v34  ;;  %vm16443_vm13 = vcmp.eq.s32.totalorder %v3938_v9, %v19195_v53  ;;  %v3934_v22 = vand.u32 31, %v19284_v29  ;;  %v19285_v9 = vld [vmem:[#allocation42_spill] sm:$0xff]  ;;  %v19293_v29 = vld [vmem:[#allocation89_spill] sm:$0xff] }
 0xca0   :  { %12307 = vmatprep.subr.msk.mxu1 %vm16425_vm0, %v19073_v12  ;;  %v19269_v2 = vsel %vm16443_vm13, 4294967295, %v19268_v2  ;;  %vm16452_vm0 = vcmp.eq.s32.totalorder %v3922_v20, %v19195_v53  ;;  %v3918_v20 = vand.u32 31, %v19285_v9 }
 0xca1   :  { %12308 = vmatpush3.msk.msra.mxu1 %vm16434_vm3, %v19073_v12  ;;  %v19272_v27 = vsel %vm16452_vm0, 4294967295, %v19271_v27  ;;  %vm16461_vm3 = vcmp.eq.s32.totalorder %v3937_v26, %v19195_v53  ;;  %v3933_v26 = vand.u32 31, %v19286_v43  ;;  %v16508_v43 = vand.u32 31, %v19293_v29 }
 0xca2   :  { %12309 = vmatprep.subr.msk.mxu1 %vm16443_vm13, %v19073_v12  ;;  %v19275_v24 = vsel %vm16461_vm3, 4294967295, %v19274_v24  ;;  %vm16470_vm13 = vcmp.eq.s32.totalorder %v3921_v63, %v19195_v53  ;;  %v19287_v63 = vmov 0  ;;  %vm16523_vm15 = vcmp.eq.s32.totalorder %v3918_v20, %v19195_v53 }
 0xca3   :  { %12310 = vmatpush3.msk.msra.mxu1 %vm16452_vm0, %v19073_v12  ;;  %v19278_v39 = vsel %vm16470_vm13, 4294967295, %v19277_v39  ;;  %vm16481_vm0 = vcmp.eq.s32.totalorder %v3936_v21, %v19195_v53  ;;  %v19291_v21 = vmov 0  ;;  %v19298_v62 = vsel %vm16523_vm15, 4294967295, %v19297_v62 }
 0xca4   :  { %12311 = vmatprep.subr.msk.mxu1 %vm16461_vm3, %v19073_v12  ;;  %v19283_v5 = vsel %vm16481_vm0, 4294967295, %v19282_v5  ;;  %vm16492_vm3 = vcmp.eq.s32.totalorder %v3920_v17, %v19195_v53  ;;  %v19292_v21 = vsel %vm16502_vm7, 4294967295, %v19291_v21  ;;  %v19294_v17 = vmov 0 }
 0xca5   :  { %12312 = vmatpush3.msk.msra.mxu1 %vm16470_vm13, %v19073_v12  ;;  %v19288_v63 = vsel %vm16492_vm3, 4294967295, %v19287_v63  ;;  %vm16497_vm13 = vcmp.eq.s32.totalorder %v3935_v41, %v19195_v53  ;;  %v19296_v41 = vld [vmem:[#allocation81_spill] sm:$0xff]  ;;  %v3916_v29 = vand.u32 31, %v19194_v28  ;;  %v19301_v20 = vmov 0 }
 0xca6   :  { %12313 = vmatprep.subr.msk.mxu1 %vm16481_vm0, %v19073_v12  ;;  %v19290_v33 = vsel %vm16497_vm13, 4294967295, %v19289_v33  ;;  %vm16514_vm0 = vcmp.eq.s32.totalorder %v3934_v22, %v19195_v53  ;;  %v3932_v10 = vand.u32 31, %v19296_v41  ;;  %v19299_v22 = vmov 0 }
 0xca7   :  { %12314 = vmatpush3.msk.msra.mxu1 %vm16492_vm3, %v19073_v12  ;;  %v19295_v17 = vsel %vm16514_vm0, 4294967295, %v19294_v17  ;;  %vm16532_vm3 = vcmp.eq.s32.totalorder %v3933_v26, %v19195_v53  ;;  %v19303_v41 = vmov 0  ;;  %vm18870_vm9 = vcmp.eq.s32.totalorder %v16508_v43, %v19281_v50 }
 0xca8   :  { %12315 = vmatprep.subr.msk.mxu1 %vm16497_vm13, %v19073_v12  ;;  %v19300_v22 = vsel %vm16532_vm3, 4294967295, %v19299_v22  ;;  %vm16540_vm13 = vcmp.eq.s32.totalorder %v3917_v45, %v19195_v53  ;;  %v16555_v26 = vand.u32 31, %v19195_v53  ;;  %v19305_v45 = vmov 0  ;;  %11428 = vmatprep.subr.msk.mxu0 %vm18870_vm9, %v19073_v12 }
 0xca9   :  { %12316 = vmatpush3.msk.msra.mxu1 %vm16502_vm7, %v19073_v12  ;;  %v19302_v20 = vsel %vm16540_vm13, 4294967295, %v19301_v20  ;;  %vm16548_vm7 = vcmp.eq.s32.totalorder %v3932_v10, %v19195_v53  ;;  %v4167_v10 = vld [vmem:[#allocation2 + $0x12] ss:$8 sm:$0x3]  ;;  %vm19309_vm9 = vnez %v19251_v49 }
 0xcaa   :  { %12317 = vmatprep.subr.msk.mxu1 %vm16514_vm0, %v19073_v12  ;;  %v19304_v41 = vsel %vm16548_vm7, 4294967295, %v19303_v41  ;;  %vm16561_vm0 = vcmp.eq.s32.totalorder %v3916_v29, %v19195_v53  ;;  %v4172_v29 = vrot.slane %v4167_v10, %v19166_v42  ;;  %v4176_v48 = vrot.slane %v4167_v10, %v19169_v30 }
 0xcab   :  { %12318 = vmatpush3.msk.msra.mxu1 %vm16523_vm15, %v19073_v12  ;;  %v19306_v45 = vsel %vm16561_vm0, 4294967295, %v19305_v45  ;;  %vm18868_vm15 = vcmp.eq.s32.totalorder %v16508_v43, %v19285_v9 }
 0xcac   :  { %12319 = vmatprep.subr.msk.mxu1 %vm16532_vm3, %v19073_v12  ;;  %vm18869_vm3 = vcmp.eq.s32.totalorder %v16555_v26, %v19281_v50 }
 0xcad   :  { %12320 = vmatpush3.msk.msra.mxu1 %vm16540_vm13, %v19073_v12  ;;  %11429 = vmatpush1.msk.msra.mxu0 %vm18869_vm3, %v19073_v12  ;;  %vm19308_vm3 = vnez %v19248_v40 }
 0xcae   :  { %12321 = vmatprep.subr.msk.mxu1 %vm16548_vm7, %v19073_v12  ;;  %11430 = vmatprep.subr.msk.mxu0 %vm18868_vm15, %v19073_v12  ;;  %vm19307_vm15 = vnez %v19245_v11 }
 0xcaf   :  { %12322 = vmatpush3.msk.msra.mxu1 %vm16561_vm0, %v19073_v12 }
 0xcb0   :  { %12326 = vmatprep.subr.msk.mxu1 %vm16238_vm4, %v19073_v12 }
 0xd50   :  { %v4453_v59 = vpop.f32.mrf.mxu0  ;;  %v4496_v57 = vpop.f32.mrf.mxu1 }
 0xd51   :  { %v4454_v38 = vadd.f32 %v4453_v59, %v4172_v29 }
 0xd52   :  { %v4455_v25 = vpop.f32.mrf.mxu0  ;;  %v4498_v60 = vpop.f32.mrf.mxu1 }
 0xd53   :  { %v4456_v53 = vadd.f32 %v4455_v25, %v4176_v48  ;;  %v16595_v51 = vadd.f32 %v4496_v57, %v4454_v38 }
 0xd54   :  { %v4457_v4 = vpop.f32.mrf.mxu0  ;;  %v4500_v16 = vpop.f32.mrf.mxu1 }
 0xd55   :  { %v4458_v61 = vadd.f32 %v4457_v4, %v4172_v29  ;;  %v16597_v36 = vadd.f32 %v4498_v60, %v4456_v53  ;;  %v4505_v10 = vmax.f32 %v16595_v51, 0.0 }
 0xd56   :  { %v4459_v14 = vpop.f32.mrf.mxu0  ;;  %v4502_v32 = vpop.f32.mrf.mxu1 }
 0xd57   :  { %v16599_v3 = vadd.f32 %v4500_v16, %v4458_v61  ;;  %v4460_v1 = vadd.f32 %v4459_v14, %v4176_v48  ;;  %v4506_v25 = vmax.f32 %v16597_v36, 0.0 }
 0xd59   :  { %v4507_v46 = vmax.f32 %v16599_v3, 0.0  ;;  %v16603_v59 = vadd.f32 %v4502_v32, %v4460_v1 }
 0xd5b   :  { %v4513_v4 = vadd.f32 %v4507_v46, %v4505_v10  ;;  %v4508_v53 = vmax.f32 %v16603_v59, 0.0 }
 0xd5d   :  { %v4514_v38 = vrot.slane %v4513_v4, 4  ;;  %v4520_v61 = vadd.f32 %v4508_v53, %v4506_v25 }
 0xd5f   :  { %v4515_v16 = vadd.f32 %v4514_v38, %v4513_v4  ;;  %v4521_v14 = vrot.slane %v4520_v61, 4 }
 0xd61   :  { %v4516_v60 = vrot.slane %v4515_v16, 2  ;;  %v4522_v32 = vadd.f32 %v4521_v14, %v4520_v61 }
 0xd63   :  { %v4517_v1 = vadd.f32 %v4516_v60, %v4515_v16  ;;  %v4523_v57 = vrot.slane %v4522_v32, 2 }
 0xd65   :  { %v4524_v48 = vadd.f32 %v4523_v57, %v4522_v32  ;;  %v4518_v29 = vrot.slane %v4517_v1, 1 }
 0xd67   :  { %v4525_v15 = vrot.slane %v4524_v48, 1  ;;  %v4519_v30 = vadd.f32 %v4518_v29, %v4517_v1 }
 0xd69   :  { %v4526_v56 = vadd.f32 %v4525_v15, %v4524_v48 }
 0xd6b   :  { %4591 = vmatprep.mubr.f32.mxu1 %v4526_v56 }
 0xd6c   :  { %4592 = vmatmul.mubr.f32.vlgmr.msra.gmra.mxu1 %v4519_v30 }
 0xd6d   :  { %12327 = vmatpush3.msk.msra.mxu1 %vm16276_vm12, %v19073_v12 }
 0xd6e   :  { %12328 = vmatprep.subr.msk.mxu1 %vm16289_vm8, %v19073_v12 }
 0xd6f   :  { %12329 = vmatpush3.msk.msra.mxu1 %vm16300_vm14, %v19073_v12 }
 0xd70   :  { %12330 = vmatprep.subr.msk.mxu1 %vm16317_vm11, %v19073_v12 }
 0xd71   :  { %12331 = vmatpush3.msk.msra.mxu1 %vm16326_vm5, %v19073_v12 }
 0xd72   :  { %12332 = vmatprep.subr.msk.mxu1 %vm16335_vm10, %v19073_v12 }
 0xd73   :  { %12333 = vmatpush3.msk.msra.mxu1 %vm16344_vm6, %v19073_v12  ;;  %vm19310_vm6 = vnez %v19254_v55 }
 0xd74   :  { %12334 = vmatprep.subr.msk.mxu1 %vm16353_vm2, %v19073_v12  ;;  %vm19311_vm2 = vnez %v19257_v47 }
 0xd75   :  { %12335 = vmatpush3.msk.msra.mxu1 %vm16362_vm1, %v19073_v12  ;;  %vm19312_vm1 = vnez %v19260_v58 }
 0xd76   :  { %12336 = vmatprep.subr.msk.mxu1 %vm19307_vm15, %v19073_v12  ;;  %vm19313_vm15 = vnez %v19263_v54 }
 0xd77   :  { %12337 = vmatpush3.msk.msra.mxu1 %vm19308_vm3, %v19073_v12  ;;  %vm19314_vm3 = vnez %v19266_v34 }
 0xd78   :  { %12338 = vmatprep.subr.msk.mxu1 %vm19309_vm9, %v19073_v12  ;;  %vm19315_vm9 = vnez %v19269_v2 }
 0xd79   :  { %12339 = vmatpush3.msk.msra.mxu1 %vm19310_vm6, %v19073_v12  ;;  %vm19316_vm6 = vnez %v19272_v27 }
 0xd7a   :  { %12340 = vmatprep.subr.msk.mxu1 %vm19311_vm2, %v19073_v12  ;;  %vm19317_vm2 = vnez %v19275_v24 }
 0xd7b   :  { %12341 = vmatpush3.msk.msra.mxu1 %vm19312_vm1, %v19073_v12  ;;  %vm19318_vm1 = vnez %v19278_v39 }
 0xd7c   :  { %12342 = vmatprep.subr.msk.mxu1 %vm19313_vm15, %v19073_v12  ;;  %vm19319_vm15 = vnez %v19283_v5 }
 0xd7d   :  { %12343 = vmatpush3.msk.msra.mxu1 %vm19314_vm3, %v19073_v12  ;;  %vm19320_vm3 = vnez %v19288_v63 }
 0xd7e   :  { %12344 = vmatprep.subr.msk.mxu1 %vm19315_vm9, %v19073_v12  ;;  %vm19321_vm9 = vnez %v19290_v33 }
 0xd7f   :  { %12345 = vmatpush3.msk.msra.mxu1 %vm19316_vm6, %v19073_v12  ;;  %vm19322_vm6 = vnez %v19292_v21 }
 0xd80   :  { %12346 = vmatprep.subr.msk.mxu1 %vm19317_vm2, %v19073_v12  ;;  %vm19323_vm2 = vnez %v19295_v17 }
 0xd81   :  { %12347 = vmatpush3.msk.msra.mxu1 %vm19318_vm1, %v19073_v12  ;;  %vm19324_vm1 = vnez %v19298_v62 }
 0xd82   :  { %12348 = vmatprep.subr.msk.mxu1 %vm19319_vm15, %v19073_v12  ;;  %vm19325_vm15 = vnez %v19300_v22 }
 0xd83   :  { %12349 = vmatpush3.msk.msra.mxu1 %vm19320_vm3, %v19073_v12 }
 0xd84   :  { %12350 = vmatprep.subr.msk.mxu1 %vm19321_vm9, %v19073_v12 }
 0xd85   :  { %12351 = vmatpush3.msk.msra.mxu1 %vm19322_vm6, %v19073_v12 }
 0xd86   :  { %12352 = vmatprep.subr.msk.mxu1 %vm19323_vm2, %v19073_v12  ;;  %vm18884_vm2 = vcmp.eq.s32.totalorder %v16555_v26, %v19285_v9 }
 0xd87   :  { %12353 = vmatpush3.msk.msra.mxu1 %vm19324_vm1, %v19073_v12  ;;  %vm18883_vm1 = vcmp.eq.s32.totalorder %v16508_v43, %v19198_v44  ;;  %11431 = vmatpush1.msk.msra.mxu0 %vm18884_vm2, %v19073_v12  ;;  %vm19327_vm2 = vcmask 261120  }
 0xd88   :  { %12354 = vmatprep.subr.msk.mxu1 %vm19325_vm15, %v19073_v12  ;;  %11432 = vmatprep.subr.msk.mxu0 %vm18883_vm1, %v19073_v12  ;;  %vm19326_vm1 = vcmp.eq.s32.totalorder %v16508_v43, %v19281_v50 }
 0xd89   :  { %12355 = vmatpush3.msk.msra.mxu1 %vm16540_vm13, %v19073_v12  ;;  %vm18886_vm13 = vcmp.eq.s32.totalorder %v16555_v26, %v19194_v28 }
 0xd8a   :  { %12356 = vmatprep.subr.msk.mxu1 %vm16548_vm7, %v19073_v12  ;;  %vm18885_vm7 = vcmp.eq.s32.totalorder %v16555_v26, %v19198_v44 }
 0xd8b   :  { %12357 = vmatpush3.msk.msra.mxu1 %vm16561_vm0, %v19073_v12  ;;  %vm18892_vm0 = vcmp.eq.s32.totalorder %v16508_v43, %v19194_v28  ;;  %11433 = vmatpush1.msk.msra.mxu0 %vm18885_vm7, %v19073_v12  ;;  %vm19328_vm7 = vcmp.eq.s32.totalorder %v16555_v26, %v19281_v50 }
 0xd8c   :  { %11434 = vmatprep.subr.msk.mxu0 %vm18892_vm0, %v19073_v12 }
 0xd8d   :  { %11435 = vmatpush1.msk.msra.mxu0 %vm18886_vm13, %v19073_v12  ;;  %vm19329_vm13 = vcmp.eq.s32.totalorder %v16508_v43, %v19285_v9 }
 0xd8e   :  { %11469 = vmatprep.subr.msk.mxu0 %vm19326_vm1, %v19073_v12  ;;  %vm19330_vm1 = vcmp.eq.s32.totalorder %v16555_v26, %v19285_v9 }
 0xe2c   :  { %v12323_v56 = vpop.f32.mrf.mxu1 }
 0xe2e   :  { %v12324_v30 = vpop.f32.mrf.mxu1 }
 0xe2f   :  { %v12325_v15 = vadd.f32 %v12324_v30, %v12323_v56 }
 0xe31   :  { %11436 = vmatmul.mubr.msk.f32.vlgmr.msra.gmra.mxu0 %vm19327_vm2, %v12325_v15  ;;  %vm19331_vm2 = vcmp.eq.s32.totalorder %v16508_v43, %v19198_v44 }
 0xe32   :  { %11470 = vmatpush1.msk.msra.mxu0 %vm19328_vm7, %v19073_v12  ;;  %4840 = vmatprep.mubr.f32.mxu0 %v19133_v13  ;;  %vm19332_vm7 = vcmp.eq.s32.totalorder %v16555_v26, %v19198_v44 }
 0xe33   :  { %11471 = vmatprep.subr.msk.mxu0 %vm19329_vm13, %v19073_v12  ;;  %vm19333_vm13 = vcmp.eq.s32.totalorder %v16555_v26, %v19194_v28 }
 0xe34   :  { %11472 = vmatpush1.msk.msra.mxu0 %vm19330_vm1, %v19073_v12  ;;  %vm19334_vm1 = vcmask 261120  }
 0xe35   :  { %11473 = vmatprep.subr.msk.mxu0 %vm19331_vm2, %v19073_v12  ;;  %vm19336_vm2 = vmmov %vm19334_vm1 }
 0xe36   :  { %11474 = vmatpush1.msk.msra.mxu0 %vm19332_vm7, %v19073_v12 }
 0xe37   :  { %11475 = vmatprep.subr.msk.mxu0 %vm18892_vm0, %v19073_v12 }
 0xe38   :  { %11476 = vmatpush1.msk.msra.mxu0 %vm19333_vm13, %v19073_v12 }
 0xef1   :  { %v4666_v4 = vpop.f32.mrf.mxu0 }
 0xef2   :  { %v4671_v38 = vmul.f32 0.0078125, %v4666_v4 }
 0xef3   :  { %v4668_v61 = vpop.f32.mrf.mxu0 }
 0xef4   :  { %v4676_v16 = vrot.slane %v4671_v38, %v19166_v42  ;;  %v4672_v14 = vmul.f32 0.0078125, %v4668_v61 }
 0xef6   :  { %v16775_v60 = vsub.f32 %v4505_v10, %v4676_v16  ;;  %v16779_v32 = vsub.f32 %v4507_v46, %v4676_v16  ;;  %v4680_v1 = vrot.slane %v4672_v14, %v19166_v42 }
 0xef8   :  { %v4685_v57 = vmul.f32 %v16775_v60, %v16775_v60  ;;  %v4687_v48 = vmul.f32 %v16779_v32, %v16779_v32  ;;  %v16788_v29 = vsub.f32 %v4506_v25, %v4680_v1  ;;  %v16792_v51 = vsub.f32 %v4508_v53, %v4680_v1 }
 0xefa   :  { %v4689_v10 = vadd.f32 %v4687_v48, %v4685_v57  ;;  %v4686_v3 = vmul.f32 %v16788_v29, %v16788_v29  ;;  %v4688_v46 = vmul.f32 %v16792_v51, %v16792_v51  ;;  %v13591_v57 = vld [vmem:[#allocation12 + $0x14] ss:$8 sps:$4 sm:$0xff]   ;;  %v13595_v48 = vld [vmem:[%s18595_s10 + $0x170] ss:$8 sps:$4 sm:$0xff]  }
 0xefb   :  { %4951 = vmatprep.subr.bf16.mxu0 %v13591_v57  ;;  %v13592_v57 = vld [vmem:[#allocation12] ss:$8 sps:$4 sm:$0xff]  }
 0xefc   :  { %v4690_v56 = vrot.slane %v4689_v10, 4  ;;  %v4696_v30 = vadd.f32 %v4688_v46, %v4686_v3  ;;  %v13600_v3 = vld [vmem:[%s18595_s10 + $0x164] ss:$8 sps:$4 sm:$0xff]   ;;  %v13598_v46 = vld [vmem:[%s18595_s10 + $0x160] ss:$8 sps:$4 sm:$0xff]  }
 0xefe   :  { %v4691_v15 = vadd.f32 %v4690_v56, %v4689_v10  ;;  %v4697_v4 = vrot.slane %v4696_v30, 4  ;;  %v13597_v10 = vld [vmem:[%s18595_s10 + $0x174] ss:$8 sps:$4 sm:$0xff]  }
 0xeff   :  { %5670 = vmatprep.subr.bf16.mxu1 %v13597_v10  ;;  %v13606_v56 = vld [vmem:[%s18595_s10 + $0x154] ss:$8 sps:$4 sm:$0xff]   ;;  %v13601_v10 = vld [vmem:[%s18595_s10 + $0x70] ss:$8 sps:$4 sm:$0xff]  }
 0xf00   :  { %v4698_v38 = vadd.f32 %v4697_v4, %v4696_v30  ;;  %v4692_v61 = vrot.slane %v4691_v15, 2  ;;  %v13604_v30 = vld [vmem:[%s18595_s10 + $0x150] ss:$8 sps:$4 sm:$0xff]   ;;  %v13610_v4 = vld [vmem:[%s18595_s10 + $0x140] ss:$8 sps:$4 sm:$0xff]  }
 0xf02   :  { %v4699_v36 = vrot.slane %v4698_v38, 2  ;;  %v4693_v25 = vadd.f32 %v4692_v61, %v4691_v15  ;;  %v13612_v15 = vld [vmem:[%s18595_s10 + $0x144] ss:$8 sps:$4 sm:$0xff]   ;;  %v13616_v61 = vld [vmem:[%s18595_s10 + $0x130] ss:$8 sps:$4 sm:$0xff]  }
 0xf04   :  { %v4700_v16 = vadd.f32 %v4699_v36, %v4698_v38  ;;  %v4694_v14 = vrot.slane %v4693_v25, 1  ;;  %v13618_v38 = vld [vmem:[%s18595_s10 + $0x134] ss:$8 sps:$4 sm:$0xff]   ;;  %v13624_v36 = vld [vmem:[%s18595_s10 + $0x124] ss:$8 sps:$4 sm:$0xff]  }
 0xf06   :  { %v4701_v59 = vrot.slane %v4700_v16, 1  ;;  %v4695_v1 = vadd.f32 %v4694_v14, %v4693_v25  ;;  %v13622_v25 = vld [vmem:[%s18595_s10 + $0x120] ss:$8 sps:$4 sm:$0xff]  }
 0xf08   :  { %v4702_v53 = vadd.f32 %v4701_v59, %v4700_v16  ;;  %v13589_v59 = vld [vmem:[#allocation12 + $0x10] ss:$8 sps:$4 sm:$0xff]  }
 0xf0a   :  { %4767 = vmatprep.mubr.f32.mxu1 %v4702_v53 }
 0xf0b   :  { %4768 = vmatmul.mubr.f32.vlgmr.msra.gmra.mxu1 %v4695_v1  ;;  %v13594_v1 = vld [vmem:[#allocation12 + $0x4] ss:$8 sps:$4 sm:$0xff]  }
 0xf0c   :  { %5671 = vmatpush1.bf16.msra.mxu1 %v13595_v48  ;;  %v13603_v48 = vld [vmem:[%s18595_s10 + $0x74] ss:$8 sps:$4 sm:$0xff]  }
 0xf0d   :  { %5672 = vmatprep.subr.bf16.mxu1 %v13600_v3  ;;  %v13609_v3 = vld [vmem:[%s18595_s10 + $0x64] ss:$8 sps:$4 sm:$0xff]  }
 0xf10   :  { %5673 = vmatpush1.bf16.msra.mxu1 %v13598_v46  ;;  %v19335_v46 = vld [vmem:[#allocation94_spill] sm:$0xff] }
 0xf11   :  { %5674 = vmatprep.subr.bf16.mxu1 %v13606_v56  ;;  %v13607_v56 = vld [vmem:[%s18595_s10 + $0x60] ss:$8 sps:$4 sm:$0xff]  }
 0xf14   :  { %5675 = vmatpush1.bf16.msra.mxu1 %v13604_v30  ;;  %v13615_v30 = vld [vmem:[%s18595_s10 + $0x54] ss:$8 sps:$4 sm:$0xff]  }
 0xf15   :  { %5676 = vmatprep.subr.bf16.mxu1 %v13612_v15  ;;  %v13613_v15 = vld [vmem:[%s18595_s10 + $0x50] ss:$8 sps:$4 sm:$0xff]  }
 0xf18   :  { %5677 = vmatpush1.bf16.msra.mxu1 %v13610_v4  ;;  %v13621_v4 = vld [vmem:[%s18595_s10 + $0x44] ss:$8 sps:$4 sm:$0xff]  }
 0xf19   :  { %5678 = vmatprep.subr.bf16.mxu1 %v13618_v38  ;;  %v13619_v38 = vld [vmem:[%s18595_s10 + $0x40] ss:$8 sps:$4 sm:$0xff]  }
 0xf1c   :  { %5679 = vmatpush1.bf16.msra.mxu1 %v13616_v61  ;;  %v13627_v61 = vld [vmem:[%s18595_s10 + $0x34] ss:$8 sps:$4 sm:$0xff]  }
 0xf1d   :  { %5680 = vmatprep.subr.bf16.mxu1 %v13624_v36  ;;  %v13625_v36 = vld [vmem:[%s18595_s10 + $0x30] ss:$8 sps:$4 sm:$0xff]  }
 0xf20   :  { %5681 = vmatpush1.bf16.msra.mxu1 %v13622_v25  ;;  %v13630_v25 = vld [vmem:[%s18595_s10 + $0x114] ss:$8 sps:$4 sm:$0xff]  }
 0xf21   :  { %5682 = vmatprep.subr.bf16.mxu1 %v13630_v25  ;;  %v13652_v25 = vld [vmem:[%s18595_s10 + $0x1d0] ss:$8 sps:$4 sm:$0xff]  }
 0xfcb   :  { %v12358_v16 = vpop.f32.mrf.mxu1 }
 0xfcd   :  { %v12359_v14 = vpop.f32.mrf.mxu1 }
 0xfce   :  { %v12360_v53 = vadd.f32 %v12359_v14, %v12358_v16  ;;  %v13628_v16 = vld [vmem:[%s18595_s10 + $0x110] ss:$8 sps:$4 sm:$0xff]   ;;  %v13633_v14 = vld [vmem:[%s18595_s10 + $0x24] ss:$8 sps:$4 sm:$0xff]  }
 0xfcf   :  { %5683 = vmatpush1.bf16.msra.mxu1 %v13628_v16  ;;  %v13655_v16 = vld [vmem:[%s18595_s10 + $0xe0] ss:$8 sps:$4 sm:$0xff]  }
 0xfd0   :  { %11477 = vmatmul.mubr.msk.f32.vlgmr.msra.gmra.mxu0 %vm19334_vm1, %v12360_v53  ;;  %v13636_v53 = vld [vmem:[%s18595_s10 + $0x104] ss:$8 sps:$4 sm:$0xff]  }
 0xfd1   :  { %4952 = vmatpush1.bf16.msra.mxu0 %v13589_v59  ;;  %4971 = vmatprep.mubr.bf16.mxu0 %v19171_v18  ;;  %v13631_v59 = vld [vmem:[%s18595_s10 + $0x20] ss:$8 sps:$4 sm:$0xff]   ;;  %v4510_v18 = vld [vmem:[#allocation2 + $0x13] ss:$8 sm:$0x3] }
 0xfd2   :  { %4953 = vmatprep.subr.bf16.mxu0 %v13594_v1  ;;  %v13634_v1 = vld [vmem:[%s18595_s10 + $0x100] ss:$8 sps:$4 sm:$0xff]   ;;  %5684 = vmatprep.subr.bf16.mxu1 %v13636_v53 }
 0xfd3   :  { %5685 = vmatpush1.bf16.msra.mxu1 %v13634_v1  ;;  %v13658_v53 = vld [vmem:[%s18595_s10 + $0x1c0] ss:$8 sps:$4 sm:$0xff]   ;;  %v13663_v1 = vld [vmem:[%s18595_s10 + $0xd4] ss:$8 sps:$4 sm:$0xff]  }
 0xfd5   :  { %4954 = vmatpush1.bf16.msra.mxu0 %v13592_v57  ;;  %v13639_v57 = vld [vmem:[%s18595_s10 + $0x14] ss:$8 sps:$4 sm:$0xff]  }
 0xfd6   :  { %5627 = vmatprep.subr.bf16.mxu0 %v13603_v48  ;;  %v13637_v48 = vld [vmem:[%s18595_s10 + $0x10] ss:$8 sps:$4 sm:$0xff]  }
 0xfd8   :  { %11482 = vmatmul.mubr.msk.bf16.vlgmr.msra.gmra.mxu0 %vm19336_vm2, %v19335_v46  ;;  %v19338_v46 = vld [vmem:[#allocation95_spill] sm:$0xff]  ;;  %vm19345_vm2 = vnez %v19236_v8 }
 0xfd9   :  { %5628 = vmatpush1.bf16.msra.mxu0 %v13601_v10  ;;  %v13642_v10 = vld [vmem:[%s18595_s10 + $0x1f4] ss:$8 sps:$4 sm:$0xff]  }
 0xfda   :  { %5629 = vmatprep.subr.bf16.mxu0 %v13609_v3  ;;  %v13640_v3 = vld [vmem:[%s18595_s10 + $0x1f0] ss:$8 sps:$4 sm:$0xff]   ;;  %5686 = vmatprep.subr.bf16.mxu1 %v13642_v10 }
 0xfdb   :  { %5687 = vmatpush2.bf16.msra.mxu1 %v13640_v3  ;;  %v13664_v10 = vld [vmem:[%s18595_s10 + $0x1b0] ss:$8 sps:$4 sm:$0xff]   ;;  %v13669_v3 = vld [vmem:[%s18595_s10 + $0xc4] ss:$8 sps:$4 sm:$0xff]  }
 0xfdd   :  { %5630 = vmatpush1.bf16.msra.mxu0 %v13607_v56  ;;  %v13645_v56 = vld [vmem:[%s18595_s10 + $0x4] ss:$8 sps:$4 sm:$0xff]  }
 0xfde   :  { %5631 = vmatprep.subr.bf16.mxu0 %v13615_v30  ;;  %v13643_v30 = vld [vmem:[%s18595_s10] ss:$8 sps:$4 sm:$0xff]  }
 0xfe1   :  { %5632 = vmatpush1.bf16.msra.mxu0 %v13613_v15  ;;  %v13648_v15 = vld [vmem:[%s18595_s10 + $0x1e4] ss:$8 sps:$4 sm:$0xff]  }
 0xfe2   :  { %5633 = vmatprep.subr.bf16.mxu0 %v13621_v4  ;;  %v13646_v4 = vld [vmem:[%s18595_s10 + $0x1e0] ss:$8 sps:$4 sm:$0xff]   ;;  %5688 = vmatprep.subr.bf16.mxu1 %v13648_v15 }
 0xfe3   :  { %5689 = vmatpush2.bf16.msra.mxu1 %v13646_v4  ;;  %v13670_v15 = vld [vmem:[%s18595_s10 + $0x1a0] ss:$8 sps:$4 sm:$0xff]   ;;  %v13675_v4 = vld [vmem:[%s18595_s10 + $0xb4] ss:$8 sps:$4 sm:$0xff]  }
 0xfe5   :  { %5634 = vmatpush1.bf16.msra.mxu0 %v13619_v38  ;;  %v13651_v38 = vld [vmem:[%s18595_s10 + $0xf4] ss:$8 sps:$4 sm:$0xff]  }
 0xfe6   :  { %5635 = vmatprep.subr.bf16.mxu0 %v13627_v61  ;;  %v13649_v61 = vld [vmem:[%s18595_s10 + $0xf0] ss:$8 sps:$4 sm:$0xff]  }
 0xfe9   :  { %5636 = vmatpush1.bf16.msra.mxu0 %v13625_v36  ;;  %v13654_v36 = vld [vmem:[%s18595_s10 + $0x1d4] ss:$8 sps:$4 sm:$0xff]  }
 0xfea   :  { %5637 = vmatprep.subr.bf16.mxu0 %v13633_v14  ;;  %5690 = vmatprep.subr.bf16.mxu1 %v13654_v36  ;;  %v13657_v14 = vld [vmem:[%s18595_s10 + $0xe4] ss:$8 sps:$4 sm:$0xff]   ;;  %v13676_v36 = vld [vmem:[%s18595_s10 + $0x190] ss:$8 sps:$4 sm:$0xff]  }
 0xfeb   :  { %5691 = vmatpush2.bf16.msra.mxu1 %v13652_v25  ;;  %v13681_v25 = vld [vmem:[%s18595_s10 + $0xa4] ss:$8 sps:$4 sm:$0xff]  }
 0xfed   :  { %5638 = vmatpush1.bf16.msra.mxu0 %v13631_v59  ;;  %v13660_v59 = vld [vmem:[%s18595_s10 + $0x1c4] ss:$8 sps:$4 sm:$0xff]  }
 0xfee   :  { %5639 = vmatprep.subr.bf16.mxu0 %v13639_v57  ;;  %5692 = vmatprep.subr.bf16.mxu1 %v13660_v59  ;;  %v13661_v57 = vld [vmem:[%s18595_s10 + $0xd0] ss:$8 sps:$4 sm:$0xff]   ;;  %v13684_v59 = vld [vmem:[%s18595_s10 + $0x184] ss:$8 sps:$4 sm:$0xff]  }
 0xfef   :  { %5693 = vmatpush2.bf16.msra.mxu1 %v13658_v53  ;;  %v13687_v53 = vld [vmem:[%s18595_s10 + $0x94] ss:$8 sps:$4 sm:$0xff]  }
 0xff1   :  { %5640 = vmatpush1.bf16.msra.mxu0 %v13637_v48  ;;  %v13666_v48 = vld [vmem:[%s18595_s10 + $0x1b4] ss:$8 sps:$4 sm:$0xff]  }
 0xff2   :  { %5641 = vmatprep.subr.bf16.mxu0 %v13645_v56  ;;  %5694 = vmatprep.subr.bf16.mxu1 %v13666_v48  ;;  %v13667_v56 = vld [vmem:[%s18595_s10 + $0xc0] ss:$8 sps:$4 sm:$0xff]  }
 0xff3   :  { %5695 = vmatpush2.bf16.msra.mxu1 %v13664_v10  ;;  %v13688_v48 = vld [vmem:[%s18595_s10 + $0x80] ss:$8 sps:$4 sm:$0xff]   ;;  %v13693_v10 = vld [vmem:[%s18595_s10 + $0x274] ss:$8 sps:$4 sm:$0xff]  }
 0xff5   :  { %5642 = vmatpush1.bf16.msra.mxu0 %v13643_v30  ;;  %v13672_v30 = vld [vmem:[%s18595_s10 + $0x1a4] ss:$8 sps:$4 sm:$0xff]  }
 0xff6   :  { %5643 = vmatprep.subr.bf16.mxu0 %v13651_v38  ;;  %5696 = vmatprep.subr.bf16.mxu1 %v13672_v30  ;;  %v13673_v38 = vld [vmem:[%s18595_s10 + $0xb0] ss:$8 sps:$4 sm:$0xff]  }
 0xff7   :  { %5697 = vmatpush2.bf16.msra.mxu1 %v13670_v15 }
 0xff9   :  { %5644 = vmatpush2.bf16.msra.mxu0 %v13649_v61  ;;  %v13678_v61 = vld [vmem:[%s18595_s10 + $0x194] ss:$8 sps:$4 sm:$0xff]  }
 0xffa   :  { %5645 = vmatprep.subr.bf16.mxu0 %v13657_v14  ;;  %5698 = vmatprep.subr.bf16.mxu1 %v13678_v61  ;;  %v13682_v14 = vld [vmem:[%s18595_s10 + $0x180] ss:$8 sps:$4 sm:$0xff]  }
 0xffb   :  { %5699 = vmatpush2.bf16.msra.mxu1 %v13676_v36 }
 0xffc   :  { %5700 = vmatprep.subr.bf16.mxu1 %v13684_v59 }
 0xffd   :  { %5646 = vmatpush2.bf16.msra.mxu0 %v13655_v16  ;;  %v13679_v16 = vld [vmem:[%s18595_s10 + $0xa0] ss:$8 sps:$4 sm:$0xff]  }
 0xffe   :  { %5647 = vmatprep.subr.bf16.mxu0 %v13663_v1  ;;  %v13685_v1 = vld [vmem:[%s18595_s10 + $0x90] ss:$8 sps:$4 sm:$0xff]  }
 0xfff   :  { %5701 = vmatpush2.bf16.msra.mxu1 %v13682_v14  ;;  %v4907_v14 = vld [vmem:[#allocation2 + $0x15] ss:$8 sm:$0x3] }
0x1000   :  { %12361 = vmatprep.subr.msk.mxu1 %vm16238_vm4, %v19073_v12 }
0x1001   :  { %5648 = vmatpush2.bf16.msra.mxu0 %v13661_v57  ;;  %v13690_v57 = vld [vmem:[%s18595_s10 + $0x84] ss:$8 sps:$4 sm:$0xff]  }
0x1002   :  { %5649 = vmatprep.subr.bf16.mxu0 %v13669_v3 }
0x1005   :  { %5650 = vmatpush2.bf16.msra.mxu0 %v13667_v56 }
0x1006   :  { %5651 = vmatprep.subr.bf16.mxu0 %v13675_v4 }
0x1009   :  { %5652 = vmatpush2.bf16.msra.mxu0 %v13673_v38 }
0x100a   :  { %5653 = vmatprep.subr.bf16.mxu0 %v13681_v25 }
0x100d   :  { %5654 = vmatpush2.bf16.msra.mxu0 %v13679_v16 }
0x100e   :  { %5655 = vmatprep.subr.bf16.mxu0 %v13687_v53 }
0x1011   :  { %5656 = vmatpush2.bf16.msra.mxu0 %v13685_v1  ;;  %v4912_v1 = vrot.slane %v4907_v14, %v19166_v42 }
0x1012   :  { %5657 = vmatprep.subr.bf16.mxu0 %v13690_v57  ;;  %v19337_v57 = vld [vmem:[#allocation88_spill] sm:$0xff] }
0x1015   :  { %5658 = vmatpush2.bf16.msra.mxu0 %v13688_v48  ;;  %v4916_v48 = vrot.slane %v4907_v14, %v19337_v57 }
0x1016   :  { %5713 = vmatprep.subr.bf16.mxu0 %v13693_v10 }
0x1090   :  { %v4842_v3 = vpop.f32.mrf.mxu0 }
0x1091   :  { %v4847_v56 = vmul.f32 0.0078125, %v4842_v3 }
0x1092   :  { %v4844_v30 = vpop.f32.mrf.mxu0 }
0x1093   :  { %v4849_v15 = vadd.f32 1e-05, %v4847_v56  ;;  %v4848_v4 = vmul.f32 0.0078125, %v4844_v30 }
0x1095   :  { %v4850_v38 = vadd.f32 1e-05, %v4848_v4  ;;  %13975 = vrsqrt.f32 %v4849_v15  ;;  %v4512_v4 = vld [vmem:[#allocation2 + $0x14] ss:$8 sm:$0x3] }
0x1096   :  { %v4891_v28 = vrot.slane %v4512_v4, %v19166_v42  ;;  %v4895_v14 = vrot.slane %v4512_v4, %v19337_v57 }
0x1097   :  { %13977 = vrsqrt.f32 %v4850_v38 }
0x1098   :  { %v4973_v61 = vpop.f32.mrf.mxu0 }
0x1099   :  { %v4974_v56 = vadd.f32 %v4973_v61, %v4912_v1 }
0x109a   :  { %v4975_v36 = vpop.f32.mrf.mxu0 }
0x109b   :  { %v4976_v30 = vadd.f32 %v4975_v36, %v4916_v48  ;;  %v4980_v0 = vmax.f32 %v4974_v56, 0.0 }
0x109c   :  { %v4977_v25 = vpop.f32.mrf.mxu0 }
0x109d   :  { %v4981_v25 = vmax.f32 %v4976_v30, 0.0  ;;  %v4993_v1 = vrot.slane %v4980_v0, %v19337_v57 }
0x109e   :  { %v4978_v16 = vpop.f32.mrf.mxu0 }
0x109f   :  { %v4989_v48 = vrot.slane %v4981_v25, %v19166_v42 }
0x10a2   :  { %v13976_v59 = vpop.eup %13975 }
0x10a4   :  { %v13978_v53 = vpop.eup %13977 }
0x10a5   :  { %v4855_v10 = vcombine.low %v13976_v59, %v13978_v53 }
0x10a7   :  { %v4862_v3 = vrot.slane %v4855_v10, %v19338_v46  ;;  %v4997_v10 = vrot.slane %v4981_v25, %v19337_v57 }
0x10a9   :  { %v4869_v15 = vrot.slane %v4862_v3, %v19338_v46 }
0x10ab   :  { %v4871_v38 = vmul.f32 %v4869_v15, %v4510_v18  ;;  %v4985_v18 = vrot.slane %v4980_v0, %v19166_v42 }
0x10ad   :  { %v4876_v16 = vrot.slane %v4871_v38, %v19166_v42  ;;  %v4880_v44 = vrot.slane %v4871_v38, %v19337_v57 }
0x10af   :  { %v4883_v59 = vmul.f32 %v4876_v16, %v16775_v60  ;;  %v4885_v53 = vmul.f32 %v4876_v16, %v16779_v32  ;;  %v4884_v61 = vmul.f32 %v4880_v44, %v16788_v29  ;;  %v4886_v36 = vmul.f32 %v4880_v44, %v16792_v51 }
0x10b1   :  { %v4898_v3 = vadd.f32 %v4891_v28, %v4883_v59  ;;  %v4900_v56 = vadd.f32 %v4891_v28, %v4885_v53  ;;  %v4899_v30 = vadd.f32 %v4895_v14, %v4884_v61  ;;  %v4901_v15 = vadd.f32 %v4895_v14, %v4886_v36  ;;  %v13691_v36 = vld [vmem:[%s18595_s10 + $0x270] ss:$8 sps:$4 sm:$0xff]  }
0x10b3   :  { %v4998_v4 = vadd.f32 %v4985_v18, %v4898_v3  ;;  %v5000_v60 = vadd.f32 %v4993_v1, %v4900_v56  ;;  %v4999_v38 = vadd.f32 %v4989_v48, %v4899_v30  ;;  %v5001_v32 = vadd.f32 %v4997_v10, %v4901_v15  ;;  %v19339_v18 = vld [vmem:[#allocation41_spill] sm:$0xff]  ;;  %v13696_v48 = vld [vmem:[%s18595_s10 + $0x264] ss:$8 sps:$4 sm:$0xff]   ;;  %v19341_v10 = vld [vmem:[#allocation86_spill] sm:$0xff] }
0x10b4   :  { %vm19340_vm7 = vnez %v19339_v18  ;;  %vm19342_vm13 = vnez %v19341_v10  ;;  %v19343_v3 = vld [vmem:[#allocation38_spill] sm:$0xff]  ;;  %v13694_v15 = vld [vmem:[%s18595_s10 + $0x260] ss:$8 sps:$4 sm:$0xff]  }
0x10b5   :  { %v17016_v16 = vpack.c.bf16 %v5000_v60, %v4998_v4  ;;  %v5003_v29 = vpack.c.bf16 %v5001_v32, %v4999_v38  ;;  %vm19344_vm1 = vnez %v19343_v3  ;;  %v19346_v30 = vld [vmem:[#allocation90_spill] sm:$0xff]  ;;  %v13702_v38 = vld [vmem:[%s18595_s10 + $0x244] ss:$8 sps:$4 sm:$0xff]   ;;  %v13700_v32 = vld [vmem:[%s18595_s10 + $0x240] ss:$8 sps:$4 sm:$0xff]  }
0x10b6   :  { %vm19347_vm0 = vnez %v19346_v30  ;;  %v13699_v4 = vld [vmem:[%s18595_s10 + $0x254] ss:$8 sps:$4 sm:$0xff]   ;;  %v13697_v60 = vld [vmem:[%s18595_s10 + $0x250] ss:$8 sps:$4 sm:$0xff]  }
0x10b7   :  { %v5005_v44 = vshrl.u32 %v17016_v16, 16  ;;  %v5009_v51 = vshrl.u32 %v5003_v29, 16  ;;  %v5017_v46 = vshll.u32 %v5003_v29, 16  ;;  %5702 = vmatprep.mubr.bf16.mxu1 %v5003_v29  ;;  %v5014_v0 = vshll.u32 %v17016_v16, 16  ;;  %v13705_v29 = vld [vmem:[%s18595_s10 + $0x234] ss:$8 sps:$4 sm:$0xff]  }
0x10b8   :  { %5703 = vmatmul.mubr.bf16.vlgmr.msra.gmra.mxu1 %v17016_v16  ;;  %v19372_v16 = vld [vmem:[#allocation33_spill] sm:$0xff] }
0x10b9   :  { %v5011_v25 = vrot.slane %v5009_v51, 7  ;;  %v5007_v28 = vrot.slane %v5005_v44, 7  ;;  %v5028_v14 = vrot.slane %v5017_v46, 1  ;;  %12362 = vmatpush3.msk.msra.mxu1 %vm16276_vm12, %v19073_v12 }
0x10ba   :  { %12363 = vmatprep.subr.msk.mxu1 %vm16289_vm8, %v19073_v12 }
0x10bb   :  { %v5019_v59 = vor.u32 %v5017_v46, %v5011_v25  ;;  %v5016_v53 = vor.u32 %v5014_v0, %v5007_v28  ;;  %v5029_v61 = vor.u32 %v5028_v14, %v5009_v51  ;;  %12364 = vmatpush3.msk.msra.mxu1 %vm16300_vm14, %v19073_v12  ;;  %v13703_v51 = vld [vmem:[%s18595_s10 + $0x230] ss:$8 sps:$4 sm:$0xff]  }
0x10bc   :  { %12365 = vmatprep.subr.msk.mxu1 %vm16317_vm11, %v19073_v12 }
0x10bd   :  { %v5023_v1 = vsel %vm19340_vm7, %v5011_v25, %v5019_v59  ;;  %v5022_v46 = vsel %vm19340_vm7, %v5007_v28, %v5016_v53  ;;  %12366 = vmatpush3.msk.msra.mxu1 %vm16326_vm5, %v19073_v12  ;;  %v5035_v56 = vsel %vm19344_vm1, %v5029_v61, %v5028_v14  ;;  %vm19349_vm7 = vnez %v19242_v52  ;;  %v13708_v25 = vld [vmem:[%s18595_s10 + $0x224] ss:$8 sps:$4 sm:$0xff]   ;;  %v13706_v28 = vld [vmem:[%s18595_s10 + $0x220] ss:$8 sps:$4 sm:$0xff]   ;;  %v13711_v14 = vld [vmem:[%s18595_s10 + $0x214] ss:$8 sps:$4 sm:$0xff]  }
0x10be   :  { %11579 = vmatprep.mubr.msk.bf16.mxu0 %vm19342_vm13, %v5023_v1  ;;  %12367 = vmatprep.subr.msk.mxu1 %vm16335_vm10, %v19073_v12  ;;  %vm19351_vm10 = vnez %v19248_v40  ;;  %v13709_v59 = vld [vmem:[%s18595_s10 + $0x210] ss:$8 sps:$4 sm:$0xff]   ;;  %v13714_v53 = vld [vmem:[%s18595_s10 + $0x204] ss:$8 sps:$4 sm:$0xff]   ;;  %v13712_v61 = vld [vmem:[%s18595_s10 + $0x200] ss:$8 sps:$4 sm:$0xff]  }
0x10bf   :  { %11580 = vmatmul.mubr.msk.bf16.vlgmr.msra.gmra.mxu0 %vm19342_vm13, %v5022_v46  ;;  %12368 = vmatpush3.msk.msra.mxu1 %vm19345_vm2, %v19073_v12  ;;  %vm19348_vm13 = vnez %v19239_v23  ;;  %vm19350_vm2 = vnez %v19245_v11  ;;  %v13715_v1 = vld [vmem:[%s18595_s10 + $0x2f0] ss:$8 sps:$4 sm:$0xff]   ;;  %v13720_v46 = vld [vmem:[%s18595_s10 + $0x2e4] ss:$8 sps:$4 sm:$0xff]  }
0x10c0   :  { %5714 = vmatpush1.bf16.msra.mxu0 %v13691_v36  ;;  %11581 = vmatprep.mubr.msk.bf16.mxu0 %vm19347_vm0, %v5035_v56  ;;  %v13717_v36 = vld [vmem:[%s18595_s10 + $0x2f4] ss:$8 sps:$4 sm:$0xff]  }
0x10c1   :  { %5715 = vmatprep.subr.bf16.mxu0 %v13696_v48  ;;  %12369 = vmatprep.subr.msk.mxu1 %vm19348_vm13, %v19073_v12  ;;  %vm19354_vm13 = vnez %v19257_v47  ;;  %v13718_v48 = vld [vmem:[%s18595_s10 + $0x2e0] ss:$8 sps:$4 sm:$0xff]   ;;  %v13723_v56 = vld [vmem:[%s18595_s10 + $0x2d4] ss:$8 sps:$4 sm:$0xff]  }
0x10c2   :  { %12370 = vmatpush3.msk.msra.mxu1 %vm19349_vm7, %v19073_v12  ;;  %vm19352_vm7 = vnez %v19251_v49 }
0x10c3   :  { %12371 = vmatprep.subr.msk.mxu1 %vm19350_vm2, %v19073_v12  ;;  %vm19353_vm2 = vnez %v19254_v55 }
0x10c4   :  { %5716 = vmatpush1.bf16.msra.mxu0 %v13694_v15  ;;  %12372 = vmatpush3.msk.msra.mxu1 %vm19351_vm10, %v19073_v12  ;;  %vm19355_vm10 = vnez %v19260_v58  ;;  %v13721_v15 = vld [vmem:[%s18595_s10 + $0x2d0] ss:$8 sps:$4 sm:$0xff]  }
0x10c5   :  { %5717 = vmatprep.subr.bf16.mxu0 %v13699_v4  ;;  %12373 = vmatprep.subr.msk.mxu1 %vm19352_vm7, %v19073_v12  ;;  %vm19358_vm7 = vnez %v19269_v2  ;;  %v13726_v4 = vld [vmem:[%s18595_s10 + $0x2c4] ss:$8 sps:$4 sm:$0xff]  }
0x10c6   :  { %12374 = vmatpush3.msk.msra.mxu1 %vm19353_vm2, %v19073_v12  ;;  %vm19356_vm2 = vnez %v19263_v54 }
0x10c7   :  { %12375 = vmatprep.subr.msk.mxu1 %vm19354_vm13, %v19073_v12  ;;  %vm19357_vm13 = vnez %v19266_v34 }
0x10c8   :  { %5718 = vmatpush1.bf16.msra.mxu0 %v13697_v60  ;;  %12376 = vmatpush3.msk.msra.mxu1 %vm19355_vm10, %v19073_v12  ;;  %vm19359_vm10 = vnez %v19272_v27  ;;  %v13724_v60 = vld [vmem:[%s18595_s10 + $0x2c0] ss:$8 sps:$4 sm:$0xff]  }
0x10c9   :  { %5719 = vmatprep.subr.bf16.mxu0 %v13702_v38  ;;  %12377 = vmatprep.subr.msk.mxu1 %vm19356_vm2, %v19073_v12  ;;  %vm19362_vm2 = vnez %v19283_v5  ;;  %v13729_v38 = vld [vmem:[%s18595_s10 + $0x2b4] ss:$8 sps:$4 sm:$0xff]  }
0x10ca   :  { %12378 = vmatpush3.msk.msra.mxu1 %vm19357_vm13, %v19073_v12  ;;  %vm19360_vm13 = vnez %v19275_v24 }
0x10cb   :  { %12379 = vmatprep.subr.msk.mxu1 %vm19358_vm7, %v19073_v12  ;;  %vm19361_vm7 = vnez %v19278_v39 }
0x10cc   :  { %5720 = vmatpush1.bf16.msra.mxu0 %v13700_v32  ;;  %12380 = vmatpush3.msk.msra.mxu1 %vm19359_vm10, %v19073_v12  ;;  %v13727_v32 = vld [vmem:[%s18595_s10 + $0x2b0] ss:$8 sps:$4 sm:$0xff]  }
0x10cd   :  { %5721 = vmatprep.subr.bf16.mxu0 %v13705_v29  ;;  %12381 = vmatprep.subr.msk.mxu1 %vm19360_vm13, %v19073_v12  ;;  %v13732_v29 = vld [vmem:[%s18595_s10 + $0x2a4] ss:$8 sps:$4 sm:$0xff]  }
0x10ce   :  { %12382 = vmatpush3.msk.msra.mxu1 %vm19361_vm7, %v19073_v12 }
0x10cf   :  { %12383 = vmatprep.subr.msk.mxu1 %vm19362_vm2, %v19073_v12  ;;  %vm19363_vm2 = vnez %v19295_v17 }
0x10d0   :  { %5722 = vmatpush1.bf16.msra.mxu0 %v13703_v51  ;;  %12384 = vmatpush3.msk.msra.mxu1 %vm19320_vm3, %v19073_v12  ;;  %vm19364_vm3 = vnez %v19298_v62  ;;  %v13730_v51 = vld [vmem:[%s18595_s10 + $0x2a0] ss:$8 sps:$4 sm:$0xff]  }
0x10d1   :  { %5723 = vmatprep.subr.bf16.mxu0 %v13708_v25  ;;  %12385 = vmatprep.subr.msk.mxu1 %vm19321_vm9, %v19073_v12  ;;  %v13735_v25 = vld [vmem:[%s18595_s10 + $0x294] ss:$8 sps:$4 sm:$0xff]  }
0x10d2   :  { %12386 = vmatpush3.msk.msra.mxu1 %vm19322_vm6, %v19073_v12  ;;  %vm19366_vm6 = vnez %v19304_v41 }
0x10d3   :  { %12387 = vmatprep.subr.msk.mxu1 %vm19363_vm2, %v19073_v12  ;;  %vm19365_vm2 = vnez %v19302_v20 }
0x10d4   :  { %5724 = vmatpush1.bf16.msra.mxu0 %v13706_v28  ;;  %12388 = vmatpush3.msk.msra.mxu1 %vm19364_vm3, %v19073_v12  ;;  %vm19367_vm3 = vnez %v19306_v45  ;;  %v13733_v28 = vld [vmem:[%s18595_s10 + $0x290] ss:$8 sps:$4 sm:$0xff]  }
0x10d5   :  { %5725 = vmatprep.subr.bf16.mxu0 %v13711_v14  ;;  %12389 = vmatprep.subr.msk.mxu1 %vm19325_vm15, %v19073_v12  ;;  %v13738_v14 = vld [vmem:[%s18595_s10 + $0x284] ss:$8 sps:$4 sm:$0xff]  }
0x10d6   :  { %12390 = vmatpush3.msk.msra.mxu1 %vm19365_vm2, %v19073_v12  ;;  %vm19368_vm2 = vcmp.eq.s32.totalorder %v16508_v43, %v19281_v50 }
0x10d7   :  { %12391 = vmatprep.subr.msk.mxu1 %vm19366_vm6, %v19073_v12  ;;  %vm19370_vm6 = vcmp.eq.s32.totalorder %v16508_v43, %v19285_v9 }
0x10d8   :  { %5726 = vmatpush1.bf16.msra.mxu0 %v13709_v59  ;;  %12392 = vmatpush3.msk.msra.mxu1 %vm19367_vm3, %v19073_v12  ;;  %v5026_v59 = vrot.slane %v5014_v0, 1  ;;  %vm19369_vm3 = vcmp.eq.s32.totalorder %v16555_v26, %v19281_v50 }
0x10d9   :  { %5727 = vmatprep.subr.bf16.mxu0 %v13714_v53  ;;  %11615 = vmatprep.subr.msk.mxu1 %vm19368_vm2, %v19073_v12  ;;  %v13736_v53 = vld [vmem:[%s18595_s10 + $0x280] ss:$8 sps:$4 sm:$0xff]  }
0x10dc   :  { %5728 = vmatpush1.bf16.msra.mxu0 %v13712_v61  ;;  %v5027_v61 = vor.u32 %v5026_v59, %v5005_v44  ;;  %v19375_v44 = vld [vmem:[#allocation32_spill] sm:$0xff] }
0x10dd   :  { %5729 = vmatprep.subr.bf16.mxu0 %v13717_v36 }
0x10de   :  { %v5034_v36 = vsel %vm19344_vm1, %v5027_v61, %v5026_v59  ;;  %vm19376_vm1 = vcmp.eq.s32.totalorder %v16508_v43, %v19375_v44 }
0x10e0   :  { %5730 = vmatpush2.bf16.msra.mxu0 %v13715_v1  ;;  %v5135_v1 = vld [vmem:[#allocation2 + $0x16] ss:$8 sm:$0x3] }
0x10e1   :  { %5731 = vmatprep.subr.bf16.mxu0 %v13720_v46 }
0x10e4   :  { %5732 = vmatpush2.bf16.msra.mxu0 %v13718_v48 }
0x10e5   :  { %5733 = vmatprep.subr.bf16.mxu0 %v13723_v56  ;;  %v5140_v56 = vrot.slane %v5135_v1, %v19166_v42 }
0x10e8   :  { %5734 = vmatpush2.bf16.msra.mxu0 %v13721_v15 }
0x10e9   :  { %5735 = vmatprep.subr.bf16.mxu0 %v13726_v4  ;;  %v5144_v4 = vrot.slane %v5135_v1, %v19337_v57 }
0x10ec   :  { %5736 = vmatpush2.bf16.msra.mxu0 %v13724_v60 }
0x10ed   :  { %5737 = vmatprep.subr.bf16.mxu0 %v13729_v38 }
0x10f0   :  { %5738 = vmatpush2.bf16.msra.mxu0 %v13727_v32 }
0x10f1   :  { %5739 = vmatprep.subr.bf16.mxu0 %v13732_v29 }
0x10f4   :  { %5740 = vmatpush2.bf16.msra.mxu0 %v13730_v51 }
0x10f5   :  { %5741 = vmatprep.subr.bf16.mxu0 %v13735_v25 }
0x10f8   :  { %5742 = vmatpush2.bf16.msra.mxu0 %v13733_v28 }
0x10f9   :  { %5743 = vmatprep.subr.bf16.mxu0 %v13738_v14 }
0x10fc   :  { %5744 = vmatpush2.bf16.msra.mxu0 %v13736_v53 }
0x10fd   :  { %11656 = vmatprep.subr.msk.mxu0 %vm19368_vm2, %v19073_v12  ;;  %vm19371_vm2 = vcmp.eq.s32.totalorder %v16555_v26, %v19285_v9 }
0x10ff   :  { %11582 = vmatmul.mubr.msk.bf16.vlgmr.msra.gmra.mxu0 %vm19347_vm0, %v5034_v36  ;;  %vm19373_vm0 = vcmp.eq.s32.totalorder %v16508_v43, %v19372_v16 }
0x1100   :  { %11657 = vmatpush1.msk.msra.mxu0 %vm19369_vm3, %v19073_v12  ;;  %6091 = vmatprep.mubr.f32.mxu0 %v19133_v13  ;;  %vm19374_vm3 = vcmp.eq.s32.totalorder %v16555_v26, %v19372_v16 }
0x1101   :  { %11658 = vmatprep.subr.msk.mxu0 %vm19370_vm6, %v19073_v12  ;;  %vm19377_vm6 = vcmp.eq.s32.totalorder %v16555_v26, %v19375_v44 }
0x1102   :  { %11659 = vmatpush1.msk.msra.mxu0 %vm19371_vm2, %v19073_v12 }
0x1103   :  { %11660 = vmatprep.subr.msk.mxu0 %vm19373_vm0, %v19073_v12  ;;  %vm19378_vm0 = vcmp.eq.s32.totalorder %v16555_v26, %v19281_v50 }
0x1104   :  { %11661 = vmatpush1.msk.msra.mxu0 %vm19374_vm3, %v19073_v12  ;;  %vm19380_vm3 = vcmp.eq.s32.totalorder %v16508_v43, %v19372_v16 }
0x1105   :  { %11662 = vmatprep.subr.msk.mxu0 %vm19376_vm1, %v19073_v12  ;;  %vm19379_vm1 = vcmp.eq.s32.totalorder %v16508_v43, %v19285_v9 }
0x1106   :  { %11663 = vmatpush1.msk.msra.mxu0 %vm19377_vm6, %v19073_v12  ;;  %vm19381_vm6 = vcmp.eq.s32.totalorder %v16555_v26, %v19372_v16 }
0x1178   :  { %v5704_v48 = vpop.f32.mrf.mxu1 }
0x117a   :  { %v5706_v60 = vpop.f32.mrf.mxu1 }
0x117c   :  { %v5708_v25 = vpop.f32.mrf.mxu1 }
0x117e   :  { %v5710_v3 = vpop.f32.mrf.mxu1 }
0x117f   :  { %v5661_v0 = vpop.f32.mrf.mxu0 }
0x1180   :  { %v5662_v38 = vadd.f32 %v5661_v0, %v5140_v56 }
0x1181   :  { %v5663_v46 = vpop.f32.mrf.mxu0 }
0x1182   :  { %v5664_v29 = vadd.f32 %v5663_v46, %v5144_v4  ;;  %v5705_v59 = vadd.f32 %v5704_v48, %v5662_v38 }
0x1183   :  { %v5665_v15 = vpop.f32.mrf.mxu0 }
0x1184   :  { %v5666_v51 = vadd.f32 %v5665_v15, %v5140_v56  ;;  %v5707_v36 = vadd.f32 %v5706_v60, %v5664_v29 }
0x1185   :  { %v5667_v32 = vpop.f32.mrf.mxu0 }
0x1186   :  { %v5668_v14 = vadd.f32 %v5667_v32, %v5144_v4  ;;  %v5709_v30 = vadd.f32 %v5708_v25, %v5666_v51 }
0x1188   :  { %v5711_v1 = vadd.f32 %v5710_v3, %v5668_v14 }
0x11bf   :  { %v5747_v28 = vpop.f32.mrf.mxu0 }
0x11c0   :  { %v17270_v61 = vadd.f32 %v5747_v28, %v5705_v59 }
0x11c1   :  { %v5749_v53 = vpop.f32.mrf.mxu0 }
0x11c2   :  { %v17272_v18 = vadd.f32 %v5749_v53, %v5707_v36  ;;  %v5756_v46 = vmax.f32 %v17270_v61, 0.0  ;;  %v13742_v61 = vld [vmem:[#allocation13 + $0xb0] sm:$0xff]  }
0x11c3   :  { %v5751_v10 = vpop.f32.mrf.mxu0 }
0x11c4   :  { %v17274_v42 = vadd.f32 %v5751_v10, %v5709_v30  ;;  %v5757_v48 = vmax.f32 %v17272_v18, 0.0  ;;  %v13741_v18 = vld [vmem:[#allocation13 + $0xf0] sm:$0xff]  }
0x11c5   :  { %v5753_v0 = vpop.f32.mrf.mxu0 }
0x11c6   :  { %v5758_v56 = vmax.f32 %v17274_v42, 0.0  ;;  %v17278_v15 = vadd.f32 %v5753_v0, %v5711_v1  ;;  %v13761_v1 = vld [vmem:[#allocation13 + $0xc8] sm:$0xff]  }
0x11c8   :  { %v5764_v4 = vadd.f32 %v5758_v56, %v5756_v46  ;;  %v5759_v60 = vmax.f32 %v17278_v15, 0.0  ;;  %v13745_v15 = vld [vmem:[#allocation13 + $0xe8] sm:$0xff]  }
0x11ca   :  { %v5765_v38 = vrot.slane %v5764_v4, 4  ;;  %v5771_v10 = vadd.f32 %v5759_v60, %v5757_v48 }
0x11cc   :  { %v5766_v3 = vadd.f32 %v5765_v38, %v5764_v4  ;;  %v5772_v30 = vrot.slane %v5771_v10, 4 }
0x11ce   :  { %v5767_v32 = vrot.slane %v5766_v3, 2  ;;  %v5773_v29 = vadd.f32 %v5772_v30, %v5771_v10  ;;  %v13748_v10 = vld [vmem:[#allocation13 + $0x30] sm:$0xff]   ;;  %v13750_v30 = vld [vmem:[#allocation13 + $0xa0] sm:$0xff]  }
0x11d0   :  { %v5768_v51 = vadd.f32 %v5767_v32, %v5766_v3  ;;  %v5774_v25 = vrot.slane %v5773_v29, 2  ;;  %v13749_v3 = vld [vmem:[#allocation13 + $0xe0] sm:$0xff]   ;;  %v13751_v32 = vld [vmem:[#allocation13 + $0x68] sm:$0xff]  }
0x11d2   :  { %v5775_v28 = vadd.f32 %v5774_v25, %v5773_v29  ;;  %v5769_v14 = vrot.slane %v5768_v51, 1  ;;  %v13752_v29 = vld [vmem:[#allocation13 + $0x28] sm:$0xff]   ;;  %v13754_v25 = vld [vmem:[#allocation13 + $0x98] sm:$0xff]  }
0x11d4   :  { %v5776_v59 = vrot.slane %v5775_v28, 1  ;;  %v5770_v36 = vadd.f32 %v5769_v14, %v5768_v51  ;;  %v13753_v51 = vld [vmem:[#allocation13 + $0xd8] sm:$0xff]   ;;  %v13757_v14 = vld [vmem:[#allocation13 + $0xd0] sm:$0xff]  }
0x11d6   :  { %v5777_v53 = vadd.f32 %v5776_v59, %v5775_v28  ;;  %v13755_v28 = vld [vmem:[#allocation13 + $0x60] sm:$0xff]  }
0x11d7   :  { %v13756_v59 = vld [vmem:[#allocation13 + $0x20] sm:$0xff]  }
0x11d8   :  { %5842 = vmatprep.mubr.f32.mxu1 %v5777_v53  ;;  %v13758_v53 = vld [vmem:[#allocation13 + $0x90] sm:$0xff]  }
0x11d9   :  { %5843 = vmatmul.mubr.f32.vlgmr.msra.gmra.mxu1 %v5770_v36  ;;  %v13759_v36 = vld [vmem:[#allocation13 + $0x58] sm:$0xff]  }
0x11da   :  { %11616 = vmatpush1.msk.msra.mxu1 %vm19378_vm0, %v19073_v12  ;;  %5915 = vmatprep.mubr.f32.mxu1 %v19133_v13  ;;  %vm19382_vm0 = vcmp.eq.s32.totalorder %v16508_v43, %v19375_v44 }
0x11db   :  { %11617 = vmatprep.subr.msk.mxu1 %vm19379_vm1, %v19073_v12  ;;  %vm19383_vm1 = vcmp.eq.s32.totalorder %v16555_v26, %v19375_v44  ;;  %v13739_v26 = vld [vmem:[#allocation13 + $0xf8] sm:$0xff]  }
0x11dc   :  { %11618 = vmatpush1.msk.msra.mxu1 %vm19371_vm2, %v19073_v12  ;;  %vm19385_vm2 = vcmask 261120  }
0x11dd   :  { %11619 = vmatprep.subr.msk.mxu1 %vm19380_vm3, %v19073_v12  ;;  %vm19392_vm3 = vnez %v19251_v49 }
0x11de   :  { %11620 = vmatpush1.msk.msra.mxu1 %vm19381_vm6, %v19073_v12  ;;  %vm19393_vm6 = vnez %v19254_v55 }
0x11df   :  { %11621 = vmatprep.subr.msk.mxu1 %vm19382_vm0, %v19073_v12  ;;  %vm19394_vm0 = vnez %v19257_v47 }
0x11e0   :  { %11622 = vmatpush1.msk.msra.mxu1 %vm19383_vm1, %v19073_v12  ;;  %vm19395_vm1 = vnez %v19260_v58 }
0x11e1   :  { %12396 = vmatprep.subr.msk.mxu1 %vm16238_vm4, %v19073_v12  ;;  %vm19386_vm4 = vnez %v19233_v35 }
0x1299   :  { %v12393_v0 = vpop.f32.mrf.mxu1 }
0x129b   :  { %v12394_v4 = vpop.f32.mrf.mxu1 }
0x129c   :  { %v12395_v38 = vadd.f32 %v12394_v4, %v12393_v0  ;;  %v13760_v0 = vld [vmem:[#allocation13 + $0x18] sm:$0xff]   ;;  %v13762_v4 = vld [vmem:[#allocation13 + $0x88] sm:$0xff]  }
0x129e   :  { %11623 = vmatmul.mubr.msk.f32.vlgmr.msra.gmra.mxu1 %vm19385_vm2, %v12395_v38  ;;  %vm19396_vm2 = vnez %v19263_v54  ;;  %v13763_v38 = vld [vmem:[#allocation13 + $0x50] sm:$0xff]  }
0x129f   :  { %12397 = vmatpush3.msk.msra.mxu1 %vm16276_vm12, %v19073_v12  ;;  %vm19387_vm12 = vnez %v19236_v8 }
0x12a0   :  { %12398 = vmatprep.subr.msk.mxu1 %vm16289_vm8, %v19073_v12  ;;  %vm19388_vm8 = vnez %v19239_v23 }
0x12a1   :  { %12399 = vmatpush3.msk.msra.mxu1 %vm16300_vm14, %v19073_v12  ;;  %vm19389_vm14 = vnez %v19242_v52 }
0x12a2   :  { %12400 = vmatprep.subr.msk.mxu1 %vm16317_vm11, %v19073_v12  ;;  %vm19390_vm11 = vnez %v19245_v11 }
0x12a3   :  { %12401 = vmatpush3.msk.msra.mxu1 %vm16326_vm5, %v19073_v12  ;;  %vm19391_vm5 = vnez %v19248_v40 }
0x12a4   :  { %12402 = vmatprep.subr.msk.mxu1 %vm19386_vm4, %v19073_v12  ;;  %vm19397_vm4 = vnez %v19266_v34 }
0x12a5   :  { %12403 = vmatpush3.msk.msra.mxu1 %vm19387_vm12, %v19073_v12  ;;  %vm19398_vm12 = vnez %v19269_v2 }
0x12a6   :  { %12404 = vmatprep.subr.msk.mxu1 %vm19388_vm8, %v19073_v12  ;;  %vm19399_vm8 = vnez %v19283_v5 }
0x12a7   :  { %12405 = vmatpush3.msk.msra.mxu1 %vm19389_vm14, %v19073_v12  ;;  %vm19400_vm14 = vnez %v19288_v63 }
0x12a8   :  { %12406 = vmatprep.subr.msk.mxu1 %vm19390_vm11, %v19073_v12  ;;  %vm19404_vm11 = vnez %v19302_v20 }
0x12a9   :  { %12407 = vmatpush3.msk.msra.mxu1 %vm19391_vm5, %v19073_v12  ;;  %vm19406_vm5 = vnez %v19306_v45  ;;  %v13740_v45 = vld [vmem:[#allocation13 + $0xb8] sm:$0xff]  }
0x12aa   :  { %12408 = vmatprep.subr.msk.mxu1 %vm19392_vm3, %v19073_v12 }
0x12ab   :  { %12409 = vmatpush3.msk.msra.mxu1 %vm19393_vm6, %v19073_v12 }
0x12ac   :  { %12410 = vmatprep.subr.msk.mxu1 %vm19394_vm0, %v19073_v12 }
0x12ad   :  { %12411 = vmatpush3.msk.msra.mxu1 %vm19395_vm1, %v19073_v12 }
0x12ae   :  { %12412 = vmatprep.subr.msk.mxu1 %vm19396_vm2, %v19073_v12 }
0x12af   :  { %12413 = vmatpush3.msk.msra.mxu1 %vm19397_vm4, %v19073_v12 }
0x12b0   :  { %12414 = vmatprep.subr.msk.mxu1 %vm19398_vm12, %v19073_v12 }
0x12b1   :  { %12415 = vmatpush3.msk.msra.mxu1 %vm19359_vm10, %v19073_v12  ;;  %vm19401_vm10 = vnez %v19292_v21 }
0x12b2   :  { %12416 = vmatprep.subr.msk.mxu1 %vm19360_vm13, %v19073_v12  ;;  %vm19402_vm13 = vnez %v19295_v17 }
0x12b3   :  { %12417 = vmatpush3.msk.msra.mxu1 %vm19361_vm7, %v19073_v12  ;;  %vm19403_vm7 = vnez %v19298_v62 }
0x12b4   :  { %12418 = vmatprep.subr.msk.mxu1 %vm19399_vm8, %v19073_v12 }
0x12b5   :  { %12419 = vmatpush3.msk.msra.mxu1 %vm19400_vm14, %v19073_v12 }
0x12b6   :  { %12420 = vmatprep.subr.msk.mxu1 %vm19321_vm9, %v19073_v12  ;;  %vm19405_vm9 = vnez %v19304_v41 }
0x12b7   :  { %12421 = vmatpush3.msk.msra.mxu1 %vm19401_vm10, %v19073_v12  ;;  %vm19423_vm10 = vmmov 0  }
0x12b8   :  { %12422 = vmatprep.subr.msk.mxu1 %vm19402_vm13, %v19073_v12  ;;  %vm19425_vm13 = vcmask 130048  }
0x12b9   :  { %12423 = vmatpush3.msk.msra.mxu1 %vm19403_vm7, %v19073_v12 }
0x12ba   :  { %12424 = vmatprep.subr.msk.mxu1 %vm19325_vm15, %v19073_v12  ;;  %vm19408_vm15 = vcmask 261120  }
0x12bb   :  { %12425 = vmatpush3.msk.msra.mxu1 %vm19404_vm11, %v19073_v12  ;;  %vm18905_vm11 = vcmask 1043456  }
0x12bc   :  { %12426 = vmatprep.subr.msk.mxu1 %vm19405_vm9, %v19073_v12  ;;  %vm6989_vm9 = vsmask.f32 3328 }
0x12bd   :  { %12427 = vmatpush3.msk.msra.mxu1 %vm19406_vm5, %v19073_v12 }
0x12be   :  { %12453 = vmatprep.subr.bf16.mxu1 %v13739_v26 }
0x135e   :  { %v5917_v19 = vpop.f32.mrf.mxu1 }
0x135f   :  { %v5922_v37 = vmul.f32 0.0078125, %v5917_v19  ;;  %v13765_v19 = vld [vmem:[#allocation13 + $0xc0] sm:$0xff]  }
0x1360   :  { %v5919_v6 = vpop.f32.mrf.mxu1 }
0x1361   :  { %v5927_v31 = vrot.slane %v5922_v37, %v19407_v7  ;;  %v5923_v35 = vmul.f32 0.0078125, %v5919_v6  ;;  %v13764_v37 = vld [vmem:[#allocation13 + $0x10] sm:$0xff]   ;;  %v13766_v6 = vld [vmem:[#allocation13 + $0x80] sm:$0xff]  }
0x1363   :  { %v17419_v8 = vsub.f32 %v5756_v46, %v5927_v31  ;;  %v17423_v23 = vsub.f32 %v5758_v56, %v5927_v31  ;;  %v5931_v52 = vrot.slane %v5923_v35, %v19407_v7  ;;  %v13743_v46 = vld [vmem:[#allocation13 + $0x78] sm:$0xff]   ;;  %v13767_v31 = vld [vmem:[#allocation13 + $0x48] sm:$0xff]  }
0x1364   :  { %v13744_v56 = vld [vmem:[#allocation13 + $0x38] sm:$0xff]   ;;  %12431 = vmatprep.subr.bf16.mxu0 %v13743_v46  ;;  %v13768_v35 = vld [vmem:[#allocation13 + $0x8] sm:$0xff]  }
0x1365   :  { %v5936_v11 = vmul.f32 %v17419_v8, %v17419_v8  ;;  %v5938_v40 = vmul.f32 %v17423_v23, %v17423_v23  ;;  %v17432_v49 = vsub.f32 %v5757_v48, %v5931_v52  ;;  %v17436_v55 = vsub.f32 %v5759_v60, %v5931_v52  ;;  %v13746_v48 = vld [vmem:[#allocation13 + $0xa8] sm:$0xff]   ;;  %v13747_v60 = vld [vmem:[#allocation13 + $0x70] sm:$0xff]   ;;  %v13769_v52 = vld [vmem:[#allocation13 + $0x1f8] sm:$0xff]  }
0x1367   :  { %v5940_v47 = vadd.f32 %v5938_v40, %v5936_v11  ;;  %v5937_v42 = vmul.f32 %v17432_v49, %v17432_v49  ;;  %v5939_v58 = vmul.f32 %v17436_v55, %v17436_v55  ;;  %v13771_v11 = vld [vmem:[#allocation13 + $0x40] sm:$0xff]  }
0x1368   :  { %v13772_v40 = vld [vmem:[#allocation13] sm:$0xff]  }
0x1369   :  { %v5941_v54 = vrot.slane %v5940_v47, 4  ;;  %v5947_v34 = vadd.f32 %v5939_v58, %v5937_v42 }
0x136b   :  { %v5942_v2 = vadd.f32 %v5941_v54, %v5940_v47  ;;  %v5948_v27 = vrot.slane %v5947_v34, 4  ;;  %v13775_v47 = vld [vmem:[#allocation13 + $0x178] sm:$0xff]  }
0x136d   :  { %v5949_v24 = vadd.f32 %v5948_v27, %v5947_v34  ;;  %v5943_v39 = vrot.slane %v5942_v2, 2 }
0x136f   :  { %v5950_v5 = vrot.slane %v5949_v24, 2  ;;  %v5944_v63 = vadd.f32 %v5943_v39, %v5942_v2 }
0x1371   :  { %v5951_v33 = vadd.f32 %v5950_v5, %v5949_v24  ;;  %v5945_v21 = vrot.slane %v5944_v63, 1 }
0x1373   :  { %v5952_v43 = vrot.slane %v5951_v33, 1  ;;  %v5946_v62 = vadd.f32 %v5945_v21, %v5944_v63  ;;  %v19409_v63 = vld [vmem:[#allocation83_spill] sm:$0xff] }
0x1374   :  { %vm6189_vm3 = vcmp.le.s32.totalorder %v19409_v63, 5 }
0x1375   :  { %v5953_v17 = vadd.f32 %v5952_v43, %v5951_v33  ;;  %v19410_v33 = vld [vmem:[#allocation95_spill] sm:$0xff]  ;;  %v19411_v43 = vld [vmem:[#allocation92_spill] sm:$0xff]  ;;  %vm6205_vm0 = vmpackc.low %vm6189_vm3, %vm6189_vm3 }
0x1376   :  { %vm6190_vm6 = vcmp.le.s32.totalorder %v19411_v43, 5  ;;  %vm17612_vm3 = vmand %vm18905_vm11, %vm6989_vm9 }
0x1377   :  { %6018 = vmatprep.mubr.f32.mxu1 %v5953_v17  ;;  %v5761_v17 = vld [vmem:[#allocation2 + $0x17] ss:$8 sm:$0x3]  ;;  %vm6206_vm1 = vmpackc.low %vm6190_vm6, %vm6190_vm6 }
0x1378   :  { %6019 = vmatmul.mubr.f32.vlgmr.msra.gmra.mxu1 %v5946_v62  ;;  %v5763_v62 = vld [vmem:[#allocation2 + $0x20] ss:$8 sm:$0x3] }
0x1379   :  { %12454 = vmatpush3.bf16.msra.mxu1 %v13740_v45  ;;  %v6142_v26 = vrot.slane %v5763_v62, %v19407_v7 }
0x137a   :  { %12455 = vmatprep.subr.bf16.mxu1 %v13741_v18 }
0x137d   :  { %12456 = vmatpush3.bf16.msra.mxu1 %v13742_v61  ;;  %v19412_v61 = vmov 0  }
0x137e   :  { %12457 = vmatprep.subr.bf16.mxu1 %v13745_v15  ;;  %v6207_v46 = vsel %vm6205_vm0, 65537, %v19412_v61 }
0x1381   :  { %12458 = vmatpush3.bf16.msra.mxu1 %v13746_v48 }
0x1382   :  { %12459 = vmatprep.subr.bf16.mxu1 %v13749_v3 }
0x1385   :  { %12460 = vmatpush3.bf16.msra.mxu1 %v13750_v30 }
0x1386   :  { %12461 = vmatprep.subr.bf16.mxu1 %v13753_v51 }
0x1389   :  { %12462 = vmatpush3.bf16.msra.mxu1 %v13754_v25 }
0x138a   :  { %12463 = vmatprep.subr.bf16.mxu1 %v13757_v14  ;;  %v13770_v14 = vld [vmem:[#allocation13 + $0x1b8] sm:$0xff]  }
0x138d   :  { %12464 = vmatpush3.bf16.msra.mxu1 %v13758_v53 }
0x138e   :  { %12465 = vmatprep.subr.bf16.mxu1 %v13761_v1 }
0x1391   :  { %12466 = vmatpush3.bf16.msra.mxu1 %v13762_v4 }
0x1392   :  { %12467 = vmatprep.subr.bf16.mxu1 %v13765_v19  ;;  %v13777_v19 = vld [vmem:[#allocation13 + $0x1e8] sm:$0xff]  }
0x1395   :  { %12468 = vmatpush3.bf16.msra.mxu1 %v13766_v6 }
0x1396   :  { %12497 = vmatprep.subr.bf16.mxu1 %v13769_v52  ;;  %v19415_v52 = vld [vmem:[#allocation41_spill] sm:$0xff] }
0x1397   :  { %vm19416_vm4 = vnez %v19415_v52 }
0x1438   :  { %v12428_v22 = vpop.f32.mrf.mxu1 }
0x143a   :  { %v12429_v20 = vpop.f32.mrf.mxu1 }
0x143b   :  { %v12430_v41 = vadd.f32 %v12429_v20, %v12428_v22 }
0x143d   :  { %11664 = vmatmul.mubr.msk.f32.vlgmr.msra.gmra.mxu0 %vm19408_vm15, %v12430_v41  ;;  %v6146_v41 = vrot.slane %v5763_v62, %v19337_v57  ;;  %v13787_v62 = vld [vmem:[#allocation13 + $0x160] sm:$0xff]  }
0x143e   :  { %12432 = vmatpush3.bf16.msra.mxu0 %v13744_v56  ;;  %v6208_v56 = vsel %vm6206_vm1, 65537, %v19412_v61 }
0x143f   :  { %12433 = vmatprep.subr.bf16.mxu0 %v13747_v60  ;;  %v11665_v3 = vcombine.low %v6207_v46, %v6208_v56  ;;  %v13794_v46 = vld [vmem:[#allocation13 + $0x188] sm:$0xff]   ;;  %v13795_v56 = vld [vmem:[#allocation13 + $0x150] sm:$0xff]  }
0x1441   :  { %vm17459_vm2 = vcmp.ne.s16.totalorder %v11665_v3, 0  ;;  %v13800_v3 = vld [vmem:[#allocation13 + $0x108] sm:$0xff]  }
0x1442   :  { %12434 = vmatpush3.bf16.msra.mxu0 %v13748_v10 }
0x1443   :  { %12435 = vmatprep.subr.bf16.mxu0 %v13751_v32 }
0x1446   :  { %12436 = vmatpush3.bf16.msra.mxu0 %v13752_v29 }
0x1447   :  { %12437 = vmatprep.subr.bf16.mxu0 %v13755_v28 }
0x144a   :  { %12438 = vmatpush3.bf16.msra.mxu0 %v13756_v59  ;;  %v13805_v59 = vld [vmem:[%s18598_s13 + $0xf8] sm:$0xff]  }
0x144b   :  { %12439 = vmatprep.subr.bf16.mxu0 %v13759_v36  ;;  %v13774_v36 = vld [vmem:[#allocation13 + $0x1b0] sm:$0xff]  }
0x144e   :  { %12440 = vmatpush3.bf16.msra.mxu0 %v13760_v0 }
0x144f   :  { %12441 = vmatprep.subr.bf16.mxu0 %v13763_v38 }
0x1452   :  { %12442 = vmatpush3.bf16.msra.mxu0 %v13764_v37 }
0x1453   :  { %12443 = vmatprep.subr.bf16.mxu0 %v13767_v31 }
0x1456   :  { %12444 = vmatpush3.bf16.msra.mxu0 %v13768_v35  ;;  %v13776_v35 = vld [vmem:[#allocation13 + $0x138] sm:$0xff]  }
0x1457   :  { %12445 = vmatprep.subr.bf16.mxu0 %v13771_v11 }
0x145a   :  { %12446 = vmatpush3.bf16.msra.mxu0 %v13772_v40 }
0x145b   :  { %12475 = vmatprep.subr.bf16.mxu0 %v13775_v47  ;;  %v13778_v47 = vld [vmem:[#allocation13 + $0x1a8] sm:$0xff]  }
0x14fd   :  { %v6093_v42 = vpop.f32.mrf.mxu0 }
0x14fe   :  { %v6098_v58 = vmul.f32 0.0078125, %v6093_v42  ;;  %v13779_v42 = vld [vmem:[#allocation13 + $0x170] sm:$0xff]  }
0x14ff   :  { %v6095_v54 = vpop.f32.mrf.mxu0 }
0x1500   :  { %v6100_v34 = vadd.f32 1e-05, %v6098_v58  ;;  %v6099_v2 = vmul.f32 0.0078125, %v6095_v54  ;;  %v19417_v58 = vld [vmem:[#allocation86_spill] sm:$0xff]  ;;  %v13781_v54 = vld [vmem:[#allocation13 + $0x1e0] sm:$0xff]  }
0x1501   :  { %vm19418_vm12 = vnez %v19417_v58 }
0x1502   :  { %v6101_v27 = vadd.f32 1e-05, %v6099_v2  ;;  %13979 = vrsqrt.f32 %v6100_v34  ;;  %v19419_v34 = vld [vmem:[#allocation38_spill] sm:$0xff] }
0x1503   :  { %vm19420_vm8 = vnez %v19419_v34 }
0x1504   :  { %13981 = vrsqrt.f32 %v6101_v27  ;;  %v19421_v27 = vld [vmem:[#allocation90_spill] sm:$0xff] }
0x1505   :  { %vm19422_vm14 = vnez %v19421_v27 }
0x150f   :  { %v13980_v24 = vpop.eup %13979 }
0x1511   :  { %v13982_v39 = vpop.eup %13981 }
0x1512   :  { %v6106_v5 = vcombine.low %v13980_v24, %v13982_v39  ;;  %v13780_v24 = vld [vmem:[#allocation13 + $0x130] sm:$0xff]   ;;  %v13782_v39 = vld [vmem:[#allocation13 + $0x1a0] sm:$0xff]  }
0x1514   :  { %v6113_v21 = vrot.slane %v6106_v5, %v19410_v33  ;;  %v13783_v5 = vld [vmem:[#allocation13 + $0x168] sm:$0xff]  }
0x1516   :  { %v6120_v22 = vrot.slane %v6113_v21, %v19410_v33  ;;  %v13785_v33 = vld [vmem:[#allocation13 + $0x1d8] sm:$0xff]   ;;  %v13784_v21 = vld [vmem:[#allocation13 + $0x128] sm:$0xff]  }
0x1518   :  { %v6122_v20 = vmul.f32 %v6120_v22, %v5761_v17  ;;  %v13786_v17 = vld [vmem:[#allocation13 + $0x198] sm:$0xff]   ;;  %v13789_v22 = vld [vmem:[#allocation13 + $0x1d0] sm:$0xff]  }
0x151a   :  { %v6131_v45 = vrot.slane %v6122_v20, %v19337_v57  ;;  %v6127_v18 = vrot.slane %v6122_v20, %v19407_v7  ;;  %v13788_v20 = vld [vmem:[#allocation13 + $0x120] sm:$0xff]  }
0x151c   :  { %v6135_v15 = vmul.f32 %v6131_v45, %v17432_v49  ;;  %v6137_v48 = vmul.f32 %v6131_v45, %v17436_v55  ;;  %v6134_v60 = vmul.f32 %v6127_v18, %v17419_v8  ;;  %v6136_v10 = vmul.f32 %v6127_v18, %v17423_v23  ;;  %v13773_v49 = vld [vmem:[#allocation13 + $0x1f0] sm:$0xff]   ;;  %v13793_v45 = vld [vmem:[#allocation13 + $0x1c8] sm:$0xff]   ;;  %v13792_v18 = vld [vmem:[#allocation13 + $0x118] sm:$0xff]  }
0x151e   :  { %v6150_v30 = vadd.f32 %v6146_v41, %v6135_v15  ;;  %v6152_v32 = vadd.f32 %v6146_v41, %v6137_v48  ;;  %v6149_v29 = vadd.f32 %v6142_v26, %v6134_v60  ;;  %v6151_v51 = vadd.f32 %v6142_v26, %v6136_v10  ;;  %v13790_v41 = vld [vmem:[#allocation13 + $0x190] sm:$0xff]   ;;  %v13791_v26 = vld [vmem:[#allocation13 + $0x158] sm:$0xff]   ;;  %v13797_v15 = vld [vmem:[#allocation13 + $0x1c0] sm:$0xff]  }
0x151f   :  { %v13796_v48 = vld [vmem:[#allocation13 + $0x110] sm:$0xff]   ;;  %v13798_v60 = vld [vmem:[#allocation13 + $0x180] sm:$0xff]   ;;  %v13799_v10 = vld [vmem:[#allocation13 + $0x148] sm:$0xff]  }
0x1520   :  { %v6154_v25 = vpack.c.bf16 %v6152_v32, %v6150_v30  ;;  %v17457_v28 = vpack.c.bf16 %v6151_v51, %v6149_v29  ;;  %v13801_v30 = vld [vmem:[#allocation13 + $0x140] sm:$0xff]  }
0x1521   :  { %v13802_v51 = vld [vmem:[#allocation13 + $0x100] sm:$0xff]  }
0x1522   :  { %6800 = vmatprep.mubr.bf16.mxu1 %v6154_v25  ;;  %v6194_v55 = vrot.slane %v6154_v25, 1  ;;  %v6160_v53 = vshrl.u32 %v6154_v25, 16  ;;  %v6168_v8 = vshll.u32 %v6154_v25, 16  ;;  %v6156_v23 = vshrl.u32 %v17457_v28, 16 }
0x1523   :  { %6801 = vmatmul.mubr.bf16.vlgmr.msra.gmra.mxu1 %v17457_v28  ;;  %v6165_v4 = vshll.u32 %v17457_v28, 16  ;;  %v6193_v32 = vrot.slane %v17457_v28, 1  ;;  %v13806_v28 = vld [vmem:[%s18598_s13 + $0xb8] sm:$0xff]  }
0x1524   :  { %12498 = vmatpush3.bf16.msra.mxu1 %v13770_v14  ;;  %11734 = vmatprep.mubr.msk.bf16.mxu1 %vm17459_vm2, %v6194_v55  ;;  %v6162_v1 = vrot.slane %v6160_v53, 7  ;;  %v6158_v0 = vrot.slane %v6156_v23, 7  ;;  %v6179_v38 = vrot.slane %v6168_v8, 1  ;;  %v13810_v55 = vld [vmem:[%s18598_s13 + $0xb0] sm:$0xff]  }
0x1525   :  { %12499 = vmatprep.subr.bf16.mxu1 %v13773_v49  ;;  %v6177_v29 = vrot.slane %v6165_v4, 1  ;;  %v13809_v49 = vld [vmem:[%s18598_s13 + $0xf0] sm:$0xff]  }
0x1526   :  { %v6170_v37 = vor.u32 %v6168_v8, %v6162_v1  ;;  %v6167_v6 = vor.u32 %v6165_v4, %v6158_v0  ;;  %v6180_v31 = vor.u32 %v6179_v38, %v6160_v53  ;;  %v13813_v53 = vld [vmem:[%s18598_s13 + $0xe8] sm:$0xff]  }
0x1527   :  { %v6178_v25 = vor.u32 %v6177_v29, %v6156_v23  ;;  %v13814_v8 = vld [vmem:[%s18598_s13 + $0xa8] sm:$0xff]   ;;  %v13817_v23 = vld [vmem:[%s18598_s13 + $0xe0] sm:$0xff]  }
0x1528   :  { %12500 = vmatpush3.bf16.msra.mxu1 %v13774_v36  ;;  %v6174_v11 = vsel %vm19416_vm4, %v6162_v1, %v6170_v37  ;;  %v6173_v40 = vsel %vm19416_vm4, %v6158_v0, %v6167_v6  ;;  %v6186_v2 = vsel %vm19420_vm8, %v6180_v31, %v6179_v38  ;;  %v13818_v36 = vld [vmem:[%s18598_s13 + $0xa0] sm:$0xff]   ;;  %v13821_v1 = vld [vmem:[%s18598_s13 + $0xd8] sm:$0xff]  }
0x1529   :  { %11730 = vmatprep.mubr.msk.bf16.mxu0 %vm19418_vm12, %v6174_v11  ;;  %12501 = vmatprep.subr.bf16.mxu1 %v13777_v19  ;;  %v6185_v14 = vsel %vm19420_vm8, %v6178_v25, %v6177_v29  ;;  %v13822_v0 = vld [vmem:[%s18598_s13 + $0x98] sm:$0xff]   ;;  %v13811_v29 = vld [vmem:[%s18598_s13 + $0x68] sm:$0xff]   ;;  %v13815_v25 = vld [vmem:[%s18598_s13 + $0x60] sm:$0xff]  }
0x152a   :  { %11731 = vmatmul.mubr.msk.bf16.vlgmr.msra.gmra.mxu0 %vm19418_vm12, %v6173_v40 }
0x152b   :  { %12476 = vmatpush3.bf16.msra.mxu0 %v13776_v35  ;;  %11732 = vmatprep.mubr.msk.bf16.mxu0 %vm19422_vm14, %v6186_v2 }
0x152c   :  { %12502 = vmatpush3.bf16.msra.mxu1 %v13778_v47  ;;  %12477 = vmatprep.subr.bf16.mxu0 %v13779_v42 }
0x152d   :  { %12503 = vmatprep.subr.bf16.mxu1 %v13781_v54 }
0x152f   :  { %12478 = vmatpush3.bf16.msra.mxu0 %v13780_v24 }
0x1530   :  { %12504 = vmatpush3.bf16.msra.mxu1 %v13782_v39  ;;  %12479 = vmatprep.subr.bf16.mxu0 %v13783_v5 }
0x1531   :  { %12505 = vmatprep.subr.bf16.mxu1 %v13785_v33 }
0x1533   :  { %12480 = vmatpush3.bf16.msra.mxu0 %v13784_v21 }
0x1534   :  { %12506 = vmatpush3.bf16.msra.mxu1 %v13786_v17  ;;  %12481 = vmatprep.subr.bf16.mxu0 %v13787_v62 }
0x1535   :  { %12507 = vmatprep.subr.bf16.mxu1 %v13789_v22 }
0x1537   :  { %12482 = vmatpush3.bf16.msra.mxu0 %v13788_v20 }
0x1538   :  { %12508 = vmatpush3.bf16.msra.mxu1 %v13790_v41  ;;  %12483 = vmatprep.subr.bf16.mxu0 %v13791_v26 }
0x1539   :  { %12509 = vmatprep.subr.bf16.mxu1 %v13793_v45 }
0x153b   :  { %12484 = vmatpush3.bf16.msra.mxu0 %v13792_v18 }
0x153c   :  { %12510 = vmatpush3.bf16.msra.mxu1 %v13794_v46  ;;  %12485 = vmatprep.subr.bf16.mxu0 %v13795_v56 }
0x153d   :  { %12511 = vmatprep.subr.bf16.mxu1 %v13797_v15 }
0x153f   :  { %12486 = vmatpush3.bf16.msra.mxu0 %v13796_v48  ;;  %v13803_v48 = vld [vmem:[%s18598_s13 + $0x78] sm:$0xff]  }
0x1540   :  { %12512 = vmatpush3.bf16.msra.mxu1 %v13798_v60  ;;  %12487 = vmatprep.subr.bf16.mxu0 %v13799_v10  ;;  %v13804_v10 = vld [vmem:[%s18598_s13 + $0x38] sm:$0xff]  }
0x1541   :  { %12544 = vmatprep.subr.bf16.mxu1 %v13805_v59  ;;  %v13819_v59 = vld [vmem:[%s18598_s13 + $0x58] sm:$0xff]  }
0x1543   :  { %12488 = vmatpush3.bf16.msra.mxu0 %v13800_v3  ;;  %11735 = vmatmul.mubr.msk.bf16.vlgmr.msra.gmra.mxu1 %vm17459_vm2, %v6193_v32  ;;  %v13807_v3 = vld [vmem:[%s18598_s13 + $0x70] sm:$0xff]  }
0x1544   :  { %12489 = vmatprep.subr.bf16.mxu0 %v13801_v30  ;;  %12545 = vmatpush3.bf16.msra.mxu1 %v13806_v28  ;;  %v19424_v30 = vld [vmem:[#allocation77_spill] sm:$0xff]  ;;  %v13820_v28 = vld [vmem:[%s18598_s13 + $0x18] sm:$0xff]  }
0x1545   :  { %12546 = vmatprep.subr.bf16.mxu1 %v13809_v49  ;;  %v13808_v32 = vld [vmem:[%s18598_s13 + $0x30] sm:$0xff]  }
0x1546   :  { %v13823_v49 = vld [vmem:[%s18598_s13 + $0x50] sm:$0xff]  }
0x1547   :  { %12490 = vmatpush3.bf16.msra.mxu0 %v13802_v51  ;;  %v13812_v51 = vld [vmem:[%s18598_s13 + $0x28] sm:$0xff]  }
0x1548   :  { %12835 = vmatprep.subr.mxu0 %v19133_v13  ;;  %12547 = vmatpush3.bf16.msra.mxu1 %v13810_v55  ;;  %v13824_v55 = vld [vmem:[%s18598_s13 + $0x10] sm:$0xff]  }
0x1549   :  { %12548 = vmatprep.subr.bf16.mxu1 %v13813_v53  ;;  %v13825_v53 = vld [vmem:[%s18598_s13 + $0xd0] sm:$0xff]  }
0x154a   :  { %11733 = vmatmul.mubr.msk.bf16.vlgmr.msra.gmra.mxu0 %vm19422_vm14, %v6185_v14  ;;  %v13816_v14 = vld [vmem:[%s18598_s13 + $0x20] sm:$0xff]   ;;  %vm18911_vm14 = vcmask 523264  }
0x154b   :  { %12839 = vmatprep.mubr.msk.f32.mxu0 %vm19423_vm10, %v19133_v13 }
0x154c   :  { %12549 = vmatpush3.bf16.msra.mxu1 %v13814_v8  ;;  %v13826_v8 = vld [vmem:[%s18598_s13 + $0x90] sm:$0xff]  }
0x154d   :  { %12550 = vmatprep.subr.bf16.mxu1 %v13817_v23  ;;  %v13827_v23 = vld [vmem:[%s18598_s13 + $0x48] sm:$0xff]  }
0x1550   :  { %12551 = vmatpush3.bf16.msra.mxu1 %v13818_v36  ;;  %v13828_v36 = vld [vmem:[%s18598_s13 + $0x8] sm:$0xff]  }
0x1551   :  { %12552 = vmatprep.subr.bf16.mxu1 %v13821_v1  ;;  %v13829_v1 = vld [vmem:[%s18598_s13 + $0xc8] sm:$0xff]  }
0x1554   :  { %12553 = vmatpush3.bf16.msra.mxu1 %v13822_v0  ;;  %v13830_v0 = vld [vmem:[%s18598_s13 + $0x88] sm:$0xff]  }
0x1555   :  { %12554 = vmatprep.subr.bf16.mxu1 %v13825_v53  ;;  %v13846_v53 = vld [vmem:[%s18598_s13 + $0x110] sm:$0xff]  }
0x1558   :  { %12555 = vmatpush3.bf16.msra.mxu1 %v13826_v8  ;;  %v19446_v8 = vld [vmem:[#allocation85_spill] sm:$0xff] }
0x1559   :  { %12556 = vmatprep.subr.bf16.mxu1 %v13829_v1  ;;  %vm19447_vm11 = vnez %v19446_v8  ;;  %v13849_v1 = vld [vmem:[%s18598_s13 + $0x140] sm:$0xff]  }
0x155c   :  { %12557 = vmatpush3.bf16.msra.mxu1 %v13830_v0  ;;  %v13850_v0 = vld [vmem:[%s18598_s13 + $0x100] sm:$0xff]  }
0x15e3   :  { %v12469_v4 = vpop.f32.mrf.mxu1 }
0x15e5   :  { %v12470_v38 = vpop.f32.mrf.mxu1 }
0x15e6   :  { %v12471_v33 = vadd.f32 %v12470_v38, %v12469_v4  ;;  %v13831_v4 = vld [vmem:[%s18598_s13 + $0x40] sm:$0xff]  }
0x15e7   :  { %v12472_v37 = vpop.f32.mrf.mxu1  ;;  %v13833_v38 = vld [vmem:[%s18598_s13 + $0xc0] sm:$0xff]  }
0x15e8   :  { %12558 = vmatprep.subr.bf16.mxu1 %v13833_v38 }
0x15e9   :  { %v12473_v31 = vpop.f32.mrf.mxu1 }
0x15ea   :  { %v12447_v19 = vpop.f32.mrf.mxu0  ;;  %v12474_v21 = vadd.f32 %v12473_v31, %v12472_v37  ;;  %v13835_v37 = vld [vmem:[%s18598_s13 + $0x178] sm:$0xff]   ;;  %v6891_v31 = vld [vmem:[#allocation2 + $0x21] ss:$0 sm:$0xff] }
0x15ec   :  { %v12448_v6 = vpop.f32.mrf.mxu0 }
0x15ed   :  { %v12449_v24 = vadd.f32 %v12448_v6, %v12447_v19  ;;  %v13832_v19 = vld [vmem:[%s18598_s13] sm:$0xff]  }
0x15ee   :  { %v12450_v35 = vpop.f32.mrf.mxu0  ;;  %v13834_v6 = vld [vmem:[%s18598_s13 + $0x80] sm:$0xff]  }
0x15ef   :  { %v6803_v20 = vadd.f32 %v12471_v33, %v12449_v24  ;;  %12559 = vmatpush3.bf16.msra.mxu1 %v13834_v6  ;;  %v19469_v33 = vld [vmem:[#allocation45_spill] sm:$0xff] }
0x15f0   :  { %v12451_v40 = vpop.f32.mrf.mxu0  ;;  %12842 = vmatprep.subr.mxu1 %v19133_v13 }
0x15f1   :  { %v12452_v39 = vadd.f32 %v12451_v40, %v12450_v35 }
0x15f3   :  { %v6806_v41 = vadd.f32 %v12474_v21, %v12452_v39  ;;  %v19426_v39 = vmov 0 }
0x1603   :  { %v12513_v11 = vpop.f32.mrf.mxu1 }
0x1605   :  { %v12514_v47 = vpop.f32.mrf.mxu1 }
0x1606   :  { %v12515_v56 = vadd.f32 %v12514_v47, %v12513_v11  ;;  %v6965_v11 = vand.u32 3, %v19375_v44 }
0x1607   :  { %v12516_v54 = vpop.f32.mrf.mxu1 }
0x1608   :  { %vm6966_vm7 = vcmp.ge.s32.totalorder %v6965_v11, 1  ;;  %vm6982_vm5 = vcmp.le.s32.totalorder %v6965_v11, 2 }
0x1609   :  { %v12517_v62 = vpop.f32.mrf.mxu1  ;;  %vm17607_vm15 = vmpackc.low %vm6966_vm7, %vm6966_vm7 }
0x160a   :  { %v12491_v42 = vpop.f32.mrf.mxu0  ;;  %v12518_v45 = vadd.f32 %v12517_v62, %v12516_v54  ;;  %v19427_v39 = vsel %vm17607_vm15, 4294967295, %v19426_v39  ;;  %vm17616_vm6 = vmpackc.low %vm6982_vm5, %vm6982_vm5 }
0x160c   :  { %v12492_v2 = vpop.f32.mrf.mxu0 }
0x160d   :  { %v12493_v17 = vadd.f32 %v12492_v2, %v12491_v42 }
0x160e   :  { %v12494_v5 = vpop.f32.mrf.mxu0 }
0x160f   :  { %v6844_v18 = vadd.f32 %v12493_v17, %v6803_v20 }
0x1610   :  { %v12495_v22 = vpop.f32.mrf.mxu0 }
0x1611   :  { %v12496_v26 = vadd.f32 %v12495_v22, %v12494_v5  ;;  %v6885_v60 = vadd.f32 %v12515_v56, %v6844_v18  ;;  %v13837_v18 = vld [vmem:[%s18598_s13 + $0x170] sm:$0xff]  }
0x1613   :  { %v6847_v46 = vadd.f32 %v12496_v26, %v6806_v41  ;;  %v13836_v41 = vld [vmem:[%s18598_s13 + $0x138] sm:$0xff]  }
0x1615   :  { %v6888_v15 = vadd.f32 %v12518_v45, %v6847_v46 }
0x1617   :  { %12836 = vmatpush3.msra.mxu0 %v6888_v15  ;;  %v13838_v15 = vld [vmem:[%s18598_s13 + $0x130] sm:$0xff]  }
0x1618   :  { %12837 = vmatprep.subr.mxu0 %v19133_v13 }
0x1619   :  { %12838 = vmatpush3.msra.mxu0 %v6885_v60  ;;  %v19432_v60 = vld [vmem:[#allocation68_spill] sm:$0xff] }
0x161a   :  { %12840 = vmatmul.mubr.msk.f32.vlgmr.msra.gmra.mxu0 %vm19425_vm13, %v19424_v30  ;;  %12522 = vmatprep.subr.bf16.mxu0 %v13803_v48  ;;  %v13839_v48 = vld [vmem:[%s18598_s13 + $0x168] sm:$0xff]   ;;  %vm19433_vm0 = vnez %v19432_v60  ;;  %v13841_v30 = vld [vmem:[%s18598_s13 + $0x160] sm:$0xff]  }
0x161b   :  { %12523 = vmatpush3.bf16.msra.mxu0 %v13804_v10  ;;  %v13840_v10 = vld [vmem:[%s18598_s13 + $0x128] sm:$0xff]  }
0x161c   :  { %12524 = vmatprep.subr.bf16.mxu0 %v13807_v3  ;;  %v19434_v3 = vld [vmem:[#allocation71_spill] sm:$0xff] }
0x161d   :  { %vm19435_vm1 = vnez %v19434_v3 }
0x161f   :  { %12525 = vmatpush3.bf16.msra.mxu0 %v13808_v32  ;;  %v19436_v32 = vld [vmem:[#allocation74_spill] sm:$0xff] }
0x1620   :  { %12526 = vmatprep.subr.bf16.mxu0 %v13811_v29  ;;  %vm19437_vm2 = vnez %v19436_v32  ;;  %v13842_v29 = vld [vmem:[%s18598_s13 + $0x120] sm:$0xff]  }
0x1623   :  { %12527 = vmatpush3.bf16.msra.mxu0 %v13812_v51  ;;  %v19438_v51 = vld [vmem:[#allocation76_spill] sm:$0xff] }
0x1624   :  { %12528 = vmatprep.subr.bf16.mxu0 %v13815_v25  ;;  %vm19439_vm13 = vnez %v19438_v51  ;;  %v13843_v25 = vld [vmem:[%s18598_s13 + $0x158] sm:$0xff]  }
0x1627   :  { %12529 = vmatpush3.bf16.msra.mxu0 %v13816_v14  ;;  %v19440_v14 = vld [vmem:[#allocation79_spill] sm:$0xff] }
0x1628   :  { %12530 = vmatprep.subr.bf16.mxu0 %v13819_v59  ;;  %vm19441_vm7 = vnez %v19440_v14  ;;  %v13844_v59 = vld [vmem:[%s18598_s13 + $0x118] sm:$0xff]  }
0x162b   :  { %12531 = vmatpush3.bf16.msra.mxu0 %v13820_v28  ;;  %v19442_v28 = vld [vmem:[#allocation82_spill] sm:$0xff] }
0x162c   :  { %12532 = vmatprep.subr.bf16.mxu0 %v13823_v49  ;;  %vm19443_vm9 = vnez %v19442_v28  ;;  %v13845_v49 = vld [vmem:[%s18598_s13 + $0x150] sm:$0xff]  }
0x162f   :  { %12533 = vmatpush3.bf16.msra.mxu0 %v13824_v55  ;;  %v19444_v55 = vld [vmem:[#allocation84_spill] sm:$0xff] }
0x1630   :  { %12534 = vmatprep.subr.bf16.mxu0 %v13827_v23  ;;  %vm19445_vm5 = vnez %v19444_v55  ;;  %v13847_v23 = vld [vmem:[%s18598_s13 + $0x148] sm:$0xff]  }
0x1633   :  { %12535 = vmatpush3.bf16.msra.mxu0 %v13828_v36  ;;  %v13848_v36 = vld [vmem:[%s18598_s13 + $0x108] sm:$0xff]  }
0x1634   :  { %12536 = vmatprep.subr.bf16.mxu0 %v13831_v4 }
0x1637   :  { %12537 = vmatpush3.bf16.msra.mxu0 %v13832_v19 }
0x1638   :  { %12566 = vmatprep.subr.bf16.mxu0 %v13835_v37 }
0x16da   :  { %v6960_v35 = vpop.f32.mrf.mxu0 }
0x16db   :  { %v6961_v40 = vadd.f32 %v6960_v35, %v6891_v31 }
0x16dc   :  { %v12841_v47 = vpop.f32.mrf.mxu0 }
0x16dd   :  { %v17602_v42 = vpack.c.bf16 %v6961_v40, %v6961_v40  ;;  %v7092_v47 = vld [vmem:[#allocation2 + $0x22] ss:$0 sm:$0xff] }
0x16df   :  { %v6968_v54 = vshrl.u32 %v17602_v42, 16  ;;  %v6973_v2 = vshll.u32 %v17602_v42, 16  ;;  %7413 = vmatprep.mubr.bf16.mxu0 %v17602_v42 }
0x16e1   :  { %v6972_v24 = vrot.slane %v6968_v54, 7  ;;  %v6983_v5 = vrot.slane %v6973_v2, 1  ;;  %v6970_v21 = vrot.slane %v6968_v54, 3  ;;  %v6986_v22 = vrot.slane %v6973_v2, 5 }
0x16e3   :  { %v6975_v17 = vor.u32 %v6973_v2, %v6972_v24  ;;  %v6984_v62 = vor.u32 %v6983_v5, %v6968_v54 }
0x16e5   :  { %v6977_v26 = vsel %vm19416_vm4, %v6970_v21, %v6975_v17  ;;  %v6991_v45 = vsel %vm17612_vm3, %v6984_v62, %v6986_v22 }
0x16e6   :  { %v6981_v46 = vsel %vm17607_vm15, %v6977_v26, 0  ;;  %v6995_v56 = vsel %vm17616_vm6, %v6991_v45, 0  ;;  %vm19452_vm15 = vcmask 130048  }
0x16e7   :  { %7414 = vmatmul.mubr.bf16.vlgmr.msra.gmra.mxu0 %v6981_v46  ;;  %7453 = vmatprep.mubr.bf16.mxu1 %v6981_v46 }
0x16e8   :  { %12567 = vmatpush3.bf16.msra.mxu0 %v13836_v41  ;;  %7454 = vmatmul.mubr.bf16.vlgmr.msra.gmra.mxu1 %v6995_v56 }
0x16e9   :  { %7493 = vmatprep.mubr.bf16.mxu0 %v6995_v56  ;;  %12568 = vmatprep.subr.bf16.mxu0 %v13837_v18 }
0x16ea   :  { %12843 = vmatpush3.msk.msra.mxu1 %vm19433_vm0, %v19073_v12  ;;  %12858 = vmatprep.mubr.msk.f32.mxu1 %vm19423_vm10, %v19133_v13 }
0x16eb   :  { %12844 = vmatprep.subr.mxu1 %v19133_v13 }
0x16ec   :  { %12569 = vmatpush3.bf16.msra.mxu0 %v13838_v15  ;;  %12845 = vmatpush3.msk.msra.mxu1 %vm19435_vm1, %v19073_v12 }
0x16ed   :  { %12570 = vmatprep.subr.bf16.mxu0 %v13839_v48  ;;  %12846 = vmatprep.subr.mxu1 %v19133_v13 }
0x16ee   :  { %12847 = vmatpush3.msk.msra.mxu1 %vm19437_vm2, %v19073_v12 }
0x16ef   :  { %12848 = vmatprep.subr.mxu1 %v19133_v13 }
0x16f0   :  { %12571 = vmatpush3.bf16.msra.mxu0 %v13840_v10  ;;  %12849 = vmatpush3.msk.msra.mxu1 %vm19439_vm13, %v19073_v12  ;;  %v19448_v10 = vld [vmem:[#allocation91_spill] sm:$0xff] }
0x16f1   :  { %12572 = vmatprep.subr.bf16.mxu0 %v13841_v30  ;;  %12850 = vmatprep.subr.mxu1 %v19133_v13  ;;  %vm19449_vm8 = vnez %v19448_v10  ;;  %v19450_v30 = vld [vmem:[#allocation93_spill] sm:$0xff] }
0x16f2   :  { %12851 = vmatpush3.msk.msra.mxu1 %vm19441_vm7, %v19073_v12  ;;  %vm19451_vm12 = vnez %v19450_v30  ;;  %v13865_v10 = vld [vmem:[#allocation16 + $0x38] sm:$0xff]   ;;  %v13867_v30 = vld [vmem:[#allocation16 + $0x28] sm:$0xff]  }
0x16f3   :  { %12852 = vmatprep.subr.mxu1 %v19133_v13 }
0x16f4   :  { %12573 = vmatpush3.bf16.msra.mxu0 %v13842_v29  ;;  %12853 = vmatpush3.msk.msra.mxu1 %vm19443_vm9, %v19073_v12 }
0x16f5   :  { %12574 = vmatprep.subr.bf16.mxu0 %v13843_v25  ;;  %12854 = vmatprep.subr.mxu1 %v19133_v13 }
0x16f6   :  { %12855 = vmatpush3.msk.msra.mxu1 %vm19445_vm5, %v19073_v12 }
0x16f7   :  { %12856 = vmatprep.subr.mxu1 %v19133_v13 }
0x16f8   :  { %12575 = vmatpush3.bf16.msra.mxu0 %v13844_v59  ;;  %12857 = vmatpush3.msk.msra.mxu1 %vm19447_vm11, %v19073_v12 }
0x16f9   :  { %12576 = vmatprep.subr.bf16.mxu0 %v13845_v49  ;;  %12861 = vmatprep.subr.mxu1 %v19133_v13 }
0x16fc   :  { %12577 = vmatpush3.bf16.msra.mxu0 %v13846_v53 }
0x16fd   :  { %12578 = vmatprep.subr.bf16.mxu0 %v13847_v23 }
0x1700   :  { %12579 = vmatpush3.bf16.msra.mxu0 %v13848_v36 }
0x1701   :  { %12580 = vmatprep.subr.bf16.mxu0 %v13849_v1 }
0x1704   :  { %12581 = vmatpush3.bf16.msra.mxu0 %v13850_v0 }
0x1705   :  { %8024 = vmatprep.subr.bf16.mxu0 %v19412_v61 }
0x1707   :  { %7494 = vmatmul.mubr.bf16.vlgmr.msra.gmra.mxu0 %v17602_v42 }
0x17a7   :  { %v12538_v4 = vpop.f32.mrf.mxu0 }
0x17a8   :  { %v12560_v38 = vpop.f32.mrf.mxu1 }
0x17a9   :  { %v12539_v19 = vpop.f32.mrf.mxu0 }
0x17aa   :  { %v12561_v37 = vpop.f32.mrf.mxu1  ;;  %v12540_v40 = vadd.f32 %v12539_v19, %v12538_v4 }
0x17ab   :  { %v12541_v6 = vpop.f32.mrf.mxu0  ;;  %v12562_v2 = vadd.f32 %v12561_v37, %v12560_v38 }
0x17ac   :  { %v12563_v31 = vpop.f32.mrf.mxu1  ;;  %v7416_v54 = vadd.f32 %v12540_v40, %v7092_v47  ;;  %v13852_v47 = vld [vmem:[#allocation15] sm:$0xff]  }
0x17ad   :  { %v12542_v35 = vpop.f32.mrf.mxu0 }
0x17ae   :  { %v12564_v11 = vpop.f32.mrf.mxu1  ;;  %v7456_v21 = vadd.f32 %v12562_v2, %v7416_v54  ;;  %v13851_v35 = vld [vmem:[#allocation15 + $0x8] sm:$0xff]   ;;  %v19453_v54 = vld [vmem:[#allocation94_spill] sm:$0xff] }
0x17af   :  { %v13853_v2 = vld [vmem:[%s18599_s14 + $0x38] sm:$0xff]  }
0x17b0   :  { %8025 = vmatpush1.bf16.msra.mxu0 %v13853_v2 }
0x17b1   :  { %8026 = vmatprep.subr.bf16.mxu0 %v19412_v61 }
0x17c7   :  { %v12582_v24 = vpop.f32.mrf.mxu0 }
0x17c9   :  { %v12583_v5 = vpop.f32.mrf.mxu0 }
0x17ca   :  { %v12584_v17 = vadd.f32 %v12583_v5, %v12582_v24  ;;  %v13854_v24 = vld [vmem:[%s18599_s14 + $0x30] sm:$0xff]   ;;  %v13855_v5 = vld [vmem:[%s18599_s14 + $0x28] sm:$0xff]  }
0x17cb   :  { %v12585_v62 = vpop.f32.mrf.mxu0  ;;  %8027 = vmatpush1.bf16.msra.mxu0 %v13854_v24 }
0x17cc   :  { %v7496_v22 = vadd.f32 %v12584_v17, %v7456_v21  ;;  %8028 = vmatprep.subr.bf16.mxu0 %v19412_v61  ;;  %v13856_v21 = vld [vmem:[%s18599_s14 + $0x20] sm:$0xff]   ;;  %v13857_v17 = vld [vmem:[%s18599_s14 + $0x18] sm:$0xff]   ;;  %v13858_v62 = vld [vmem:[%s18599_s14 + $0x10] sm:$0xff]  }
0x17cd   :  { %v12586_v42 = vpop.f32.mrf.mxu0 }
0x17ce   :  { %v7501_v41 = vmax.f32 %v7496_v22, 0.0  ;;  %v13859_v22 = vld [vmem:[%s18599_s14 + $0x8] sm:$0xff]   ;;  %v13860_v42 = vld [vmem:[%s18599_s14] sm:$0xff]  }
0x17cf   :  { %8029 = vmatpush1.bf16.msra.mxu0 %v13855_v5 }
0x17d0   :  { %v7505_v26 = vsel %vm18911_vm14, %v7501_v41, 0.0  ;;  %8030 = vmatprep.subr.bf16.mxu0 %v19412_v61 }
0x17d1   :  { %v7506_v45 = vrot.slane %v7505_v26, 4 }
0x17d3   :  { %v7507_v18 = vadd.f32 %v7506_v45, %v7505_v26  ;;  %8031 = vmatpush1.bf16.msra.mxu0 %v13856_v21  ;;  %v13862_v26 = vld [vmem:[%s18599_s14 + $0x50] sm:$0xff]   ;;  %v13863_v45 = vld [vmem:[%s18599_s14 + $0x48] sm:$0xff]  }
0x17d4   :  { %8032 = vmatprep.subr.bf16.mxu0 %v19412_v61 }
0x17d5   :  { %v7508_v46 = vrot.slane %v7507_v18, 2 }
0x17d7   :  { %v7509_v56 = vadd.f32 %v7508_v46, %v7507_v18  ;;  %8033 = vmatpush1.bf16.msra.mxu0 %v13857_v17  ;;  %v13864_v18 = vld [vmem:[%s18599_s14 + $0x40] sm:$0xff]  }
0x17d8   :  { %8034 = vmatprep.subr.bf16.mxu0 %v19412_v61 }
0x17d9   :  { %v7510_v15 = vrot.slane %v7509_v56, 1 }
0x17db   :  { %v7511_v48 = vadd.f32 %v7510_v15, %v7509_v56  ;;  %8035 = vmatpush1.bf16.msra.mxu0 %v13858_v62 }
0x17dc   :  { %8036 = vmatprep.subr.bf16.mxu0 %v19412_v61 }
0x17dd   :  { %12859 = vmatmul.mubr.msk.f32.vlgmr.msra.gmra.mxu1 %vm18911_vm14, %v7511_v48 }
0x17de   :  { %12862 = vmatpush3.msk.msra.mxu1 %vm19449_vm8, %v19073_v12  ;;  %12865 = vmatprep.mubr.msk.f32.mxu1 %vm19423_vm10, %v19133_v13 }
0x17df   :  { %12863 = vmatprep.subr.mxu1 %v19133_v13  ;;  %8037 = vmatpush1.bf16.msra.mxu0 %v13859_v22 }
0x17e0   :  { %12864 = vmatpush3.msk.msra.mxu1 %vm19451_vm12, %v19073_v12  ;;  %8038 = vmatprep.subr.bf16.mxu0 %v19412_v61 }
0x17e1   :  { %12868 = vmatprep.subr.mxu1 %v19133_v13 }
0x17e3   :  { %8039 = vmatpush1.bf16.msra.mxu0 %v13860_v42 }
0x17e4   :  { %8048 = vmatprep.subr.bf16.mxu0 %v19412_v61 }
0x189d   :  { %v7581_v29 = vpop.f32.mrf.mxu1 }
0x189e   :  { %12866 = vmatmul.mubr.msk.f32.vlgmr.msra.gmra.mxu1 %vm19452_vm15, %v7581_v29 }
0x189f   :  { %v12860_v25 = vpop.f32.mrf.mxu1  ;;  %12869 = vmatpush3.msk.msra.mxu1 %vm19433_vm0, %v19073_v12  ;;  %12884 = vmatprep.mubr.msk.f32.mxu1 %vm19423_vm10, %v19133_v13 }
0x18a0   :  { %12870 = vmatprep.subr.mxu1 %v19133_v13 }
0x18a1   :  { %12871 = vmatpush3.msk.msra.mxu1 %vm19435_vm1, %v19073_v12 }
0x18a2   :  { %12872 = vmatprep.subr.mxu1 %v19133_v13 }
0x18a3   :  { %12873 = vmatpush3.msk.msra.mxu1 %vm19437_vm2, %v19073_v12 }
0x18a4   :  { %12874 = vmatprep.subr.mxu1 %v19133_v13 }
0x18a5   :  { %12875 = vmatpush3.msk.msra.mxu1 %vm19439_vm13, %v19073_v12 }
0x18a6   :  { %12876 = vmatprep.subr.mxu1 %v19133_v13 }
0x18a7   :  { %12877 = vmatpush3.msk.msra.mxu1 %vm19441_vm7, %v19073_v12 }
0x18a8   :  { %12878 = vmatprep.subr.mxu1 %v19133_v13 }
0x18a9   :  { %12879 = vmatpush3.msk.msra.mxu1 %vm19443_vm9, %v19073_v12 }
0x18aa   :  { %12880 = vmatprep.subr.mxu1 %v19133_v13 }
0x18ab   :  { %12881 = vmatpush3.msk.msra.mxu1 %vm19445_vm5, %v19073_v12 }
0x18ac   :  { %12882 = vmatprep.subr.mxu1 %v19133_v13 }
0x18ad   :  { %12883 = vmatpush3.msk.msra.mxu1 %vm19447_vm11, %v19073_v12 }
0x18ae   :  { %12887 = vmatprep.subr.mxu1 %v19133_v13 }
0x195e   :  { %v7654_v59 = vpop.f32.mrf.mxu1 }
0x195f   :  { %v7658_v49 = vmul.f32 0.03125, %v7654_v59  ;;  %v7832_v59 = vld [vmem:[#allocation2 + $0x25] ss:$0 sm:$0xff] }
0x1960   :  { %v12867_v53 = vpop.f32.mrf.mxu1 }
0x1961   :  { %v7662_v23 = vrot.slane %v7658_v49, %v19407_v7 }
0x1963   :  { %v17757_v36 = vsub.f32 %v7501_v41, %v7662_v23  ;;  %v13861_v41 = vld [vmem:[%s18599_s14 + $0x58] sm:$0xff]  }
0x1964   :  { %8049 = vmatpush2.bf16.msra.mxu0 %v13861_v41 }
0x1965   :  { %v7664_v1 = vmul.f32 %v17757_v36, %v17757_v36  ;;  %8050 = vmatprep.subr.bf16.mxu0 %v19412_v61 }
0x1967   :  { %v7665_v0 = vsel %vm18911_vm14, %v7664_v1, 0.0  ;;  %v7502_v1 = vld [vmem:[#allocation2 + $0x23] ss:$0 sm:$0xff] }
0x1968   :  { %v7666_v4 = vrot.slane %v7665_v0, 4  ;;  %8051 = vmatpush2.bf16.msra.mxu0 %v13862_v26 }
0x1969   :  { %8052 = vmatprep.subr.bf16.mxu0 %v19412_v61 }
0x196a   :  { %v7667_v38 = vadd.f32 %v7666_v4, %v7665_v0 }
0x196c   :  { %v7668_v19 = vrot.slane %v7667_v38, 2  ;;  %8053 = vmatpush2.bf16.msra.mxu0 %v13863_v45 }
0x196d   :  { %8054 = vmatprep.subr.bf16.mxu0 %v19412_v61 }
0x196e   :  { %v7669_v37 = vadd.f32 %v7668_v19, %v7667_v38 }
0x1970   :  { %v7670_v6 = vrot.slane %v7669_v37, 1  ;;  %8055 = vmatpush2.bf16.msra.mxu0 %v13864_v18 }
0x1971   :  { %12974 = vmatprep.subr.bf16.mxu0 %v19133_v13 }
0x1972   :  { %v7671_v31 = vadd.f32 %v7670_v6, %v7669_v37 }
0x1974   :  { %12885 = vmatmul.mubr.msk.f32.vlgmr.msra.gmra.mxu1 %vm18911_vm14, %v7671_v31  ;;  %vm19454_vm14 = vcmask 261120   ;;  %v7503_v31 = vld [vmem:[#allocation2 + $0x24] ss:$0 sm:$0xff] }
0x1975   :  { %12888 = vmatpush3.msk.msra.mxu1 %vm19449_vm8, %v19073_v12  ;;  %12891 = vmatprep.mubr.msk.f32.mxu1 %vm19423_vm10, %v19133_v13 }
0x1976   :  { %12889 = vmatprep.subr.mxu1 %v19133_v13 }
0x1977   :  { %12890 = vmatpush3.msk.msra.mxu1 %vm19451_vm12, %v19073_v12 }
0x1978   :  { %12894 = vmatprep.subr.bf16.mxu1 %v19133_v13 }
0x1a34   :  { %v7741_v11 = vpop.f32.mrf.mxu1 }
0x1a35   :  { %12892 = vmatmul.mubr.msk.f32.vlgmr.msra.gmra.mxu1 %vm19452_vm15, %v7741_v11  ;;  %vm19456_vm15 = vcmask 523264  }
0x1a36   :  { %12895 = vmatpush3.bf16.msra.mxu1 %v13851_v35  ;;  %v12886_v40 = vpop.f32.mrf.mxu1  ;;  %12898 = vmatprep.mubr.msk.bf16.mxu1 %vm19423_vm10, %v19133_v13 }
0x1a37   :  { %12896 = vmatprep.subr.bf16.mxu1 %v19133_v13 }
0x1a3a   :  { %12897 = vmatpush3.bf16.msra.mxu1 %v13852_v47 }
0x1a3b   :  { %12902 = vmatprep.subr.mxu1 %v19133_v13 }
0x1a3d   :  { %12899 = vmatmul.mubr.msk.bf16.vlgmr.msra.gmra.mxu1 %vm19454_vm14, %v19453_v54  ;;  %vm19455_vm14 = vcmask 1043456  }
0x1a3e   :  { %12903 = vmatpush3.msk.msra.mxu1 %vm19433_vm0, %v19073_v12  ;;  %12918 = vmatprep.mubr.msk.f32.mxu1 %vm19423_vm10, %v19133_v13 }
0x1a3f   :  { %12904 = vmatprep.subr.mxu1 %v19133_v13 }
0x1a40   :  { %12905 = vmatpush3.msk.msra.mxu1 %vm19435_vm1, %v19073_v12 }
0x1a41   :  { %12906 = vmatprep.subr.mxu1 %v19133_v13 }
0x1a42   :  { %12907 = vmatpush3.msk.msra.mxu1 %vm19437_vm2, %v19073_v12 }
0x1a43   :  { %12908 = vmatprep.subr.mxu1 %v19133_v13 }
0x1a44   :  { %12909 = vmatpush3.msk.msra.mxu1 %vm19439_vm13, %v19073_v12 }
0x1a45   :  { %12910 = vmatprep.subr.mxu1 %v19133_v13 }
0x1a46   :  { %12911 = vmatpush3.msk.msra.mxu1 %vm19441_vm7, %v19073_v12 }
0x1a47   :  { %12912 = vmatprep.subr.mxu1 %v19133_v13 }
0x1a48   :  { %12913 = vmatpush3.msk.msra.mxu1 %vm19443_vm9, %v19073_v12 }
0x1a49   :  { %12914 = vmatprep.subr.mxu1 %v19133_v13 }
0x1a4a   :  { %12915 = vmatpush3.msk.msra.mxu1 %vm19445_vm5, %v19073_v12 }
0x1a4b   :  { %12916 = vmatprep.subr.mxu1 %v19133_v13 }
0x1a4c   :  { %12917 = vmatpush3.msk.msra.mxu1 %vm19447_vm11, %v19073_v12  ;;  %vm19458_vm11 = vmmov %vm19456_vm15 }
0x1a4d   :  { %12921 = vmatprep.subr.mxu1 %v19133_v13 }
0x1af5   :  { %v7814_v46 = vpop.f32.mrf.mxu1 }
0x1af6   :  { %v7818_v56 = vmul.f32 0.03125, %v7814_v46 }
0x1af7   :  { %v12893_v15 = vpop.f32.mrf.mxu1 }
0x1af8   :  { %v7819_v48 = vadd.f32 1e-05, %v7818_v56  ;;  %v7948_v15 = vld [vmem:[#allocation2 + $0x26] ss:$0 sm:$0xff] }
0x1afa   :  { %13983 = vrsqrt.f32 %v7819_v48 }
0x1afd   :  { %v7879_v29 = vpop.f32.mrf.mxu1 }
0x1afe   :  { %v7880_v53 = vadd.f32 %v7879_v29, %v7832_v59 }
0x1aff   :  { %v12900_v25 = vpop.f32.mrf.mxu1 }
0x1b00   :  { %v7885_v4 = vmax.f32 %v7880_v53, 0.0 }
0x1b01   :  { %v7882_v49 = vpop.f32.mrf.mxu1 }
0x1b02   :  { %v7889_v37 = vrot.slane %v7885_v4, %v19407_v7  ;;  %v7893_v6 = vrot.slane %v7885_v4, %v19337_v57 }
0x1b03   :  { %v12901_v23 = vpop.f32.mrf.mxu1 }
0x1b04   :  { %v7895_v40 = vsel %vm19455_vm14, %v7889_v37, %v7893_v6  ;;  %vm19457_vm14 = vnez %v19427_v39 }
0x1b07   :  { %v13984_v0 = vpop.eup %13983 }
0x1b08   :  { %v7821_v38 = vmul.f32 %v13984_v0, %v7502_v1 }
0x1b0a   :  { %v7825_v19 = vrot.slane %v7821_v38, %v19407_v7 }
0x1b0c   :  { %v7826_v35 = vmul.f32 %v7825_v19, %v17757_v36 }
0x1b0e   :  { %v7827_v11 = vadd.f32 %v7826_v35, %v7503_v31 }
0x1b10   :  { %v7896_v47 = vadd.f32 %v7895_v40, %v7827_v11 }
0x1b12   :  { %v7897_v2 = vpack.c.bf16 %v7896_v47, %v7896_v47 }
0x1b14   :  { %7918 = vrot.lane.b32.xlu0 %v7897_v2, %s14288_s28  ;;  %v7899_v24 = vshrl.u32 %v7897_v2, 16  ;;  %v7904_v5 = vshll.u32 %v7897_v2, 16 }
0x1b16   :  { %v7910_v21 = vrot.slane %v7904_v5, 1  ;;  %v7903_v17 = vrot.slane %v7899_v24, 7  ;;  %v7913_v22 = vrot.slane %v7904_v5, 5  ;;  %v7901_v42 = vrot.slane %v7899_v24, 3 }
0x1b18   :  { %v7911_v62 = vor.u32 %v7910_v21, %v7899_v24  ;;  %v7906_v41 = vor.u32 %v7904_v5, %v7903_v17  ;;  %v13868_v21 = vld [vmem:[#allocation18 + $0x38] sm:$0xff]   ;;  %v13866_v17 = vld [vmem:[#allocation16 + $0x30] sm:$0xff]  }
0x1b1a   :  { %v7915_v26 = vsel %vm17612_vm3, %v7911_v62, %v7913_v22  ;;  %v7908_v36 = vsel %vm19416_vm4, %v7901_v42, %v7906_v41  ;;  %vm19459_vm4 = vmmov %vm19458_vm11  ;;  %v13870_v62 = vld [vmem:[#allocation18 + $0x30] sm:$0xff]   ;;  %v13872_v22 = vld [vmem:[#allocation18 + $0x28] sm:$0xff]  }
0x1b1b   :  { %v7916_v45 = vsel %vm17616_vm6, %v7915_v26, 0  ;;  %v7909_v46 = vsel %vm19457_vm14, %v7908_v36, 0  ;;  %v13869_v42 = vld [vmem:[#allocation16 + $0x20] sm:$0xff]   ;;  %v13871_v26 = vld [vmem:[#allocation16 + $0x18] sm:$0xff]  }
0x1b1c   :  { %11824 = vmatprep.mubr.msk.bf16.mxu0 %vm19456_vm15, %v7916_v45  ;;  %v13874_v41 = vld [vmem:[#allocation18 + $0x20] sm:$0xff]   ;;  %v13876_v36 = vld [vmem:[#allocation18 + $0x18] sm:$0xff]   ;;  %v13873_v45 = vld [vmem:[#allocation16 + $0x10] sm:$0xff]   ;;  %vm19471_vm15 = vnez %v19417_v58 }
0x1b86   :  { %v7919_v18 = vpop.permute.xlu0 %7918 }
0x1b87   :  { %v7922_v56 = vsel %vm19458_vm11, %v7909_v46, %v7919_v18  ;;  %vm19460_vm11 = vmmov %vm19459_vm4  ;;  %v13878_v18 = vld [vmem:[#allocation18 + $0x10] sm:$0xff]   ;;  %v13875_v46 = vld [vmem:[#allocation16 + $0x8] sm:$0xff]  }
0x1b88   :  { %8057 = vmatmul.mubr.bf16.vlgmr.msra.gmra.mxu0 %v7922_v56  ;;  %v13877_v56 = vld [vmem:[#allocation16] sm:$0xff]  }
0x1b89   :  { %12990 = vmatprep.mubr.msk.bf16.mxu0 %vm19423_vm10, %v19133_v13  ;;  %12975 = vmatpush3.bf16.msra.mxu0 %v13868_v21  ;;  %v13883_v21 = vld [vmem:[%s18603_s18 + $0xf8] sm:$0xff]  }
0x1b8a   :  { %12976 = vmatprep.subr.bf16.mxu0 %v19133_v13 }
0x1b8d   :  { %12977 = vmatpush3.bf16.msra.mxu0 %v13870_v62 }
0x1b8e   :  { %12978 = vmatprep.subr.bf16.mxu0 %v19133_v13 }
0x1b91   :  { %12979 = vmatpush3.bf16.msra.mxu0 %v13872_v22  ;;  %v13887_v22 = vld [vmem:[%s18603_s18 + $0xf0] sm:$0xff]  }
0x1b92   :  { %12980 = vmatprep.subr.bf16.mxu0 %v19133_v13 }
0x1b95   :  { %12981 = vmatpush3.bf16.msra.mxu0 %v13874_v41 }
0x1b96   :  { %12982 = vmatprep.subr.bf16.mxu0 %v19133_v13 }
0x1b99   :  { %12983 = vmatpush3.bf16.msra.mxu0 %v13876_v36  ;;  %v13888_v36 = vld [vmem:[%s18603_s18 + $0xb0] sm:$0xff]  }
0x1b9a   :  { %12984 = vmatprep.subr.bf16.mxu0 %v19133_v13 }
0x1b9d   :  { %12985 = vmatpush3.bf16.msra.mxu0 %v13878_v18 }
0x1b9e   :  { %12986 = vmatprep.subr.bf16.mxu0 %v19133_v13 }
0x1c48   :  { %v8058_v48 = vpop.f32.mrf.mxu0 }
0x1c49   :  { %v8059_v29 = vadd.f32 %v8058_v48, %v7948_v15 }
0x1c4a   :  { %v8060_v25 = vpop.f32.mrf.mxu0 }
0x1c4b   :  { %v8064_v59 = vmax.f32 %v8059_v29, 0.0 }
0x1c4c   :  { %v8061_v49 = vpop.f32.mrf.mxu0 }
0x1c4d   :  { %v8067_v53 = vsel %vm19459_vm4, %v8064_v59, 0.0  ;;  %vm19461_vm4 = vcmask 130048   ;;  %v13879_v49 = vld [vmem:[#allocation18 + $0x8] sm:$0xff]  }
0x1c4e   :  { %v8068_v23 = vrot.slane %v8067_v53, 4  ;;  %v8062_v1 = vpop.f32.mrf.mxu0  ;;  %12987 = vmatpush3.bf16.msra.mxu0 %v13879_v49 }
0x1c4f   :  { %v13880_v1 = vld [vmem:[#allocation18] sm:$0xff]   ;;  %12988 = vmatprep.subr.bf16.mxu0 %v19133_v13 }
0x1c50   :  { %v8069_v0 = vadd.f32 %v8068_v23, %v8067_v53 }
0x1c52   :  { %v8070_v4 = vrot.slane %v8069_v0, 2  ;;  %12989 = vmatpush3.bf16.msra.mxu0 %v13880_v1  ;;  %v13889_v1 = vld [vmem:[%s18603_s18 + $0x68] sm:$0xff]  }
0x1c54   :  { %v8071_v38 = vadd.f32 %v8070_v4, %v8069_v0  ;;  %v8066_v4 = vld [vmem:[#allocation2 + $0x30] ss:$0 sm:$0xff] }
0x1c56   :  { %v8072_v19 = vrot.slane %v8071_v38, 1 }
0x1c58   :  { %v8073_v37 = vadd.f32 %v8072_v19, %v8071_v38 }
0x1c5a   :  { %12919 = vmatmul.mubr.msk.f32.vlgmr.msra.gmra.mxu1 %vm19460_vm11, %v8073_v37 }
0x1c5b   :  { %12922 = vmatpush3.msk.msra.mxu1 %vm19449_vm8, %v19073_v12  ;;  %12925 = vmatprep.mubr.msk.f32.mxu1 %vm19423_vm10, %v19133_v13 }
0x1c5c   :  { %12923 = vmatprep.subr.mxu1 %v19133_v13 }
0x1c5d   :  { %12924 = vmatpush3.msk.msra.mxu1 %vm19451_vm12, %v19073_v12 }
0x1c5e   :  { %12928 = vmatprep.subr.mxu1 %v19133_v13 }
0x1d1a   :  { %v8143_v6 = vpop.f32.mrf.mxu1 }
0x1d1b   :  { %12926 = vmatmul.mubr.msk.f32.vlgmr.msra.gmra.mxu1 %vm19461_vm4, %v8143_v6 }
0x1d1c   :  { %v12920_v31 = vpop.f32.mrf.mxu1  ;;  %12929 = vmatpush3.msk.msra.mxu1 %vm19433_vm0, %v19073_v12  ;;  %12944 = vmatprep.mubr.msk.f32.mxu1 %vm19423_vm10, %v19133_v13  ;;  %vm19462_vm0 = vnez %v19446_v8 }
0x1d1d   :  { %12930 = vmatprep.subr.mxu1 %v19133_v13 }
0x1d1e   :  { %12931 = vmatpush3.msk.msra.mxu1 %vm19435_vm1, %v19073_v12  ;;  %vm19463_vm1 = vmmov %vm19460_vm11  ;;  %vm19472_vm11 = vnez %v19419_v34 }
0x1d1f   :  { %12932 = vmatprep.subr.mxu1 %v19133_v13 }
0x1d20   :  { %12933 = vmatpush3.msk.msra.mxu1 %vm19437_vm2, %v19073_v12  ;;  %vm19464_vm2 = vmmov %vm19463_vm1 }
0x1d21   :  { %12934 = vmatprep.subr.mxu1 %v19133_v13 }
0x1d22   :  { %12935 = vmatpush3.msk.msra.mxu1 %vm19439_vm13, %v19073_v12  ;;  %vm19465_vm13 = vmmov %vm19461_vm4  ;;  %vm19473_vm4 = vnez %v19421_v27 }
0x1d23   :  { %12936 = vmatprep.subr.mxu1 %v19133_v13 }
0x1d24   :  { %12937 = vmatpush3.msk.msra.mxu1 %vm19441_vm7, %v19073_v12  ;;  %vm19468_vm7 = vmmov %vm19463_vm1 }
0x1d25   :  { %12938 = vmatprep.subr.mxu1 %v19133_v13 }
0x1d26   :  { %12939 = vmatpush3.msk.msra.mxu1 %vm19443_vm9, %v19073_v12 }
0x1d27   :  { %12940 = vmatprep.subr.mxu1 %v19133_v13 }
0x1d28   :  { %12941 = vmatpush3.msk.msra.mxu1 %vm19445_vm5, %v19073_v12 }
0x1d29   :  { %12942 = vmatprep.subr.mxu1 %v19133_v13 }
0x1d2a   :  { %12943 = vmatpush3.msk.msra.mxu1 %vm19462_vm0, %v19073_v12 }
0x1d2b   :  { %12947 = vmatprep.subr.mxu1 %v19133_v13 }
0x1ddb   :  { %v8216_v60 = vpop.f32.mrf.mxu1 }
0x1ddc   :  { %v8220_v3 = vmul.f32 0.03125, %v8216_v60 }
0x1ddd   :  { %v12927_v32 = vpop.f32.mrf.mxu1 }
0x1dde   :  { %v8224_v51 = vrot.slane %v8220_v3, %v19407_v7 }
0x1de0   :  { %v17928_v14 = vsub.f32 %v8064_v59, %v8224_v51  ;;  %v8065_v59 = vld [vmem:[#allocation2 + $0x27] ss:$0 sm:$0xff] }
0x1de2   :  { %v8226_v28 = vmul.f32 %v17928_v14, %v17928_v14 }
0x1de4   :  { %v8227_v55 = vsel %vm19463_vm1, %v8226_v28, 0.0 }
0x1de5   :  { %v8228_v35 = vrot.slane %v8227_v55, 4 }
0x1de7   :  { %v8229_v11 = vadd.f32 %v8228_v35, %v8227_v55 }
0x1de9   :  { %v8230_v40 = vrot.slane %v8229_v11, 2 }
0x1deb   :  { %v8231_v47 = vadd.f32 %v8230_v40, %v8229_v11 }
0x1ded   :  { %v8232_v8 = vrot.slane %v8231_v47, 1 }
0x1def   :  { %v8233_v2 = vadd.f32 %v8232_v8, %v8231_v47 }
0x1df1   :  { %12945 = vmatmul.mubr.msk.f32.vlgmr.msra.gmra.mxu1 %vm19464_vm2, %v8233_v2 }
0x1df2   :  { %12948 = vmatpush3.msk.msra.mxu1 %vm19449_vm8, %v19073_v12  ;;  %12951 = vmatprep.mubr.msk.f32.mxu1 %vm19423_vm10, %v19133_v13  ;;  %vm19467_vm8 = vmmov %vm19463_vm1 }
0x1df3   :  { %12949 = vmatprep.subr.mxu1 %v19133_v13 }
0x1df4   :  { %12950 = vmatpush3.msk.msra.mxu1 %vm19451_vm12, %v19073_v12  ;;  %vm19466_vm12 = vnez %v19415_v52 }
0x1df5   :  { %12954 = vmatprep.subr.bf16.mxu1 %v19133_v13 }
0x1eb1   :  { %v8303_v24 = vpop.f32.mrf.mxu1 }
0x1eb2   :  { %12952 = vmatmul.mubr.msk.f32.vlgmr.msra.gmra.mxu1 %vm19465_vm13, %v8303_v24 }
0x1eb3   :  { %v12946_v5 = vpop.f32.mrf.mxu1  ;;  %12970 = vmatprep.mubr.msk.bf16.mxu1 %vm19423_vm10, %v19133_v13  ;;  %12955 = vmatpush3.bf16.msra.mxu1 %v13865_v10 }
0x1eb4   :  { %12956 = vmatprep.subr.bf16.mxu1 %v19133_v13  ;;  %v17976_v5 = vmul.u32 2, %v19469_v33 }
0x1eb6   :  { %v17986_v39 = vadd.s32 1, %v17976_v5  ;;  %vm8633_vm5 = vcmp.eq.s32.totalorder %v19372_v16, %v17976_v5 }
0x1eb7   :  { %12957 = vmatpush3.bf16.msra.mxu1 %v13866_v17  ;;  %v18001_v62 = vsel %vm8633_vm5, 1.0, %v19133_v13  ;;  %vm19492_vm5 = vcmask 523264  }
0x1eb8   :  { %12958 = vmatprep.subr.bf16.mxu1 %v19133_v13  ;;  %vm8639_vm9 = vcmp.eq.s32.totalorder %v19375_v44, %v17986_v39 }
0x1eb9   :  { %v17991_v10 = vsel %vm8639_vm9, 1.0, %v19133_v13  ;;  %vm18914_vm9 = vcmp.eq.s32.totalorder %v19409_v63, %v19469_v33 }
0x1ebb   :  { %12959 = vmatpush3.bf16.msra.mxu1 %v13867_v30  ;;  %v13884_v30 = vld [vmem:[%s18603_s18 + $0xb8] sm:$0xff]  }
0x1ebc   :  { %12960 = vmatprep.subr.bf16.mxu1 %v19133_v13 }
0x1ebf   :  { %12961 = vmatpush3.bf16.msra.mxu1 %v13869_v42 }
0x1ec0   :  { %12962 = vmatprep.subr.bf16.mxu1 %v19133_v13 }
0x1ec3   :  { %12963 = vmatpush3.bf16.msra.mxu1 %v13871_v26  ;;  %v19470_v26 = vld [vmem:[#allocation35_spill] sm:$0xff] }
0x1ec4   :  { %12964 = vmatprep.subr.bf16.mxu1 %v19133_v13 }
0x1ec7   :  { %12965 = vmatpush3.bf16.msra.mxu1 %v13873_v45  ;;  %v13891_v45 = vld [vmem:[%s18603_s18 + $0xe8] sm:$0xff]  }
0x1ec8   :  { %12966 = vmatprep.subr.bf16.mxu1 %v19133_v13 }
0x1ecb   :  { %12967 = vmatpush3.bf16.msra.mxu1 %v13875_v46  ;;  %v13881_v46 = vld [vmem:[%s18603_s18 + $0x78] sm:$0xff]  }
0x1ecc   :  { %12968 = vmatprep.subr.bf16.mxu1 %v19133_v13 }
0x1ecf   :  { %12969 = vmatpush3.bf16.msra.mxu1 %v13877_v56 }
0x1f72   :  { %v8376_v15 = vpop.f32.mrf.mxu1 }
0x1f73   :  { %v8380_v48 = vmul.f32 0.03125, %v8376_v15 }
0x1f74   :  { %v12953_v29 = vpop.f32.mrf.mxu1 }
0x1f75   :  { %v8381_v25 = vadd.f32 1e-05, %v8380_v48  ;;  %v13882_v48 = vld [vmem:[%s18603_s18 + $0x38] sm:$0xff]   ;;  %v13885_v29 = vld [vmem:[%s18603_s18 + $0x70] sm:$0xff]  }
0x1f77   :  { %13985 = vrsqrt.f32 %v8381_v25  ;;  %v13895_v25 = vld [vmem:[%s18603_s18 + $0xe0] sm:$0xff]  }
0x1f84   :  { %v13986_v53 = vpop.eup %13985 }
0x1f85   :  { %v8383_v23 = vmul.f32 %v13986_v53, %v8065_v59  ;;  %v13886_v53 = vld [vmem:[%s18603_s18 + $0x30] sm:$0xff]  }
0x1f87   :  { %v8387_v0 = vrot.slane %v8383_v23, %v19407_v7  ;;  %v13896_v23 = vld [vmem:[%s18603_s18 + $0xa0] sm:$0xff]  }
0x1f89   :  { %v8388_v38 = vmul.f32 %v8387_v0, %v17928_v14 }
0x1f8b   :  { %v8389_v19 = vadd.f32 %v8388_v38, %v8066_v4  ;;  %v13890_v4 = vld [vmem:[%s18603_s18 + $0x28] sm:$0xff]   ;;  %v13893_v38 = vld [vmem:[%s18603_s18 + $0x60] sm:$0xff]  }
0x1f8d   :  { %v8390_v37 = vpack.c.bf16 %v8389_v19, %v8389_v19  ;;  %v13894_v19 = vld [vmem:[%s18603_s18 + $0x20] sm:$0xff]  }
0x1f8f   :  { %8411 = vrot.lane.b32.xlu1 %v8390_v37, %s14288_s28  ;;  %v8392_v6 = vshrl.u32 %v8390_v37, 16  ;;  %v8397_v31 = vshll.u32 %v8390_v37, 16 }
0x1f91   :  { %v8403_v60 = vrot.slane %v8397_v31, 1  ;;  %v8396_v3 = vrot.slane %v8392_v6, 7  ;;  %v8406_v51 = vrot.slane %v8397_v31, 5  ;;  %v8394_v28 = vrot.slane %v8392_v6, 3 }
0x1f93   :  { %v8404_v32 = vor.u32 %v8403_v60, %v8392_v6  ;;  %v8399_v55 = vor.u32 %v8397_v31, %v8396_v3  ;;  %v13898_v6 = vld [vmem:[%s18603_s18 + $0x18] sm:$0xff]   ;;  %v13901_v3 = vld [vmem:[%s18603_s18 + $0x50] sm:$0xff]  }
0x1f94   :  { %v13899_v31 = vld [vmem:[%s18603_s18 + $0xd8] sm:$0xff]  }
0x1f95   :  { %v8408_v35 = vsel %vm17612_vm3, %v8404_v32, %v8406_v51  ;;  %v8401_v11 = vsel %vm19466_vm12, %v8394_v28, %v8399_v55  ;;  %vm8632_vm3 = vcmp.eq.s32.totalorder %v19375_v44, %v17976_v5  ;;  %v13900_v60 = vld [vmem:[%s18603_s18 + $0x98] sm:$0xff]   ;;  %v13902_v32 = vld [vmem:[%s18603_s18 + $0x10] sm:$0xff]   ;;  %v13905_v55 = vld [vmem:[%s18603_s18 + $0x48] sm:$0xff]  }
0x1f96   :  { %v8409_v14 = vsel %vm17616_vm6, %v8408_v35, 0  ;;  %v8402_v47 = vsel %vm19457_vm14, %v8401_v11, 0  ;;  %vm8645_vm6 = vcmask 64512   ;;  %v17981_v20 = vsel %vm8632_vm3, 1.0, %v19133_v13  ;;  %v13903_v51 = vld [vmem:[%s18603_s18 + $0xd0] sm:$0xff]   ;;  %v13906_v35 = vld [vmem:[%s18603_s18 + $0x8] sm:$0xff]  }
0x1f97   :  { %8522 = vrot.lane.b32.xlu0 %v8409_v14, %s14288_s28  ;;  %vm8640_vm14 = vcmp.eq.s32.totalorder %v19372_v16, %v17986_v39  ;;  %v13892_v16 = vld [vmem:[%s18603_s18 + $0xa8] sm:$0xff]   ;;  %v13904_v28 = vld [vmem:[%s18603_s18 + $0x90] sm:$0xff]   ;;  %vm18915_vm3 = vcmp.eq.s32.totalorder %v19411_v43, %v19469_v33 }
0x1f98   :  { %v18026_v15 = vsel %vm8640_vm14, 1.0, %v19133_v13  ;;  %v13907_v11 = vld [vmem:[%s18603_s18 + $0xc8] sm:$0xff]   ;;  %vm19493_vm14 = vmmov %vm19492_vm5 }
0x1f99   :  { %v13908_v14 = vld [vmem:[%s18603_s18 + $0x88] sm:$0xff]  }
0x2001   :  { %v8412_v40 = vpop.permute.xlu1 %8411 }
0x2002   :  { %v8415_v8 = vsel %vm19467_vm8, %v8402_v47, %v8412_v40  ;;  %v13909_v40 = vld [vmem:[%s18603_s18 + $0x40] sm:$0xff]  }
0x2003   :  { %12971 = vmatmul.mubr.bf16.vlgmr.msra.gmra.mxu1 %v8415_v8  ;;  %v13910_v47 = vld [vmem:[%s18603_s18] sm:$0xff]  }
0x2004   :  { %12996 = vmatprep.mubr.msk.f32.mxu1 %vm8645_vm6, %v17991_v10  ;;  %v13911_v8 = vld [vmem:[%s18603_s18 + $0xc0] sm:$0xff]  }
0x2009   :  { %v8523_v2 = vpop.permute.xlu0 %8522 }
0x200a   :  { %v8525_v24 = vsel %vm19468_vm7, %v8390_v37, %v8523_v2  ;;  %v13897_v37 = vld [vmem:[%s18603_s18 + $0x58] sm:$0xff]   ;;  %v13912_v2 = vld [vmem:[%s18603_s18 + $0x80] sm:$0xff]  }
0x200b   :  { %12991 = vmatmul.mubr.bf16.vlgmr.msra.gmra.mxu0 %v8525_v24  ;;  %v13913_v24 = vld [vmem:[%s18603_s18 + $0x178] sm:$0xff]  }
0x200c   :  { %13001 = vmatprep.mubr.msk.f32.mxu0 %vm8645_vm6, %v17981_v20 }
0x20c3   :  { %v8515_v17 = vpop.f32.mrf.mxu1 }
0x20c4   :  { %12999 = vmatprep.subr.mxu0 %v8515_v17 }
0x20c5   :  { %v12972_v42 = vpop.f32.mrf.mxu1  ;;  %13000 = vmatpush3.msra.mxu0 %v8515_v17 }
0x20c6   :  { %13002 = vmatmul.mubr.msk.f32.vlgmr.msra.gmra.mxu0 %vm8645_vm6, %v18001_v62  ;;  %12685 = vmatprep.subr.bf16.mxu0 %v13883_v21 }
0x20c7   :  { %v8518_v41 = vpop.f32.mrf.mxu1  ;;  %11931 = vmatprep.mubr.msk.bf16.mxu0 %vm19471_vm15, %v19470_v26  ;;  %12686 = vmatpush3.bf16.msra.mxu0 %v13884_v30 }
0x20c8   :  { %12687 = vmatprep.subr.bf16.mxu0 %v13887_v22  ;;  %v8808_v22 = vld [vmem:[#allocation2 + $0x31] ss:$0 sm:$0xff] }
0x20c9   :  { %v12973_v18 = vpop.f32.mrf.mxu1 }
0x20cb   :  { %v8625_v56 = vpop.f32.mrf.mxu0  ;;  %12688 = vmatpush3.bf16.msra.mxu0 %v13888_v36 }
0x20cc   :  { %12994 = vmatprep.subr.mxu1 %v8625_v56  ;;  %12689 = vmatprep.subr.bf16.mxu0 %v13891_v45 }
0x20cd   :  { %v12992_v59 = vpop.f32.mrf.mxu0  ;;  %12995 = vmatpush3.msra.mxu1 %v8625_v56 }
0x20ce   :  { %12997 = vmatmul.mubr.msk.f32.vlgmr.msra.gmra.mxu1 %vm8645_vm6, %v18026_v15  ;;  %12663 = vmatprep.subr.bf16.mxu1 %v13881_v46  ;;  %v13914_v59 = vld [vmem:[%s18603_s18 + $0x138] sm:$0xff]  }
0x20cf   :  { %v8628_v49 = vpop.f32.mrf.mxu0  ;;  %12664 = vmatpush3.bf16.msra.mxu1 %v13882_v48  ;;  %12690 = vmatpush3.bf16.msra.mxu0 %v13892_v16 }
0x20d0   :  { %12665 = vmatprep.subr.bf16.mxu1 %v13885_v29  ;;  %12691 = vmatprep.subr.bf16.mxu0 %v13895_v25  ;;  %v13915_v49 = vld [vmem:[%s18603_s18 + $0x170] sm:$0xff]  }
0x20d1   :  { %v12993_v0 = vpop.f32.mrf.mxu0 }
0x20d2   :  { %v13916_v0 = vld [vmem:[%s18603_s18 + $0x130] sm:$0xff]  }
0x20d3   :  { %12666 = vmatpush3.bf16.msra.mxu1 %v13886_v53  ;;  %12692 = vmatpush3.bf16.msra.mxu0 %v13896_v23 }
0x20d4   :  { %12667 = vmatprep.subr.bf16.mxu1 %v13889_v1  ;;  %12693 = vmatprep.subr.bf16.mxu0 %v13899_v31  ;;  %v19474_v1 = vld [vmem:[#allocation36_spill] sm:$0xff]  ;;  %v13922_v31 = vld [vmem:[%s18603_s18 + $0x118] sm:$0xff]  }
0x20d7   :  { %12668 = vmatpush3.bf16.msra.mxu1 %v13890_v4  ;;  %12694 = vmatpush3.bf16.msra.mxu0 %v13900_v60  ;;  %v13917_v4 = vld [vmem:[%s18603_s18 + $0x168] sm:$0xff]   ;;  %v13923_v60 = vld [vmem:[%s18603_s18 + $0x150] sm:$0xff]  }
0x20d8   :  { %12669 = vmatprep.subr.bf16.mxu1 %v13893_v38  ;;  %12695 = vmatprep.subr.bf16.mxu0 %v13903_v51  ;;  %v13918_v38 = vld [vmem:[%s18603_s18 + $0x128] sm:$0xff]  }
0x20d9   :  { %v13926_v51 = vld [vmem:[%s18603_s18 + $0x108] sm:$0xff]  }
0x20db   :  { %12670 = vmatpush3.bf16.msra.mxu1 %v13894_v19  ;;  %12696 = vmatpush3.bf16.msra.mxu0 %v13904_v28  ;;  %v13919_v19 = vld [vmem:[%s18603_s18 + $0x160] sm:$0xff]  }
0x20dc   :  { %12671 = vmatprep.subr.bf16.mxu1 %v13897_v37  ;;  %12697 = vmatprep.subr.bf16.mxu0 %v13907_v11  ;;  %v13920_v37 = vld [vmem:[%s18603_s18 + $0x120] sm:$0xff]   ;;  %v19476_v11 = vld [vmem:[#allocation64_spill] sm:$0xff] }
0x20dd   :  { %v13927_v28 = vld [vmem:[%s18603_s18 + $0x140] sm:$0xff]  }
0x20df   :  { %12672 = vmatpush3.bf16.msra.mxu1 %v13898_v6  ;;  %12698 = vmatpush3.bf16.msra.mxu0 %v13908_v14  ;;  %v13921_v6 = vld [vmem:[%s18603_s18 + $0x158] sm:$0xff]   ;;  %v8816_v14 = vand.u32 7, %v19476_v11 }
0x20e0   :  { %12673 = vmatprep.subr.bf16.mxu1 %v13901_v3  ;;  %12699 = vmatprep.subr.bf16.mxu0 %v13911_v8  ;;  %v13924_v3 = vld [vmem:[%s18603_s18 + $0x110] sm:$0xff]  }
0x20e1   :  { %vm18176_vm0 = vcmp.eq.s32.totalorder %v8816_v14, %v19469_v33 }
0x20e3   :  { %12674 = vmatpush3.bf16.msra.mxu1 %v13902_v32  ;;  %12700 = vmatpush3.bf16.msra.mxu0 %v13912_v2  ;;  %v13925_v32 = vld [vmem:[%s18603_s18 + $0x148] sm:$0xff]  }
0x20e4   :  { %12675 = vmatprep.subr.bf16.mxu1 %v13905_v55  ;;  %13004 = vmatprep.subr.mxu0 %v19133_v13  ;;  %v13928_v55 = vld [vmem:[%s18603_s18 + $0x100] sm:$0xff]  }
0x20e7   :  { %12676 = vmatpush3.bf16.msra.mxu1 %v13906_v35  ;;  %v19475_v35 = vld [vmem:[#allocation50_spill] sm:$0xff] }
0x20e8   :  { %12677 = vmatprep.subr.bf16.mxu1 %v13909_v40 }
0x20eb   :  { %12678 = vmatpush3.bf16.msra.mxu1 %v13910_v47  ;;  %v19479_v47 = vld [vmem:[#allocation66_spill] sm:$0xff] }
0x20ec   :  { %12707 = vmatprep.subr.bf16.mxu1 %v13913_v24  ;;  %v8815_v8 = vand.u32 7, %v19479_v47  ;;  %v19482_v24 = vld [vmem:[#allocation69_spill] sm:$0xff] }
0x20ee   :  { %vm18186_vm1 = vcmp.eq.s32.totalorder %v8815_v8, %v19469_v33 }
0x2186   :  { %v13003_v21 = vpop.f32.mrf.mxu0 }
0x2188   :  { %v8799_v41 = vpop.f32.mrf.mxu0 }
0x218e   :  { %v12998_v17 = vpop.f32.mrf.mxu1 }
0x218f   :  { %v8805_v30 = vadd.f32 %v13003_v21, %v12998_v17  ;;  %v8814_v21 = vand.u32 7, %v19482_v24 }
0x2190   :  { %v8718_v42 = vpop.f32.mrf.mxu1 }
0x2191   :  { %v8800_v26 = vadd.f32 %v8799_v41, %v8718_v42  ;;  %v8810_v36 = vadd.f32 %v8808_v22, %v8805_v30  ;;  %vm18196_vm2 = vcmp.eq.s32.totalorder %v8814_v21, %v19469_v33  ;;  %v19485_v30 = vld [vmem:[#allocation72_spill] sm:$0xff]  ;;  %v8812_v41 = vand.u32 7, %v19281_v50 }
0x2193   :  { %v8809_v45 = vadd.f32 %v8808_v22, %v8800_v26  ;;  %v8813_v22 = vand.u32 7, %v19485_v30  ;;  %vm18216_vm8 = vcmp.eq.s32.totalorder %v8812_v41, %v19469_v33 }
0x2195   :  { %v8845_v18 = vpack.c.bf16 %v8810_v36, %v8809_v45  ;;  %vm18206_vm13 = vcmp.eq.s32.totalorder %v8813_v22, %v19469_v33  ;;  %v8811_v36 = vand.u32 7, %v19285_v9 }
0x2197   :  { %v8847_v46 = vshrl.u32 %v8845_v18, 16  ;;  %v8851_v56 = vshll.u32 %v8845_v18, 16  ;;  %9280 = vmatprep.mubr.bf16.mxu1 %v8845_v18  ;;  %vm18226_vm7 = vcmp.eq.s32.totalorder %v8811_v36, %v19469_v33 }
0x2199   :  { %v8849_v48 = vrot.slane %v8847_v46, 7  ;;  %v8857_v16 = vrot.slane %v8851_v56, 1 }
0x219b   :  { %v8853_v29 = vor.u32 %v8851_v56, %v8849_v48  ;;  %v8858_v25 = vor.u32 %v8857_v16, %v8847_v46 }
0x219d   :  { %v8855_v53 = vsel %vm19466_vm12, %v8849_v48, %v8853_v29  ;;  %v8861_v23 = vsel %vm19472_vm11, %v8858_v25, %v8857_v16  ;;  %v8959_v25 = vld [vmem:[#allocation2 + $0x32] ss:$0 sm:$0xff] }
0x219e   :  { %11930 = vmatmul.mubr.msk.bf16.vlgmr.msra.gmra.mxu1 %vm19471_vm15, %v8855_v53  ;;  %11932 = vmatmul.mubr.msk.bf16.vlgmr.msra.gmra.mxu0 %vm19473_vm4, %v8861_v23 }
0x219f   :  { %12708 = vmatpush3.bf16.msra.mxu1 %v13914_v59  ;;  %11933 = vmatprep.mubr.msk.bf16.mxu1 %vm19473_vm4, %v19474_v1 }
0x21a0   :  { %12709 = vmatprep.subr.bf16.mxu1 %v13915_v49  ;;  %13020 = vmatprep.mubr.msk.f32.mxu0 %vm19423_vm10, %v19133_v13 }
0x21a1   :  { %13005 = vmatpush3.msk.msra.mxu0 %vm18176_vm0, %v19073_v12 }
0x21a2   :  { %13006 = vmatprep.subr.mxu0 %v19133_v13 }
0x21a3   :  { %12710 = vmatpush3.bf16.msra.mxu1 %v13916_v0  ;;  %13007 = vmatpush3.msk.msra.mxu0 %vm18186_vm1, %v19073_v12 }
0x21a4   :  { %12711 = vmatprep.subr.bf16.mxu1 %v13917_v4  ;;  %13008 = vmatprep.subr.mxu0 %v19133_v13 }
0x21a5   :  { %13009 = vmatpush3.msk.msra.mxu0 %vm18196_vm2, %v19073_v12 }
0x21a6   :  { %13010 = vmatprep.subr.mxu0 %v19133_v13 }
0x21a7   :  { %12712 = vmatpush3.bf16.msra.mxu1 %v13918_v38  ;;  %13011 = vmatpush3.msk.msra.mxu0 %vm18206_vm13, %v19073_v12 }
0x21a8   :  { %12713 = vmatprep.subr.bf16.mxu1 %v13919_v19  ;;  %13012 = vmatprep.subr.mxu0 %v19133_v13 }
0x21a9   :  { %13013 = vmatpush3.msk.msra.mxu0 %vm18216_vm8, %v19073_v12 }
0x21aa   :  { %13014 = vmatprep.subr.mxu0 %v19133_v13 }
0x21ab   :  { %12714 = vmatpush3.bf16.msra.mxu1 %v13920_v37  ;;  %13015 = vmatpush3.msk.msra.mxu0 %vm18226_vm7, %v19073_v12 }
0x21ac   :  { %12715 = vmatprep.subr.bf16.mxu1 %v13921_v6  ;;  %13016 = vmatprep.subr.mxu0 %v19133_v13 }
0x21ad   :  { %13017 = vmatpush3.msk.msra.mxu0 %vm18915_vm3, %v19073_v12 }
0x21ae   :  { %13018 = vmatprep.subr.mxu0 %v19133_v13 }
0x21af   :  { %12716 = vmatpush3.bf16.msra.mxu1 %v13922_v31  ;;  %13019 = vmatpush3.msk.msra.mxu0 %vm18914_vm9, %v19073_v12  ;;  %vm19494_vm9 = vmmov %vm19492_vm5 }
0x21b0   :  { %12717 = vmatprep.subr.bf16.mxu1 %v13923_v60  ;;  %13023 = vmatprep.subr.mxu0 %v19133_v13 }
0x21b3   :  { %12718 = vmatpush3.bf16.msra.mxu1 %v13924_v3 }
0x21b4   :  { %12719 = vmatprep.subr.bf16.mxu1 %v13925_v32 }
0x21b7   :  { %12720 = vmatpush3.bf16.msra.mxu1 %v13926_v51 }
0x21b8   :  { %12721 = vmatprep.subr.bf16.mxu1 %v13927_v28 }
0x21bb   :  { %12722 = vmatpush3.bf16.msra.mxu1 %v13928_v55 }
0x21bc   :  { %13047 = vmatprep.subr.mxu1 %v19133_v13 }
0x21be   :  { %9363 = vmatmul.mubr.bf16.vlgmr.msra.gmra.mxu1 %v19475_v35 }
0x21bf   :  { %13049 = vmatprep.mubr.msk.f32.mxu1 %vm19423_vm10, %v19133_v13 }
0x225e   :  { %v12679_v18 = vpop.f32.mrf.mxu1  ;;  %v12701_v56 = vpop.f32.mrf.mxu0 }
0x2260   :  { %v12680_v46 = vpop.f32.mrf.mxu1  ;;  %v12702_v16 = vpop.f32.mrf.mxu0 }
0x2261   :  { %v12681_v29 = vadd.f32 %v12680_v46, %v12679_v18  ;;  %v12703_v0 = vadd.f32 %v12702_v16, %v12701_v56  ;;  %v8841_v18 = vand.u32 7, %v19469_v33  ;;  %v13945_v46 = vld [vmem:[#allocation21 + $0x28] sm:$0xff]  }
0x2262   :  { %v12682_v48 = vpop.f32.mrf.mxu1  ;;  %v12704_v49 = vpop.f32.mrf.mxu0 }
0x2263   :  { %v9283_v53 = vadd.f32 %v12681_v29, %v8959_v25  ;;  %vm18255_vm3 = vcmp.eq.s32.totalorder %v8841_v18, %v19375_v44  ;;  %v13940_v18 = vld [vmem:[%s18604_s19 + $0x50] sm:$0xff]  }
0x2264   :  { %v12683_v59 = vpop.f32.mrf.mxu1  ;;  %v12705_v4 = vpop.f32.mrf.mxu0  ;;  %13048 = vmatpush3.msk.msra.mxu1 %vm18255_vm3, %v19073_v12 }
0x2265   :  { %v12684_v23 = vadd.f32 %v12683_v59, %v12682_v48  ;;  %v9324_v19 = vadd.f32 %v12703_v0, %v9283_v53  ;;  %v12706_v60 = vadd.f32 %v12705_v4, %v12704_v49  ;;  %9899 = vmatprep.subr.bf16.mxu1 %v19412_v61 }
0x2267   :  { %v9286_v37 = vadd.f32 %v12684_v23, %v8959_v25 }
0x2269   :  { %v9327_v51 = vadd.f32 %v12706_v60, %v9286_v37  ;;  %v13929_v60 = vld [vmem:[#allocation19 + $0x8] sm:$0xff]  }
0x227e   :  { %v12723_v1 = vpop.f32.mrf.mxu1 }
0x2280   :  { %v12724_v38 = vpop.f32.mrf.mxu1 }
0x2281   :  { %v12725_v6 = vadd.f32 %v12724_v38, %v12723_v1 }
0x2282   :  { %v12726_v31 = vpop.f32.mrf.mxu1 }
0x2283   :  { %v9365_v3 = vadd.f32 %v12725_v6, %v9324_v19 }
0x2284   :  { %v12727_v32 = vpop.f32.mrf.mxu1 }
0x2285   :  { %v12728_v28 = vadd.f32 %v12727_v32, %v12726_v31  ;;  %v9371_v55 = vmax.f32 %v9365_v3, 0.0  ;;  %v13930_v32 = vld [vmem:[#allocation19] sm:$0xff]  }
0x2287   :  { %v9368_v35 = vadd.f32 %v12728_v28, %v9327_v51  ;;  %v9375_v14 = vsel %vm19492_vm5, %v9371_v55, 0.0  ;;  %vm19498_vm5 = vcmp.eq.s32.totalorder %v19409_v63, %v19469_v33 }
0x2289   :  { %v9372_v11 = vmax.f32 %v9368_v35, 0.0 }
0x228b   :  { %v9376_v47 = vsel %vm19493_vm14, %v9372_v11, 0.0 }
0x228c   :  { %v9377_v8 = vadd.f32 %v9376_v47, %v9375_v14  ;;  %v13931_v14 = vld [vmem:[%s18604_s19 + $0x38] sm:$0xff]   ;;  %v13932_v47 = vld [vmem:[%s18604_s19 + $0x30] sm:$0xff]  }
0x228e   :  { %v9378_v24 = vrot.slane %v9377_v8, 4 }
0x2290   :  { %v9379_v21 = vadd.f32 %v9378_v24, %v9377_v8  ;;  %v13933_v8 = vld [vmem:[%s18604_s19 + $0x28] sm:$0xff]   ;;  %v13934_v24 = vld [vmem:[%s18604_s19 + $0x20] sm:$0xff]  }
0x2292   :  { %v9380_v30 = vrot.slane %v9379_v21, 2 }
0x2294   :  { %v9381_v22 = vadd.f32 %v9380_v30, %v9379_v21  ;;  %v13935_v21 = vld [vmem:[%s18604_s19 + $0x18] sm:$0xff]   ;;  %v13936_v30 = vld [vmem:[%s18604_s19 + $0x10] sm:$0xff]  }
0x2296   :  { %v9382_v41 = vrot.slane %v9381_v22, 1 }
0x2298   :  { %v9383_v36 = vadd.f32 %v9382_v41, %v9381_v22  ;;  %v13937_v22 = vld [vmem:[%s18604_s19 + $0x8] sm:$0xff]   ;;  %v13938_v41 = vld [vmem:[%s18604_s19] sm:$0xff]  }
0x229a   :  { %13021 = vmatmul.mubr.msk.f32.vlgmr.msra.gmra.mxu0 %vm19494_vm9, %v9383_v36  ;;  %vm19497_vm9 = vcmp.eq.s32.totalorder %v19411_v43, %v19469_v33  ;;  %v13939_v36 = vld [vmem:[%s18604_s19 + $0x58] sm:$0xff]  }
0x229b   :  { %13025 = vmatprep.mubr.msk.f32.mxu0 %vm19423_vm10, %v19133_v13  ;;  %13024 = vmatpush3.msk.msra.mxu0 %vm18255_vm3, %v19073_v12 }
0x229c   :  { %13028 = vmatprep.subr.mxu0 %v19133_v13 }
0x235a   :  { %v9453_v56 = vpop.f32.mrf.mxu0 }
0x235b   :  { %13026 = vmatmul.mubr.msk.f32.vlgmr.msra.gmra.mxu0 %vm8645_vm6, %v9453_v56  ;;  %v13941_v56 = vld [vmem:[%s18604_s19 + $0x48] sm:$0xff]  }
0x235c   :  { %v13022_v48 = vpop.f32.mrf.mxu0  ;;  %13029 = vmatpush3.msk.msra.mxu0 %vm18176_vm0, %v19073_v12  ;;  %13044 = vmatprep.mubr.msk.f32.mxu0 %vm19423_vm10, %v19133_v13 }
0x235d   :  { %13030 = vmatprep.subr.mxu0 %v19133_v13  ;;  %v13942_v48 = vld [vmem:[%s18604_s19 + $0x40] sm:$0xff]  }
0x235e   :  { %13031 = vmatpush3.msk.msra.mxu0 %vm18186_vm1, %v19073_v12 }
0x235f   :  { %13032 = vmatprep.subr.mxu0 %v19133_v13 }
0x2360   :  { %13033 = vmatpush3.msk.msra.mxu0 %vm18196_vm2, %v19073_v12 }
0x2361   :  { %13034 = vmatprep.subr.mxu0 %v19133_v13 }
0x2362   :  { %13035 = vmatpush3.msk.msra.mxu0 %vm18206_vm13, %v19073_v12 }
0x2363   :  { %13036 = vmatprep.subr.mxu0 %v19133_v13 }
0x2364   :  { %13037 = vmatpush3.msk.msra.mxu0 %vm18216_vm8, %v19073_v12 }
0x2365   :  { %13038 = vmatprep.subr.mxu0 %v19133_v13 }
0x2366   :  { %13039 = vmatpush3.msk.msra.mxu0 %vm18226_vm7, %v19073_v12 }
0x2367   :  { %13040 = vmatprep.subr.mxu0 %v19133_v13 }
0x2368   :  { %13041 = vmatpush3.msk.msra.mxu0 %vm19497_vm9, %v19073_v12  ;;  %vm19499_vm9 = vmmov %vm19493_vm14 }
0x2369   :  { %13042 = vmatprep.subr.mxu0 %v19133_v13 }
0x236a   :  { %13043 = vmatpush3.msk.msra.mxu0 %vm19498_vm5, %v19073_v12  ;;  %vm19500_vm5 = vmmov %vm19499_vm9 }
0x236b   :  { %13052 = vmatprep.subr.bf16.mxu0 %v19133_v13 }
0x241b   :  { %v9526_v44 = vpop.f32.mrf.mxu0 }
0x241c   :  { %v9530_v16 = vmul.f32 0.0078125, %v9526_v44 }
0x241d   :  { %v13027_v29 = vpop.f32.mrf.mxu0 }
0x241e   :  { %v9534_v25 = vrot.slane %v9530_v16, %v19407_v7 }
0x2420   :  { %v18305_v59 = vsub.f32 %v9371_v55, %v9534_v25  ;;  %v18307_v49 = vsub.f32 %v9372_v11, %v9534_v25 }
0x2422   :  { %v9537_v53 = vmul.f32 %v18305_v59, %v18305_v59  ;;  %v9538_v23 = vmul.f32 %v18307_v49, %v18307_v49 }
0x2424   :  { %v9539_v1 = vsel %vm19493_vm14, %v9537_v53, 0.0  ;;  %v9540_v0 = vsel %vm19499_vm9, %v9538_v23, 0.0  ;;  %vm19501_vm14 = vcmask 261120   ;;  %vm19502_vm9 = vcmp.eq.s32.totalorder %v19411_v43, %v19469_v33  ;;  %v9710_v53 = vld [vmem:[#allocation2 + $0x35] ss:$0 sm:$0xff] }
0x2425   :  { %v9541_v4 = vadd.f32 %v9540_v0, %v9539_v1  ;;  %v9373_v23 = vld [vmem:[#allocation2 + $0x33] ss:$0 sm:$0xff] }
0x2427   :  { %v9542_v38 = vrot.slane %v9541_v4, 4 }
0x2429   :  { %v9543_v19 = vadd.f32 %v9542_v38, %v9541_v4 }
0x242b   :  { %v9544_v37 = vrot.slane %v9543_v19, 2 }
0x242d   :  { %v9545_v6 = vadd.f32 %v9544_v37, %v9543_v19  ;;  %v9374_v37 = vld [vmem:[#allocation2 + $0x34] ss:$0 sm:$0xff] }
0x242f   :  { %v9546_v31 = vrot.slane %v9545_v6, 1 }
0x2431   :  { %v9547_v3 = vadd.f32 %v9546_v31, %v9545_v6 }
0x2433   :  { %13045 = vmatmul.mubr.msk.f32.vlgmr.msra.gmra.mxu0 %vm19500_vm5, %v9547_v3  ;;  %vm19503_vm5 = vcmp.eq.s32.totalorder %v19409_v63, %v19469_v33 }
0x2434   :  { %13053 = vmatpush3.bf16.msra.mxu0 %v13929_v60  ;;  %13056 = vmatprep.mubr.msk.bf16.mxu0 %vm19423_vm10, %v19133_v13 }
0x2435   :  { %13054 = vmatprep.subr.bf16.mxu0 %v19133_v13 }
0x2438   :  { %13055 = vmatpush3.bf16.msra.mxu0 %v13930_v32 }
0x2439   :  { %13060 = vmatprep.subr.mxu0 %v19133_v13 }
0x243b   :  { %13057 = vmatmul.mubr.msk.bf16.vlgmr.msra.gmra.mxu0 %vm19501_vm14, %v19453_v54  ;;  %vm19504_vm14 = vcmask 523264  }
0x243c   :  { %13061 = vmatpush3.msk.msra.mxu0 %vm18176_vm0, %v19073_v12  ;;  %13076 = vmatprep.mubr.msk.f32.mxu0 %vm19423_vm10, %v19133_v13 }
0x243d   :  { %13062 = vmatprep.subr.mxu0 %v19133_v13 }
0x243e   :  { %13063 = vmatpush3.msk.msra.mxu0 %vm18186_vm1, %v19073_v12 }
0x243f   :  { %13064 = vmatprep.subr.mxu0 %v19133_v13 }
0x2440   :  { %13065 = vmatpush3.msk.msra.mxu0 %vm18196_vm2, %v19073_v12 }
0x2441   :  { %13066 = vmatprep.subr.mxu0 %v19133_v13 }
0x2442   :  { %13067 = vmatpush3.msk.msra.mxu0 %vm18206_vm13, %v19073_v12 }
0x2443   :  { %13068 = vmatprep.subr.mxu0 %v19133_v13 }
0x2444   :  { %13069 = vmatpush3.msk.msra.mxu0 %vm18216_vm8, %v19073_v12 }
0x2445   :  { %13070 = vmatprep.subr.mxu0 %v19133_v13 }
0x2446   :  { %13071 = vmatpush3.msk.msra.mxu0 %vm18226_vm7, %v19073_v12 }
0x2447   :  { %13072 = vmatprep.subr.mxu0 %v19133_v13 }
0x2448   :  { %13073 = vmatpush3.msk.msra.mxu0 %vm19502_vm9, %v19073_v12  ;;  %vm19505_vm9 = vmmov %vm19504_vm14 }
0x2449   :  { %13074 = vmatprep.subr.mxu0 %v19133_v13 }
0x244a   :  { %13075 = vmatpush3.msk.msra.mxu0 %vm19503_vm5, %v19073_v12  ;;  %vm19506_vm5 = vmmov %vm19505_vm9 }
0x244b   :  { %13079 = vmatprep.subr.mxu0 %v19133_v13 }
0x24f3   :  { %v9617_v54 = vpop.f32.mrf.mxu0 }
0x24f4   :  { %13050 = vmatmul.mubr.msk.f32.vlgmr.msra.gmra.mxu1 %vm8645_vm6, %v9617_v54 }
0x24f5   :  { %v13046_v51 = vpop.f32.mrf.mxu0  ;;  %9900 = vmatpush1.bf16.msra.mxu1 %v13931_v14 }
0x24f6   :  { %9901 = vmatprep.subr.bf16.mxu1 %v19412_v61 }
0x24f9   :  { %9902 = vmatpush1.bf16.msra.mxu1 %v13932_v47 }
0x24fa   :  { %9903 = vmatprep.subr.bf16.mxu1 %v19412_v61 }
0x24fb   :  { %v9757_v28 = vpop.f32.mrf.mxu0 }
0x24fc   :  { %v9758_v1 = vadd.f32 %v9757_v28, %v9710_v53 }
0x24fd   :  { %v13058_v55 = vpop.f32.mrf.mxu0  ;;  %9904 = vmatpush1.bf16.msra.mxu1 %v13933_v8 }
0x24fe   :  { %9905 = vmatprep.subr.bf16.mxu1 %v19412_v61  ;;  %v9763_v38 = vmax.f32 %v9758_v1, 0.0 }
0x24ff   :  { %v9760_v35 = vpop.f32.mrf.mxu0 }
0x2500   :  { %v9767_v31 = vrot.slane %v9763_v38, %v19407_v7  ;;  %v9771_v60 = vrot.slane %v9763_v38, %v19337_v57 }
0x2501   :  { %v13059_v11 = vpop.f32.mrf.mxu0  ;;  %9906 = vmatpush1.bf16.msra.mxu1 %v13934_v24 }
0x2502   :  { %9907 = vmatprep.subr.bf16.mxu1 %v19412_v61 }
0x2505   :  { %9908 = vmatpush1.bf16.msra.mxu1 %v13935_v21 }
0x2506   :  { %9909 = vmatprep.subr.bf16.mxu1 %v19412_v61 }
0x2509   :  { %9910 = vmatpush1.bf16.msra.mxu1 %v13936_v30 }
0x250a   :  { %9911 = vmatprep.subr.bf16.mxu1 %v19412_v61 }
0x250d   :  { %9912 = vmatpush1.bf16.msra.mxu1 %v13937_v22  ;;  %v9823_v22 = vld [vmem:[#allocation2 + $0x36] ss:$0 sm:$0xff] }
0x250e   :  { %9913 = vmatprep.subr.bf16.mxu1 %v19412_v61 }
0x2511   :  { %9914 = vmatpush1.bf16.msra.mxu1 %v13938_v41 }
0x2512   :  { %9923 = vmatprep.subr.bf16.mxu1 %v19412_v61 }
0x2515   :  { %9924 = vmatpush2.bf16.msra.mxu1 %v13939_v36 }
0x2516   :  { %9925 = vmatprep.subr.bf16.mxu1 %v19412_v61 }
0x2519   :  { %9926 = vmatpush2.bf16.msra.mxu1 %v13940_v18 }
0x251a   :  { %9927 = vmatprep.subr.bf16.mxu1 %v19412_v61 }
0x251d   :  { %9928 = vmatpush2.bf16.msra.mxu1 %v13941_v56 }
0x251e   :  { %9929 = vmatprep.subr.bf16.mxu1 %v19412_v61 }
0x2521   :  { %9930 = vmatpush2.bf16.msra.mxu1 %v13942_v48 }
0x2522   :  { %13128 = vmatprep.subr.bf16.mxu1 %v19133_v13 }
0x25b4   :  { %v9690_v44 = vpop.f32.mrf.mxu1 }
0x25b5   :  { %v9694_v16 = vmul.f32 0.0078125, %v9690_v44 }
0x25b6   :  { %v13051_v29 = vpop.f32.mrf.mxu1 }
0x25b7   :  { %v9695_v25 = vadd.f32 1e-05, %v9694_v16 }
0x25b9   :  { %13987 = vrsqrt.f32 %v9695_v25 }
0x25c6   :  { %v13988_v0 = vpop.eup %13987 }
0x25c7   :  { %v9697_v4 = vmul.f32 %v13988_v0, %v9373_v23 }
0x25c9   :  { %v9701_v19 = vrot.slane %v9697_v4, %v19407_v7 }
0x25cb   :  { %v9702_v6 = vmul.f32 %v9701_v19, %v18305_v59  ;;  %v9703_v61 = vmul.f32 %v9701_v19, %v18307_v49 }
0x25cd   :  { %v9704_v3 = vadd.f32 %v9702_v6, %v9374_v37  ;;  %v9705_v32 = vadd.f32 %v9703_v61, %v9374_v37 }
0x25cf   :  { %v9772_v54 = vadd.f32 %v9767_v31, %v9704_v3  ;;  %v9773_v51 = vadd.f32 %v9771_v60, %v9705_v32 }
0x25d1   :  { %v9774_v55 = vpack.c.bf16 %v9773_v51, %v9772_v54 }
0x25d3   :  { %9793 = vrot.lane.b32.xlu1 %v9774_v55, %s14288_s28  ;;  %v9776_v28 = vshrl.u32 %v9774_v55, 16  ;;  %v9780_v35 = vshll.u32 %v9774_v55, 16 }
0x25d5   :  { %v9786_v11 = vrot.slane %v9780_v35, 1  ;;  %v9778_v14 = vrot.slane %v9776_v28, 7 }
0x25d7   :  { %v9787_v47 = vor.u32 %v9786_v11, %v9776_v28  ;;  %v9782_v8 = vor.u32 %v9780_v35, %v9778_v14 }
0x25d9   :  { %v9790_v59 = vsel %vm19472_vm11, %v9787_v47, %v9786_v11  ;;  %v9784_v49 = vsel %vm19466_vm12, %v9778_v14, %v9782_v8  ;;  %v13943_v14 = vld [vmem:[#allocation21 + $0x38] sm:$0xff]   ;;  %v13944_v8 = vld [vmem:[#allocation21 + $0x30] sm:$0xff]  }
0x25da   :  { %v9791_v57 = vsel %vm19473_vm4, %v9790_v59, 0  ;;  %v9785_v21 = vsel %vm19471_vm15, %v9784_v49, 0  ;;  %v13946_v47 = vld [vmem:[#allocation22 + $0x38] sm:$0xff]   ;;  %v13950_v59 = vld [vmem:[#allocation22 + $0x28] sm:$0xff]   ;;  %v13947_v49 = vld [vmem:[#allocation21 + $0x20] sm:$0xff]  }
0x25db   :  { %11971 = vmatprep.mubr.msk.bf16.mxu1 %vm19504_vm14, %v9791_v57  ;;  %vm19507_vm14 = vmmov %vm19506_vm5  ;;  %v13952_v57 = vld [vmem:[#allocation22 + $0x20] sm:$0xff]  }
0x2645   :  { %v9794_v24 = vpop.permute.xlu1 %9793 }
0x2646   :  { %v9797_v30 = vsel %vm19505_vm9, %v9785_v21, %v9794_v24  ;;  %vm19508_vm9 = vmmov %vm19506_vm5  ;;  %v13949_v24 = vld [vmem:[#allocation21 + $0x18] sm:$0xff]  }
0x2647   :  { %9932 = vmatmul.mubr.bf16.vlgmr.msra.gmra.mxu1 %v9797_v30  ;;  %v13954_v21 = vld [vmem:[#allocation22 + $0x18] sm:$0xff]   ;;  %v13951_v30 = vld [vmem:[#allocation21 + $0x10] sm:$0xff]  }
0x2648   :  { %13144 = vmatprep.mubr.msk.bf16.mxu1 %vm19423_vm10, %v19133_v13  ;;  %13129 = vmatpush3.bf16.msra.mxu1 %v13946_v47 }
0x2649   :  { %13130 = vmatprep.subr.bf16.mxu1 %v19133_v13 }
0x2707   :  { %v9933_v41 = vpop.f32.mrf.mxu1 }
0x2708   :  { %v9934_v36 = vadd.f32 %v9933_v41, %v9823_v22  ;;  %v13953_v41 = vld [vmem:[#allocation21 + $0x8] sm:$0xff]  }
0x2709   :  { %v9935_v18 = vpop.f32.mrf.mxu1 }
0x270a   :  { %v9940_v48 = vmax.f32 %v9934_v36, 0.0  ;;  %v13955_v36 = vld [vmem:[#allocation21] sm:$0xff]  }
0x270b   :  { %v9936_v56 = vpop.f32.mrf.mxu1 }
0x270c   :  { %v9937_v44 = vadd.f32 %v9936_v56, %v9823_v22  ;;  %v9944_v25 = vsel %vm19506_vm5, %v9940_v48, 0.0  ;;  %v13956_v22 = vld [vmem:[#allocation22 + $0x10] sm:$0xff]  }
0x270d   :  { %v9938_v16 = vpop.f32.mrf.mxu1 }
0x270e   :  { %v9941_v29 = vmax.f32 %v9937_v44, 0.0  ;;  %v9942_v16 = vld [vmem:[#allocation2 + $0x37] ss:$0 sm:$0xff] }
0x2710   :  { %v9945_v53 = vsel %vm19507_vm14, %v9941_v29, 0.0 }
0x2711   :  { %v9946_v23 = vadd.f32 %v9945_v53, %v9944_v25 }
0x2713   :  { %v9947_v1 = vrot.slane %v9946_v23, 4 }
0x2715   :  { %v9948_v0 = vadd.f32 %v9947_v1, %v9946_v23  ;;  %v13958_v23 = vld [vmem:[#allocation22] sm:$0xff]  }
0x2717   :  { %v9949_v4 = vrot.slane %v9948_v0, 2 }
0x2719   :  { %v9950_v38 = vadd.f32 %v9949_v4, %v9948_v0  ;;  %v9943_v0 = vld [vmem:[#allocation2 + $0x40] ss:$0 sm:$0xff] }
0x271b   :  { %v9951_v19 = vrot.slane %v9950_v38, 1 }
0x271d   :  { %v9952_v37 = vadd.f32 %v9951_v19, %v9950_v38 }
0x271f   :  { %13077 = vmatmul.mubr.msk.f32.vlgmr.msra.gmra.mxu0 %vm19508_vm9, %v9952_v37  ;;  %vm10523_vm9 = vcmp.eq.s32.totalorder %v19281_v50, %v17986_v39 }
0x2720   :  { %13080 = vmatpush3.msk.msra.mxu0 %vm18255_vm3, %v19073_v12  ;;  %13081 = vmatprep.mubr.msk.f32.mxu0 %vm19423_vm10, %v19133_v13 }
0x2721   :  { %13084 = vmatprep.subr.mxu0 %v19133_v13 }
0x27df   :  { %v10022_v6 = vpop.f32.mrf.mxu0 }
0x27e0   :  { %13082 = vmatmul.mubr.msk.f32.vlgmr.msra.gmra.mxu0 %vm8645_vm6, %v10022_v6 }
0x27e1   :  { %v13078_v61 = vpop.f32.mrf.mxu0  ;;  %13085 = vmatpush3.msk.msra.mxu0 %vm18176_vm0, %v19073_v12  ;;  %13100 = vmatprep.mubr.msk.f32.mxu0 %vm19423_vm10, %v19133_v13  ;;  %vm19509_vm0 = vcmp.eq.s32.totalorder %v19411_v43, %v19469_v33 }
0x27e2   :  { %13086 = vmatprep.subr.mxu0 %v19133_v13 }
0x27e3   :  { %13087 = vmatpush3.msk.msra.mxu0 %vm18186_vm1, %v19073_v12  ;;  %vm19510_vm1 = vcmp.eq.s32.totalorder %v19409_v63, %v19469_v33 }
0x27e4   :  { %13088 = vmatprep.subr.mxu0 %v19133_v13 }
0x27e5   :  { %13089 = vmatpush3.msk.msra.mxu0 %vm18196_vm2, %v19073_v12  ;;  %vm19511_vm2 = vmmov %vm19506_vm5  ;;  %vm10522_vm5 = vcmp.eq.s32.totalorder %v19285_v9, %v17986_v39  ;;  %v13964_v39 = vld [vmem:[%s18608_s23 + $0x10] sm:$0xff]  }
0x27e6   :  { %13090 = vmatprep.subr.mxu0 %v19133_v13 }
0x27e7   :  { %13091 = vmatpush3.msk.msra.mxu0 %vm18206_vm13, %v19073_v12  ;;  %vm19512_vm13 = vmmov %vm19511_vm2 }
0x27e8   :  { %13092 = vmatprep.subr.mxu0 %v19133_v13 }
0x27e9   :  { %13093 = vmatpush3.msk.msra.mxu0 %vm18216_vm8, %v19073_v12  ;;  %vm19513_vm8 = vmmov %vm19511_vm2 }
0x27ea   :  { %13094 = vmatprep.subr.mxu0 %v19133_v13 }
0x27eb   :  { %13095 = vmatpush3.msk.msra.mxu0 %vm18226_vm7, %v19073_v12 }
0x27ec   :  { %13096 = vmatprep.subr.mxu0 %v19133_v13 }
0x27ed   :  { %13097 = vmatpush3.msk.msra.mxu0 %vm19509_vm0, %v19073_v12 }
0x27ee   :  { %13098 = vmatprep.subr.mxu0 %v19133_v13 }
0x27ef   :  { %13099 = vmatpush3.msk.msra.mxu0 %vm19510_vm1, %v19073_v12 }
0x27f0   :  { %13103 = vmatprep.subr.mxu0 %v19133_v13 }
0x28a0   :  { %v10095_v40 = vpop.f32.mrf.mxu0 }
0x28a1   :  { %v10099_v2 = vmul.f32 0.0078125, %v10095_v40 }
0x28a2   :  { %v13083_v17 = vpop.f32.mrf.mxu0 }
0x28a3   :  { %v10103_v42 = vrot.slane %v10099_v2, %v19407_v7 }
0x28a5   :  { %v18472_v26 = vsub.f32 %v9940_v48, %v10103_v42  ;;  %v18474_v45 = vsub.f32 %v9941_v29, %v10103_v42  ;;  %v13957_v29 = vld [vmem:[#allocation22 + $0x8] sm:$0xff]  }
0x28a7   :  { %v10106_v43 = vmul.f32 %v18472_v26, %v18472_v26  ;;  %v10107_v31 = vmul.f32 %v18474_v45, %v18474_v45 }
0x28a9   :  { %v10108_v63 = vsel %vm19511_vm2, %v10106_v43, 0.0  ;;  %v10109_v33 = vsel %vm19512_vm13, %v10107_v31, 0.0  ;;  %vm19524_vm13 = vcmask 392192  }
0x28aa   :  { %v10110_v60 = vadd.f32 %v10109_v33, %v10108_v63 }
0x28ac   :  { %v10111_v3 = vrot.slane %v10110_v60, 4 }
0x28ae   :  { %v10112_v32 = vadd.f32 %v10111_v3, %v10110_v60 }
0x28b0   :  { %v10113_v54 = vrot.slane %v10112_v32, 2 }
0x28b2   :  { %v10114_v51 = vadd.f32 %v10113_v54, %v10112_v32 }
0x28b4   :  { %v10115_v55 = vrot.slane %v10114_v51, 1 }
0x28b6   :  { %v10116_v28 = vadd.f32 %v10115_v55, %v10114_v51 }
0x28b8   :  { %13101 = vmatmul.mubr.msk.f32.vlgmr.msra.gmra.mxu0 %vm19513_vm8, %v10116_v28  ;;  %v13960_v28 = vld [vmem:[%s18608_s23 + $0x30] sm:$0xff]   ;;  %vm19525_vm8 = vmmov %vm19524_vm13 }
0x28b9   :  { %13104 = vmatpush3.msk.msra.mxu0 %vm18255_vm3, %v19073_v12  ;;  %13105 = vmatprep.mubr.msk.f32.mxu0 %vm19423_vm10, %v19133_v13  ;;  %v13948_v12 = vld [vmem:[#allocation22 + $0x30] sm:$0xff]  }
0x28ba   :  { %13108 = vmatprep.subr.bf16.mxu0 %v19133_v13  ;;  %13131 = vmatpush3.bf16.msra.mxu1 %v13948_v12 }
0x28bb   :  { %13132 = vmatprep.subr.bf16.mxu1 %v19133_v13 }
0x28be   :  { %13133 = vmatpush3.bf16.msra.mxu1 %v13950_v59 }
0x28bf   :  { %13134 = vmatprep.subr.bf16.mxu1 %v19133_v13 }
0x28c2   :  { %13135 = vmatpush3.bf16.msra.mxu1 %v13952_v57 }
0x28c3   :  { %13136 = vmatprep.subr.bf16.mxu1 %v19133_v13 }
0x28c6   :  { %13137 = vmatpush3.bf16.msra.mxu1 %v13954_v21 }
0x28c7   :  { %13138 = vmatprep.subr.bf16.mxu1 %v19133_v13 }
0x28ca   :  { %13139 = vmatpush3.bf16.msra.mxu1 %v13956_v22 }
0x28cb   :  { %13140 = vmatprep.subr.bf16.mxu1 %v19133_v13 }
0x28ce   :  { %13141 = vmatpush3.bf16.msra.mxu1 %v13957_v29  ;;  %v10741_v29 = vld [vmem:[#allocation2 + $0x42] ss:$0 sm:$0xff] }
0x28cf   :  { %13142 = vmatprep.subr.bf16.mxu1 %v19133_v13 }
0x28d2   :  { %13143 = vmatpush3.bf16.msra.mxu1 %v13958_v23 }
0x2978   :  { %v10186_v35 = vpop.f32.mrf.mxu0 }
0x2979   :  { %13106 = vmatmul.mubr.msk.f32.vlgmr.msra.gmra.mxu0 %vm8645_vm6, %v10186_v35  ;;  %vm19515_vm6 = vcmask 130048   ;;  %v13961_v35 = vld [vmem:[%s18608_s23 + $0x28] sm:$0xff]  }
0x297a   :  { %v13102_v11 = vpop.f32.mrf.mxu0  ;;  %13124 = vmatprep.mubr.msk.bf16.mxu0 %vm19423_vm10, %v19133_v13  ;;  %13109 = vmatpush3.bf16.msra.mxu0 %v13943_v14  ;;  %vm19514_vm10 = vmmov %vm19511_vm2 }
0x297b   :  { %13110 = vmatprep.subr.bf16.mxu0 %v19133_v13  ;;  %vm19518_vm7 = vmmov %vm19515_vm6  ;;  %v13966_v11 = vld [vmem:[%s18608_s23] sm:$0xff]  }
0x297c   :  { %vm19519_vm3 = vmmov %vm19515_vm6 }
0x297d   :  { %vm19520_vm14 = vmmov %vm19519_vm3 }
0x297e   :  { %13111 = vmatpush3.bf16.msra.mxu0 %v13944_v8  ;;  %vm19521_vm0 = vmmov %vm19519_vm3 }
0x297f   :  { %13112 = vmatprep.subr.bf16.mxu0 %v19133_v13  ;;  %vm19522_vm1 = vmmov %vm19521_vm0 }
0x2982   :  { %13113 = vmatpush3.bf16.msra.mxu0 %v13945_v46  ;;  %v10718_v46 = vld [vmem:[#allocation2 + $0x41] ss:$0 sm:$0xff] }
0x2983   :  { %13114 = vmatprep.subr.bf16.mxu0 %v19133_v13 }
0x2986   :  { %13115 = vmatpush3.bf16.msra.mxu0 %v13947_v49 }
0x2987   :  { %13116 = vmatprep.subr.bf16.mxu0 %v19133_v13 }
0x298a   :  { %13117 = vmatpush3.bf16.msra.mxu0 %v13949_v24 }
0x298b   :  { %13118 = vmatprep.subr.bf16.mxu0 %v19133_v13 }
0x298e   :  { %13119 = vmatpush3.bf16.msra.mxu0 %v13951_v30 }
0x298f   :  { %13120 = vmatprep.subr.bf16.mxu0 %v19133_v13 }
0x2992   :  { %13121 = vmatpush3.bf16.msra.mxu0 %v13953_v41 }
0x2993   :  { %13122 = vmatprep.subr.bf16.mxu0 %v19133_v13 }
0x2996   :  { %13123 = vmatpush3.bf16.msra.mxu0 %v13955_v36 }
0x2a39   :  { %v10259_v18 = vpop.f32.mrf.mxu0 }
0x2a3a   :  { %v10263_v56 = vmul.f32 0.0078125, %v10259_v18 }
0x2a3b   :  { %v13107_v48 = vpop.f32.mrf.mxu0 }
0x2a3c   :  { %v10264_v44 = vadd.f32 1e-05, %v10263_v56 }
0x2a3e   :  { %13989 = vrsqrt.f32 %v10264_v44 }
0x2a4b   :  { %v13990_v25 = vpop.eup %13989 }
0x2a4c   :  { %v10266_v53 = vmul.f32 %v13990_v25, %v9942_v16 }
0x2a4e   :  { %v10270_v1 = vrot.slane %v10266_v53, %v19407_v7 }
0x2a50   :  { %v10271_v4 = vmul.f32 %v10270_v1, %v18472_v26  ;;  %v10272_v38 = vmul.f32 %v10270_v1, %v18474_v45 }
0x2a52   :  { %v10273_v19 = vadd.f32 %v10271_v4, %v9943_v0  ;;  %v10274_v37 = vadd.f32 %v10272_v38, %v9943_v0 }
0x2a54   :  { %v10275_v6 = vpack.c.bf16 %v10274_v37, %v10273_v19 }
0x2a56   :  { %10294 = vrot.lane.b32.xlu0 %v10275_v6, %s14288_s28  ;;  %v10277_v61 = vshrl.u32 %v10275_v6, 16  ;;  %v10281_v40 = vshll.u32 %v10275_v6, 16 }
0x2a58   :  { %v10287_v2 = vrot.slane %v10281_v40, 1  ;;  %v10279_v17 = vrot.slane %v10277_v61, 7 }
0x2a5a   :  { %v10288_v42 = vor.u32 %v10287_v2, %v10277_v61  ;;  %v10283_v43 = vor.u32 %v10281_v40, %v10279_v17 }
0x2a5c   :  { %v10291_v7 = vsel %vm19472_vm11, %v10288_v42, %v10287_v2  ;;  %v10285_v26 = vsel %vm19466_vm12, %v10279_v17, %v10283_v43  ;;  %vm19516_vm11 = vmmov %vm19511_vm2 }
0x2a5d   :  { %v10292_v45 = vsel %vm19473_vm4, %v10291_v7, 0  ;;  %v10286_v63 = vsel %vm19471_vm15, %v10285_v26, 0  ;;  %vm19517_vm12 = vmmov %vm19515_vm6  ;;  %vm10516_vm4 = vcmp.eq.s32.totalorder %v19285_v9, %v17976_v5  ;;  %vm10517_vm15 = vcmp.eq.s32.totalorder %v19281_v50, %v17976_v5  ;;  %v13959_v5 = vld [vmem:[%s18608_s23 + $0x38] sm:$0xff]   ;;  %v13962_v50 = vld [vmem:[%s18608_s23 + $0x20] sm:$0xff]  }
0x2a5e   :  { %10406 = vrot.lane.b32.xlu1 %v10292_v45, %s14288_s28  ;;  %v12010_v32 = vsel %vm10516_vm4, 1.0, %v19133_v13  ;;  %v12011_v54 = vsel %vm10517_vm15, 1.0, %v19133_v13  ;;  %v12013_v9 = vsel %vm10523_vm9, 1.0, %v19133_v13  ;;  %vm19523_vm2 = vmmov %vm19521_vm0 }
0x2ac8   :  { %v10295_v31 = vpop.permute.xlu0 %10294 }
0x2ac9   :  { %v10298_v33 = vsel %vm19514_vm10, %v10286_v63, %v10295_v31  ;;  %vm19526_vm10 = vmmov %vm19525_vm8 }
0x2aca   :  { %13125 = vmatmul.mubr.bf16.vlgmr.msra.gmra.mxu0 %v10298_v33 }
0x2acb   :  { %13152 = vmatprep.mubr.msk.f32.mxu0 %vm19515_vm6, %v17991_v10  ;;  %vm19527_vm6 = vmmov %vm19525_vm8 }
0x2ad0   :  { %v10407_v34 = vpop.permute.xlu1 %10406 }
0x2ad1   :  { %v10409_v60 = vsel %vm19516_vm11, %v10275_v6, %v10407_v34 }
0x2ad2   :  { %13145 = vmatmul.mubr.bf16.vlgmr.msra.gmra.mxu1 %v10409_v60 }
0x2ad3   :  { %13162 = vmatprep.mubr.msk.f32.mxu1 %vm19517_vm12, %v17981_v20 }
0x2b8a   :  { %v10398_v52 = vpop.f32.mrf.mxu0 }
0x2b8c   :  { %v13126_v27 = vpop.f32.mrf.mxu0 }
0x2b8e   :  { %v10401_v3 = vpop.f32.mrf.mxu0 }
0x2b8f   :  { %13158 = vmatprep.subr.mxu1 %v10401_v3 }
0x2b90   :  { %v13127_v58 = vpop.f32.mrf.mxu0  ;;  %13159 = vmatpush3.msra.mxu1 %v10401_v3 }
0x2b91   :  { %13160 = vmatprep.subr.mxu1 %v10398_v52 }
0x2b92   :  { %v10509_v10 = vpop.f32.mrf.mxu1  ;;  %13161 = vmatpush3.msra.mxu1 %v10398_v52 }
0x2b93   :  { %13163 = vmatmul.mubr.msk.f32.vlgmr.msra.gmra.mxu1 %vm19518_vm7, %v18001_v62  ;;  %v12012_v62 = vsel %vm10522_vm5, 1.0, %v19133_v13  ;;  %v13963_v13 = vld [vmem:[%s18608_s23 + $0x18] sm:$0xff]  }
0x2b94   :  { %v13146_v20 = vpop.f32.mrf.mxu1  ;;  %13165 = vmatprep.mubr.msk.f32.mxu1 %vm19519_vm3, %v12010_v32 }
0x2b96   :  { %v10512_v51 = vpop.f32.mrf.mxu1 }
0x2b97   :  { %13148 = vmatprep.subr.mxu0 %v10512_v51  ;;  %13166 = vmatmul.mubr.msk.f32.gmra.mxu1 %vm19520_vm14, %v12011_v54 }
0x2b98   :  { %v13147_v55 = vpop.f32.mrf.mxu1  ;;  %13149 = vmatpush3.msra.mxu0 %v10512_v51 }
0x2b99   :  { %13150 = vmatprep.subr.mxu0 %v10509_v10 }
0x2b9a   :  { %13151 = vmatpush3.msra.mxu0 %v10509_v10 }
0x2b9b   :  { %13153 = vmatmul.mubr.msk.f32.vlgmr.msra.gmra.mxu0 %vm19521_vm0, %v18026_v15  ;;  %13168 = vmatprep.subr.bf16.mxu0 %v13959_v5  ;;  %v13965_v15 = vld [vmem:[%s18608_s23 + $0x8] sm:$0xff]  }
0x2b9c   :  { %13155 = vmatprep.mubr.msk.f32.mxu0 %vm19522_vm1, %v12012_v62  ;;  %13169 = vmatpush3.bf16.msra.mxu0 %v13959_v5 }
0x2b9d   :  { %13170 = vmatprep.subr.bf16.mxu0 %v13960_v28 }
0x2b9f   :  { %13156 = vmatmul.mubr.msk.f32.gmra.mxu0 %vm19523_vm2, %v12013_v9 }
0x2ba0   :  { %13171 = vmatpush3.bf16.msra.mxu0 %v13960_v28 }
0x2ba1   :  { %13172 = vmatprep.subr.bf16.mxu0 %v13961_v35 }
0x2ba4   :  { %13173 = vmatpush3.bf16.msra.mxu0 %v13961_v35 }
0x2ba5   :  { %13174 = vmatprep.subr.bf16.mxu0 %v13962_v50 }
0x2ba8   :  { %13175 = vmatpush3.bf16.msra.mxu0 %v13962_v50 }
0x2ba9   :  { %13176 = vmatprep.subr.bf16.mxu0 %v13963_v13 }
0x2bac   :  { %13177 = vmatpush3.bf16.msra.mxu0 %v13963_v13 }
0x2bad   :  { %13178 = vmatprep.subr.bf16.mxu0 %v13964_v39 }
0x2bb0   :  { %13179 = vmatpush3.bf16.msra.mxu0 %v13964_v39 }
0x2bb1   :  { %13180 = vmatprep.subr.bf16.mxu0 %v13965_v15 }
0x2bb4   :  { %13181 = vmatpush3.bf16.msra.mxu0 %v13965_v15 }
0x2bb5   :  { %13182 = vmatprep.subr.bf16.mxu0 %v13966_v11 }
0x2bb8   :  { %13183 = vmatpush3.bf16.msra.mxu0 %v13966_v11 }
0x2c53   :  { %v13164_v14 = vpop.f32.mrf.mxu1 }
0x2c55   :  { %v10699_v47 = vpop.f32.mrf.mxu1 }
0x2c57   :  { %v13167_v49 = vpop.f32.mrf.mxu1 }
0x2c59   :  { %v10709_v36 = vpop.f32.mrf.mxu1 }
0x2c5b   :  { %v13154_v8 = vpop.f32.mrf.mxu0 }
0x2c5c   :  { %v10705_v12 = vadd.f32 %v13164_v14, %v13154_v8 }
0x2c5d   :  { %v10604_v59 = vpop.f32.mrf.mxu0 }
0x2c5e   :  { %v10700_v57 = vadd.f32 %v10699_v47, %v10604_v59  ;;  %v10720_v21 = vadd.f32 %v10718_v46, %v10705_v12 }
0x2c5f   :  { %v13157_v24 = vpop.f32.mrf.mxu0 }
0x2c60   :  { %v10719_v30 = vadd.f32 %v10718_v46, %v10700_v57  ;;  %v10715_v22 = vadd.f32 %v13167_v49, %v13157_v24 }
0x2c61   :  { %v10614_v41 = vpop.f32.mrf.mxu0 }
0x2c62   :  { %v10710_v18 = vadd.f32 %v10709_v36, %v10614_v41  ;;  %v10723_v56 = vpack.c.bf16 %v10720_v21, %v10719_v30  ;;  %v10722_v48 = vadd.f32 %v10718_v46, %v10715_v22 }
0x2c64   :  { %v10721_v44 = vadd.f32 %v10718_v46, %v10710_v18  ;;  %13184 = vmatprep.mubr.bf16.mxu0 %v10723_v56 }
0x2c66   :  { %v10724_v16 = vpack.c.bf16 %v10722_v48, %v10721_v44 }
0x2c68   :  { %13185 = vmatmul.mubr.bf16.vlgmr.msra.gmra.mxu0 %v10724_v16 }
0x2d28   :  { %v13186_v25 = vpop.f32.mrf.mxu0 }
0x2d29   :  { %v10833_v53 = vadd.f32 %v13186_v25, %v10741_v29 }
0x2d2a   :  { %v10824_v23 = vpop.f32.mrf.mxu0 }
0x2d2b   :  { %10841 = vst.msk [vmem:[%s18609_s24 + $0x10] sm:$0xff] %vm19524_vm13, %v10833_v53  ;;  %v10825_v1 = vadd.f32 %v10824_v23, %v10741_v29 }
0x2d2c   :  { %v13187_v0 = vpop.f32.mrf.mxu0 }
0x2d2d   :  { %10839 = vst.msk [vmem:[%s18609_s24] sm:$0xff] %vm19525_vm8, %v10825_v1  ;;  %v10836_v4 = vadd.f32 %v13187_v0, %v10741_v29 }
0x2d2e   :  { %v10827_v38 = vpop.f32.mrf.mxu0 }
0x2d2f   :  { %10842 = vst.msk [vmem:[%s18609_s24 + $0x18] sm:$0xff] %vm19526_vm10, %v10836_v4  ;;  %v10828_v19 = vadd.f32 %v10827_v38, %v10741_v29 }
0x2d31   :  { %10840 = vst.msk [vmem:[%s18609_s24 + $0x8] sm:$0xff] %vm19527_vm6, %v10828_v19 }
0x2d32   :  { %10847 = vsyncpa [#allocation3], 1 }
0x2d33   :  { %10848 = vsyncpa [#allocation5], 1 }
0x2d34   :  { %10849 = vsyncpa [#allocation8], 1 }
0x2d35   :  { %10850 = vsyncpa [#allocation11], 1 }
0x2d36   :  { %10851 = vsyncpa [#allocation14], 1 }
0x2d37   :  { %10852 = vsyncpa [#allocation17], 1 }
0x2d38   :  { %10853 = vsyncpa [#allocation20], 1 }
0x2d39   :  { %10854 = vsyncpa [#allocation23], 1 }

</bundles_post_ra>
